<compile_context>
chip_gen: v5e
topology: v5e:2x2
jax: 0.10.0
libtpu: 0.0.40
codegen_flags: <defaults>
</compile_context>

<pallas_src>
import functools

import jax
import jax.numpy as jnp
from jax import lax
from jax.experimental import pallas as pl
from jax.experimental.pallas import tpu as pltpu

DTYPE_ACT = jnp.bfloat16
_VMEM_LIMIT = 32 * 1024 * 1024


# ----------------------------------------------------------------------------
# Shared epilogue: bias already added; optional InstanceNorm, then activation.
# ----------------------------------------------------------------------------
def _epilogue(acc, post, mask=None, n_valid=None):
    if post == "in_lrelu":
        if mask is None:
            mean = jnp.mean(acc, axis=0, keepdims=True)
            d = acc - mean
            var = jnp.mean(d * d, axis=0, keepdims=True)
        else:
            inv_n = 1.0 / float(n_valid)
            mean = jnp.sum(acc * mask, axis=0, keepdims=True) * inv_n
            d = (acc - mean) * mask
            var = jnp.sum(d * d, axis=0, keepdims=True) * inv_n
        acc = (acc - mean) * lax.rsqrt(var + 1e-5)
    if post in ("lrelu", "in_lrelu"):
        acc = jnp.where(acc >= 0.0, acc, 0.2 * acc)
    elif post == "sigmoid":
        acc = pl.reciprocal(1.0 + jnp.exp(-acc), approx=True)
    else:
        assert post in ("lrelu", "in_lrelu", "sigmoid"), post
    return acc


# ----------------------------------------------------------------------------
# Stride-1 conv kernel: 9 accumulated matmuls over row-shifted flat views.
#   x_ref : (1, Lin,  Cin)   bf16, Lin = (H+3)*(W+2)  (padded, flattened)
#   w_ref : (9, Cin, Coutp)  bf16
#   b_ref : (1, Coutp)       f32
#   m_ref : (Lout, 1)        f32 validity mask (col < W), for InstanceNorm
#   o_ref : (1, Lout, Coutp) out dtype, Lout = H*(W+2) (padded-width layout)
# ----------------------------------------------------------------------------
def _make_s1_kernel(wp, lout, n_valid, post):
    def kernel(x_ref, w_ref, b_ref, m_ref, o_ref):
        coutp = o_ref.shape[-1]
        acc = jnp.zeros((lout, coutp), jnp.float32)
        for dy in range(3):
            for dx in range(3):
                xs = x_ref[0, pl.ds(dy * wp + dx, lout), :]        # (Lout, Cin)
                acc = acc + jnp.dot(xs, w_ref[dy * 3 + dx],
                                    preferred_element_type=jnp.float32)
        acc = acc + b_ref[...].astype(jnp.float32)
        mask = m_ref[...].astype(jnp.float32) if post == "in_lrelu" else None
        acc = _epilogue(acc, post, mask=mask, n_valid=n_valid)
        o_ref[0] = acc.astype(o_ref.dtype)

    return kernel


def _conv_s1(x, w_oihw, b, *, post, out_dtype):
    """3x3 / stride-1 / pad-1 conv (+post) on NHWC bf16 input."""
    n, h, w, cin = x.shape
    cout = w_oihw.shape[0]
    # Pad the final (sigmoid, Cout=1) layer to 128 lanes for dense stores.
    coutp = ((cout + 127) // 128) * 128 if post == "sigmoid" else cout

    wp_ = w + 2
    lin = (h + 3) * wp_          # H padded by (1,2) so shifted reads stay in-bounds
    lout = h * wp_               # output in padded-width layout

    xpad = jnp.pad(x, ((0, 0), (1, 2), (1, 1), (0, 0)))
    xflat = xpad.reshape(n, lin, cin).astype(DTYPE_ACT)

    # (Cout, Cin, 3, 3) -> (3, 3, Cin, Cout) -> (9, Cin, Coutp)
    w9 = jnp.transpose(w_oihw, (2, 3, 1, 0)).reshape(9, cin, cout)
    bvec = b.reshape(1, cout).astype(jnp.float32)
    if coutp != cout:
        w9 = jnp.pad(w9, ((0, 0), (0, 0), (0, coutp - cout)))
        bvec = jnp.pad(bvec, ((0, 0), (0, coutp - cout)))
    w9 = w9.astype(DTYPE_ACT)

    # Validity mask over the flattened (H, Wp) rows: column index < W.
    mask = (jnp.arange(lout, dtype=jnp.int32) % wp_ < w)
    mask = mask.astype(jnp.float32).reshape(lout, 1)

    flops = 2 * n * lout * 9 * cin * coutp
    transcendentals = n * lout * coutp if post in ("sigmoid", "in_lrelu") else 0
    bytes_accessed = (n * lin * cin * 2 + 9 * cin * coutp * 2
                      + n * lout * coutp * jnp.dtype(out_dtype).itemsize)

    out = pl.pallas_call(
        _make_s1_kernel(wp_, lout, h * w, post),
        out_shape=jax.ShapeDtypeStruct((n, lout, coutp), out_dtype),
        grid=(n,),
        in_specs=[
            pl.BlockSpec((1, lin, cin), lambda i: (i, 0, 0)),
            pl.BlockSpec((9, cin, coutp), lambda i: (0, 0, 0)),
            pl.BlockSpec((1, coutp), lambda i: (0, 0)),
            pl.BlockSpec((lout, 1), lambda i: (0, 0)),
        ],
        out_specs=pl.BlockSpec((1, lout, coutp), lambda i: (i, 0, 0)),
        compiler_params=pltpu.CompilerParams(
            dimension_semantics=("parallel",),
            vmem_limit_bytes=_VMEM_LIMIT),
        cost_estimate=pl.CostEstimate(flops=flops,
                                      transcendentals=transcendentals,
                                      bytes_accessed=bytes_accessed),
    )(xflat, w9, bvec, mask)

    # Drop the padded-width garbage columns and the padded output channels.
    return out.reshape(n, h, wp_, coutp)[:, :, :w, :cout]


# ----------------------------------------------------------------------------
# Stride-2 layers (spatially small, no InstanceNorm): fused im2col matmul.
# ----------------------------------------------------------------------------
def _make_mm_kernel(post):
    def kernel(x_ref, w_ref, b_ref, o_ref):
        acc = jnp.dot(x_ref[0], w_ref[...], preferred_element_type=jnp.float32)
        acc = acc + b_ref[...].astype(jnp.float32)
        acc = _epilogue(acc, post)
        o_ref[0] = acc.astype(o_ref.dtype)

    return kernel


def _im2col_s2(x):
    n, h, w, cin = x.shape
    xp = jnp.pad(x, ((0, 0), (1, 1), (1, 1), (0, 0)))
    ho = (h - 1) // 2 + 1
    wo = (w - 1) // 2 + 1
    cols = []
    for dy in range(3):
        for dx in range(3):
            xs = lax.slice(
                xp,
                (0, dy, dx, 0),
                (n, dy + 2 * (ho - 1) + 1, dx + 2 * (wo - 1) + 1, cin),
                (1, 2, 2, 1))
            cols.append(xs.reshape(n, ho * wo, cin))
    return jnp.concatenate(cols, axis=-1), ho, wo


def _conv_s2(x, w_oihw, b, *, post, out_dtype):
    n = x.shape[0]
    cout, cin = w_oihw.shape[0], w_oihw.shape[1]
    cols, ho, wo = _im2col_s2(x)
    p = ho * wo
    k = 9 * cin
    cols = cols.astype(DTYPE_ACT)
    wmat = jnp.transpose(w_oihw, (2, 3, 1, 0)).reshape(k, cout).astype(DTYPE_ACT)
    bvec = b.reshape(1, cout).astype(jnp.float32)

    flops = 2 * n * p * k * cout
    bytes_accessed = (n * p * k * 2 + k * cout * 2
                      + n * p * cout * jnp.dtype(out_dtype).itemsize)

    out = pl.pallas_call(
        _make_mm_kernel(post),
        out_shape=jax.ShapeDtypeStruct((n, p, cout), out_dtype),
        grid=(n,),
        in_specs=[
            pl.BlockSpec((1, p, k), lambda i: (i, 0, 0)),
            pl.BlockSpec((k, cout), lambda i: (0, 0)),
            pl.BlockSpec((1, cout), lambda i: (0, 0)),
        ],
        out_specs=pl.BlockSpec((1, p, cout), lambda i: (i, 0, 0)),
        compiler_params=pltpu.CompilerParams(
            dimension_semantics=("parallel",),
            vmem_limit_bytes=_VMEM_LIMIT),
        cost_estimate=pl.CostEstimate(flops=flops, transcendentals=0,
                                      bytes_accessed=bytes_accessed),
    )(cols, wmat, bvec)
    return out.reshape(n, ho, wo, cout)


# ----------------------------------------------------------------------------
# discriminator: static layer config + array-only parameters (fixes the jit
# "str is not an abstract array" failure).
# ----------------------------------------------------------------------------
def _layer_cfg(in_nc, out_nc, nf):
    return (
        (in_nc,  nf,     1, "lrelu"),
        (nf,     nf * 2, 2, "lrelu"),
        (nf * 2, nf * 4, 1, "in_lrelu"),
        (nf * 4, nf * 4, 2, "lrelu"),
        (nf * 4, nf * 8, 1, "in_lrelu"),
        (nf * 8, nf * 8, 1, "in_lrelu"),
        (nf * 8, out_nc, 1, "sigmoid"),
    )


def make_weights(key, cfg):
    # utils.initialize_weights: DCGAN-style N(0, 0.02) conv weights, zero bias.
    weights = []
    for (cin, cout, _stride, _post) in cfg:
        key, wk = jax.random.split(key)
        w = 0.02 * jax.random.normal(wk, (cout, cin, 3, 3), jnp.float32)
        b = jnp.zeros((cout,), jnp.float32)
        weights.append((w, b))
    return weights


@functools.partial(jax.jit, static_argnames=("cfg",))
def discriminator_forward(x_nchw, weights, *, cfg):
    x = jnp.transpose(x_nchw, (0, 2, 3, 1)).astype(DTYPE_ACT)   # NCHW -> NHWC
    n_layers = len(cfg)
    for li, ((w, b), (_cin, _cout, stride, post)) in enumerate(zip(weights, cfg)):
        out_dtype = jnp.float32 if li == n_layers - 1 else DTYPE_ACT
        if stride == 1:
            x = _conv_s1(x, w, b, post=post, out_dtype=out_dtype)
        else:
            x = _conv_s2(x, w, b, post=post, out_dtype=out_dtype)
    return jnp.transpose(x, (0, 3, 1, 2))                        # NHWC -> NCHW


# ----------------------------------------------------------------------------
# Pure-JAX reference (lax.conv) with the same bf16 input/weight quantization.
# ----------------------------------------------------------------------------
def reference_forward(x_nchw, weights, cfg):
    x = jnp.transpose(x_nchw, (0, 2, 3, 1))
    for (w, b), (_cin, _cout, stride, post) in zip(weights, cfg):
        xq = x.astype(DTYPE_ACT)
        wq = jnp.transpose(w, (2, 3, 1, 0)).astype(DTYPE_ACT)    # HWIO
        y = lax.conv_general_dilated(
            xq, wq, window_strides=(stride, stride), padding=((1, 1), (1, 1)),
            dimension_numbers=("NHWC", "HWIO", "NHWC"),
            preferred_element_type=jnp.float32) + b
        if post == "in_lrelu":
            mean = jnp.mean(y, axis=(1, 2), keepdims=True)
            var = jnp.mean((y - mean) ** 2, axis=(1, 2), keepdims=True)
            y = (y - mean) * lax.rsqrt(var + 1e-5)
        if post in ("lrelu", "in_lrelu"):
            y = jnp.where(y >= 0.0, y, 0.2 * y)
        elif post == "sigmoid":
            y = jax.nn.sigmoid(y)
        x = y
    return jnp.transpose(x, (0, 3, 1, 2))


if __name__ == "__main__":
    in_nc, out_nc, nf = 3, 1, 16
    N, H, W = 2, 16, 16

    key = jax.random.PRNGKey(0)
    key, xk = jax.random.split(key)
    x = jax.random.normal(xk, (N, in_nc, H, W), jnp.float32)     # NCHW like PyTorch
    cfg = _layer_cfg(in_nc, out_nc, nf)
    weights = make_weights(key, cfg)

    out = discriminator_forward(x, weights, cfg=cfg)
    out = jax.block_until_ready(out)
    ref = jax.block_until_ready(reference_forward(x, weights, cfg))

    assert out.shape == (N, out_nc, H // 4, W // 4), out.shape
    max_err = float(jnp.max(jnp.abs(out - ref)))
    assert max_err < 2e-2, max_err

    print("KERNEL_OK")
</pallas_src>

<mosaic_0001>
module attributes {stable_mosaic.version = 11 : i64} {
  func.func @kernel(%arg0: i32, %arg1: memref<1x342x3xbf16, #tpu.memory_space<vmem>>, %arg2: memref<9x3x16xbf16, #tpu.memory_space<vmem>>, %arg3: memref<1x16xf32, #tpu.memory_space<vmem>>, %arg4: memref<288x1xf32, #tpu.memory_space<vmem>>, %arg5: memref<1x288x16xbf16, #tpu.memory_space<vmem>>) attributes {dimension_semantics = [#tpu.dimension_semantics<parallel>], iteration_bounds = array<i64: 2>, scalar_prefetch = 0 : i64, scratch_operands = 0 : i64, tpu.core_type = #tpu.core_type<tc>, window_params = [{transform_indices = @transform_0, window_bounds = array<i64: 1, 342, 3>}, {pipeline_mode = #tpu.pipeline_mode<synchronous>, transform_indices = @transform_1, window_bounds = array<i64: 9, 3, 16>}, {pipeline_mode = #tpu.pipeline_mode<synchronous>, transform_indices = @transform_2, window_bounds = array<i64: 1, 16>}, {pipeline_mode = #tpu.pipeline_mode<synchronous>, transform_indices = @transform_3, window_bounds = array<i64: 288, 1>}, {transform_indices = @transform_4, window_bounds = array<i64: 1, 288, 16>}]} {
    %cst = arith.constant 0.000000e+00 : f32
    %0 = vector.broadcast %cst : f32 to vector<288x16xf32>
    %c0 = arith.constant 0 : index
    %c0_0 = arith.constant 0 : index
    %c0_1 = arith.constant 0 : index
    %1 = vector.load %arg1[%c0, %c0_0, %c0_1] : memref<1x342x3xbf16, #tpu.memory_space<vmem>>, vector<1x288x3xbf16>
    %2 = vector.shape_cast %1 : vector<1x288x3xbf16> to vector<288x3xbf16>
    %c0_2 = arith.constant 0 : index
    %c0_3 = arith.constant 0 : index
    %c0_4 = arith.constant 0 : index
    %3 = vector.load %arg2[%c0_2, %c0_3, %c0_4] : memref<9x3x16xbf16, #tpu.memory_space<vmem>>, vector<1x3x16xbf16>
    %4 = vector.shape_cast %3 : vector<1x3x16xbf16> to vector<3x16xbf16>
    %cst_5 = arith.constant dense<0.000000e+00> : vector<288x16xf32>
    %5 = tpu.matmul %2, %4, %cst_5 {dimension_numbers = #tpu.dot_dimension_numbers<[1], [0], [0], [1], [0, 0, 1, 1], [], []>} : vector<288x3xbf16>, vector<3x16xbf16>, vector<288x16xf32> -> vector<288x16xf32>
    %6 = arith.addf %0, %5 : vector<288x16xf32>
    %c0_6 = arith.constant 0 : index
    %c1 = arith.constant 1 : index
    %c0_7 = arith.constant 0 : index
    %7 = vector.load %arg1[%c0_6, %c1, %c0_7] : memref<1x342x3xbf16, #tpu.memory_space<vmem>>, vector<1x288x3xbf16>
    %8 = vector.shape_cast %7 : vector<1x288x3xbf16> to vector<288x3xbf16>
    %c1_8 = arith.constant 1 : index
    %c0_9 = arith.constant 0 : index
    %c0_10 = arith.constant 0 : index
    %9 = vector.load %arg2[%c1_8, %c0_9, %c0_10] : memref<9x3x16xbf16, #tpu.memory_space<vmem>>, vector<1x3x16xbf16>
    %10 = vector.shape_cast %9 : vector<1x3x16xbf16> to vector<3x16xbf16>
    %cst_11 = arith.constant dense<0.000000e+00> : vector<288x16xf32>
    %11 = tpu.matmul %8, %10, %cst_11 {dimension_numbers = #tpu.dot_dimension_numbers<[1], [0], [0], [1], [0, 0, 1, 1], [], []>} : vector<288x3xbf16>, vector<3x16xbf16>, vector<288x16xf32> -> vector<288x16xf32>
    %12 = arith.addf %6, %11 : vector<288x16xf32>
    %c0_12 = arith.constant 0 : index
    %c2 = arith.constant 2 : index
    %c0_13 = arith.constant 0 : index
    %13 = vector.load %arg1[%c0_12, %c2, %c0_13] : memref<1x342x3xbf16, #tpu.memory_space<vmem>>, vector<1x288x3xbf16>
    %14 = vector.shape_cast %13 : vector<1x288x3xbf16> to vector<288x3xbf16>
    %c2_14 = arith.constant 2 : index
    %c0_15 = arith.constant 0 : index
    %c0_16 = arith.constant 0 : index
    %15 = vector.load %arg2[%c2_14, %c0_15, %c0_16] : memref<9x3x16xbf16, #tpu.memory_space<vmem>>, vector<1x3x16xbf16>
    %16 = vector.shape_cast %15 : vector<1x3x16xbf16> to vector<3x16xbf16>
    %cst_17 = arith.constant dense<0.000000e+00> : vector<288x16xf32>
    %17 = tpu.matmul %14, %16, %cst_17 {dimension_numbers = #tpu.dot_dimension_numbers<[1], [0], [0], [1], [0, 0, 1, 1], [], []>} : vector<288x3xbf16>, vector<3x16xbf16>, vector<288x16xf32> -> vector<288x16xf32>
    %18 = arith.addf %12, %17 : vector<288x16xf32>
    %c0_18 = arith.constant 0 : index
    %c18 = arith.constant 18 : index
    %c0_19 = arith.constant 0 : index
    %19 = vector.load %arg1[%c0_18, %c18, %c0_19] : memref<1x342x3xbf16, #tpu.memory_space<vmem>>, vector<1x288x3xbf16>
    %20 = vector.shape_cast %19 : vector<1x288x3xbf16> to vector<288x3xbf16>
    %c3 = arith.constant 3 : index
    %c0_20 = arith.constant 0 : index
    %c0_21 = arith.constant 0 : index
    %21 = vector.load %arg2[%c3, %c0_20, %c0_21] : memref<9x3x16xbf16, #tpu.memory_space<vmem>>, vector<1x3x16xbf16>
    %22 = vector.shape_cast %21 : vector<1x3x16xbf16> to vector<3x16xbf16>
    %cst_22 = arith.constant dense<0.000000e+00> : vector<288x16xf32>
    %23 = tpu.matmul %20, %22, %cst_22 {dimension_numbers = #tpu.dot_dimension_numbers<[1], [0], [0], [1], [0, 0, 1, 1], [], []>} : vector<288x3xbf16>, vector<3x16xbf16>, vector<288x16xf32> -> vector<288x16xf32>
    %24 = arith.addf %18, %23 : vector<288x16xf32>
    %c0_23 = arith.constant 0 : index
    %c19 = arith.constant 19 : index
    %c0_24 = arith.constant 0 : index
    %25 = vector.load %arg1[%c0_23, %c19, %c0_24] : memref<1x342x3xbf16, #tpu.memory_space<vmem>>, vector<1x288x3xbf16>
    %26 = vector.shape_cast %25 : vector<1x288x3xbf16> to vector<288x3xbf16>
    %c4 = arith.constant 4 : index
    %c0_25 = arith.constant 0 : index
    %c0_26 = arith.constant 0 : index
    %27 = vector.load %arg2[%c4, %c0_25, %c0_26] : memref<9x3x16xbf16, #tpu.memory_space<vmem>>, vector<1x3x16xbf16>
    %28 = vector.shape_cast %27 : vector<1x3x16xbf16> to vector<3x16xbf16>
    %cst_27 = arith.constant dense<0.000000e+00> : vector<288x16xf32>
    %29 = tpu.matmul %26, %28, %cst_27 {dimension_numbers = #tpu.dot_dimension_numbers<[1], [0], [0], [1], [0, 0, 1, 1], [], []>} : vector<288x3xbf16>, vector<3x16xbf16>, vector<288x16xf32> -> vector<288x16xf32>
    %30 = arith.addf %24, %29 : vector<288x16xf32>
    %c0_28 = arith.constant 0 : index
    %c20 = arith.constant 20 : index
    %c0_29 = arith.constant 0 : index
    %31 = vector.load %arg1[%c0_28, %c20, %c0_29] : memref<1x342x3xbf16, #tpu.memory_space<vmem>>, vector<1x288x3xbf16>
    %32 = vector.shape_cast %31 : vector<1x288x3xbf16> to vector<288x3xbf16>
    %c5 = arith.constant 5 : index
    %c0_30 = arith.constant 0 : index
    %c0_31 = arith.constant 0 : index
    %33 = vector.load %arg2[%c5, %c0_30, %c0_31] : memref<9x3x16xbf16, #tpu.memory_space<vmem>>, vector<1x3x16xbf16>
    %34 = vector.shape_cast %33 : vector<1x3x16xbf16> to vector<3x16xbf16>
    %cst_32 = arith.constant dense<0.000000e+00> : vector<288x16xf32>
    %35 = tpu.matmul %32, %34, %cst_32 {dimension_numbers = #tpu.dot_dimension_numbers<[1], [0], [0], [1], [0, 0, 1, 1], [], []>} : vector<288x3xbf16>, vector<3x16xbf16>, vector<288x16xf32> -> vector<288x16xf32>
    %36 = arith.addf %30, %35 : vector<288x16xf32>
    %c0_33 = arith.constant 0 : index
    %c36 = arith.constant 36 : index
    %c0_34 = arith.constant 0 : index
    %37 = vector.load %arg1[%c0_33, %c36, %c0_34] : memref<1x342x3xbf16, #tpu.memory_space<vmem>>, vector<1x288x3xbf16>
    %38 = vector.shape_cast %37 : vector<1x288x3xbf16> to vector<288x3xbf16>
    %c6 = arith.constant 6 : index
    %c0_35 = arith.constant 0 : index
    %c0_36 = arith.constant 0 : index
    %39 = vector.load %arg2[%c6, %c0_35, %c0_36] : memref<9x3x16xbf16, #tpu.memory_space<vmem>>, vector<1x3x16xbf16>
    %40 = vector.shape_cast %39 : vector<1x3x16xbf16> to vector<3x16xbf16>
    %cst_37 = arith.constant dense<0.000000e+00> : vector<288x16xf32>
    %41 = tpu.matmul %38, %40, %cst_37 {dimension_numbers = #tpu.dot_dimension_numbers<[1], [0], [0], [1], [0, 0, 1, 1], [], []>} : vector<288x3xbf16>, vector<3x16xbf16>, vector<288x16xf32> -> vector<288x16xf32>
    %42 = arith.addf %36, %41 : vector<288x16xf32>
    %c0_38 = arith.constant 0 : index
    %c37 = arith.constant 37 : index
    %c0_39 = arith.constant 0 : index
    %43 = vector.load %arg1[%c0_38, %c37, %c0_39] : memref<1x342x3xbf16, #tpu.memory_space<vmem>>, vector<1x288x3xbf16>
    %44 = vector.shape_cast %43 : vector<1x288x3xbf16> to vector<288x3xbf16>
    %c7 = arith.constant 7 : index
    %c0_40 = arith.constant 0 : index
    %c0_41 = arith.constant 0 : index
    %45 = vector.load %arg2[%c7, %c0_40, %c0_41] : memref<9x3x16xbf16, #tpu.memory_space<vmem>>, vector<1x3x16xbf16>
    %46 = vector.shape_cast %45 : vector<1x3x16xbf16> to vector<3x16xbf16>
    %cst_42 = arith.constant dense<0.000000e+00> : vector<288x16xf32>
    %47 = tpu.matmul %44, %46, %cst_42 {dimension_numbers = #tpu.dot_dimension_numbers<[1], [0], [0], [1], [0, 0, 1, 1], [], []>} : vector<288x3xbf16>, vector<3x16xbf16>, vector<288x16xf32> -> vector<288x16xf32>
    %48 = arith.addf %42, %47 : vector<288x16xf32>
    %c0_43 = arith.constant 0 : index
    %c38 = arith.constant 38 : index
    %c0_44 = arith.constant 0 : index
    %49 = vector.load %arg1[%c0_43, %c38, %c0_44] : memref<1x342x3xbf16, #tpu.memory_space<vmem>>, vector<1x288x3xbf16>
    %50 = vector.shape_cast %49 : vector<1x288x3xbf16> to vector<288x3xbf16>
    %c8 = arith.constant 8 : index
    %c0_45 = arith.constant 0 : index
    %c0_46 = arith.constant 0 : index
    %51 = vector.load %arg2[%c8, %c0_45, %c0_46] : memref<9x3x16xbf16, #tpu.memory_space<vmem>>, vector<1x3x16xbf16>
    %52 = vector.shape_cast %51 : vector<1x3x16xbf16> to vector<3x16xbf16>
    %cst_47 = arith.constant dense<0.000000e+00> : vector<288x16xf32>
    %53 = tpu.matmul %50, %52, %cst_47 {dimension_numbers = #tpu.dot_dimension_numbers<[1], [0], [0], [1], [0, 0, 1, 1], [], []>} : vector<288x3xbf16>, vector<3x16xbf16>, vector<288x16xf32> -> vector<288x16xf32>
    %54 = arith.addf %48, %53 : vector<288x16xf32>
    %c0_48 = arith.constant 0 : index
    %c0_49 = arith.constant 0 : index
    %55 = vector.load %arg3[%c0_48, %c0_49] : memref<1x16xf32, #tpu.memory_space<vmem>>, vector<1x16xf32>
    %56 = vector.broadcast %55 : vector<1x16xf32> to vector<288x16xf32>
    %57 = arith.addf %54, %56 : vector<288x16xf32>
    %cst_50 = arith.constant 0.000000e+00 : f32
    %58 = vector.broadcast %cst_50 : f32 to vector<288x16xf32>
    %59 = arith.cmpf oge, %57, %58 : vector<288x16xf32>
    %cst_51 = arith.constant 2.000000e-01 : f32
    %60 = vector.broadcast %cst_51 : f32 to vector<288x16xf32>
    %61 = arith.mulf %60, %57 : vector<288x16xf32>
    %62 = arith.select %59, %57, %61 : vector<288x16xi1>, vector<288x16xf32>
    %63 = arith.truncf %62 : vector<288x16xf32> to vector<288x16xbf16>
    %c0_52 = arith.constant 0 : index
    %c0_53 = arith.constant 0 : index
    %c0_54 = arith.constant 0 : index
    %64 = vector.load %arg5[%c0_52, %c0_53, %c0_54] : memref<1x288x16xbf16, #tpu.memory_space<vmem>>, vector<1x288x16xbf16>
    %65 = vector.shape_cast %64 : vector<1x288x16xbf16> to vector<288x16xbf16>
    %66 = vector.shape_cast %63 : vector<288x16xbf16> to vector<1x288x16xbf16>
    tpu.vector_store %arg5[%c0_52, %c0_53, %c0_54], %66 {strides = array<i32>} : memref<1x288x16xbf16, #tpu.memory_space<vmem>>, vector<1x288x16xbf16>,
    return
  }
  func.func @transform_0(%arg0: i32) -> (i32, i32, i32) {
    %c0_i32 = arith.constant 0 : i32
    %c0_i32_0 = arith.constant 0 : i32
    %c0_i32_1 = arith.constant 0 : i32
    return %arg0, %c0_i32, %c0_i32_0 : i32, i32, i32
  }
  func.func @transform_1(%arg0: i32) -> (i32, i32, i32) {
    %c0_i32 = arith.constant 0 : i32
    %c0_i32_0 = arith.constant 0 : i32
    %c0_i32_1 = arith.constant 0 : i32
    %c0_i32_2 = arith.constant 0 : i32
    return %c0_i32, %c0_i32_0, %c0_i32_1 : i32, i32, i32
  }
  func.func @transform_2(%arg0: i32) -> (i32, i32) {
    %c0_i32 = arith.constant 0 : i32
    %c0_i32_0 = arith.constant 0 : i32
    %c0_i32_1 = arith.constant 0 : i32
    return %c0_i32, %c0_i32_0 : i32, i32
  }
  func.func @transform_3(%arg0: i32) -> (i32, i32) {
    %c0_i32 = arith.constant 0 : i32
    %c0_i32_0 = arith.constant 0 : i32
    %c0_i32_1 = arith.constant 0 : i32
    return %c0_i32, %c0_i32_0 : i32, i32
  }
  func.func @transform_4(%arg0: i32) -> (i32, i32, i32) {
    %c0_i32 = arith.constant 0 : i32
    %c0_i32_0 = arith.constant 0 : i32
    %c0_i32_1 = arith.constant 0 : i32
    return %arg0, %c0_i32, %c0_i32_0 : i32, i32, i32
  }
}

module attributes {stable_mosaic.version = 11 : i64} {
  func.func @kernel(%arg0: i32, %arg1: memref<1x64x144xbf16, #tpu.memory_space<vmem>>, %arg2: memref<144x32xbf16, #tpu.memory_space<vmem>>, %arg3: memref<1x32xf32, #tpu.memory_space<vmem>>, %arg4: memref<1x64x32xbf16, #tpu.memory_space<vmem>>) attributes {dimension_semantics = [#tpu.dimension_semantics<parallel>], iteration_bounds = array<i64: 2>, scalar_prefetch = 0 : i64, scratch_operands = 0 : i64, tpu.core_type = #tpu.core_type<tc>, window_params = [{transform_indices = @transform_0, window_bounds = array<i64: 1, 64, 144>}, {pipeline_mode = #tpu.pipeline_mode<synchronous>, transform_indices = @transform_1, window_bounds = array<i64: 144, 32>}, {pipeline_mode = #tpu.pipeline_mode<synchronous>, transform_indices = @transform_2, window_bounds = array<i64: 1, 32>}, {transform_indices = @transform_3, window_bounds = array<i64: 1, 64, 32>}]} {
    %c0 = arith.constant 0 : index
    %c0_0 = arith.constant 0 : index
    %c0_1 = arith.constant 0 : index
    %0 = vector.load %arg1[%c0, %c0_0, %c0_1] : memref<1x64x144xbf16, #tpu.memory_space<vmem>>, vector<1x64x144xbf16>
    %1 = vector.shape_cast %0 : vector<1x64x144xbf16> to vector<64x144xbf16>
    %c0_2 = arith.constant 0 : index
    %c0_3 = arith.constant 0 : index
    %2 = vector.load %arg2[%c0_2, %c0_3] : memref<144x32xbf16, #tpu.memory_space<vmem>>, vector<144x32xbf16>
    %cst = arith.constant dense<0.000000e+00> : vector<64x32xf32>
    %3 = tpu.matmul %1, %2, %cst {dimension_numbers = #tpu.dot_dimension_numbers<[1], [0], [0], [1], [0, 0, 1, 1], [], []>} : vector<64x144xbf16>, vector<144x32xbf16>, vector<64x32xf32> -> vector<64x32xf32>
    %c0_4 = arith.constant 0 : index
    %c0_5 = arith.constant 0 : index
    %4 = vector.load %arg3[%c0_4, %c0_5] : memref<1x32xf32, #tpu.memory_space<vmem>>, vector<1x32xf32>
    %5 = vector.broadcast %4 : vector<1x32xf32> to vector<64x32xf32>
    %6 = arith.addf %3, %5 : vector<64x32xf32>
    %cst_6 = arith.constant 0.000000e+00 : f32
    %7 = vector.broadcast %cst_6 : f32 to vector<64x32xf32>
    %8 = arith.cmpf oge, %6, %7 : vector<64x32xf32>
    %cst_7 = arith.constant 2.000000e-01 : f32
    %9 = vector.broadcast %cst_7 : f32 to vector<64x32xf32>
    %10 = arith.mulf %9, %6 : vector<64x32xf32>
    %11 = arith.select %8, %6, %10 : vector<64x32xi1>, vector<64x32xf32>
    %12 = arith.truncf %11 : vector<64x32xf32> to vector<64x32xbf16>
    %c0_8 = arith.constant 0 : index
    %c0_9 = arith.constant 0 : index
    %c0_10 = arith.constant 0 : index
    %13 = vector.load %arg4[%c0_8, %c0_9, %c0_10] : memref<1x64x32xbf16, #tpu.memory_space<vmem>>, vector<1x64x32xbf16>
    %14 = vector.shape_cast %13 : vector<1x64x32xbf16> to vector<64x32xbf16>
    %15 = vector.shape_cast %12 : vector<64x32xbf16> to vector<1x64x32xbf16>
    tpu.vector_store %arg4[%c0_8, %c0_9, %c0_10], %15 {strides = array<i32>} : memref<1x64x32xbf16, #tpu.memory_space<vmem>>, vector<1x64x32xbf16>,
    return
  }
  func.func @transform_0(%arg0: i32) -> (i32, i32, i32) {
    %c0_i32 = arith.constant 0 : i32
    %c0_i32_0 = arith.constant 0 : i32
    %c0_i32_1 = arith.constant 0 : i32
    return %arg0, %c0_i32, %c0_i32_0 : i32, i32, i32
  }
  func.func @transform_1(%arg0: i32) -> (i32, i32) {
    %c0_i32 = arith.constant 0 : i32
    %c0_i32_0 = arith.constant 0 : i32
    %c0_i32_1 = arith.constant 0 : i32
    return %c0_i32, %c0_i32_0 : i32, i32
  }
  func.func @transform_2(%arg0: i32) -> (i32, i32) {
    %c0_i32 = arith.constant 0 : i32
    %c0_i32_0 = arith.constant 0 : i32
    %c0_i32_1 = arith.constant 0 : i32
    return %c0_i32, %c0_i32_0 : i32, i32
  }
  func.func @transform_3(%arg0: i32) -> (i32, i32, i32) {
    %c0_i32 = arith.constant 0 : i32
    %c0_i32_0 = arith.constant 0 : i32
    %c0_i32_1 = arith.constant 0 : i32
    return %arg0, %c0_i32, %c0_i32_0 : i32, i32, i32
  }
}

module attributes {stable_mosaic.version = 11 : i64} {
  func.func @kernel(%arg0: i32, %arg1: memref<1x110x32xbf16, #tpu.memory_space<vmem>>, %arg2: memref<9x32x64xbf16, #tpu.memory_space<vmem>>, %arg3: memref<1x64xf32, #tpu.memory_space<vmem>>, %arg4: memref<80x1xf32, #tpu.memory_space<vmem>>, %arg5: memref<1x80x64xbf16, #tpu.memory_space<vmem>>) attributes {dimension_semantics = [#tpu.dimension_semantics<parallel>], iteration_bounds = array<i64: 2>, scalar_prefetch = 0 : i64, scratch_operands = 0 : i64, tpu.core_type = #tpu.core_type<tc>, window_params = [{transform_indices = @transform_0, window_bounds = array<i64: 1, 110, 32>}, {pipeline_mode = #tpu.pipeline_mode<synchronous>, transform_indices = @transform_1, window_bounds = array<i64: 9, 32, 64>}, {pipeline_mode = #tpu.pipeline_mode<synchronous>, transform_indices = @transform_2, window_bounds = array<i64: 1, 64>}, {pipeline_mode = #tpu.pipeline_mode<synchronous>, transform_indices = @transform_3, window_bounds = array<i64: 80, 1>}, {transform_indices = @transform_4, window_bounds = array<i64: 1, 80, 64>}]} {
    %cst = arith.constant 0.000000e+00 : f32
    %0 = vector.broadcast %cst : f32 to vector<80x64xf32>
    %c0 = arith.constant 0 : index
    %c0_0 = arith.constant 0 : index
    %c0_1 = arith.constant 0 : index
    %1 = vector.load %arg1[%c0, %c0_0, %c0_1] : memref<1x110x32xbf16, #tpu.memory_space<vmem>>, vector<1x80x32xbf16>
    %2 = vector.shape_cast %1 : vector<1x80x32xbf16> to vector<80x32xbf16>
    %c0_2 = arith.constant 0 : index
    %c0_3 = arith.constant 0 : index
    %c0_4 = arith.constant 0 : index
    %3 = vector.load %arg2[%c0_2, %c0_3, %c0_4] : memref<9x32x64xbf16, #tpu.memory_space<vmem>>, vector<1x32x64xbf16>
    %4 = vector.shape_cast %3 : vector<1x32x64xbf16> to vector<32x64xbf16>
    %cst_5 = arith.constant dense<0.000000e+00> : vector<80x64xf32>
    %5 = tpu.matmul %2, %4, %cst_5 {dimension_numbers = #tpu.dot_dimension_numbers<[1], [0], [0], [1], [0, 0, 1, 1], [], []>} : vector<80x32xbf16>, vector<32x64xbf16>, vector<80x64xf32> -> vector<80x64xf32>
    %6 = arith.addf %0, %5 : vector<80x64xf32>
    %c0_6 = arith.constant 0 : index
    %c1 = arith.constant 1 : index
    %c0_7 = arith.constant 0 : index
    %7 = vector.load %arg1[%c0_6, %c1, %c0_7] : memref<1x110x32xbf16, #tpu.memory_space<vmem>>, vector<1x80x32xbf16>
    %8 = vector.shape_cast %7 : vector<1x80x32xbf16> to vector<80x32xbf16>
    %c1_8 = arith.constant 1 : index
    %c0_9 = arith.constant 0 : index
    %c0_10 = arith.constant 0 : index
    %9 = vector.load %arg2[%c1_8, %c0_9, %c0_10] : memref<9x32x64xbf16, #tpu.memory_space<vmem>>, vector<1x32x64xbf16>
    %10 = vector.shape_cast %9 : vector<1x32x64xbf16> to vector<32x64xbf16>
    %cst_11 = arith.constant dense<0.000000e+00> : vector<80x64xf32>
    %11 = tpu.matmul %8, %10, %cst_11 {dimension_numbers = #tpu.dot_dimension_numbers<[1], [0], [0], [1], [0, 0, 1, 1], [], []>} : vector<80x32xbf16>, vector<32x64xbf16>, vector<80x64xf32> -> vector<80x64xf32>
    %12 = arith.addf %6, %11 : vector<80x64xf32>
    %c0_12 = arith.constant 0 : index
    %c2 = arith.constant 2 : index
    %c0_13 = arith.constant 0 : index
    %13 = vector.load %arg1[%c0_12, %c2, %c0_13] : memref<1x110x32xbf16, #tpu.memory_space<vmem>>, vector<1x80x32xbf16>
    %14 = vector.shape_cast %13 : vector<1x80x32xbf16> to vector<80x32xbf16>
    %c2_14 = arith.constant 2 : index
    %c0_15 = arith.constant 0 : index
    %c0_16 = arith.constant 0 : index
    %15 = vector.load %arg2[%c2_14, %c0_15, %c0_16] : memref<9x32x64xbf16, #tpu.memory_space<vmem>>, vector<1x32x64xbf16>
    %16 = vector.shape_cast %15 : vector<1x32x64xbf16> to vector<32x64xbf16>
    %cst_17 = arith.constant dense<0.000000e+00> : vector<80x64xf32>
    %17 = tpu.matmul %14, %16, %cst_17 {dimension_numbers = #tpu.dot_dimension_numbers<[1], [0], [0], [1], [0, 0, 1, 1], [], []>} : vector<80x32xbf16>, vector<32x64xbf16>, vector<80x64xf32> -> vector<80x64xf32>
    %18 = arith.addf %12, %17 : vector<80x64xf32>
    %c0_18 = arith.constant 0 : index
    %c10 = arith.constant 10 : index
    %c0_19 = arith.constant 0 : index
    %19 = vector.load %arg1[%c0_18, %c10, %c0_19] : memref<1x110x32xbf16, #tpu.memory_space<vmem>>, vector<1x80x32xbf16>
    %20 = vector.shape_cast %19 : vector<1x80x32xbf16> to vector<80x32xbf16>
    %c3 = arith.constant 3 : index
    %c0_20 = arith.constant 0 : index
    %c0_21 = arith.constant 0 : index
    %21 = vector.load %arg2[%c3, %c0_20, %c0_21] : memref<9x32x64xbf16, #tpu.memory_space<vmem>>, vector<1x32x64xbf16>
    %22 = vector.shape_cast %21 : vector<1x32x64xbf16> to vector<32x64xbf16>
    %cst_22 = arith.constant dense<0.000000e+00> : vector<80x64xf32>
    %23 = tpu.matmul %20, %22, %cst_22 {dimension_numbers = #tpu.dot_dimension_numbers<[1], [0], [0], [1], [0, 0, 1, 1], [], []>} : vector<80x32xbf16>, vector<32x64xbf16>, vector<80x64xf32> -> vector<80x64xf32>
    %24 = arith.addf %18, %23 : vector<80x64xf32>
    %c0_23 = arith.constant 0 : index
    %c11 = arith.constant 11 : index
    %c0_24 = arith.constant 0 : index
    %25 = vector.load %arg1[%c0_23, %c11, %c0_24] : memref<1x110x32xbf16, #tpu.memory_space<vmem>>, vector<1x80x32xbf16>
    %26 = vector.shape_cast %25 : vector<1x80x32xbf16> to vector<80x32xbf16>
    %c4 = arith.constant 4 : index
    %c0_25 = arith.constant 0 : index
    %c0_26 = arith.constant 0 : index
    %27 = vector.load %arg2[%c4, %c0_25, %c0_26] : memref<9x32x64xbf16, #tpu.memory_space<vmem>>, vector<1x32x64xbf16>
    %28 = vector.shape_cast %27 : vector<1x32x64xbf16> to vector<32x64xbf16>
    %cst_27 = arith.constant dense<0.000000e+00> : vector<80x64xf32>
    %29 = tpu.matmul %26, %28, %cst_27 {dimension_numbers = #tpu.dot_dimension_numbers<[1], [0], [0], [1], [0, 0, 1, 1], [], []>} : vector<80x32xbf16>, vector<32x64xbf16>, vector<80x64xf32> -> vector<80x64xf32>
    %30 = arith.addf %24, %29 : vector<80x64xf32>
    %c0_28 = arith.constant 0 : index
    %c12 = arith.constant 12 : index
    %c0_29 = arith.constant 0 : index
    %31 = vector.load %arg1[%c0_28, %c12, %c0_29] : memref<1x110x32xbf16, #tpu.memory_space<vmem>>, vector<1x80x32xbf16>
    %32 = vector.shape_cast %31 : vector<1x80x32xbf16> to vector<80x32xbf16>
    %c5 = arith.constant 5 : index
    %c0_30 = arith.constant 0 : index
    %c0_31 = arith.constant 0 : index
    %33 = vector.load %arg2[%c5, %c0_30, %c0_31] : memref<9x32x64xbf16, #tpu.memory_space<vmem>>, vector<1x32x64xbf16>
    %34 = vector.shape_cast %33 : vector<1x32x64xbf16> to vector<32x64xbf16>
    %cst_32 = arith.constant dense<0.000000e+00> : vector<80x64xf32>
    %35 = tpu.matmul %32, %34, %cst_32 {dimension_numbers = #tpu.dot_dimension_numbers<[1], [0], [0], [1], [0, 0, 1, 1], [], []>} : vector<80x32xbf16>, vector<32x64xbf16>, vector<80x64xf32> -> vector<80x64xf32>
    %36 = arith.addf %30, %35 : vector<80x64xf32>
    %c0_33 = arith.constant 0 : index
    %c20 = arith.constant 20 : index
    %c0_34 = arith.constant 0 : index
    %37 = vector.load %arg1[%c0_33, %c20, %c0_34] : memref<1x110x32xbf16, #tpu.memory_space<vmem>>, vector<1x80x32xbf16>
    %38 = vector.shape_cast %37 : vector<1x80x32xbf16> to vector<80x32xbf16>
    %c6 = arith.constant 6 : index
    %c0_35 = arith.constant 0 : index
    %c0_36 = arith.constant 0 : index
    %39 = vector.load %arg2[%c6, %c0_35, %c0_36] : memref<9x32x64xbf16, #tpu.memory_space<vmem>>, vector<1x32x64xbf16>
    %40 = vector.shape_cast %39 : vector<1x32x64xbf16> to vector<32x64xbf16>
    %cst_37 = arith.constant dense<0.000000e+00> : vector<80x64xf32>
    %41 = tpu.matmul %38, %40, %cst_37 {dimension_numbers = #tpu.dot_dimension_numbers<[1], [0], [0], [1], [0, 0, 1, 1], [], []>} : vector<80x32xbf16>, vector<32x64xbf16>, vector<80x64xf32> -> vector<80x64xf32>
    %42 = arith.addf %36, %41 : vector<80x64xf32>
    %c0_38 = arith.constant 0 : index
    %c21 = arith.constant 21 : index
    %c0_39 = arith.constant 0 : index
    %43 = vector.load %arg1[%c0_38, %c21, %c0_39] : memref<1x110x32xbf16, #tpu.memory_space<vmem>>, vector<1x80x32xbf16>
    %44 = vector.shape_cast %43 : vector<1x80x32xbf16> to vector<80x32xbf16>
    %c7 = arith.constant 7 : index
    %c0_40 = arith.constant 0 : index
    %c0_41 = arith.constant 0 : index
    %45 = vector.load %arg2[%c7, %c0_40, %c0_41] : memref<9x32x64xbf16, #tpu.memory_space<vmem>>, vector<1x32x64xbf16>
    %46 = vector.shape_cast %45 : vector<1x32x64xbf16> to vector<32x64xbf16>
    %cst_42 = arith.constant dense<0.000000e+00> : vector<80x64xf32>
    %47 = tpu.matmul %44, %46, %cst_42 {dimension_numbers = #tpu.dot_dimension_numbers<[1], [0], [0], [1], [0, 0, 1, 1], [], []>} : vector<80x32xbf16>, vector<32x64xbf16>, vector<80x64xf32> -> vector<80x64xf32>
    %48 = arith.addf %42, %47 : vector<80x64xf32>
    %c0_43 = arith.constant 0 : index
    %c22 = arith.constant 22 : index
    %c0_44 = arith.constant 0 : index
    %49 = vector.load %arg1[%c0_43, %c22, %c0_44] : memref<1x110x32xbf16, #tpu.memory_space<vmem>>, vector<1x80x32xbf16>
    %50 = vector.shape_cast %49 : vector<1x80x32xbf16> to vector<80x32xbf16>
    %c8 = arith.constant 8 : index
    %c0_45 = arith.constant 0 : index
    %c0_46 = arith.constant 0 : index
    %51 = vector.load %arg2[%c8, %c0_45, %c0_46] : memref<9x32x64xbf16, #tpu.memory_space<vmem>>, vector<1x32x64xbf16>
    %52 = vector.shape_cast %51 : vector<1x32x64xbf16> to vector<32x64xbf16>
    %cst_47 = arith.constant dense<0.000000e+00> : vector<80x64xf32>
    %53 = tpu.matmul %50, %52, %cst_47 {dimension_numbers = #tpu.dot_dimension_numbers<[1], [0], [0], [1], [0, 0, 1, 1], [], []>} : vector<80x32xbf16>, vector<32x64xbf16>, vector<80x64xf32> -> vector<80x64xf32>
    %54 = arith.addf %48, %53 : vector<80x64xf32>
    %c0_48 = arith.constant 0 : index
    %c0_49 = arith.constant 0 : index
    %55 = vector.load %arg3[%c0_48, %c0_49] : memref<1x64xf32, #tpu.memory_space<vmem>>, vector<1x64xf32>
    %56 = vector.broadcast %55 : vector<1x64xf32> to vector<80x64xf32>
    %57 = arith.addf %54, %56 : vector<80x64xf32>
    %c0_50 = arith.constant 0 : index
    %c0_51 = arith.constant 0 : index
    %58 = vector.load %arg4[%c0_50, %c0_51] : memref<80x1xf32, #tpu.memory_space<vmem>>, vector<80x1xf32>
    %59 = vector.broadcast %58 : vector<80x1xf32> to vector<80x64xf32>
    %60 = arith.mulf %57, %59 : vector<80x64xf32>
    %cst_52 = arith.constant dense<0.000000e+00> : vector<64xf32>
    %61 = vector.multi_reduction <add>, %60, %cst_52 [0] : vector<80x64xf32> to vector<64xf32>
    %62 = vector.shape_cast %61 : vector<64xf32> to vector<1x64xf32>
    %cst_53 = arith.constant 1.562500e-02 : f32
    %63 = vector.broadcast %cst_53 : f32 to vector<1x64xf32>
    %64 = arith.mulf %62, %63 : vector<1x64xf32>
    %65 = vector.broadcast %64 : vector<1x64xf32> to vector<80x64xf32>
    %66 = arith.subf %57, %65 : vector<80x64xf32>
    %67 = vector.broadcast %58 : vector<80x1xf32> to vector<80x64xf32>
    %68 = arith.mulf %66, %67 : vector<80x64xf32>
    %69 = arith.mulf %68, %68 : vector<80x64xf32>
    %cst_54 = arith.constant dense<0.000000e+00> : vector<64xf32>
    %70 = vector.multi_reduction <add>, %69, %cst_54 [0] : vector<80x64xf32> to vector<64xf32>
    %71 = vector.shape_cast %70 : vector<64xf32> to vector<1x64xf32>
    %cst_55 = arith.constant 1.562500e-02 : f32
    %72 = vector.broadcast %cst_55 : f32 to vector<1x64xf32>
    %73 = arith.mulf %71, %72 : vector<1x64xf32>
    %74 = vector.broadcast %64 : vector<1x64xf32> to vector<80x64xf32>
    %75 = arith.subf %57, %74 : vector<80x64xf32>
    %cst_56 = arith.constant 9.99999974E-6 : f32
    %76 = vector.broadcast %cst_56 : f32 to vector<1x64xf32>
    %77 = arith.addf %73, %76 : vector<1x64xf32>
    %78 = math.rsqrt %77 : vector<1x64xf32>
    %79 = vector.broadcast %78 : vector<1x64xf32> to vector<80x64xf32>
    %80 = arith.mulf %75, %79 : vector<80x64xf32>
    %cst_57 = arith.constant 0.000000e+00 : f32
    %81 = vector.broadcast %cst_57 : f32 to vector<80x64xf32>
    %82 = arith.cmpf oge, %80, %81 : vector<80x64xf32>
    %cst_58 = arith.constant 2.000000e-01 : f32
    %83 = vector.broadcast %cst_58 : f32 to vector<80x64xf32>
    %84 = arith.mulf %83, %80 : vector<80x64xf32>
    %85 = arith.select %82, %80, %84 : vector<80x64xi1>, vector<80x64xf32>
    %86 = arith.truncf %85 : vector<80x64xf32> to vector<80x64xbf16>
    %c0_59 = arith.constant 0 : index
    %c0_60 = arith.constant 0 : index
    %c0_61 = arith.constant 0 : index
    %87 = vector.load %arg5[%c0_59, %c0_60, %c0_61] : memref<1x80x64xbf16, #tpu.memory_space<vmem>>, vector<1x80x64xbf16>
    %88 = vector.shape_cast %87 : vector<1x80x64xbf16> to vector<80x64xbf16>
    %89 = vector.shape_cast %86 : vector<80x64xbf16> to vector<1x80x64xbf16>
    tpu.vector_store %arg5[%c0_59, %c0_60, %c0_61], %89 {strides = array<i32>} : memref<1x80x64xbf16, #tpu.memory_space<vmem>>, vector<1x80x64xbf16>,
    return
  }
  func.func @transform_0(%arg0: i32) -> (i32, i32, i32) {
    %c0_i32 = arith.constant 0 : i32
    %c0_i32_0 = arith.constant 0 : i32
    %c0_i32_1 = arith.constant 0 : i32
    return %arg0, %c0_i32, %c0_i32_0 : i32, i32, i32
  }
  func.func @transform_1(%arg0: i32) -> (i32, i32, i32) {
    %c0_i32 = arith.constant 0 : i32
    %c0_i32_0 = arith.constant 0 : i32
    %c0_i32_1 = arith.constant 0 : i32
    %c0_i32_2 = arith.constant 0 : i32
    return %c0_i32, %c0_i32_0, %c0_i32_1 : i32, i32, i32
  }
  func.func @transform_2(%arg0: i32) -> (i32, i32) {
    %c0_i32 = arith.constant 0 : i32
    %c0_i32_0 = arith.constant 0 : i32
    %c0_i32_1 = arith.constant 0 : i32
    return %c0_i32, %c0_i32_0 : i32, i32
  }
  func.func @transform_3(%arg0: i32) -> (i32, i32) {
    %c0_i32 = arith.constant 0 : i32
    %c0_i32_0 = arith.constant 0 : i32
    %c0_i32_1 = arith.constant 0 : i32
    return %c0_i32, %c0_i32_0 : i32, i32
  }
  func.func @transform_4(%arg0: i32) -> (i32, i32, i32) {
    %c0_i32 = arith.constant 0 : i32
    %c0_i32_0 = arith.constant 0 : i32
    %c0_i32_1 = arith.constant 0 : i32
    return %arg0, %c0_i32, %c0_i32_0 : i32, i32, i32
  }
}

module attributes {stable_mosaic.version = 11 : i64} {
  func.func @kernel(%arg0: i32, %arg1: memref<1x16x576xbf16, #tpu.memory_space<vmem>>, %arg2: memref<576x64xbf16, #tpu.memory_space<vmem>>, %arg3: memref<1x64xf32, #tpu.memory_space<vmem>>, %arg4: memref<1x16x64xbf16, #tpu.memory_space<vmem>>) attributes {dimension_semantics = [#tpu.dimension_semantics<parallel>], iteration_bounds = array<i64: 2>, scalar_prefetch = 0 : i64, scratch_operands = 0 : i64, tpu.core_type = #tpu.core_type<tc>, window_params = [{transform_indices = @transform_0, window_bounds = array<i64: 1, 16, 576>}, {pipeline_mode = #tpu.pipeline_mode<synchronous>, transform_indices = @transform_1, window_bounds = array<i64: 576, 64>}, {pipeline_mode = #tpu.pipeline_mode<synchronous>, transform_indices = @transform_2, window_bounds = array<i64: 1, 64>}, {transform_indices = @transform_3, window_bounds = array<i64: 1, 16, 64>}]} {
    %c0 = arith.constant 0 : index
    %c0_0 = arith.constant 0 : index
    %c0_1 = arith.constant 0 : index
    %0 = vector.load %arg1[%c0, %c0_0, %c0_1] : memref<1x16x576xbf16, #tpu.memory_space<vmem>>, vector<1x16x576xbf16>
    %1 = vector.shape_cast %0 : vector<1x16x576xbf16> to vector<16x576xbf16>
    %c0_2 = arith.constant 0 : index
    %c0_3 = arith.constant 0 : index
    %2 = vector.load %arg2[%c0_2, %c0_3] : memref<576x64xbf16, #tpu.memory_space<vmem>>, vector<576x64xbf16>
    %cst = arith.constant dense<0.000000e+00> : vector<16x64xf32>
    %3 = tpu.matmul %1, %2, %cst {dimension_numbers = #tpu.dot_dimension_numbers<[1], [0], [0], [1], [0, 0, 1, 1], [], []>} : vector<16x576xbf16>, vector<576x64xbf16>, vector<16x64xf32> -> vector<16x64xf32>
    %c0_4 = arith.constant 0 : index
    %c0_5 = arith.constant 0 : index
    %4 = vector.load %arg3[%c0_4, %c0_5] : memref<1x64xf32, #tpu.memory_space<vmem>>, vector<1x64xf32>
    %5 = vector.broadcast %4 : vector<1x64xf32> to vector<16x64xf32>
    %6 = arith.addf %3, %5 : vector<16x64xf32>
    %cst_6 = arith.constant 0.000000e+00 : f32
    %7 = vector.broadcast %cst_6 : f32 to vector<16x64xf32>
    %8 = arith.cmpf oge, %6, %7 : vector<16x64xf32>
    %cst_7 = arith.constant 2.000000e-01 : f32
    %9 = vector.broadcast %cst_7 : f32 to vector<16x64xf32>
    %10 = arith.mulf %9, %6 : vector<16x64xf32>
    %11 = arith.select %8, %6, %10 : vector<16x64xi1>, vector<16x64xf32>
    %12 = arith.truncf %11 : vector<16x64xf32> to vector<16x64xbf16>
    %c0_8 = arith.constant 0 : index
    %c0_9 = arith.constant 0 : index
    %c0_10 = arith.constant 0 : index
    %13 = vector.load %arg4[%c0_8, %c0_9, %c0_10] : memref<1x16x64xbf16, #tpu.memory_space<vmem>>, vector<1x16x64xbf16>
    %14 = vector.shape_cast %13 : vector<1x16x64xbf16> to vector<16x64xbf16>
    %15 = vector.shape_cast %12 : vector<16x64xbf16> to vector<1x16x64xbf16>
    tpu.vector_store %arg4[%c0_8, %c0_9, %c0_10], %15 {strides = array<i32>} : memref<1x16x64xbf16, #tpu.memory_space<vmem>>, vector<1x16x64xbf16>,
    return
  }
  func.func @transform_0(%arg0: i32) -> (i32, i32, i32) {
    %c0_i32 = arith.constant 0 : i32
    %c0_i32_0 = arith.constant 0 : i32
    %c0_i32_1 = arith.constant 0 : i32
    return %arg0, %c0_i32, %c0_i32_0 : i32, i32, i32
  }
  func.func @transform_1(%arg0: i32) -> (i32, i32) {
    %c0_i32 = arith.constant 0 : i32
    %c0_i32_0 = arith.constant 0 : i32
    %c0_i32_1 = arith.constant 0 : i32
    return %c0_i32, %c0_i32_0 : i32, i32
  }
  func.func @transform_2(%arg0: i32) -> (i32, i32) {
    %c0_i32 = arith.constant 0 : i32
    %c0_i32_0 = arith.constant 0 : i32
    %c0_i32_1 = arith.constant 0 : i32
    return %c0_i32, %c0_i32_0 : i32, i32
  }
  func.func @transform_3(%arg0: i32) -> (i32, i32, i32) {
    %c0_i32 = arith.constant 0 : i32
    %c0_i32_0 = arith.constant 0 : i32
    %c0_i32_1 = arith.constant 0 : i32
    return %arg0, %c0_i32, %c0_i32_0 : i32, i32, i32
  }
}

module attributes {stable_mosaic.version = 11 : i64} {
  func.func @kernel(%arg0: i32, %arg1: memref<1x42x64xbf16, #tpu.memory_space<vmem>>, %arg2: memref<9x64x128xbf16, #tpu.memory_space<vmem>>, %arg3: memref<1x128xf32, #tpu.memory_space<vmem>>, %arg4: memref<24x1xf32, #tpu.memory_space<vmem>>, %arg5: memref<1x24x128xbf16, #tpu.memory_space<vmem>>) attributes {dimension_semantics = [#tpu.dimension_semantics<parallel>], iteration_bounds = array<i64: 2>, scalar_prefetch = 0 : i64, scratch_operands = 0 : i64, tpu.core_type = #tpu.core_type<tc>, window_params = [{transform_indices = @transform_0, window_bounds = array<i64: 1, 42, 64>}, {pipeline_mode = #tpu.pipeline_mode<synchronous>, transform_indices = @transform_1, window_bounds = array<i64: 9, 64, 128>}, {pipeline_mode = #tpu.pipeline_mode<synchronous>, transform_indices = @transform_2, window_bounds = array<i64: 1, 128>}, {pipeline_mode = #tpu.pipeline_mode<synchronous>, transform_indices = @transform_3, window_bounds = array<i64: 24, 1>}, {transform_indices = @transform_4, window_bounds = array<i64: 1, 24, 128>}]} {
    %cst = arith.constant 0.000000e+00 : f32
    %0 = vector.broadcast %cst : f32 to vector<24x128xf32>
    %c0 = arith.constant 0 : index
    %c0_0 = arith.constant 0 : index
    %c0_1 = arith.constant 0 : index
    %1 = vector.load %arg1[%c0, %c0_0, %c0_1] : memref<1x42x64xbf16, #tpu.memory_space<vmem>>, vector<1x24x64xbf16>
    %2 = vector.shape_cast %1 : vector<1x24x64xbf16> to vector<24x64xbf16>
    %c0_2 = arith.constant 0 : index
    %c0_3 = arith.constant 0 : index
    %c0_4 = arith.constant 0 : index
    %3 = vector.load %arg2[%c0_2, %c0_3, %c0_4] : memref<9x64x128xbf16, #tpu.memory_space<vmem>>, vector<1x64x128xbf16>
    %4 = vector.shape_cast %3 : vector<1x64x128xbf16> to vector<64x128xbf16>
    %cst_5 = arith.constant dense<0.000000e+00> : vector<24x128xf32>
    %5 = tpu.matmul %2, %4, %cst_5 {dimension_numbers = #tpu.dot_dimension_numbers<[1], [0], [0], [1], [0, 0, 1, 1], [], []>} : vector<24x64xbf16>, vector<64x128xbf16>, vector<24x128xf32> -> vector<24x128xf32>
    %6 = arith.addf %0, %5 : vector<24x128xf32>
    %c0_6 = arith.constant 0 : index
    %c1 = arith.constant 1 : index
    %c0_7 = arith.constant 0 : index
    %7 = vector.load %arg1[%c0_6, %c1, %c0_7] : memref<1x42x64xbf16, #tpu.memory_space<vmem>>, vector<1x24x64xbf16>
    %8 = vector.shape_cast %7 : vector<1x24x64xbf16> to vector<24x64xbf16>
    %c1_8 = arith.constant 1 : index
    %c0_9 = arith.constant 0 : index
    %c0_10 = arith.constant 0 : index
    %9 = vector.load %arg2[%c1_8, %c0_9, %c0_10] : memref<9x64x128xbf16, #tpu.memory_space<vmem>>, vector<1x64x128xbf16>
    %10 = vector.shape_cast %9 : vector<1x64x128xbf16> to vector<64x128xbf16>
    %cst_11 = arith.constant dense<0.000000e+00> : vector<24x128xf32>
    %11 = tpu.matmul %8, %10, %cst_11 {dimension_numbers = #tpu.dot_dimension_numbers<[1], [0], [0], [1], [0, 0, 1, 1], [], []>} : vector<24x64xbf16>, vector<64x128xbf16>, vector<24x128xf32> -> vector<24x128xf32>
    %12 = arith.addf %6, %11 : vector<24x128xf32>
    %c0_12 = arith.constant 0 : index
    %c2 = arith.constant 2 : index
    %c0_13 = arith.constant 0 : index
    %13 = vector.load %arg1[%c0_12, %c2, %c0_13] : memref<1x42x64xbf16, #tpu.memory_space<vmem>>, vector<1x24x64xbf16>
    %14 = vector.shape_cast %13 : vector<1x24x64xbf16> to vector<24x64xbf16>
    %c2_14 = arith.constant 2 : index
    %c0_15 = arith.constant 0 : index
    %c0_16 = arith.constant 0 : index
    %15 = vector.load %arg2[%c2_14, %c0_15, %c0_16] : memref<9x64x128xbf16, #tpu.memory_space<vmem>>, vector<1x64x128xbf16>
    %16 = vector.shape_cast %15 : vector<1x64x128xbf16> to vector<64x128xbf16>
    %cst_17 = arith.constant dense<0.000000e+00> : vector<24x128xf32>
    %17 = tpu.matmul %14, %16, %cst_17 {dimension_numbers = #tpu.dot_dimension_numbers<[1], [0], [0], [1], [0, 0, 1, 1], [], []>} : vector<24x64xbf16>, vector<64x128xbf16>, vector<24x128xf32> -> vector<24x128xf32>
    %18 = arith.addf %12, %17 : vector<24x128xf32>
    %c0_18 = arith.constant 0 : index
    %c6 = arith.constant 6 : index
    %c0_19 = arith.constant 0 : index
    %19 = vector.load %arg1[%c0_18, %c6, %c0_19] : memref<1x42x64xbf16, #tpu.memory_space<vmem>>, vector<1x24x64xbf16>
    %20 = vector.shape_cast %19 : vector<1x24x64xbf16> to vector<24x64xbf16>
    %c3 = arith.constant 3 : index
    %c0_20 = arith.constant 0 : index
    %c0_21 = arith.constant 0 : index
    %21 = vector.load %arg2[%c3, %c0_20, %c0_21] : memref<9x64x128xbf16, #tpu.memory_space<vmem>>, vector<1x64x128xbf16>
    %22 = vector.shape_cast %21 : vector<1x64x128xbf16> to vector<64x128xbf16>
    %cst_22 = arith.constant dense<0.000000e+00> : vector<24x128xf32>
    %23 = tpu.matmul %20, %22, %cst_22 {dimension_numbers = #tpu.dot_dimension_numbers<[1], [0], [0], [1], [0, 0, 1, 1], [], []>} : vector<24x64xbf16>, vector<64x128xbf16>, vector<24x128xf32> -> vector<24x128xf32>
    %24 = arith.addf %18, %23 : vector<24x128xf32>
    %c0_23 = arith.constant 0 : index
    %c7 = arith.constant 7 : index
    %c0_24 = arith.constant 0 : index
    %25 = vector.load %arg1[%c0_23, %c7, %c0_24] : memref<1x42x64xbf16, #tpu.memory_space<vmem>>, vector<1x24x64xbf16>
    %26 = vector.shape_cast %25 : vector<1x24x64xbf16> to vector<24x64xbf16>
    %c4 = arith.constant 4 : index
    %c0_25 = arith.constant 0 : index
    %c0_26 = arith.constant 0 : index
    %27 = vector.load %arg2[%c4, %c0_25, %c0_26] : memref<9x64x128xbf16, #tpu.memory_space<vmem>>, vector<1x64x128xbf16>
    %28 = vector.shape_cast %27 : vector<1x64x128xbf16> to vector<64x128xbf16>
    %cst_27 = arith.constant dense<0.000000e+00> : vector<24x128xf32>
    %29 = tpu.matmul %26, %28, %cst_27 {dimension_numbers = #tpu.dot_dimension_numbers<[1], [0], [0], [1], [0, 0, 1, 1], [], []>} : vector<24x64xbf16>, vector<64x128xbf16>, vector<24x128xf32> -> vector<24x128xf32>
    %30 = arith.addf %24, %29 : vector<24x128xf32>
    %c0_28 = arith.constant 0 : index
    %c8 = arith.constant 8 : index
    %c0_29 = arith.constant 0 : index
    %31 = vector.load %arg1[%c0_28, %c8, %c0_29] : memref<1x42x64xbf16, #tpu.memory_space<vmem>>, vector<1x24x64xbf16>
    %32 = vector.shape_cast %31 : vector<1x24x64xbf16> to vector<24x64xbf16>
    %c5 = arith.constant 5 : index
    %c0_30 = arith.constant 0 : index
    %c0_31 = arith.constant 0 : index
    %33 = vector.load %arg2[%c5, %c0_30, %c0_31] : memref<9x64x128xbf16, #tpu.memory_space<vmem>>, vector<1x64x128xbf16>
    %34 = vector.shape_cast %33 : vector<1x64x128xbf16> to vector<64x128xbf16>
    %cst_32 = arith.constant dense<0.000000e+00> : vector<24x128xf32>
    %35 = tpu.matmul %32, %34, %cst_32 {dimension_numbers = #tpu.dot_dimension_numbers<[1], [0], [0], [1], [0, 0, 1, 1], [], []>} : vector<24x64xbf16>, vector<64x128xbf16>, vector<24x128xf32> -> vector<24x128xf32>
    %36 = arith.addf %30, %35 : vector<24x128xf32>
    %c0_33 = arith.constant 0 : index
    %c12 = arith.constant 12 : index
    %c0_34 = arith.constant 0 : index
    %37 = vector.load %arg1[%c0_33, %c12, %c0_34] : memref<1x42x64xbf16, #tpu.memory_space<vmem>>, vector<1x24x64xbf16>
    %38 = vector.shape_cast %37 : vector<1x24x64xbf16> to vector<24x64xbf16>
    %c6_35 = arith.constant 6 : index
    %c0_36 = arith.constant 0 : index
    %c0_37 = arith.constant 0 : index
    %39 = vector.load %arg2[%c6_35, %c0_36, %c0_37] : memref<9x64x128xbf16, #tpu.memory_space<vmem>>, vector<1x64x128xbf16>
    %40 = vector.shape_cast %39 : vector<1x64x128xbf16> to vector<64x128xbf16>
    %cst_38 = arith.constant dense<0.000000e+00> : vector<24x128xf32>
    %41 = tpu.matmul %38, %40, %cst_38 {dimension_numbers = #tpu.dot_dimension_numbers<[1], [0], [0], [1], [0, 0, 1, 1], [], []>} : vector<24x64xbf16>, vector<64x128xbf16>, vector<24x128xf32> -> vector<24x128xf32>
    %42 = arith.addf %36, %41 : vector<24x128xf32>
    %c0_39 = arith.constant 0 : index
    %c13 = arith.constant 13 : index
    %c0_40 = arith.constant 0 : index
    %43 = vector.load %arg1[%c0_39, %c13, %c0_40] : memref<1x42x64xbf16, #tpu.memory_space<vmem>>, vector<1x24x64xbf16>
    %44 = vector.shape_cast %43 : vector<1x24x64xbf16> to vector<24x64xbf16>
    %c7_41 = arith.constant 7 : index
    %c0_42 = arith.constant 0 : index
    %c0_43 = arith.constant 0 : index
    %45 = vector.load %arg2[%c7_41, %c0_42, %c0_43] : memref<9x64x128xbf16, #tpu.memory_space<vmem>>, vector<1x64x128xbf16>
    %46 = vector.shape_cast %45 : vector<1x64x128xbf16> to vector<64x128xbf16>
    %cst_44 = arith.constant dense<0.000000e+00> : vector<24x128xf32>
    %47 = tpu.matmul %44, %46, %cst_44 {dimension_numbers = #tpu.dot_dimension_numbers<[1], [0], [0], [1], [0, 0, 1, 1], [], []>} : vector<24x64xbf16>, vector<64x128xbf16>, vector<24x128xf32> -> vector<24x128xf32>
    %48 = arith.addf %42, %47 : vector<24x128xf32>
    %c0_45 = arith.constant 0 : index
    %c14 = arith.constant 14 : index
    %c0_46 = arith.constant 0 : index
    %49 = vector.load %arg1[%c0_45, %c14, %c0_46] : memref<1x42x64xbf16, #tpu.memory_space<vmem>>, vector<1x24x64xbf16>
    %50 = vector.shape_cast %49 : vector<1x24x64xbf16> to vector<24x64xbf16>
    %c8_47 = arith.constant 8 : index
    %c0_48 = arith.constant 0 : index
    %c0_49 = arith.constant 0 : index
    %51 = vector.load %arg2[%c8_47, %c0_48, %c0_49] : memref<9x64x128xbf16, #tpu.memory_space<vmem>>, vector<1x64x128xbf16>
    %52 = vector.shape_cast %51 : vector<1x64x128xbf16> to vector<64x128xbf16>
    %cst_50 = arith.constant dense<0.000000e+00> : vector<24x128xf32>
    %53 = tpu.matmul %50, %52, %cst_50 {dimension_numbers = #tpu.dot_dimension_numbers<[1], [0], [0], [1], [0, 0, 1, 1], [], []>} : vector<24x64xbf16>, vector<64x128xbf16>, vector<24x128xf32> -> vector<24x128xf32>
    %54 = arith.addf %48, %53 : vector<24x128xf32>
    %c0_51 = arith.constant 0 : index
    %c0_52 = arith.constant 0 : index
    %55 = vector.load %arg3[%c0_51, %c0_52] : memref<1x128xf32, #tpu.memory_space<vmem>>, vector<1x128xf32>
    %56 = vector.broadcast %55 : vector<1x128xf32> to vector<24x128xf32>
    %57 = arith.addf %54, %56 : vector<24x128xf32>
    %c0_53 = arith.constant 0 : index
    %c0_54 = arith.constant 0 : index
    %58 = vector.load %arg4[%c0_53, %c0_54] : memref<24x1xf32, #tpu.memory_space<vmem>>, vector<24x1xf32>
    %59 = vector.broadcast %58 : vector<24x1xf32> to vector<24x128xf32>
    %60 = arith.mulf %57, %59 : vector<24x128xf32>
    %cst_55 = arith.constant dense<0.000000e+00> : vector<128xf32>
    %61 = vector.multi_reduction <add>, %60, %cst_55 [0] : vector<24x128xf32> to vector<128xf32>
    %62 = vector.shape_cast %61 : vector<128xf32> to vector<1x128xf32>
    %cst_56 = arith.constant 6.250000e-02 : f32
    %63 = vector.broadcast %cst_56 : f32 to vector<1x128xf32>
    %64 = arith.mulf %62, %63 : vector<1x128xf32>
    %65 = vector.broadcast %64 : vector<1x128xf32> to vector<24x128xf32>
    %66 = arith.subf %57, %65 : vector<24x128xf32>
    %67 = vector.broadcast %58 : vector<24x1xf32> to vector<24x128xf32>
    %68 = arith.mulf %66, %67 : vector<24x128xf32>
    %69 = arith.mulf %68, %68 : vector<24x128xf32>
    %cst_57 = arith.constant dense<0.000000e+00> : vector<128xf32>
    %70 = vector.multi_reduction <add>, %69, %cst_57 [0] : vector<24x128xf32> to vector<128xf32>
    %71 = vector.shape_cast %70 : vector<128xf32> to vector<1x128xf32>
    %cst_58 = arith.constant 6.250000e-02 : f32
    %72 = vector.broadcast %cst_58 : f32 to vector<1x128xf32>
    %73 = arith.mulf %71, %72 : vector<1x128xf32>
    %74 = vector.broadcast %64 : vector<1x128xf32> to vector<24x128xf32>
    %75 = arith.subf %57, %74 : vector<24x128xf32>
    %cst_59 = arith.constant 9.99999974E-6 : f32
    %76 = vector.broadcast %cst_59 : f32 to vector<1x128xf32>
    %77 = arith.addf %73, %76 : vector<1x128xf32>
    %78 = math.rsqrt %77 : vector<1x128xf32>
    %79 = vector.broadcast %78 : vector<1x128xf32> to vector<24x128xf32>
    %80 = arith.mulf %75, %79 : vector<24x128xf32>
    %cst_60 = arith.constant 0.000000e+00 : f32
    %81 = vector.broadcast %cst_60 : f32 to vector<24x128xf32>
    %82 = arith.cmpf oge, %80, %81 : vector<24x128xf32>
    %cst_61 = arith.constant 2.000000e-01 : f32
    %83 = vector.broadcast %cst_61 : f32 to vector<24x128xf32>
    %84 = arith.mulf %83, %80 : vector<24x128xf32>
    %85 = arith.select %82, %80, %84 : vector<24x128xi1>, vector<24x128xf32>
    %86 = arith.truncf %85 : vector<24x128xf32> to vector<24x128xbf16>
    %c0_62 = arith.constant 0 : index
    %c0_63 = arith.constant 0 : index
    %c0_64 = arith.constant 0 : index
    %87 = vector.load %arg5[%c0_62, %c0_63, %c0_64] : memref<1x24x128xbf16, #tpu.memory_space<vmem>>, vector<1x24x128xbf16>
    %88 = vector.shape_cast %87 : vector<1x24x128xbf16> to vector<24x128xbf16>
    %89 = vector.shape_cast %86 : vector<24x128xbf16> to vector<1x24x128xbf16>
    tpu.vector_store %arg5[%c0_62, %c0_63, %c0_64], %89 {strides = array<i32>} : memref<1x24x128xbf16, #tpu.memory_space<vmem>>, vector<1x24x128xbf16>,
    return
  }
  func.func @transform_0(%arg0: i32) -> (i32, i32, i32) {
    %c0_i32 = arith.constant 0 : i32
    %c0_i32_0 = arith.constant 0 : i32
    %c0_i32_1 = arith.constant 0 : i32
    return %arg0, %c0_i32, %c0_i32_0 : i32, i32, i32
  }
  func.func @transform_1(%arg0: i32) -> (i32, i32, i32) {
    %c0_i32 = arith.constant 0 : i32
    %c0_i32_0 = arith.constant 0 : i32
    %c0_i32_1 = arith.constant 0 : i32
    %c0_i32_2 = arith.constant 0 : i32
    return %c0_i32, %c0_i32_0, %c0_i32_1 : i32, i32, i32
  }
  func.func @transform_2(%arg0: i32) -> (i32, i32) {
    %c0_i32 = arith.constant 0 : i32
    %c0_i32_0 = arith.constant 0 : i32
    %c0_i32_1 = arith.constant 0 : i32
    return %c0_i32, %c0_i32_0 : i32, i32
  }
  func.func @transform_3(%arg0: i32) -> (i32, i32) {
    %c0_i32 = arith.constant 0 : i32
    %c0_i32_0 = arith.constant 0 : i32
    %c0_i32_1 = arith.constant 0 : i32
    return %c0_i32, %c0_i32_0 : i32, i32
  }
  func.func @transform_4(%arg0: i32) -> (i32, i32, i32) {
    %c0_i32 = arith.constant 0 : i32
    %c0_i32_0 = arith.constant 0 : i32
    %c0_i32_1 = arith.constant 0 : i32
    return %arg0, %c0_i32, %c0_i32_0 : i32, i32, i32
  }
}

module attributes {stable_mosaic.version = 11 : i64} {
  func.func @kernel(%arg0: i32, %arg1: memref<1x42x128xbf16, #tpu.memory_space<vmem>>, %arg2: memref<9x128x128xbf16, #tpu.memory_space<vmem>>, %arg3: memref<1x128xf32, #tpu.memory_space<vmem>>, %arg4: memref<24x1xf32, #tpu.memory_space<vmem>>, %arg5: memref<1x24x128xbf16, #tpu.memory_space<vmem>>) attributes {dimension_semantics = [#tpu.dimension_semantics<parallel>], iteration_bounds = array<i64: 2>, scalar_prefetch = 0 : i64, scratch_operands = 0 : i64, tpu.core_type = #tpu.core_type<tc>, window_params = [{transform_indices = @transform_0, window_bounds = array<i64: 1, 42, 128>}, {pipeline_mode = #tpu.pipeline_mode<synchronous>, transform_indices = @transform_1, window_bounds = array<i64: 9, 128, 128>}, {pipeline_mode = #tpu.pipeline_mode<synchronous>, transform_indices = @transform_2, window_bounds = array<i64: 1, 128>}, {pipeline_mode = #tpu.pipeline_mode<synchronous>, transform_indices = @transform_3, window_bounds = array<i64: 24, 1>}, {transform_indices = @transform_4, window_bounds = array<i64: 1, 24, 128>}]} {
    %cst = arith.constant 0.000000e+00 : f32
    %0 = vector.broadcast %cst : f32 to vector<24x128xf32>
    %c0 = arith.constant 0 : index
    %c0_0 = arith.constant 0 : index
    %c0_1 = arith.constant 0 : index
    %1 = vector.load %arg1[%c0, %c0_0, %c0_1] : memref<1x42x128xbf16, #tpu.memory_space<vmem>>, vector<1x24x128xbf16>
    %2 = vector.shape_cast %1 : vector<1x24x128xbf16> to vector<24x128xbf16>
    %c0_2 = arith.constant 0 : index
    %c0_3 = arith.constant 0 : index
    %c0_4 = arith.constant 0 : index
    %3 = vector.load %arg2[%c0_2, %c0_3, %c0_4] : memref<9x128x128xbf16, #tpu.memory_space<vmem>>, vector<1x128x128xbf16>
    %4 = vector.shape_cast %3 : vector<1x128x128xbf16> to vector<128x128xbf16>
    %cst_5 = arith.constant dense<0.000000e+00> : vector<24x128xf32>
    %5 = tpu.matmul %2, %4, %cst_5 {dimension_numbers = #tpu.dot_dimension_numbers<[1], [0], [0], [1], [0, 0, 1, 1], [], []>} : vector<24x128xbf16>, vector<128x128xbf16>, vector<24x128xf32> -> vector<24x128xf32>
    %6 = arith.addf %0, %5 : vector<24x128xf32>
    %c0_6 = arith.constant 0 : index
    %c1 = arith.constant 1 : index
    %c0_7 = arith.constant 0 : index
    %7 = vector.load %arg1[%c0_6, %c1, %c0_7] : memref<1x42x128xbf16, #tpu.memory_space<vmem>>, vector<1x24x128xbf16>
    %8 = vector.shape_cast %7 : vector<1x24x128xbf16> to vector<24x128xbf16>
    %c1_8 = arith.constant 1 : index
    %c0_9 = arith.constant 0 : index
    %c0_10 = arith.constant 0 : index
    %9 = vector.load %arg2[%c1_8, %c0_9, %c0_10] : memref<9x128x128xbf16, #tpu.memory_space<vmem>>, vector<1x128x128xbf16>
    %10 = vector.shape_cast %9 : vector<1x128x128xbf16> to vector<128x128xbf16>
    %cst_11 = arith.constant dense<0.000000e+00> : vector<24x128xf32>
    %11 = tpu.matmul %8, %10, %cst_11 {dimension_numbers = #tpu.dot_dimension_numbers<[1], [0], [0], [1], [0, 0, 1, 1], [], []>} : vector<24x128xbf16>, vector<128x128xbf16>, vector<24x128xf32> -> vector<24x128xf32>
    %12 = arith.addf %6, %11 : vector<24x128xf32>
    %c0_12 = arith.constant 0 : index
    %c2 = arith.constant 2 : index
    %c0_13 = arith.constant 0 : index
    %13 = vector.load %arg1[%c0_12, %c2, %c0_13] : memref<1x42x128xbf16, #tpu.memory_space<vmem>>, vector<1x24x128xbf16>
    %14 = vector.shape_cast %13 : vector<1x24x128xbf16> to vector<24x128xbf16>
    %c2_14 = arith.constant 2 : index
    %c0_15 = arith.constant 0 : index
    %c0_16 = arith.constant 0 : index
    %15 = vector.load %arg2[%c2_14, %c0_15, %c0_16] : memref<9x128x128xbf16, #tpu.memory_space<vmem>>, vector<1x128x128xbf16>
    %16 = vector.shape_cast %15 : vector<1x128x128xbf16> to vector<128x128xbf16>
    %cst_17 = arith.constant dense<0.000000e+00> : vector<24x128xf32>
    %17 = tpu.matmul %14, %16, %cst_17 {dimension_numbers = #tpu.dot_dimension_numbers<[1], [0], [0], [1], [0, 0, 1, 1], [], []>} : vector<24x128xbf16>, vector<128x128xbf16>, vector<24x128xf32> -> vector<24x128xf32>
    %18 = arith.addf %12, %17 : vector<24x128xf32>
    %c0_18 = arith.constant 0 : index
    %c6 = arith.constant 6 : index
    %c0_19 = arith.constant 0 : index
    %19 = vector.load %arg1[%c0_18, %c6, %c0_19] : memref<1x42x128xbf16, #tpu.memory_space<vmem>>, vector<1x24x128xbf16>
    %20 = vector.shape_cast %19 : vector<1x24x128xbf16> to vector<24x128xbf16>
    %c3 = arith.constant 3 : index
    %c0_20 = arith.constant 0 : index
    %c0_21 = arith.constant 0 : index
    %21 = vector.load %arg2[%c3, %c0_20, %c0_21] : memref<9x128x128xbf16, #tpu.memory_space<vmem>>, vector<1x128x128xbf16>
    %22 = vector.shape_cast %21 : vector<1x128x128xbf16> to vector<128x128xbf16>
    %cst_22 = arith.constant dense<0.000000e+00> : vector<24x128xf32>
    %23 = tpu.matmul %20, %22, %cst_22 {dimension_numbers = #tpu.dot_dimension_numbers<[1], [0], [0], [1], [0, 0, 1, 1], [], []>} : vector<24x128xbf16>, vector<128x128xbf16>, vector<24x128xf32> -> vector<24x128xf32>
    %24 = arith.addf %18, %23 : vector<24x128xf32>
    %c0_23 = arith.constant 0 : index
    %c7 = arith.constant 7 : index
    %c0_24 = arith.constant 0 : index
    %25 = vector.load %arg1[%c0_23, %c7, %c0_24] : memref<1x42x128xbf16, #tpu.memory_space<vmem>>, vector<1x24x128xbf16>
    %26 = vector.shape_cast %25 : vector<1x24x128xbf16> to vector<24x128xbf16>
    %c4 = arith.constant 4 : index
    %c0_25 = arith.constant 0 : index
    %c0_26 = arith.constant 0 : index
    %27 = vector.load %arg2[%c4, %c0_25, %c0_26] : memref<9x128x128xbf16, #tpu.memory_space<vmem>>, vector<1x128x128xbf16>
    %28 = vector.shape_cast %27 : vector<1x128x128xbf16> to vector<128x128xbf16>
    %cst_27 = arith.constant dense<0.000000e+00> : vector<24x128xf32>
    %29 = tpu.matmul %26, %28, %cst_27 {dimension_numbers = #tpu.dot_dimension_numbers<[1], [0], [0], [1], [0, 0, 1, 1], [], []>} : vector<24x128xbf16>, vector<128x128xbf16>, vector<24x128xf32> -> vector<24x128xf32>
    %30 = arith.addf %24, %29 : vector<24x128xf32>
    %c0_28 = arith.constant 0 : index
    %c8 = arith.constant 8 : index
    %c0_29 = arith.constant 0 : index
    %31 = vector.load %arg1[%c0_28, %c8, %c0_29] : memref<1x42x128xbf16, #tpu.memory_space<vmem>>, vector<1x24x128xbf16>
    %32 = vector.shape_cast %31 : vector<1x24x128xbf16> to vector<24x128xbf16>
    %c5 = arith.constant 5 : index
    %c0_30 = arith.constant 0 : index
    %c0_31 = arith.constant 0 : index
    %33 = vector.load %arg2[%c5, %c0_30, %c0_31] : memref<9x128x128xbf16, #tpu.memory_space<vmem>>, vector<1x128x128xbf16>
    %34 = vector.shape_cast %33 : vector<1x128x128xbf16> to vector<128x128xbf16>
    %cst_32 = arith.constant dense<0.000000e+00> : vector<24x128xf32>
    %35 = tpu.matmul %32, %34, %cst_32 {dimension_numbers = #tpu.dot_dimension_numbers<[1], [0], [0], [1], [0, 0, 1, 1], [], []>} : vector<24x128xbf16>, vector<128x128xbf16>, vector<24x128xf32> -> vector<24x128xf32>
    %36 = arith.addf %30, %35 : vector<24x128xf32>
    %c0_33 = arith.constant 0 : index
    %c12 = arith.constant 12 : index
    %c0_34 = arith.constant 0 : index
    %37 = vector.load %arg1[%c0_33, %c12, %c0_34] : memref<1x42x128xbf16, #tpu.memory_space<vmem>>, vector<1x24x128xbf16>
    %38 = vector.shape_cast %37 : vector<1x24x128xbf16> to vector<24x128xbf16>
    %c6_35 = arith.constant 6 : index
    %c0_36 = arith.constant 0 : index
    %c0_37 = arith.constant 0 : index
    %39 = vector.load %arg2[%c6_35, %c0_36, %c0_37] : memref<9x128x128xbf16, #tpu.memory_space<vmem>>, vector<1x128x128xbf16>
    %40 = vector.shape_cast %39 : vector<1x128x128xbf16> to vector<128x128xbf16>
    %cst_38 = arith.constant dense<0.000000e+00> : vector<24x128xf32>
    %41 = tpu.matmul %38, %40, %cst_38 {dimension_numbers = #tpu.dot_dimension_numbers<[1], [0], [0], [1], [0, 0, 1, 1], [], []>} : vector<24x128xbf16>, vector<128x128xbf16>, vector<24x128xf32> -> vector<24x128xf32>
    %42 = arith.addf %36, %41 : vector<24x128xf32>
    %c0_39 = arith.constant 0 : index
    %c13 = arith.constant 13 : index
    %c0_40 = arith.constant 0 : index
    %43 = vector.load %arg1[%c0_39, %c13, %c0_40] : memref<1x42x128xbf16, #tpu.memory_space<vmem>>, vector<1x24x128xbf16>
    %44 = vector.shape_cast %43 : vector<1x24x128xbf16> to vector<24x128xbf16>
    %c7_41 = arith.constant 7 : index
    %c0_42 = arith.constant 0 : index
    %c0_43 = arith.constant 0 : index
    %45 = vector.load %arg2[%c7_41, %c0_42, %c0_43] : memref<9x128x128xbf16, #tpu.memory_space<vmem>>, vector<1x128x128xbf16>
    %46 = vector.shape_cast %45 : vector<1x128x128xbf16> to vector<128x128xbf16>
    %cst_44 = arith.constant dense<0.000000e+00> : vector<24x128xf32>
    %47 = tpu.matmul %44, %46, %cst_44 {dimension_numbers = #tpu.dot_dimension_numbers<[1], [0], [0], [1], [0, 0, 1, 1], [], []>} : vector<24x128xbf16>, vector<128x128xbf16>, vector<24x128xf32> -> vector<24x128xf32>
    %48 = arith.addf %42, %47 : vector<24x128xf32>
    %c0_45 = arith.constant 0 : index
    %c14 = arith.constant 14 : index
    %c0_46 = arith.constant 0 : index
    %49 = vector.load %arg1[%c0_45, %c14, %c0_46] : memref<1x42x128xbf16, #tpu.memory_space<vmem>>, vector<1x24x128xbf16>
    %50 = vector.shape_cast %49 : vector<1x24x128xbf16> to vector<24x128xbf16>
    %c8_47 = arith.constant 8 : index
    %c0_48 = arith.constant 0 : index
    %c0_49 = arith.constant 0 : index
    %51 = vector.load %arg2[%c8_47, %c0_48, %c0_49] : memref<9x128x128xbf16, #tpu.memory_space<vmem>>, vector<1x128x128xbf16>
    %52 = vector.shape_cast %51 : vector<1x128x128xbf16> to vector<128x128xbf16>
    %cst_50 = arith.constant dense<0.000000e+00> : vector<24x128xf32>
    %53 = tpu.matmul %50, %52, %cst_50 {dimension_numbers = #tpu.dot_dimension_numbers<[1], [0], [0], [1], [0, 0, 1, 1], [], []>} : vector<24x128xbf16>, vector<128x128xbf16>, vector<24x128xf32> -> vector<24x128xf32>
    %54 = arith.addf %48, %53 : vector<24x128xf32>
    %c0_51 = arith.constant 0 : index
    %c0_52 = arith.constant 0 : index
    %55 = vector.load %arg3[%c0_51, %c0_52] : memref<1x128xf32, #tpu.memory_space<vmem>>, vector<1x128xf32>
    %56 = vector.broadcast %55 : vector<1x128xf32> to vector<24x128xf32>
    %57 = arith.addf %54, %56 : vector<24x128xf32>
    %c0_53 = arith.constant 0 : index
    %c0_54 = arith.constant 0 : index
    %58 = vector.load %arg4[%c0_53, %c0_54] : memref<24x1xf32, #tpu.memory_space<vmem>>, vector<24x1xf32>
    %59 = vector.broadcast %58 : vector<24x1xf32> to vector<24x128xf32>
    %60 = arith.mulf %57, %59 : vector<24x128xf32>
    %cst_55 = arith.constant dense<0.000000e+00> : vector<128xf32>
    %61 = vector.multi_reduction <add>, %60, %cst_55 [0] : vector<24x128xf32> to vector<128xf32>
    %62 = vector.shape_cast %61 : vector<128xf32> to vector<1x128xf32>
    %cst_56 = arith.constant 6.250000e-02 : f32
    %63 = vector.broadcast %cst_56 : f32 to vector<1x128xf32>
    %64 = arith.mulf %62, %63 : vector<1x128xf32>
    %65 = vector.broadcast %64 : vector<1x128xf32> to vector<24x128xf32>
    %66 = arith.subf %57, %65 : vector<24x128xf32>
    %67 = vector.broadcast %58 : vector<24x1xf32> to vector<24x128xf32>
    %68 = arith.mulf %66, %67 : vector<24x128xf32>
    %69 = arith.mulf %68, %68 : vector<24x128xf32>
    %cst_57 = arith.constant dense<0.000000e+00> : vector<128xf32>
    %70 = vector.multi_reduction <add>, %69, %cst_57 [0] : vector<24x128xf32> to vector<128xf32>
    %71 = vector.shape_cast %70 : vector<128xf32> to vector<1x128xf32>
    %cst_58 = arith.constant 6.250000e-02 : f32
    %72 = vector.broadcast %cst_58 : f32 to vector<1x128xf32>
    %73 = arith.mulf %71, %72 : vector<1x128xf32>
    %74 = vector.broadcast %64 : vector<1x128xf32> to vector<24x128xf32>
    %75 = arith.subf %57, %74 : vector<24x128xf32>
    %cst_59 = arith.constant 9.99999974E-6 : f32
    %76 = vector.broadcast %cst_59 : f32 to vector<1x128xf32>
    %77 = arith.addf %73, %76 : vector<1x128xf32>
    %78 = math.rsqrt %77 : vector<1x128xf32>
    %79 = vector.broadcast %78 : vector<1x128xf32> to vector<24x128xf32>
    %80 = arith.mulf %75, %79 : vector<24x128xf32>
    %cst_60 = arith.constant 0.000000e+00 : f32
    %81 = vector.broadcast %cst_60 : f32 to vector<24x128xf32>
    %82 = arith.cmpf oge, %80, %81 : vector<24x128xf32>
    %cst_61 = arith.constant 2.000000e-01 : f32
    %83 = vector.broadcast %cst_61 : f32 to vector<24x128xf32>
    %84 = arith.mulf %83, %80 : vector<24x128xf32>
    %85 = arith.select %82, %80, %84 : vector<24x128xi1>, vector<24x128xf32>
    %86 = arith.truncf %85 : vector<24x128xf32> to vector<24x128xbf16>
    %c0_62 = arith.constant 0 : index
    %c0_63 = arith.constant 0 : index
    %c0_64 = arith.constant 0 : index
    %87 = vector.load %arg5[%c0_62, %c0_63, %c0_64] : memref<1x24x128xbf16, #tpu.memory_space<vmem>>, vector<1x24x128xbf16>
    %88 = vector.shape_cast %87 : vector<1x24x128xbf16> to vector<24x128xbf16>
    %89 = vector.shape_cast %86 : vector<24x128xbf16> to vector<1x24x128xbf16>
    tpu.vector_store %arg5[%c0_62, %c0_63, %c0_64], %89 {strides = array<i32>} : memref<1x24x128xbf16, #tpu.memory_space<vmem>>, vector<1x24x128xbf16>,
    return
  }
  func.func @transform_0(%arg0: i32) -> (i32, i32, i32) {
    %c0_i32 = arith.constant 0 : i32
    %c0_i32_0 = arith.constant 0 : i32
    %c0_i32_1 = arith.constant 0 : i32
    return %arg0, %c0_i32, %c0_i32_0 : i32, i32, i32
  }
  func.func @transform_1(%arg0: i32) -> (i32, i32, i32) {
    %c0_i32 = arith.constant 0 : i32
    %c0_i32_0 = arith.constant 0 : i32
    %c0_i32_1 = arith.constant 0 : i32
    %c0_i32_2 = arith.constant 0 : i32
    return %c0_i32, %c0_i32_0, %c0_i32_1 : i32, i32, i32
  }
  func.func @transform_2(%arg0: i32) -> (i32, i32) {
    %c0_i32 = arith.constant 0 : i32
    %c0_i32_0 = arith.constant 0 : i32
    %c0_i32_1 = arith.constant 0 : i32
    return %c0_i32, %c0_i32_0 : i32, i32
  }
  func.func @transform_3(%arg0: i32) -> (i32, i32) {
    %c0_i32 = arith.constant 0 : i32
    %c0_i32_0 = arith.constant 0 : i32
    %c0_i32_1 = arith.constant 0 : i32
    return %c0_i32, %c0_i32_0 : i32, i32
  }
  func.func @transform_4(%arg0: i32) -> (i32, i32, i32) {
    %c0_i32 = arith.constant 0 : i32
    %c0_i32_0 = arith.constant 0 : i32
    %c0_i32_1 = arith.constant 0 : i32
    return %arg0, %c0_i32, %c0_i32_0 : i32, i32, i32
  }
}

module attributes {stable_mosaic.version = 11 : i64} {
  func.func @kernel(%arg0: i32, %arg1: memref<1x42x128xbf16, #tpu.memory_space<vmem>>, %arg2: memref<9x128x128xbf16, #tpu.memory_space<vmem>>, %arg3: memref<1x128xf32, #tpu.memory_space<vmem>>, %arg4: memref<24x1xf32, #tpu.memory_space<vmem>>, %arg5: memref<1x24x128xf32, #tpu.memory_space<vmem>>) attributes {dimension_semantics = [#tpu.dimension_semantics<parallel>], iteration_bounds = array<i64: 2>, scalar_prefetch = 0 : i64, scratch_operands = 0 : i64, tpu.core_type = #tpu.core_type<tc>, window_params = [{transform_indices = @transform_0, window_bounds = array<i64: 1, 42, 128>}, {pipeline_mode = #tpu.pipeline_mode<synchronous>, transform_indices = @transform_1, window_bounds = array<i64: 9, 128, 128>}, {pipeline_mode = #tpu.pipeline_mode<synchronous>, transform_indices = @transform_2, window_bounds = array<i64: 1, 128>}, {pipeline_mode = #tpu.pipeline_mode<synchronous>, transform_indices = @transform_3, window_bounds = array<i64: 24, 1>}, {transform_indices = @transform_4, window_bounds = array<i64: 1, 24, 128>}]} {
    %cst = arith.constant 0.000000e+00 : f32
    %0 = vector.broadcast %cst : f32 to vector<24x128xf32>
    %c0 = arith.constant 0 : index
    %c0_0 = arith.constant 0 : index
    %c0_1 = arith.constant 0 : index
    %1 = vector.load %arg1[%c0, %c0_0, %c0_1] : memref<1x42x128xbf16, #tpu.memory_space<vmem>>, vector<1x24x128xbf16>
    %2 = vector.shape_cast %1 : vector<1x24x128xbf16> to vector<24x128xbf16>
    %c0_2 = arith.constant 0 : index
    %c0_3 = arith.constant 0 : index
    %c0_4 = arith.constant 0 : index
    %3 = vector.load %arg2[%c0_2, %c0_3, %c0_4] : memref<9x128x128xbf16, #tpu.memory_space<vmem>>, vector<1x128x128xbf16>
    %4 = vector.shape_cast %3 : vector<1x128x128xbf16> to vector<128x128xbf16>
    %cst_5 = arith.constant dense<0.000000e+00> : vector<24x128xf32>
    %5 = tpu.matmul %2, %4, %cst_5 {dimension_numbers = #tpu.dot_dimension_numbers<[1], [0], [0], [1], [0, 0, 1, 1], [], []>} : vector<24x128xbf16>, vector<128x128xbf16>, vector<24x128xf32> -> vector<24x128xf32>
    %6 = arith.addf %0, %5 : vector<24x128xf32>
    %c0_6 = arith.constant 0 : index
    %c1 = arith.constant 1 : index
    %c0_7 = arith.constant 0 : index
    %7 = vector.load %arg1[%c0_6, %c1, %c0_7] : memref<1x42x128xbf16, #tpu.memory_space<vmem>>, vector<1x24x128xbf16>
    %8 = vector.shape_cast %7 : vector<1x24x128xbf16> to vector<24x128xbf16>
    %c1_8 = arith.constant 1 : index
    %c0_9 = arith.constant 0 : index
    %c0_10 = arith.constant 0 : index
    %9 = vector.load %arg2[%c1_8, %c0_9, %c0_10] : memref<9x128x128xbf16, #tpu.memory_space<vmem>>, vector<1x128x128xbf16>
    %10 = vector.shape_cast %9 : vector<1x128x128xbf16> to vector<128x128xbf16>
    %cst_11 = arith.constant dense<0.000000e+00> : vector<24x128xf32>
    %11 = tpu.matmul %8, %10, %cst_11 {dimension_numbers = #tpu.dot_dimension_numbers<[1], [0], [0], [1], [0, 0, 1, 1], [], []>} : vector<24x128xbf16>, vector<128x128xbf16>, vector<24x128xf32> -> vector<24x128xf32>
    %12 = arith.addf %6, %11 : vector<24x128xf32>
    %c0_12 = arith.constant 0 : index
    %c2 = arith.constant 2 : index
    %c0_13 = arith.constant 0 : index
    %13 = vector.load %arg1[%c0_12, %c2, %c0_13] : memref<1x42x128xbf16, #tpu.memory_space<vmem>>, vector<1x24x128xbf16>
    %14 = vector.shape_cast %13 : vector<1x24x128xbf16> to vector<24x128xbf16>
    %c2_14 = arith.constant 2 : index
    %c0_15 = arith.constant 0 : index
    %c0_16 = arith.constant 0 : index
    %15 = vector.load %arg2[%c2_14, %c0_15, %c0_16] : memref<9x128x128xbf16, #tpu.memory_space<vmem>>, vector<1x128x128xbf16>
    %16 = vector.shape_cast %15 : vector<1x128x128xbf16> to vector<128x128xbf16>
    %cst_17 = arith.constant dense<0.000000e+00> : vector<24x128xf32>
    %17 = tpu.matmul %14, %16, %cst_17 {dimension_numbers = #tpu.dot_dimension_numbers<[1], [0], [0], [1], [0, 0, 1, 1], [], []>} : vector<24x128xbf16>, vector<128x128xbf16>, vector<24x128xf32> -> vector<24x128xf32>
    %18 = arith.addf %12, %17 : vector<24x128xf32>
    %c0_18 = arith.constant 0 : index
    %c6 = arith.constant 6 : index
    %c0_19 = arith.constant 0 : index
    %19 = vector.load %arg1[%c0_18, %c6, %c0_19] : memref<1x42x128xbf16, #tpu.memory_space<vmem>>, vector<1x24x128xbf16>
    %20 = vector.shape_cast %19 : vector<1x24x128xbf16> to vector<24x128xbf16>
    %c3 = arith.constant 3 : index
    %c0_20 = arith.constant 0 : index
    %c0_21 = arith.constant 0 : index
    %21 = vector.load %arg2[%c3, %c0_20, %c0_21] : memref<9x128x128xbf16, #tpu.memory_space<vmem>>, vector<1x128x128xbf16>
    %22 = vector.shape_cast %21 : vector<1x128x128xbf16> to vector<128x128xbf16>
    %cst_22 = arith.constant dense<0.000000e+00> : vector<24x128xf32>
    %23 = tpu.matmul %20, %22, %cst_22 {dimension_numbers = #tpu.dot_dimension_numbers<[1], [0], [0], [1], [0, 0, 1, 1], [], []>} : vector<24x128xbf16>, vector<128x128xbf16>, vector<24x128xf32> -> vector<24x128xf32>
    %24 = arith.addf %18, %23 : vector<24x128xf32>
    %c0_23 = arith.constant 0 : index
    %c7 = arith.constant 7 : index
    %c0_24 = arith.constant 0 : index
    %25 = vector.load %arg1[%c0_23, %c7, %c0_24] : memref<1x42x128xbf16, #tpu.memory_space<vmem>>, vector<1x24x128xbf16>
    %26 = vector.shape_cast %25 : vector<1x24x128xbf16> to vector<24x128xbf16>
    %c4 = arith.constant 4 : index
    %c0_25 = arith.constant 0 : index
    %c0_26 = arith.constant 0 : index
    %27 = vector.load %arg2[%c4, %c0_25, %c0_26] : memref<9x128x128xbf16, #tpu.memory_space<vmem>>, vector<1x128x128xbf16>
    %28 = vector.shape_cast %27 : vector<1x128x128xbf16> to vector<128x128xbf16>
    %cst_27 = arith.constant dense<0.000000e+00> : vector<24x128xf32>
    %29 = tpu.matmul %26, %28, %cst_27 {dimension_numbers = #tpu.dot_dimension_numbers<[1], [0], [0], [1], [0, 0, 1, 1], [], []>} : vector<24x128xbf16>, vector<128x128xbf16>, vector<24x128xf32> -> vector<24x128xf32>
    %30 = arith.addf %24, %29 : vector<24x128xf32>
    %c0_28 = arith.constant 0 : index
    %c8 = arith.constant 8 : index
    %c0_29 = arith.constant 0 : index
    %31 = vector.load %arg1[%c0_28, %c8, %c0_29] : memref<1x42x128xbf16, #tpu.memory_space<vmem>>, vector<1x24x128xbf16>
    %32 = vector.shape_cast %31 : vector<1x24x128xbf16> to vector<24x128xbf16>
    %c5 = arith.constant 5 : index
    %c0_30 = arith.constant 0 : index
    %c0_31 = arith.constant 0 : index
    %33 = vector.load %arg2[%c5, %c0_30, %c0_31] : memref<9x128x128xbf16, #tpu.memory_space<vmem>>, vector<1x128x128xbf16>
    %34 = vector.shape_cast %33 : vector<1x128x128xbf16> to vector<128x128xbf16>
    %cst_32 = arith.constant dense<0.000000e+00> : vector<24x128xf32>
    %35 = tpu.matmul %32, %34, %cst_32 {dimension_numbers = #tpu.dot_dimension_numbers<[1], [0], [0], [1], [0, 0, 1, 1], [], []>} : vector<24x128xbf16>, vector<128x128xbf16>, vector<24x128xf32> -> vector<24x128xf32>
    %36 = arith.addf %30, %35 : vector<24x128xf32>
    %c0_33 = arith.constant 0 : index
    %c12 = arith.constant 12 : index
    %c0_34 = arith.constant 0 : index
    %37 = vector.load %arg1[%c0_33, %c12, %c0_34] : memref<1x42x128xbf16, #tpu.memory_space<vmem>>, vector<1x24x128xbf16>
    %38 = vector.shape_cast %37 : vector<1x24x128xbf16> to vector<24x128xbf16>
    %c6_35 = arith.constant 6 : index
    %c0_36 = arith.constant 0 : index
    %c0_37 = arith.constant 0 : index
    %39 = vector.load %arg2[%c6_35, %c0_36, %c0_37] : memref<9x128x128xbf16, #tpu.memory_space<vmem>>, vector<1x128x128xbf16>
    %40 = vector.shape_cast %39 : vector<1x128x128xbf16> to vector<128x128xbf16>
    %cst_38 = arith.constant dense<0.000000e+00> : vector<24x128xf32>
    %41 = tpu.matmul %38, %40, %cst_38 {dimension_numbers = #tpu.dot_dimension_numbers<[1], [0], [0], [1], [0, 0, 1, 1], [], []>} : vector<24x128xbf16>, vector<128x128xbf16>, vector<24x128xf32> -> vector<24x128xf32>
    %42 = arith.addf %36, %41 : vector<24x128xf32>
    %c0_39 = arith.constant 0 : index
    %c13 = arith.constant 13 : index
    %c0_40 = arith.constant 0 : index
    %43 = vector.load %arg1[%c0_39, %c13, %c0_40] : memref<1x42x128xbf16, #tpu.memory_space<vmem>>, vector<1x24x128xbf16>
    %44 = vector.shape_cast %43 : vector<1x24x128xbf16> to vector<24x128xbf16>
    %c7_41 = arith.constant 7 : index
    %c0_42 = arith.constant 0 : index
    %c0_43 = arith.constant 0 : index
    %45 = vector.load %arg2[%c7_41, %c0_42, %c0_43] : memref<9x128x128xbf16, #tpu.memory_space<vmem>>, vector<1x128x128xbf16>
    %46 = vector.shape_cast %45 : vector<1x128x128xbf16> to vector<128x128xbf16>
    %cst_44 = arith.constant dense<0.000000e+00> : vector<24x128xf32>
    %47 = tpu.matmul %44, %46, %cst_44 {dimension_numbers = #tpu.dot_dimension_numbers<[1], [0], [0], [1], [0, 0, 1, 1], [], []>} : vector<24x128xbf16>, vector<128x128xbf16>, vector<24x128xf32> -> vector<24x128xf32>
    %48 = arith.addf %42, %47 : vector<24x128xf32>
    %c0_45 = arith.constant 0 : index
    %c14 = arith.constant 14 : index
    %c0_46 = arith.constant 0 : index
    %49 = vector.load %arg1[%c0_45, %c14, %c0_46] : memref<1x42x128xbf16, #tpu.memory_space<vmem>>, vector<1x24x128xbf16>
    %50 = vector.shape_cast %49 : vector<1x24x128xbf16> to vector<24x128xbf16>
    %c8_47 = arith.constant 8 : index
    %c0_48 = arith.constant 0 : index
    %c0_49 = arith.constant 0 : index
    %51 = vector.load %arg2[%c8_47, %c0_48, %c0_49] : memref<9x128x128xbf16, #tpu.memory_space<vmem>>, vector<1x128x128xbf16>
    %52 = vector.shape_cast %51 : vector<1x128x128xbf16> to vector<128x128xbf16>
    %cst_50 = arith.constant dense<0.000000e+00> : vector<24x128xf32>
    %53 = tpu.matmul %50, %52, %cst_50 {dimension_numbers = #tpu.dot_dimension_numbers<[1], [0], [0], [1], [0, 0, 1, 1], [], []>} : vector<24x128xbf16>, vector<128x128xbf16>, vector<24x128xf32> -> vector<24x128xf32>
    %54 = arith.addf %48, %53 : vector<24x128xf32>
    %c0_51 = arith.constant 0 : index
    %c0_52 = arith.constant 0 : index
    %55 = vector.load %arg3[%c0_51, %c0_52] : memref<1x128xf32, #tpu.memory_space<vmem>>, vector<1x128xf32>
    %56 = vector.broadcast %55 : vector<1x128xf32> to vector<24x128xf32>
    %57 = arith.addf %54, %56 : vector<24x128xf32>
    %cst_53 = arith.constant 0.000000e+00 : f32
    %58 = vector.broadcast %cst_53 : f32 to vector<24x128xf32>
    %59 = arith.subf %58, %57 : vector<24x128xf32>
    %60 = math.exp %59 : vector<24x128xf32>
    %cst_54 = arith.constant 1.000000e+00 : f32
    %61 = vector.broadcast %cst_54 : f32 to vector<24x128xf32>
    %62 = arith.addf %61, %60 : vector<24x128xf32>
    %63 = tpu.reciprocal %62 {approx = true} : vector<24x128xf32> -> vector<24x128xf32>
    %c0_55 = arith.constant 0 : index
    %c0_56 = arith.constant 0 : index
    %c0_57 = arith.constant 0 : index
    %64 = vector.load %arg5[%c0_55, %c0_56, %c0_57] : memref<1x24x128xf32, #tpu.memory_space<vmem>>, vector<1x24x128xf32>
    %65 = vector.shape_cast %64 : vector<1x24x128xf32> to vector<24x128xf32>
    %66 = vector.shape_cast %63 : vector<24x128xf32> to vector<1x24x128xf32>
    tpu.vector_store %arg5[%c0_55, %c0_56, %c0_57], %66 {strides = array<i32>} : memref<1x24x128xf32, #tpu.memory_space<vmem>>, vector<1x24x128xf32>,
    return
  }
  func.func @transform_0(%arg0: i32) -> (i32, i32, i32) {
    %c0_i32 = arith.constant 0 : i32
    %c0_i32_0 = arith.constant 0 : i32
    %c0_i32_1 = arith.constant 0 : i32
    return %arg0, %c0_i32, %c0_i32_0 : i32, i32, i32
  }
  func.func @transform_1(%arg0: i32) -> (i32, i32, i32) {
    %c0_i32 = arith.constant 0 : i32
    %c0_i32_0 = arith.constant 0 : i32
    %c0_i32_1 = arith.constant 0 : i32
    %c0_i32_2 = arith.constant 0 : i32
    return %c0_i32, %c0_i32_0, %c0_i32_1 : i32, i32, i32
  }
  func.func @transform_2(%arg0: i32) -> (i32, i32) {
    %c0_i32 = arith.constant 0 : i32
    %c0_i32_0 = arith.constant 0 : i32
    %c0_i32_1 = arith.constant 0 : i32
    return %c0_i32, %c0_i32_0 : i32, i32
  }
  func.func @transform_3(%arg0: i32) -> (i32, i32) {
    %c0_i32 = arith.constant 0 : i32
    %c0_i32_0 = arith.constant 0 : i32
    %c0_i32_1 = arith.constant 0 : i32
    return %c0_i32, %c0_i32_0 : i32, i32
  }
  func.func @transform_4(%arg0: i32) -> (i32, i32, i32) {
    %c0_i32 = arith.constant 0 : i32
    %c0_i32_0 = arith.constant 0 : i32
    %c0_i32_1 = arith.constant 0 : i32
    return %arg0, %c0_i32, %c0_i32_0 : i32, i32, i32
  }
}

</mosaic_0001>

<bundles_post_ra>
// kernel: discriminator_forward.7
= control target key start
LH: loop header
LB: loop body
LE: loop exit
PB: predicated region body
PF: predicated region fallthrough
CT: control target
= control target key end

     0   :  { %s3735_s15 = smov 0   ;;  %s4872_s0 = inlined_call_operand.vmem [shape: bf16[2,342,3], index: 0, kind: input, shape index: {}]   ;;  %s4873_s1 = inlined_call_operand.vmem [shape: bf16[9,3,16], index: 1, kind: input, shape index: {}]   ;;  %s4874_s2 = inlined_call_operand.vmem [shape: f32[1,16], index: 2, kind: input, shape index: {}]   ;;  %s4875_s3 = inlined_call_operand.vmem [shape: f32[288,1], index: 3, kind: input, shape index: {}]   ;;  %s4876_s4 = inlined_call_operand.vmem [shape: bf16[2,288,16], index: 4, kind: output, shape index: {}]  }
   0x1 LB: > { %s3224_s16 = sadd.s32 4294967295, %s3707_s15   ;;  %p3228_p0 = scmp.ge.s32.totalorder %s3707_s15, 1  ;;  %s3707_s15 = sphi %s3735_s15, %s14_s15  }
   0x2   : > { %p162_p1 = scmp.lt.s32.totalorder %s3707_s15, 3 }
   0x4   : > { %p163_p2 = pnand %p3228_p0, %p162_p1 }
   0x6   : > { %166 = sbr.rel (%p163_p2) target bundleno = 820 (0x334), region = 36 }
   0xb   : > { %v3231_v0 = vld [vmem:[%s4873_s1 + $0x2] sm:$0x3]  ;;  %vm536_vm0 = vcmask 1040384   ;;  %vm537_vm1 = vcmask 1041408   ;;  %p188_p3 = scmp.lt.s32.totalorder %s3224_s16, 1  ;;  %v3709_v1 = vmov 65535  }
   0xc   : > { %v538_v2 = vsel %vm536_vm0, 4294967295, %v3709_v1  ;;  %v3336_v3 = vld [vmem:[%s4873_s1 + $0x4] sm:$0x3]  ;;  %v235_v5 = vld [vmem:[%s4873_s1] sm:$0x3]  ;;  %vm481_vm3 = vcmask 23552  }
   0xd   : > { %v3749_v4 = vsel %vm537_vm1, %v538_v2, 0  ;;  %s4902_s16 = smov (!%p188_p3, %s3224_s16), 1  ;;  %v3442_v6 = vld [vmem:[%s4873_s1 + $0x8] sm:$0x3]  ;;  %vm332_vm2 = vsmask.f32 7424 }
   0xe   : > { %v541_v7 = vand.u32 %v3231_v0, %v3749_v4  ;;  %v879_v8 = vand.u32 %v3336_v3, %v3749_v4  ;;  %v679_v9 = vand.u32 %v3749_v4, %v235_v5  ;;  %v1609_v10 = vand.u32 %v3442_v6, %v3749_v4  ;;  %s3668_s24 = smul.u32 172, %s4902_s16  ;;  %v3355_v48 = vld [vmem:[%s4873_s1 + $0x6] sm:$0x3] }
   0xf   : > { %v1240_v56 = vand.u32 %v3355_v48, %v3749_v4  ;;  %vm786_vm4 = vcmask 1046528   ;;  %vm1383_vm5 = vsmask.f32 6400  ;;  %vm2349_vm6 = vsmask.f32 5376  ;;  %s3669_s14 = smul.u32 144, %s4902_s16 }
  0x10   : > { %3665 = vmatpush.bf16.msra.mxu1 %v541_v7  ;;  %3666 = vmatpush.bf16.msra.mxu2 %v541_v7  ;;  %s3767_s27 = scalar_lea.vmem %s4872_s0, %s3668_s24  ;;  %vm1752_vm7 = vcmask 1045504   ;;  %vm2718_vm8 = vcmask 1044480   ;;  %vm3132_vm10 = vcmask 125952  }
  0x11   : > { %550 = vmatpush.bf16.msra.mxu0 %v541_v7  ;;  %v3770_v11 = vld [vmem:[%s3767_s27 + $0x28] sm:$0xff]  ;;  %v3773_v12 = vld [vmem:[%s3767_s27 + $0x30] sm:$0xff]  ;;  %v3779_v14 = vld [vmem:[%s3767_s27 + $0x58] sm:$0xff]  ;;  %3667 = vmatpush.bf16.msra.mxu3 %v541_v7  ;;  %s4540_s3 = scalar_lea.vmem %s4876_s4, %s3669_s14 }
  0x12   : > { %v3776_v13 = vld [vmem:[%s3767_s27 + $0x50] sm:$0xff]  ;;  %v3782_v15 = vld [vmem:[%s3767_s27] sm:$0xff]   ;;  %v3785_v16 = vld [vmem:[%s3767_s27 + $0x8] sm:$0xff]  ;;  %v373_v17 = vshll.u32 %v3770_v11, 16  ;;  %v377_v18 = vshrl.u32 %v3770_v11, 16  ;;  %v381_v19 = vshll.u32 %v3773_v12, 16 }
  0x13   : > { %v413_v20 = vshll.u32 %v3776_v13, 16  ;;  %v417_v21 = vshrl.u32 %v3776_v13, 16  ;;  %v421_v22 = vshll.u32 %v3779_v14, 16  ;;  %v334_v23 = vshrl.u32 %v3782_v15, 16  ;;  %v3803_v34 = vld [vmem:[%s3767_s27 + $0x78] sm:$0xff]  ;;  %v3622_v35 = vld [vmem:[%s3767_s27 + $0x80] sm:$0xff] }
  0x14   : > { %888 = vmatpush.bf16.msrb.mxu2 %v879_v8  ;;  %688 = vmatpush.bf16.msrb.mxu1 %v679_v9  ;;  %v336_v24 = vshll.u32 %v3782_v15, 16  ;;  %v3795_v25 = vrot.slane %v373_v17, 1  ;;  %v383_v26 = vrot.slane %v381_v19, 1  ;;  %v341_v28 = vshll.u32 %v3785_v16, 16  ;;  %v3812_v40 = vld [vmem:[%s3767_s27 + $0x38] sm:$0xff]  ;;  %v3816_v41 = vld [vmem:[%s3767_s27 + $0x60] sm:$0xff] }
  0x15   : > { %1618 = vmatpush.bf16.msrb.mxu0 %v1609_v10  ;;  %v3797_v27 = vrot.slane %v413_v20, 1  ;;  %v423_v29 = vrot.slane %v421_v22, 1  ;;  %v453_v42 = vshll.u32 %v3803_v34, 16  ;;  %v457_v43 = vshrl.u32 %v3803_v34, 16  ;;  %v3821_v45 = vld [vmem:[%s3767_s27 + $0x10] sm:$0xff]  ;;  %1249 = vmatpush.bf16.msrb.mxu3 %v1240_v56  ;;  %v3623_v62 = vld [vmem:[%s3767_s27 + $0x88] sm:$0xff] }
  0x16   : > { %v338_v30 = vrot.slane %v336_v24, 1  ;;  %v379_v31 = vor.u32 %v377_v18, %v3795_v25  ;;  %v343_v33 = vrot.slane %v341_v28, 1  ;;  %v461_v44 = vshll.u32 %v3622_v35, 16  ;;  %v3840_v63 = vld [vmem:[%s3767_s27 + $0x48] sm:$0xff]  ;;  %v3849_v9 = vld [vmem:[%s3767_s27 + $0x40] sm:$0xff]  ;;  %v3887_v56 = vld [vmem:[%s3767_s27 + $0x70] sm:$0xff] }
  0x17   : > { %v419_v32 = vor.u32 %v417_v21, %v3797_v27  ;;  %v3823_v46 = vrot.slane %v453_v42, 1  ;;  %v385_v49 = vshrl.u32 %v3773_v12, 16  ;;  %v389_v50 = vshll.u32 %v3812_v40, 16  ;;  %v3852_v10 = vld [vmem:[%s3767_s27 + $0x68] sm:$0xff]  ;;  %v3857_v21 = vld [vmem:[%s3767_s27 + $0x18] sm:$0xff] }
  0x18   : > { %v339_v36 = vor.u32 %v338_v30, %v334_v23  ;;  %v384_v37 = vsel %vm332_vm2, %v379_v31, %v383_v26  ;;  %v463_v47 = vrot.slane %v461_v44, 1  ;;  %v425_v51 = vshrl.u32 %v3779_v14, 16  ;;  %v236_v22 = vld [vmem:[%s3767_s27 + $0x90] sm:$0x1]  ;;  %v3866_v31 = vld [vmem:[%s3767_s27 + $0x20] sm:$0xff] }
  0x19   : > { %v424_v38 = vsel %vm332_vm2, %v419_v32, %v423_v29  ;;  %3305 = vmatmul.msk.bf16.vlgmr.msra.gmra.mxu1 %vm481_vm3, %v384_v37  ;;  %v429_v52 = vshll.u32 %v3816_v41, 16  ;;  %v459_v53 = vor.u32 %v457_v43, %v3823_v46  ;;  %v345_v54 = vshrl.u32 %v3785_v16, 16 }
  0x1a   : > { %3310 = vmatmul.msk.bf16.vlgmr.msra.gmra.mxu2 %vm481_vm3, %v424_v38  ;;  %v344_v39 = vsel %vm332_vm2, %v339_v36, %v343_v33  ;;  %v349_v55 = vshll.u32 %v3821_v45, 16  ;;  %v387_v58 = vor.u32 %v385_v49, %v383_v26  ;;  %v391_v59 = vrot.slane %v389_v50, 1 }
  0x1b   : > { %3300 = vmatmul.msk.bf16.vlgmr.msra.gmra.mxu0 %vm481_vm3, %v344_v39  ;;  %v464_v57 = vsel %vm332_vm2, %v459_v53, %v463_v47  ;;  %v427_v60 = vor.u32 %v425_v51, %v423_v29  ;;  %v431_v61 = vrot.slane %v429_v52, 1  ;;  %v347_v0 = vor.u32 %v345_v54, %v343_v33 }
  0x1c   : > { %3315 = vmatmul.msk.bf16.vlgmr.msra.gmra.mxu3 %vm481_vm3, %v464_v57  ;;  %v351_v1 = vrot.slane %v349_v55, 1  ;;  %v392_v2 = vsel %vm332_vm2, %v387_v58, %v391_v59  ;;  %v465_v5 = vshrl.u32 %v3622_v35, 16  ;;  %v469_v6 = vshll.u32 %v3623_v62, 16 }
  0x1d   : > { %v432_v3 = vsel %vm332_vm2, %v427_v60, %v431_v61  ;;  %v405_v7 = vshll.u32 %v3840_v63, 16  ;;  %v409_v20 = vshrl.u32 %v3840_v63, 16  ;;  %v393_v24 = vshrl.u32 %v3812_v40, 16 }
  0x1e   : > { %v352_v8 = vsel %vm332_vm2, %v347_v0, %v351_v1  ;;  %v467_v17 = vor.u32 %v465_v5, %v463_v47  ;;  %v471_v18 = vrot.slane %v469_v6, 1  ;;  %v397_v26 = vshll.u32 %v3849_v9, 16 }
  0x1f   : > { %v407_v19 = vrot.slane %v405_v7, 1  ;;  %v433_v28 = vshrl.u32 %v3816_v41, 16  ;;  %v437_v29 = vshll.u32 %v3852_v10, 16  ;;  %v312_v32 = vunpack.c.l.b16 %v236_v22  ;;  %v3624_v22 = vld [vmem:[%s3767_s27 + $0x10] sm:$0xff] }
  0x20   : > { %v472_v30 = vsel %vm332_vm2, %v467_v17, %v471_v18  ;;  %v353_v35 = vshrl.u32 %v3821_v45, 16  ;;  %v357_v36 = vshll.u32 %v3857_v21, 16  ;;  %v395_v37 = vor.u32 %v393_v24, %v391_v59 }
  0x21   : > { %v411_v23 = vor.u32 %v409_v20, %v407_v19  ;;  %v399_v38 = vrot.slane %v397_v26, 1  ;;  %v435_v39 = vor.u32 %v433_v28, %v431_v61  ;;  %v439_v42 = vrot.slane %v437_v29, 1  ;;  %v3480_v26 = vld [vmem:[%s4873_s1 + $0xc] sm:$0x3] }
  0x22   : > { %v365_v43 = vshll.u32 %v3866_v31, 16  ;;  %v3876_v44 = vpack.c.b16 %v312_v32, %v312_v32  ;;  %v355_v47 = vor.u32 %v353_v35, %v351_v1  ;;  %v359_v48 = vrot.slane %v357_v36, 1  ;;  %v3461_v32 = vld [vmem:[%s4873_s1 + $0xa] sm:$0x3] }
  0x23   : > { %v3870_v33 = vsel %vm332_vm2, %v411_v23, %v3797_v27  ;;  %v400_v27 = vsel %vm332_vm2, %v395_v37, %v399_v38  ;;  %v440_v49 = vsel %vm332_vm2, %v435_v39, %v439_v42  ;;  %v473_v51 = vshrl.u32 %v3623_v62, 16  ;;  %v3586_v37 = vld [vmem:[%s4873_s1 + $0x10] sm:$0x3] }
  0x24   : > { %v367_v50 = vrot.slane %v365_v43, 1  ;;  %v477_v52 = vshll.u32 %v3876_v44, 16  ;;  %v369_v53 = vshrl.u32 %v3866_v31, 16  ;;  %v360_v54 = vsel %vm332_vm2, %v355_v47, %v359_v48 }
  0x25   : > { %v475_v57 = vor.u32 %v473_v51, %v471_v18  ;;  %v401_v60 = vshrl.u32 %v3849_v9, 16  ;;  %v441_v61 = vshrl.u32 %v3852_v10, 16  ;;  %v445_v62 = vshll.u32 %v3887_v56, 16 }
  0x26   : > { %v371_v55 = vor.u32 %v369_v53, %v367_v50  ;;  %v479_v58 = vrot.slane %v477_v52, 1  ;;  %v361_v1 = vshrl.u32 %v3857_v21, 16  ;;  %v2206_v29 = vand.u32 %v3480_v26, %v3749_v4 }
  0x27   : > { %v403_v5 = vor.u32 %v401_v60, %v399_v38  ;;  %v443_v6 = vor.u32 %v441_v61, %v439_v42  ;;  %v447_v7 = vrot.slane %v445_v62, 1  ;;  %v1845_v36 = vand.u32 %v3461_v32, %v3749_v4 }
  0x28   : > { %v376_v59 = vsel %vm332_vm2, %v371_v55, %v3795_v25  ;;  %v480_v0 = vsel %vm332_vm2, %v475_v57, %v479_v58  ;;  %v363_v17 = vor.u32 %v361_v1, %v359_v48  ;;  %2215 = vmatpush.bf16.msra.mxu2 %v2206_v29  ;;  %v2811_v38 = vand.u32 %v3586_v37, %v3749_v4  ;;  %v3625_v48 = vld [vmem:[%s3767_s27 + $0x18] sm:$0xff]  ;;  %v3626_v1 = vld [vmem:[%s3767_s27 + $0x20] sm:$0xff] }
  0x29   : > { %3306 = vmatmul.msk.bf16.gmra.mxu1 %vm481_vm3, %v392_v2  ;;  %v1016_v2 = vld [vmem:[%s3767_s27 + $0x8] sm:$0xe]  ;;  %v408_v18 = vsel %vm332_vm2, %v403_v5, %v407_v19  ;;  %v448_v20 = vsel %vm332_vm2, %v443_v6, %v447_v7  ;;  %v1149_v19 = vrot.slane %v3624_v22, 1  ;;  %v449_v39 = vshrl.u32 %v3887_v56, 16 }
  0x2a   : > { %3311 = vmatmul.msk.bf16.gmra.mxu2 %vm481_vm3, %v432_v3  ;;  %v3898_v3 = vld [vmem:[%s3767_s27 + $0xc] sm:$0xf]  ;;  %v1092_v25 = vunpack.c.l.b16 %v1016_v2  ;;  %v368_v24 = vsel %vm332_vm2, %v363_v17, %v367_v50  ;;  %1854 = vmatpush.bf16.msra.mxu1 %v1845_v36  ;;  %v1393_v52 = vshrl.u32 %v3624_v22, 16  ;;  %v1396_v53 = vshll.u32 %v3624_v22, 16 }
  0x2b   : > { %3301 = vmatmul.msk.bf16.gmra.mxu0 %vm481_vm3, %v352_v8  ;;  %v4877_v8 = vunpack.c.l.b16 %v3898_v3  ;;  %v451_v43 = vor.u32 %v449_v39, %v447_v7  ;;  %v1153_v5 = vrot.slane %v3626_v1, 1  ;;  %v1402_v6 = vshrl.u32 %v3625_v48, 16 }
  0x2c   : > { %3316 = vmatmul.msk.bf16.gmra.mxu3 %vm481_vm3, %v472_v30  ;;  %v3567_v30 = vld [vmem:[%s4873_s1 + $0xe] sm:$0x3]  ;;  %2820 = vmatpush.bf16.msra.mxu0 %v2811_v38  ;;  %v1395_v58 = vrot.slane %v1393_v52, 1  ;;  %v1398_v60 = vrot.slane %v1396_v53, 2  ;;  %v1405_v7 = vshll.u32 %v3625_v48, 16  ;;  %v3628_v38 = vld [vmem:[%s3767_s27 + $0x30] sm:$0xff] }
  0x2d   : > { %v1129_v23 = vpack.c.b16 %v4877_v8, %v1092_v25  ;;  %v2575_v35 = vand.u32 %v3567_v30, %v3749_v4  ;;  %v456_v47 = vsel %vm332_vm2, %v451_v43, %v3823_v46  ;;  %v3662_v4 = vld [vmem:[%s3767_s27] sm:$0xf0]  ;;  %v1404_v17 = vrot.slane %v1402_v6, 1 }
  0x2e   : > { %v1399_v62 = vor.u32 %v1398_v60, %v1395_v58  ;;  %v1157_v39 = vrot.slane %v3628_v38, 1  ;;  %v3630_v6 = vld [vmem:[%s3767_s27 + $0x40] sm:$0xff] }
  0x2f   : > { %v1148_v28 = vrot.slane %v1129_v23, 1  ;;  %2584 = vmatpush.bf16.msra.mxu3 %v2575_v35  ;;  %v1385_v50 = vshrl.u32 %v1129_v23, 16  ;;  %v1388_v51 = vshll.u32 %v1129_v23, 16  ;;  %v792_v35 = vrot.slane %v3857_v21, 1  ;;  %v3634_v8 = vld [vmem:[%s3767_s27 + $0x60] sm:$0xff] }
  0x31   : > { %v1150_v42 = vsel %vm786_vm4, %v1148_v28, %v1149_v19  ;;  %v1387_v46 = vrot.slane %v1385_v50, 1  ;;  %v1390_v57 = vrot.slane %v1388_v51, 2  ;;  %v1411_v28 = vshrl.u32 %v3626_v1, 16  ;;  %v3629_v51 = vld [vmem:[%s3767_s27 + $0x38] sm:$0xff] }
  0x33   : > { %v1391_v61 = vor.u32 %v1390_v57, %v1387_v46  ;;  %v1413_v30 = vrot.slane %v1411_v28, 1  ;;  %v1432_v46 = vshll.u32 %v3628_v38, 16 }
  0x35   : > { %v1400_v2 = vsel %vm1383_vm5, %v1391_v61, %v1399_v62  ;;  %v1434_v61 = vrot.slane %v1432_v46, 2 }
  0x39   : > { %3307 = vmatmul.msk.bf16.gmra.mxu1 %vm481_vm3, %v400_v27  ;;  %v1151_v27 = vrot.slane %v3625_v48, 1 }
  0x3a   : > { %3312 = vmatmul.msk.bf16.gmra.mxu2 %vm481_vm3, %v440_v49  ;;  %v3663_v49 = vld [vmem:[%s3767_s27] sm:$0xe] }
  0x3b   : > { %3302 = vmatmul.msk.bf16.gmra.mxu0 %vm481_vm3, %v360_v54  ;;  %v3664_v54 = vor.u32 %v3663_v49, %v3662_v4  ;;  %v1152_v55 = vsel %vm786_vm4, %v1149_v19, %v1151_v27  ;;  %v1154_v25 = vsel %vm786_vm4, %v1151_v27, %v1153_v5  ;;  %v1414_v19 = vshll.u32 %v3626_v1, 16 }
  0x3c   : > { %3317 = vmatmul.msk.bf16.gmra.mxu3 %vm481_vm3, %v480_v0  ;;  %v794_v27 = vrot.slane %v3866_v31, 1 }
  0x3d   : > { %v1416_v32 = vrot.slane %v1414_v19, 2  ;;  %v798_v19 = vrot.slane %v3773_v12, 1 }
  0x3f   : > { %v1417_v36 = vor.u32 %v1416_v32, %v1413_v30 }
  0x49   : > { %3308 = vmatmul.msk.bf16.gmra.mxu1 %vm481_vm3, %v408_v18  ;;  %v1407_v18 = vrot.slane %v1405_v7, 2 }
  0x4a   : > { %3313 = vmatmul.msk.bf16.gmra.mxu2 %vm481_vm3, %v448_v20  ;;  %v790_v20 = vrot.slane %v3821_v45, 1 }
  0x4b   : > { %3303 = vmatmul.msk.bf16.gmra.mxu0 %vm481_vm3, %v368_v24  ;;  %v1408_v22 = vor.u32 %v1407_v18, %v1404_v17  ;;  %v1161_v17 = vrot.slane %v3630_v6, 1  ;;  %v1438_v18 = vshrl.u32 %v3629_v51, 16 }
  0x4c   : > { %3424 = vmatmul.msk.bf16.vlgmr.msrb.gmra.mxu3 %vm481_vm3, %v1150_v42  ;;  %v793_v37 = vsel %vm786_vm4, %v790_v20, %v792_v35 }
  0x4d   : > { %v1409_v24 = vsel %vm1383_vm5, %v1399_v62, %v1408_v22  ;;  %v1440_v28 = vrot.slane %v1438_v18, 1 }
  0x59   : > { %3309 = vmatmul.msk.bf16.gmra.mxu1 %vm481_vm3, %v3870_v33  ;;  %v787_v33 = vrot.slane %v3664_v54, 1  ;;  %v1159_v54 = vrot.slane %v3629_v51, 1 }
  0x5a   : > { %3314 = vmatmul.msk.bf16.gmra.mxu2 %vm481_vm3, %v456_v47 }
  0x5b   : > { %3304 = vmatmul.msk.bf16.gmra.mxu0 %vm481_vm3, %v376_v59  ;;  %v788_v59 = vrot.slane %v3785_v16, 1  ;;  %v1160_v60 = vsel %vm786_vm4, %v1157_v39, %v1159_v54 }
  0x5c   : > { %3425 = vmatmul.msk.bf16.gmra.mxu3 %vm481_vm3, %v1152_v55  ;;  %v1429_v55 = vshrl.u32 %v3628_v38, 16 }
  0x5d   : > { %v789_v0 = vsel %vm786_vm4, %v787_v33, %v788_v59  ;;  %v791_v23 = vsel %vm786_vm4, %v788_v59, %v790_v20  ;;  %v1441_v20 = vshll.u32 %v3629_v51, 16  ;;  %v800_v51 = vrot.slane %v3812_v40, 1 }
  0x5e   : > { %v1431_v59 = vrot.slane %v1429_v55, 1 }
  0x60   : > { %v1435_v62 = vor.u32 %v1434_v61, %v1431_v59  ;;  %v3632_v59 = vld [vmem:[%s3767_s27 + $0x50] sm:$0xff] }
  0x69   : > { %3318 = vmatmul.msk.bf16.vlgmr.msrb.gmra.mxu1 %vm481_vm3, %v3782_v15  ;;  %v3627_v15 = vld [vmem:[%s3767_s27 + $0x28] sm:$0xff] }
  0x6a   : > { %3337 = vmatmul.msk.bf16.vlgmr.msrb.gmra.mxu2 %vm481_vm3, %v789_v0  ;;  %v1155_v26 = vrot.slane %v3627_v15, 1  ;;  %v1420_v42 = vshrl.u32 %v3627_v15, 16  ;;  %v1423_v43 = vshll.u32 %v3627_v15, 16 }
  0x6b   : > { %3443 = vmatmul.msk.bf16.vlgmr.msrb.gmra.mxu0 %vm481_vm3, %v1400_v2 }
  0x6c   : > { %3426 = vmatmul.msk.bf16.gmra.mxu3 %vm481_vm3, %v1154_v25  ;;  %v1156_v29 = vsel %vm786_vm4, %v1153_v5, %v1155_v26  ;;  %v1158_v47 = vsel %vm786_vm4, %v1155_v26, %v1157_v39  ;;  %v1422_v48 = vrot.slane %v1420_v42, 1  ;;  %v1425_v4 = vrot.slane %v1423_v43, 2 }
  0x6d   : > { %v1447_v42 = vshrl.u32 %v3630_v6, 16  ;;  %v1450_v43 = vshll.u32 %v3630_v6, 16 }
  0x6e   : > { %v1426_v49 = vor.u32 %v1425_v4, %v1422_v48 }
  0x70   : > { %v1427_v53 = vsel %vm1383_vm5, %v1417_v36, %v1426_v49  ;;  %v1436_v25 = vsel %vm1383_vm5, %v1426_v49, %v1435_v62 }
  0x79   : > { %3319 = vmatmul.msk.bf16.gmra.mxu1 %vm481_vm3, %v3785_v16  ;;  %v1418_v16 = vsel %vm1383_vm5, %v1408_v22, %v1417_v36 }
  0x7a   : > { %3338 = vmatmul.msk.bf16.gmra.mxu2 %vm481_vm3, %v791_v23 }
  0x7b   : > { %3444 = vmatmul.msk.bf16.gmra.mxu0 %vm481_vm3, %v1409_v24  ;;  %v1162_v24 = vsel %vm786_vm4, %v1159_v54, %v1161_v17 }
  0x7c   : > { %3427 = vmatmul.msk.bf16.gmra.mxu3 %vm481_vm3, %v1156_v29 }
  0x89   : > { %3320 = vmatmul.msk.bf16.gmra.mxu1 %vm481_vm3, %v3821_v45  ;;  %v795_v45 = vsel %vm786_vm4, %v792_v35, %v794_v27 }
  0x8a   : > { %3339 = vmatmul.msk.bf16.gmra.mxu2 %vm481_vm3, %v793_v37  ;;  %v3631_v37 = vld [vmem:[%s3767_s27 + $0x48] sm:$0xff] }
  0x8b   : > { %3445 = vmatmul.msk.bf16.gmra.mxu0 %vm481_vm3, %v1418_v16  ;;  %v1163_v39 = vrot.slane %v3631_v37, 1  ;;  %v1459_v6 = vshll.u32 %v3631_v37, 16 }
  0x8c   : > { %3428 = vmatmul.msk.bf16.gmra.mxu3 %vm481_vm3, %v1158_v47 }
  0x96   : > { %v3972_v50 = vpop.f32.mrf.mxu1 }
  0x98   : > { %v3976_v52 = vpop.f32.mrf.mxu0 }
  0x99   : > { %3321 = vmatmul.msk.bf16.gmra.mxu1 %vm481_vm3, %v3857_v21  ;;  %v796_v21 = vrot.slane %v3770_v11, 1 }
  0x9a   : > { %3340 = vmatmul.msk.bf16.gmra.mxu2 %vm481_vm3, %v795_v45  ;;  %v1449_v45 = vrot.slane %v1447_v42, 1  ;;  %v3633_v42 = vld [vmem:[%s3767_s27 + $0x58] sm:$0xff] }
  0x9b   : > { %3446 = vmatmul.msk.bf16.gmra.mxu0 %vm481_vm3, %v1427_v53  ;;  %v797_v5 = vsel %vm786_vm4, %v794_v27, %v796_v21  ;;  %v799_v36 = vsel %vm786_vm4, %v796_v21, %v798_v19  ;;  %v1164_v27 = vsel %vm786_vm4, %v1161_v17, %v1163_v39 }
  0x9c   : > { %3429 = vmatmul.msk.bf16.gmra.mxu3 %vm481_vm3, %v1160_v60  ;;  %v801_v60 = vsel %vm786_vm4, %v798_v19, %v800_v51 }
  0x9d   : > { %v3983_v57 = vpop.f32.mrf.mxu2 }
  0x9e   : > { %v3985_v58 = vpop.f32.mrf.mxu1 }
  0x9f   : > { %v3994_v1 = vpop.f32.mrf.mxu3 }
  0xa0   : > { %v3988_v33 = vpop.f32.mrf.mxu0  ;;  %4879 = vst [vmem:[#allocation2_spill] sm:$0xff] %v3994_v1 }
  0xa5   : > { %v3992_v0 = vpop.f32.mrf.mxu2 }
  0xa6   : > { %v3996_v2 = vpop.f32.mrf.mxu1 }
  0xa7   : > { %v4009_v23 = vpop.f32.mrf.mxu3 }
  0xa8   : > { %v4000_v7 = vpop.f32.mrf.mxu0  ;;  %4880 = vst [vmem:[#allocation3_spill] sm:$0xff] %v4009_v23 }
  0xa9   : > { %3322 = vmatmul.msk.bf16.gmra.mxu1 %vm481_vm3, %v3866_v31  ;;  %v1443_v31 = vrot.slane %v1441_v20, 2 }
  0xaa   : > { %3341 = vmatmul.msk.bf16.gmra.mxu2 %vm481_vm3, %v797_v5  ;;  %v1456_v5 = vshrl.u32 %v3631_v37, 16 }
  0xab   : > { %3447 = vmatmul.msk.bf16.gmra.mxu0 %vm481_vm3, %v1436_v25  ;;  %v1444_v29 = vor.u32 %v1443_v31, %v1440_v28  ;;  %v802_v31 = vrot.slane %v3849_v9, 1 }
  0xac   : > { %3430 = vmatmul.msk.bf16.gmra.mxu3 %vm481_vm3, %v1162_v24  ;;  %v1458_v28 = vrot.slane %v1456_v5, 1 }
  0xad   : > { %v4007_v22 = vpop.f32.mrf.mxu2  ;;  %v1445_v16 = vsel %vm1383_vm5, %v1435_v62, %v1444_v29  ;;  %v1165_v62 = vrot.slane %v3632_v59, 1 }
  0xae   : > { %v4011_v15 = vpop.f32.mrf.mxu1 }
  0xaf   : > { %v4020_v32 = vpop.f32.mrf.mxu3  ;;  %v1166_v20 = vsel %vm786_vm4, %v1163_v39, %v1165_v62 }
  0xb0   : > { %v4014_v26 = vpop.f32.mrf.mxu0  ;;  %4881 = vst [vmem:[#allocation4_spill] sm:$0xff] %v4020_v32 }
  0xb5   : > { %v4018_v30 = vpop.f32.mrf.mxu2 }
  0xb6   : > { %v4022_v35 = vpop.f32.mrf.mxu1 }
  0xb7   : > { %v4035_v48 = vpop.f32.mrf.mxu3 }
  0xb8   : > { %v4026_v38 = vpop.f32.mrf.mxu0  ;;  %4882 = vst [vmem:[#allocation5_spill] sm:$0xff] %v4035_v48 }
  0xb9   : > { %3323 = vmatmul.msk.bf16.gmra.mxu1 %vm481_vm3, %v3770_v11  ;;  %v1452_v11 = vrot.slane %v1450_v43, 2 }
  0xba   : > { %3342 = vmatmul.msk.bf16.gmra.mxu2 %vm481_vm3, %v799_v36 }
  0xbb   : > { %3448 = vmatmul.msk.bf16.gmra.mxu0 %vm481_vm3, %v1445_v16  ;;  %v1453_v53 = vor.u32 %v1452_v11, %v1449_v45  ;;  %v803_v16 = vsel %vm786_vm4, %v800_v51, %v802_v31  ;;  %v1465_v45 = vshrl.u32 %v3632_v59, 16  ;;  %v1468_v11 = vshll.u32 %v3632_v59, 16 }
  0xbc   : > { %3431 = vmatmul.msk.bf16.gmra.mxu3 %vm481_vm3, %v1164_v27  ;;  %v1167_v27 = vrot.slane %v3633_v42, 1 }
  0xbd   : > { %v4033_v47 = vpop.f32.mrf.mxu2  ;;  %v1454_v21 = vsel %vm1383_vm5, %v1444_v29, %v1453_v53 }
  0xbe   : > { %v4037_v4 = vpop.f32.mrf.mxu1  ;;  %v1168_v5 = vsel %vm786_vm4, %v1165_v62, %v1167_v27  ;;  %v1169_v62 = vrot.slane %v3634_v8, 1 }
  0xbf   : > { %v4046_v55 = vpop.f32.mrf.mxu3 }
  0xc0   : > { %v4040_v49 = vpop.f32.mrf.mxu0  ;;  %4883 = vst [vmem:[#allocation6_spill] sm:$0xff] %v4046_v55  ;;  %v1170_v32 = vsel %vm786_vm4, %v1167_v27, %v1169_v62  ;;  %v3635_v27 = vld [vmem:[%s3767_s27 + $0x68] sm:$0xff] }
  0xc5   : > { %v4044_v54 = vpop.f32.mrf.mxu2 }
  0xc6   : > { %v4048_v46 = vpop.f32.mrf.mxu1 }
  0xc7   : > { %v4061_v17 = vpop.f32.mrf.mxu3 }
  0xc8   : > { %v4052_v61 = vpop.f32.mrf.mxu0  ;;  %4884 = vst [vmem:[#allocation7_spill] sm:$0xff] %v4061_v17 }
  0xc9   : > { %3324 = vmatmul.msk.bf16.gmra.mxu1 %vm481_vm3, %v3773_v12  ;;  %v1461_v12 = vrot.slane %v1459_v6, 2 }
  0xca   : > { %3343 = vmatmul.msk.bf16.gmra.mxu2 %vm481_vm3, %v801_v60 }
  0xcb   : > { %3449 = vmatmul.msk.bf16.gmra.mxu0 %vm481_vm3, %v1454_v21  ;;  %v1462_v19 = vor.u32 %v1461_v12, %v1458_v28 }
  0xcc   : > { %3432 = vmatmul.msk.bf16.gmra.mxu3 %vm481_vm3, %v1166_v20  ;;  %v1470_v20 = vrot.slane %v1468_v11, 2  ;;  %v1474_v11 = vshrl.u32 %v3633_v42, 16 }
  0xcd   : > { %v4059_v25 = vpop.f32.mrf.mxu2  ;;  %v1463_v39 = vsel %vm1383_vm5, %v1453_v53, %v1462_v19  ;;  %v1467_v53 = vrot.slane %v1465_v45, 1 }
  0xce   : > { %v4063_v18 = vpop.f32.mrf.mxu1  ;;  %v1476_v1 = vrot.slane %v1474_v11, 1 }
  0xcf   : > { %v1251_v36 = vpop.f32.mrf.mxu3  ;;  %v1471_v28 = vor.u32 %v1470_v20, %v1467_v53 }
  0xd0   : > { %v4066_v24 = vpop.f32.mrf.mxu0 }
  0xd1   : > { %v1472_v55 = vsel %vm1383_vm5, %v1462_v19, %v1471_v28 }
  0xd5   : > { %v4070_v29 = vpop.f32.mrf.mxu2 }
  0xd6   : > { %v4072_v37 = vpop.f32.mrf.mxu1 }
  0xd7   : > { %v1253_v21 = vpop.f32.mrf.mxu3 }
  0xd8   : > { %v4076_v43 = vpop.f32.mrf.mxu0 }
  0xd9   : > { %3325 = vmatmul.msk.bf16.gmra.mxu1 %vm481_vm3, %v3812_v40  ;;  %v804_v40 = vrot.slane %v3840_v63, 1 }
  0xda   : > { %3344 = vmatmul.msk.bf16.gmra.mxu2 %vm481_vm3, %v803_v16 }
  0xdb   : > { %3450 = vmatmul.msk.bf16.gmra.mxu0 %vm481_vm3, %v1463_v39  ;;  %v805_v39 = vsel %vm786_vm4, %v802_v31, %v804_v40 }
  0xdc   : > { %3433 = vmatmul.msk.bf16.gmra.mxu3 %vm481_vm3, %v1168_v5  ;;  %v1477_v5 = vshll.u32 %v3633_v42, 16 }
  0xdd   : > { %v4083_v60 = vpop.f32.mrf.mxu2 }
  0xde   : > { %4885 = vst [vmem:[#allocation8_spill] sm:$0xff] %v4083_v60  ;;  %v4085_v51 = vpop.f32.mrf.mxu1 }
  0xdf   : > { %v1256_v16 = vpop.f32.mrf.mxu3 }
  0xe0   : > { %v4088_v6 = vpop.f32.mrf.mxu0 }
  0xe5   : > { %v4092_v12 = vpop.f32.mrf.mxu2 }
  0xe6   : > { %4886 = vst [vmem:[#allocation9_spill] sm:$0xff] %v4092_v12  ;;  %v690_v59 = vpop.f32.mrf.mxu1 }
  0xe7   : > { %v691_v45 = vadd.f32 %v690_v59, %v3976_v52  ;;  %v1258_v20 = vpop.f32.mrf.mxu3 }
  0xe8   : > { %v1620_v17 = vpop.f32.mrf.mxu0 }
  0xe9   : > { %3326 = vmatmul.msk.bf16.gmra.mxu1 %vm481_vm3, %v3849_v9  ;;  %v1479_v9 = vrot.slane %v1477_v5, 2  ;;  %v1486_v5 = vshll.u32 %v3634_v8, 16 }
  0xea   : > { %3345 = vmatmul.msk.bf16.gmra.mxu2 %vm481_vm3, %v805_v39 }
  0xeb   : > { %3451 = vmatmul.msk.bf16.gmra.mxu0 %vm481_vm3, %v1472_v55  ;;  %v806_v55 = vrot.slane %v3776_v13, 1  ;;  %v1480_v42 = vor.u32 %v1479_v9, %v1476_v1 }
  0xec   : > { %3434 = vmatmul.msk.bf16.gmra.mxu3 %vm481_vm3, %v1170_v32 }
  0xed   : > { %v890_v53 = vpop.f32.mrf.mxu2  ;;  %v807_v60 = vsel %vm786_vm4, %v804_v40, %v806_v55  ;;  %v1481_v11 = vsel %vm1383_vm5, %v1471_v28, %v1480_v42 }
  0xee   : > { %v980_v48 = vadd.f32 %v890_v53, %v691_v45  ;;  %v692_v31 = vpop.f32.mrf.mxu1 }
  0xef   : > { %v693_v52 = vadd.f32 %v692_v31, %v3988_v33  ;;  %v1261_v12 = vpop.f32.mrf.mxu3  ;;  %v1171_v33 = vrot.slane %v3635_v27, 1 }
  0xf0   : > { %v1341_v19 = vadd.f32 %v1251_v36, %v980_v48  ;;  %v1622_v23 = vpop.f32.mrf.mxu0 }
  0xf1   : > { %v1172_v28 = vsel %vm786_vm4, %v1169_v62, %v1171_v33  ;;  %v3636_v62 = vld [vmem:[%s3767_s27 + $0x70] sm:$0xff] }
  0xf2   : > { %v4104_v39 = vadd.f32 %v1620_v17, %v1341_v19  ;;  %v1483_v17 = vshrl.u32 %v3634_v8, 16 }
  0xf5   : > { %v892_v59 = vpop.f32.mrf.mxu2 }
  0xf6   : > { %v981_v45 = vadd.f32 %v892_v59, %v693_v52  ;;  %v695_v53 = vpop.f32.mrf.mxu1  ;;  %v1485_v52 = vrot.slane %v1483_v17, 1  ;;  %v808_v59 = vrot.slane %v3779_v14, 1 }
  0xf7   : > { %v696_v1 = vadd.f32 %v695_v53, %v4000_v7  ;;  %v1263_v31 = vpop.f32.mrf.mxu3 }
  0xf8   : > { %v1342_v48 = vadd.f32 %v1253_v21, %v981_v45  ;;  %v1625_v36 = vpop.f32.mrf.mxu0 }
  0xf9   : > { %3327 = vmatmul.msk.bf16.gmra.mxu1 %vm481_vm3, %v3840_v63 }
  0xfa   : > { %3346 = vmatmul.msk.bf16.gmra.mxu2 %vm481_vm3, %v807_v60  ;;  %v4114_v32 = vadd.f32 %v1622_v23, %v1342_v48  ;;  %v1488_v60 = vrot.slane %v1486_v5, 2 }
  0xfb   : > { %3452 = vmatmul.msk.bf16.gmra.mxu0 %vm481_vm3, %v1481_v11 }
  0xfc   : > { %3435 = vmatmul.msk.bf16.gmra.mxu3 %vm481_vm3, %v1172_v28  ;;  %v1489_v8 = vor.u32 %v1488_v60, %v1485_v52 }
  0xfd   : > { %v895_v40 = vpop.f32.mrf.mxu2 }
  0xfe   : > { %v982_v21 = vadd.f32 %v895_v40, %v696_v1  ;;  %v697_v19 = vpop.f32.mrf.mxu1  ;;  %v809_v1 = vsel %vm786_vm4, %v806_v55, %v808_v59  ;;  %v1490_v17 = vsel %vm1383_vm5, %v1480_v42, %v1489_v8 }
  0xff   : > { %v698_v7 = vadd.f32 %v697_v19, %v4014_v26  ;;  %v1266_v53 = vpop.f32.mrf.mxu3  ;;  %v1173_v26 = vrot.slane %v3636_v62, 1  ;;  %v1495_v19 = vshll.u32 %v3635_v27, 16 }
 0x100   : > { %v1343_v9 = vadd.f32 %v1256_v16, %v982_v21  ;;  %v1627_v63 = vpop.f32.mrf.mxu0  ;;  %v1492_v21 = vshrl.u32 %v3635_v27, 16 }
 0x101   : > { %v1174_v42 = vsel %vm786_vm4, %v1171_v33, %v1173_v26  ;;  %v3637_v33 = vld [vmem:[%s3767_s27 + $0x78] sm:$0xff] }
 0x102   : > { %v4120_v23 = vadd.f32 %v1625_v36, %v1343_v9  ;;  %v1494_v60 = vrot.slane %v1492_v21, 1 }
 0x105   : > { %v897_v45 = vpop.f32.mrf.mxu2 }
 0x106   : > { %v983_v48 = vadd.f32 %v897_v45, %v698_v7  ;;  %v700_v11 = vpop.f32.mrf.mxu1  ;;  %v1497_v7 = vrot.slane %v1495_v19, 2  ;;  %v810_v45 = vrot.slane %v3816_v41, 1 }
 0x107   : > { %v701_v5 = vadd.f32 %v700_v11, %v4026_v38  ;;  %v1268_v28 = vpop.f32.mrf.mxu3 }
 0x108   : > { %v1344_v16 = vadd.f32 %v1258_v20, %v983_v48  ;;  %v1630_v40 = vpop.f32.mrf.mxu0  ;;  %v1498_v27 = vor.u32 %v1497_v7, %v1494_v60 }
 0x109   : > { %3328 = vmatmul.msk.bf16.gmra.mxu1 %vm481_vm3, %v3776_v13 }
 0x10a   : > { %3347 = vmatmul.msk.bf16.gmra.mxu2 %vm481_vm3, %v809_v1  ;;  %v4130_v36 = vadd.f32 %v1627_v63, %v1344_v16  ;;  %v1499_v21 = vsel %vm1383_vm5, %v1489_v8, %v1498_v27 }
 0x10b   : > { %3453 = vmatmul.msk.bf16.gmra.mxu0 %vm481_vm3, %v1490_v17  ;;  %v811_v17 = vsel %vm786_vm4, %v808_v59, %v810_v45 }
 0x10c   : > { %3436 = vmatmul.msk.bf16.gmra.mxu3 %vm481_vm3, %v1174_v42 }
 0x10d   : > { %v900_v55 = vpop.f32.mrf.mxu2 }
 0x10e   : > { %v984_v20 = vadd.f32 %v900_v55, %v701_v5  ;;  %v702_v9 = vpop.f32.mrf.mxu1  ;;  %v1501_v55 = vshrl.u32 %v3636_v62, 16 }
 0x10f   : > { %v703_v38 = vadd.f32 %v702_v9, %v4040_v49  ;;  %v1271_v11 = vpop.f32.mrf.mxu3  ;;  %v1175_v49 = vrot.slane %v3637_v33, 1 }
 0x110   : > { %v1345_v52 = vadd.f32 %v1261_v12, %v984_v20  ;;  %v1632_v13 = vpop.f32.mrf.mxu0  ;;  %v1504_v20 = vshll.u32 %v3636_v62, 16  ;;  %v1503_v60 = vrot.slane %v1501_v55, 1 }
 0x111   : > { %v1176_v8 = vsel %vm786_vm4, %v1173_v26, %v1175_v49  ;;  %v3638_v26 = vld [vmem:[%s3767_s27 + $0x80] sm:$0xff] }
 0x112   : > { %v4136_v63 = vadd.f32 %v1630_v40, %v1345_v52  ;;  %v1506_v7 = vrot.slane %v1504_v20, 2  ;;  %v1510_v20 = vshrl.u32 %v3637_v33, 16 }
 0x114   : > { %v1507_v62 = vor.u32 %v1506_v7, %v1503_v60  ;;  %v814_v7 = vrot.slane %v3887_v56, 1 }
 0x115   : > { %v902_v48 = vpop.f32.mrf.mxu2 }
 0x116   : > { %v985_v1 = vadd.f32 %v902_v48, %v703_v38  ;;  %v705_v16 = vpop.f32.mrf.mxu1  ;;  %v812_v38 = vrot.slane %v3852_v10, 1 }
 0x117   : > { %v706_v19 = vadd.f32 %v705_v16, %v4052_v61  ;;  %v1273_v9 = vpop.f32.mrf.mxu3 }
 0x118   : > { %v1346_v12 = vadd.f32 %v1263_v31, %v985_v1  ;;  %v1635_v5 = vpop.f32.mrf.mxu0 }
 0x119   : > { %3329 = vmatmul.msk.bf16.gmra.mxu1 %vm481_vm3, %v3779_v14 }
 0x11a   : > { %3348 = vmatmul.msk.bf16.gmra.mxu2 %vm481_vm3, %v811_v17  ;;  %v4146_v40 = vadd.f32 %v1632_v13, %v1346_v12  ;;  %v813_v12 = vsel %vm786_vm4, %v810_v45, %v812_v38 }
 0x11b   : > { %3454 = vmatmul.msk.bf16.gmra.mxu0 %vm481_vm3, %v1499_v21 }
 0x11c   : > { %3437 = vmatmul.msk.bf16.gmra.mxu3 %vm481_vm3, %v1176_v8 }
 0x11d   : > { %v905_v59 = vpop.f32.mrf.mxu2 }
 0x11e   : > { %v986_v31 = vadd.f32 %v905_v59, %v706_v19  ;;  %v707_v42 = vpop.f32.mrf.mxu1  ;;  %v1508_v19 = vsel %vm1383_vm5, %v1498_v27, %v1507_v62  ;;  %v1513_v59 = vshll.u32 %v3637_v33, 16 }
 0x11f   : > { %v708_v61 = vadd.f32 %v707_v42, %v4066_v24  ;;  %v1276_v1 = vpop.f32.mrf.mxu3  ;;  %v1177_v24 = vrot.slane %v3638_v26, 1 }
 0x120   : > { %v1347_v52 = vadd.f32 %v1266_v53, %v986_v31  ;;  %v1637_v14 = vpop.f32.mrf.mxu0  ;;  %v1515_v60 = vrot.slane %v1513_v59, 2  ;;  %v1522_v59 = vshll.u32 %v3638_v26, 16 }
 0x121   : > { %v1178_v27 = vsel %vm786_vm4, %v1175_v49, %v1177_v24  ;;  %v3639_v49 = vld [vmem:[%s3767_s27 + $0x88] sm:$0xff] }
 0x122   : > { %v4152_v13 = vadd.f32 %v1635_v5, %v1347_v52  ;;  %v1512_v52 = vrot.slane %v1510_v20, 1  ;;  %v1519_v20 = vshrl.u32 %v3638_v26, 16 }
 0x124   : > { %v1516_v33 = vor.u32 %v1515_v60, %v1512_v52  ;;  %v816_v52 = vrot.slane %v3803_v34, 1 }
 0x125   : > { %v907_v48 = vpop.f32.mrf.mxu2 }
 0x126   : > { %v987_v16 = vadd.f32 %v907_v48, %v708_v61  ;;  %v710_v17 = vpop.f32.mrf.mxu1 }
 0x127   : > { %v711_v55 = vadd.f32 %v710_v17, %v4076_v43  ;;  %v1278_v31 = vpop.f32.mrf.mxu3 }
 0x128   : > { %v1348_v53 = vadd.f32 %v1268_v28, %v987_v16  ;;  %v1640_v21 = vpop.f32.mrf.mxu0 }
 0x129   : > { %3330 = vmatmul.msk.bf16.gmra.mxu1 %vm481_vm3, %v3816_v41 }
 0x12a   : > { %3349 = vmatmul.msk.bf16.gmra.mxu2 %vm481_vm3, %v813_v12  ;;  %v4162_v5 = vadd.f32 %v1637_v14, %v1348_v53  ;;  %v815_v12 = vsel %vm786_vm4, %v812_v38, %v814_v7 }
 0x12b   : > { %3455 = vmatmul.msk.bf16.gmra.mxu0 %vm481_vm3, %v1508_v19  ;;  %v1517_v19 = vsel %vm1383_vm5, %v1507_v62, %v1516_v33 }
 0x12c   : > { %3438 = vmatmul.msk.bf16.gmra.mxu3 %vm481_vm3, %v1178_v27  ;;  %v1521_v27 = vrot.slane %v1519_v20, 1 }
 0x12d   : > { %v910_v45 = vpop.f32.mrf.mxu2 }
 0x12e   : > { %v988_v28 = vadd.f32 %v910_v45, %v711_v55  ;;  %v712_v42 = vpop.f32.mrf.mxu1 }
 0x12f   : > { %v713_v43 = vadd.f32 %v712_v42, %v4088_v6  ;;  %v1281_v48 = vpop.f32.mrf.mxu3  ;;  %v1179_v6 = vrot.slane %v3639_v49, 1 }
 0x130   : > { %v1349_v8 = vadd.f32 %v1271_v11, %v988_v28  ;;  %v1642_v41 = vpop.f32.mrf.mxu0 }
 0x131   : > { %v1180_v62 = vsel %vm786_vm4, %v1177_v24, %v1179_v6  ;;  %v3640_v24 = vld [vmem:[%s3767_s27 + $0x90] sm:$0xff] }
 0x132   : > { %v4168_v14 = vadd.f32 %v1640_v21, %v1349_v8  ;;  %v1524_v8 = vrot.slane %v1522_v59, 2 }
 0x134   : > { %v1525_v26 = vor.u32 %v1524_v8, %v1521_v27 }
 0x135   : > { %v912_v61 = vpop.f32.mrf.mxu2 }
 0x136   : > { %v989_v16 = vadd.f32 %v912_v61, %v713_v43  ;;  %v715_v17 = vpop.f32.mrf.mxu1 }
 0x137   : > { %v716_v55 = vadd.f32 %v715_v17, %v3972_v50  ;;  %v1283_v45 = vpop.f32.mrf.mxu3  ;;  %v817_v17 = vsel %vm786_vm4, %v814_v7, %v816_v52  ;;  %v1528_v7 = vshrl.u32 %v3639_v49, 16 }
 0x138   : > { %v1350_v11 = vadd.f32 %v1273_v9, %v989_v16  ;;  %v1645_v53 = vpop.f32.mrf.mxu0 }
 0x139   : > { %3331 = vmatmul.msk.bf16.gmra.mxu1 %vm481_vm3, %v3852_v10 }
 0x13a   : > { %3350 = vmatmul.msk.bf16.gmra.mxu2 %vm481_vm3, %v815_v12  ;;  %v4178_v21 = vadd.f32 %v1642_v41, %v1350_v11  ;;  %v1526_v11 = vsel %vm1383_vm5, %v1516_v33, %v1525_v26 }
 0x13b   : > { %3456 = vmatmul.msk.bf16.gmra.mxu0 %vm481_vm3, %v1517_v19  ;;  %v1531_v19 = vshll.u32 %v3639_v49, 16 }
 0x13c   : > { %3439 = vmatmul.msk.bf16.gmra.mxu3 %vm481_vm3, %v1180_v62  ;;  %v1052_v62 = vld [vmem:[%s3767_s27 + $0x98] sm:$0x1] }
 0x13d   : > { %v915_v38 = vpop.f32.mrf.mxu2 }
 0x13e   : > { %v990_v9 = vadd.f32 %v915_v38, %v716_v55  ;;  %v717_v28 = vpop.f32.mrf.mxu1 }
 0x13f   : > { %v718_v50 = vadd.f32 %v717_v28, %v3985_v58  ;;  %v1286_v43 = vpop.f32.mrf.mxu3  ;;  %v1181_v58 = vrot.slane %v3640_v24, 1  ;;  %v1533_v28 = vrot.slane %v1531_v19, 2 }
 0x140   : > { %v1351_v42 = vadd.f32 %v1276_v1, %v990_v9  ;;  %v1647_v10 = vpop.f32.mrf.mxu0  ;;  %v1530_v9 = vrot.slane %v1528_v7, 1  ;;  %v3681_v7 = vld [vmem:[%s3767_s27 + $0x78] sm:$0xff] }
 0x142   : > { %v4184_v41 = vadd.f32 %v1645_v53, %v1351_v42 }
 0x145   : > { %v917_v60 = vpop.f32.mrf.mxu2 }
 0x146   : > { %v991_v61 = vadd.f32 %v917_v60, %v718_v50  ;;  %v720_v16 = vpop.f32.mrf.mxu1 }
 0x147   : > { %v721_v53 = vadd.f32 %v720_v16, %v3996_v2  ;;  %v4198_v55 = vpop.f32.mrf.mxu3  ;;  %v4206_v2 = vld [vmem:[%s3767_s27 + $0x80] sm:$0xff] }
 0x148   : > { %v1352_v1 = vadd.f32 %v1278_v31, %v991_v61  ;;  %v1650_v12 = vpop.f32.mrf.mxu0  ;;  %v818_v49 = vrot.slane %v4206_v2, 1 }
 0x149   : > { %3332 = vmatmul.msk.bf16.gmra.mxu1 %vm481_vm3, %v3887_v56  ;;  %v1182_v56 = vsel %vm786_vm4, %v1179_v6, %v1181_v58  ;;  %v1534_v6 = vor.u32 %v1533_v28, %v1530_v9  ;;  %v4230_v28 = vld [vmem:[%s3767_s27 + $0x18] sm:$0xff] }
 0x14a   : > { %3351 = vmatmul.msk.bf16.gmra.mxu2 %vm481_vm3, %v817_v17  ;;  %v4194_v34 = vadd.f32 %v1647_v10, %v1352_v1  ;;  %v1128_v10 = vunpack.c.l.b16 %v1052_v62  ;;  %v819_v61 = vsel %vm786_vm4, %v816_v52, %v818_v49 }
 0x14b   : > { %3457 = vmatmul.msk.bf16.gmra.mxu0 %vm481_vm3, %v1526_v11  ;;  %v1982_v11 = vld [vmem:[%s3767_s27 + $0x10] sm:$0xc] }
 0x14c   : > { %3440 = vmatmul.msk.bf16.gmra.mxu3 %vm481_vm3, %v1182_v56  ;;  %v1147_v16 = vpack.c.b16 %v1128_v10, %v1128_v10  ;;  %v2058_v52 = vunpack.c.l.b16 %v1982_v11 }
 0x14d   : > { %v920_v31 = vpop.f32.mrf.mxu2 }
 0x14e   : > { %v992_v33 = vadd.f32 %v920_v31, %v721_v53  ;;  %v722_v20 = vpop.f32.mrf.mxu1  ;;  %v4216_v53 = vld [vmem:[%s3767_s27 + $0x14] sm:$0xf]  ;;  %v1183_v19 = vrot.slane %v1147_v16, 1  ;;  %v1537_v31 = vshrl.u32 %v3640_v24, 16 }
 0x14f   : > { %v723_v27 = vadd.f32 %v722_v20, %v4011_v15  ;;  %v4210_v8 = vpop.f32.mrf.mxu3 }
 0x150   : > { %v1353_v59 = vadd.f32 %v1281_v48, %v992_v33  ;;  %v1652_v38 = vpop.f32.mrf.mxu0  ;;  %v1540_v33 = vshll.u32 %v3640_v24, 16 }
 0x152   : > { %v4203_v42 = vadd.f32 %v1650_v12, %v1353_v59  ;;  %v1535_v12 = vsel %vm1383_vm5, %v1525_v26, %v1534_v6 }
 0x155   : > { %v922_v48 = vpop.f32.mrf.mxu2 }
 0x156   : > { %v993_v50 = vadd.f32 %v922_v48, %v723_v27  ;;  %v725_v60 = vpop.f32.mrf.mxu1  ;;  %v1539_v48 = vrot.slane %v1537_v31, 1 }
 0x157   : > { %v726_v26 = vadd.f32 %v725_v60, %v4022_v35  ;;  %v4226_v56 = vpop.f32.mrf.mxu3  ;;  %v1377_v35 = vld [vmem:[%s3767_s27 + $0x98] sm:$0x3]  ;;  %v4238_v60 = vld [vmem:[%s3767_s27 + $0x88] sm:$0xff] }
 0x158   : > { %v1354_v17 = vadd.f32 %v1283_v45, %v993_v50  ;;  %v1655_v1 = vpop.f32.mrf.mxu0  ;;  %v4878_v45 = vunpack.c.l.b16 %v4216_v53  ;;  %v1542_v50 = vrot.slane %v1540_v33, 2  ;;  %v820_v24 = vrot.slane %v4238_v60, 1 }
 0x159   : > { %3333 = vmatmul.msk.bf16.gmra.mxu1 %vm481_vm3, %v3681_v7  ;;  %v1381_v7 = vunpack.c.l.b16 %v1377_v35 }
 0x15a   : > { %3352 = vmatmul.msk.bf16.gmra.mxu2 %vm481_vm3, %v819_v61  ;;  %v4221_v15 = vadd.f32 %v1652_v38, %v1354_v17  ;;  %v1184_v38 = vsel %vm786_vm4, %v1181_v58, %v1183_v19  ;;  %v4234_v62 = vpack.c.b16 %v4878_v45, %v2058_v52  ;;  %v2359_v17 = vshrl.u32 %v4230_v28, 16 }
 0x15b   : > { %3458 = vmatmul.msk.bf16.gmra.mxu0 %vm481_vm3, %v1535_v12  ;;  %v1543_v11 = vor.u32 %v1542_v50, %v1539_v48  ;;  %v821_v31 = vsel %vm786_vm4, %v818_v49, %v820_v24 }
 0x15c   : > { %4887 = vst [vmem:[#allocation10_spill] sm:$0xff] %v4221_v15  ;;  %3441 = vmatmul.msk.bf16.gmra.mxu3 %vm481_vm3, %v1184_v38  ;;  %v2351_v58 = vshrl.u32 %v4234_v62, 16  ;;  %v2354_v16 = vshll.u32 %v4234_v62, 16  ;;  %v4254_v15 = vpack.c.b16 %v1381_v7, %v1381_v7  ;;  %v822_v7 = vrot.slane %v3876_v44, 1 }
 0x15d   : > { %v925_v20 = vpop.f32.mrf.mxu2 }
 0x15e   : > { %v994_v59 = vadd.f32 %v925_v20, %v726_v26  ;;  %v727_v9 = vpop.f32.mrf.mxu1  ;;  %v2353_v33 = vrot.slane %v2351_v58, 2  ;;  %v2356_v20 = vrot.slane %v2354_v16, 3 }
 0x15f   : > { %v728_v12 = vadd.f32 %v727_v9, %v4037_v4  ;;  %v4249_v52 = vpop.f32.mrf.mxu3 }
 0x160   : > { %v1355_v10 = vadd.f32 %v1286_v43, %v994_v59  ;;  %v1657_v27 = vpop.f32.mrf.mxu0  ;;  %v2362_v43 = vshll.u32 %v4230_v28, 16  ;;  %v2361_v59 = vrot.slane %v2359_v17, 2  ;;  %v2357_v49 = vor.u32 %v2356_v20, %v2353_v33 }
 0x162   : > { %v4242_v61 = vadd.f32 %v1655_v1, %v1355_v10  ;;  %v2364_v38 = vrot.slane %v2362_v43, 3 }
 0x164   : > { %4888 = vst [vmem:[#allocation11_spill] sm:$0xff] %v4242_v61  ;;  %v1544_v61 = vsel %vm1383_vm5, %v1534_v6, %v1543_v11  ;;  %v2365_v9 = vor.u32 %v2364_v38, %v2361_v59  ;;  %v1549_v6 = vshll.u32 %v4254_v15, 16  ;;  %v823_v38 = vsel %vm786_vm4, %v820_v24, %v822_v7  ;;  %v4299_v7 = vld [vmem:[%s3767_s27 + $0x28] sm:$0xff] }
 0x165   : > { %v927_v19 = vpop.f32.mrf.mxu2 }
 0x166   : > { %v995_v26 = vadd.f32 %v927_v19, %v728_v12  ;;  %v730_v1 = vpop.f32.mrf.mxu1  ;;  %v2366_v16 = vsel %vm2349_vm6, %v2357_v49, %v2365_v9 }
 0x167   : > { %v731_v48 = vadd.f32 %v730_v1, %v4048_v46  ;;  %v4265_v35 = vpop.f32.mrf.mxu3  ;;  %v1551_v46 = vrot.slane %v1549_v6, 2  ;;  %v2712_v6 = vld [vmem:[%s3767_s27 + $0x10] sm:$0x8] }
 0x168   : > { %v1356_v10 = vadd.f32 %v4198_v55, %v995_v26  ;;  %v1660_v45 = vpop.f32.mrf.mxu0  ;;  %v1546_v55 = vshrl.u32 %v4254_v15, 16 }
 0x169   : > { %3334 = vmatmul.msk.bf16.gmra.mxu1 %vm481_vm3, %v4206_v2 }
 0x16a   : > { %3353 = vmatmul.msk.bf16.gmra.mxu2 %vm481_vm3, %v821_v31  ;;  %v4259_v4 = vadd.f32 %v1657_v27, %v1356_v10  ;;  %v4269_v27 = vld [vmem:[%s3767_s27 + $0x20] sm:$0xff]  ;;  %v1548_v43 = vrot.slane %v1546_v55, 1  ;;  %v1746_v10 = vld [vmem:[%s3767_s27 + $0x8] sm:$0xc] }
 0x16b   : > { %3459 = vmatmul.msk.bf16.gmra.mxu0 %vm481_vm3, %v1544_v61  ;;  %v2368_v19 = vshrl.u32 %v4269_v27, 16  ;;  %v2371_v26 = vshll.u32 %v4269_v27, 16 }
 0x16c   : > { %3568 = vmatmul.msk.bf16.vlgmr.msra.gmra.mxu3 %vm481_vm3, %v2366_v16  ;;  %v1552_v1 = vor.u32 %v1551_v46, %v1548_v43 }
 0x16d   : > { %v930_v50 = vpop.f32.mrf.mxu2  ;;  %v2373_v49 = vrot.slane %v2371_v26, 3  ;;  %v4890_v26 = vunpack.c.l.b16 %v4216_v53 }
 0x16e   : > { %v996_v58 = vadd.f32 %v930_v50, %v731_v48  ;;  %v732_v2 = vpop.f32.mrf.mxu1  ;;  %v1553_v55 = vsel %vm1383_vm5, %v1543_v11, %v1552_v1  ;;  %v3683_v1 = vld [vmem:[%s3767_s27 + $0x10] sm:$0xff] }
 0x16f   : > { %v733_v31 = vadd.f32 %v732_v2, %v4063_v18  ;;  %v1750_v18 = vunpack.c.l.b16 %v1746_v10  ;;  %v2720_v10 = vrot.slane %v4230_v28, 3 }
 0x170   : > { %v1357_v61 = vadd.f32 %v4210_v8, %v996_v58  ;;  %v1662_v17 = vpop.f32.mrf.mxu0  ;;  %v4279_v8 = vpop.f32.mrf.mxu3 }
 0x172   : > { %v4273_v12 = vadd.f32 %v1660_v45, %v1357_v61  ;;  %v2370_v45 = vrot.slane %v2368_v19, 2  ;;  %v4889_v61 = vunpack.c.l.b16 %v3898_v3  ;;  %v2114_v3 = vrot.slane %v4234_v62, 2 }
 0x174   : > { %v2374_v24 = vor.u32 %v2373_v49, %v2370_v45  ;;  %v1751_v43 = vpack.c.b16 %v4889_v61, %v1750_v18 }
 0x175   : > { %v932_v33 = vpop.f32.mrf.mxu2 }
 0x176   : > { %v997_v20 = vadd.f32 %v932_v33, %v733_v31  ;;  %v735_v59 = vpop.f32.mrf.mxu1  ;;  %v2375_v46 = vsel %vm2349_vm6, %v2365_v9, %v2374_v24  ;;  %v1754_v33 = vrot.slane %v3683_v1, 2  ;;  %v2377_v9 = vshrl.u32 %v4299_v7, 16 }
 0x177   : > { %v736_v58 = vadd.f32 %v735_v59, %v4072_v37  ;;  %v1753_v37 = vrot.slane %v1751_v43, 2  ;;  %v2115_v59 = vrot.slane %v4230_v28, 2 }
 0x178   : > { %v1358_v44 = vadd.f32 %v4226_v56, %v997_v20  ;;  %v1665_v48 = vpop.f32.mrf.mxu0  ;;  %v2716_v56 = vunpack.c.l.b16 %v2712_v6  ;;  %v4293_v16 = vpop.f32.mrf.mxu3  ;;  %v2379_v6 = vrot.slane %v2377_v9, 2 }
 0x179   : > { %3335 = vmatmul.msk.bf16.gmra.mxu1 %vm481_vm3, %v4238_v60  ;;  %v2116_v62 = vsel %vm1752_vm7, %v2114_v3, %v2115_v59  ;;  %v2117_v3 = vrot.slane %v4269_v27, 2 }
 0x17a   : > { %3354 = vmatmul.msk.bf16.gmra.mxu2 %vm481_vm3, %v823_v38  ;;  %v4289_v50 = vadd.f32 %v1662_v17, %v1358_v44  ;;  %v2717_v31 = vpack.c.b16 %v4890_v26, %v2716_v56  ;;  %v2380_v38 = vshll.u32 %v4299_v7, 16 }
 0x17b   : > { %3460 = vmatmul.msk.bf16.gmra.mxu0 %vm481_vm3, %v1553_v55  ;;  %v1755_v55 = vsel %vm1752_vm7, %v1753_v37, %v1754_v33  ;;  %v3684_v37 = vld [vmem:[%s3767_s27 + $0x18] sm:$0xff] }
 0x17c   : > { %3569 = vmatmul.msk.bf16.gmra.mxu3 %vm481_vm3, %v2375_v46  ;;  %v2719_v53 = vrot.slane %v2717_v31, 3  ;;  %v2382_v18 = vrot.slane %v2380_v38, 3  ;;  %v1756_v1 = vrot.slane %v3684_v37, 2 }
 0x17d   : > { %v935_v2 = vpop.f32.mrf.mxu2 }
 0x17e   : > { %v998_v11 = vadd.f32 %v935_v2, %v736_v58  ;;  %v737_v60 = vpop.f32.mrf.mxu1  ;;  %v2383_v2 = vor.u32 %v2382_v18, %v2379_v6 }
 0x180   : > { %v1359_v17 = vadd.f32 %v4249_v52, %v998_v11  ;;  %v1667_v19 = vpop.f32.mrf.mxu0  ;;  %v738_v52 = vadd.f32 %v737_v60, %v4085_v51  ;;  %v1306_v49 = vpop.f32.mrf.mxu3  ;;  %v2721_v51 = vsel %vm2718_vm8, %v2719_v53, %v2720_v10 }
 0x182   : > { %v4306_v20 = vadd.f32 %v1665_v48, %v1359_v17  ;;  %v4326_v17 = vld [vmem:[%s3767_s27 + $0x30] sm:$0xff] }
 0x183   : > { %v2389_v9 = vshll.u32 %v4326_v17, 16 }
 0x185   : > { %v937_v45 = vpop.f32.mrf.mxu2 }
 0x186   : > { %v999_v44 = vadd.f32 %v937_v45, %v738_v52  ;;  %v740_v48 = vpop.f32.mrf.mxu1 }
 0x187   : > { %v741_v11 = vadd.f32 %v740_v48, %v3983_v57  ;;  %v2386_v57 = vshrl.u32 %v4326_v17, 16  ;;  %v2118_v48 = vsel %vm1752_vm7, %v2115_v59, %v2117_v3 }
 0x188   : > { %v1360_v58 = vadd.f32 %v4265_v35, %v999_v44  ;;  %v1670_v56 = vpop.f32.mrf.mxu0  ;;  %v1308_v43 = vpop.f32.mrf.mxu3  ;;  %v2384_v35 = vsel %vm2349_vm6, %v2374_v24, %v2383_v2  ;;  %v2722_v24 = vrot.slane %v4269_v27, 3  ;;  %v1757_v44 = vsel %vm1752_vm7, %v1754_v33, %v1756_v1 }
 0x189   : > { %3462 = vmatmul.msk.bf16.vlgmr.msra.gmra.mxu1 %vm481_vm3, %v1755_v55  ;;  %v2388_v55 = vrot.slane %v2386_v57, 2 }
 0x18a   : > { %3549 = vmatmul.msk.bf16.vlgmr.msra.gmra.mxu2 %vm481_vm3, %v2116_v62  ;;  %v4320_v28 = vadd.f32 %v1667_v19, %v1360_v58  ;;  %v2391_v62 = vrot.slane %v2389_v9, 3  ;;  %v2723_v58 = vsel %vm2718_vm8, %v2720_v10, %v2722_v24 }
 0x18b   : > { %3587 = vmatmul.msk.bf16.vlgmr.msra.gmra.mxu0 %vm481_vm3, %v2721_v51 }
 0x18c   : > { %3570 = vmatmul.msk.bf16.gmra.mxu3 %vm481_vm3, %v2384_v35  ;;  %v2392_v27 = vor.u32 %v2391_v62, %v2388_v55  ;;  %v3685_v35 = vld [vmem:[%s3767_s27 + $0x20] sm:$0xff] }
 0x18d   : > { %v940_v61 = vpop.f32.mrf.mxu2 }
 0x18e   : > { %v1000_v60 = vadd.f32 %v940_v61, %v741_v11  ;;  %v742_v46 = vpop.f32.mrf.mxu1  ;;  %v4350_v61 = vld [vmem:[%s3767_s27 + $0x38] sm:$0xff] }
 0x18f   : > { %v743_v38 = vadd.f32 %v742_v46, %v3992_v0  ;;  %v2398_v37 = vshll.u32 %v4350_v61, 16 }
 0x190   : > { %v1361_v26 = vadd.f32 %v4279_v8, %v1000_v60  ;;  %v1672_v31 = vpop.f32.mrf.mxu0  ;;  %v1311_v53 = vpop.f32.mrf.mxu3 }
 0x192   : > { %v4330_v19 = vadd.f32 %v1670_v56, %v1361_v26  ;;  %v1758_v26 = vrot.slane %v3685_v35, 2 }
 0x195   : > { %v942_v52 = vpop.f32.mrf.mxu2 }
 0x196   : > { %v1001_v8 = vadd.f32 %v942_v52, %v743_v38  ;;  %v745_v45 = vpop.f32.mrf.mxu1 }
 0x197   : > { %v746_v33 = vadd.f32 %v745_v45, %v4007_v22  ;;  %v2395_v22 = vshrl.u32 %v4350_v61, 16 }
 0x198   : > { %v1362_v6 = vadd.f32 %v4293_v16, %v1001_v8  ;;  %v1675_v18 = vpop.f32.mrf.mxu0  ;;  %v1313_v56 = vpop.f32.mrf.mxu3  ;;  %v2393_v16 = vsel %vm2349_vm6, %v2383_v2, %v2392_v27  ;;  %v2724_v2 = vrot.slane %v4299_v7, 3  ;;  %v1759_v8 = vsel %vm1752_vm7, %v1756_v1, %v1758_v26 }
 0x199   : > { %3463 = vmatmul.msk.bf16.gmra.mxu1 %vm481_vm3, %v1757_v44  ;;  %v2397_v44 = vrot.slane %v2395_v22, 2 }
 0x19a   : > { %3550 = vmatmul.msk.bf16.gmra.mxu2 %vm481_vm3, %v2118_v48  ;;  %v4344_v0 = vadd.f32 %v1672_v31, %v1362_v6  ;;  %v2119_v31 = vrot.slane %v4299_v7, 2  ;;  %v2400_v48 = vrot.slane %v2398_v37, 3  ;;  %v2725_v6 = vsel %vm2718_vm8, %v2722_v24, %v2724_v2 }
 0x19b   : > { %3588 = vmatmul.msk.bf16.gmra.mxu0 %vm481_vm3, %v2723_v58 }
 0x19c   : > { %3571 = vmatmul.msk.bf16.gmra.mxu3 %vm481_vm3, %v2393_v16  ;;  %v2120_v45 = vsel %vm1752_vm7, %v2117_v3, %v2119_v31  ;;  %v2401_v7 = vor.u32 %v2400_v48, %v2397_v44  ;;  %v3686_v16 = vld [vmem:[%s3767_s27 + $0x28] sm:$0xff] }
 0x19d   : > { %v945_v59 = vpop.f32.mrf.mxu2 }
 0x19e   : > { %v1002_v51 = vadd.f32 %v945_v59, %v746_v33  ;;  %v747_v11 = vpop.f32.mrf.mxu1  ;;  %v4372_v59 = vld [vmem:[%s3767_s27 + $0x40] sm:$0xff] }
 0x19f   : > { %v748_v57 = vadd.f32 %v747_v11, %v4018_v30  ;;  %v2407_v35 = vshll.u32 %v4372_v59, 16 }
 0x1a0   : > { %v1363_v10 = vadd.f32 %v1306_v49, %v1002_v51  ;;  %v1677_v60 = vpop.f32.mrf.mxu0  ;;  %v1316_v38 = vpop.f32.mrf.mxu3 }
 0x1a2   : > { %v4353_v46 = vadd.f32 %v1675_v18, %v1363_v10  ;;  %v1760_v10 = vrot.slane %v3686_v16, 2 }
 0x1a5   : > { %v947_v9 = vpop.f32.mrf.mxu2 }
 0x1a6   : > { %v1003_v49 = vadd.f32 %v947_v9, %v748_v57  ;;  %v750_v52 = vpop.f32.mrf.mxu1 }
 0x1a7   : > { %v751_v1 = vadd.f32 %v750_v52, %v4033_v47  ;;  %v2404_v47 = vshrl.u32 %v4372_v59, 16 }
 0x1a8   : > { %v1364_v55 = vadd.f32 %v1308_v43, %v1003_v49  ;;  %v1680_v62 = vpop.f32.mrf.mxu0  ;;  %v1318_v18 = vpop.f32.mrf.mxu3  ;;  %v2402_v43 = vsel %vm2349_vm6, %v2392_v27, %v2401_v7  ;;  %v2726_v27 = vrot.slane %v4326_v17, 3  ;;  %v1761_v49 = vsel %vm1752_vm7, %v1758_v26, %v1760_v10 }
 0x1a9   : > { %3464 = vmatmul.msk.bf16.gmra.mxu1 %vm481_vm3, %v1759_v8  ;;  %v2406_v8 = vrot.slane %v2404_v47, 2 }
 0x1aa   : > { %3551 = vmatmul.msk.bf16.gmra.mxu2 %vm481_vm3, %v2120_v45  ;;  %v4366_v30 = vadd.f32 %v1677_v60, %v1364_v55  ;;  %v2121_v60 = vrot.slane %v4326_v17, 2  ;;  %v2409_v45 = vrot.slane %v2407_v35, 3  ;;  %v2727_v55 = vsel %vm2718_vm8, %v2724_v2, %v2726_v27 }
 0x1ab   : > { %3589 = vmatmul.msk.bf16.gmra.mxu0 %vm481_vm3, %v2725_v6 }
 0x1ac   : > { %3572 = vmatmul.msk.bf16.gmra.mxu3 %vm481_vm3, %v2402_v43  ;;  %v2122_v52 = vsel %vm1752_vm7, %v2119_v31, %v2121_v60  ;;  %v2410_v17 = vor.u32 %v2409_v45, %v2406_v8  ;;  %v3687_v43 = vld [vmem:[%s3767_s27 + $0x30] sm:$0xff] }
 0x1ad   : > { %v950_v3 = vpop.f32.mrf.mxu2 }
 0x1ae   : > { %v1004_v58 = vadd.f32 %v950_v3, %v751_v1  ;;  %v752_v33 = vpop.f32.mrf.mxu1  ;;  %v4394_v3 = vld [vmem:[%s3767_s27 + $0x48] sm:$0xff] }
 0x1af   : > { %v753_v22 = vadd.f32 %v752_v33, %v4044_v54  ;;  %v2416_v16 = vshll.u32 %v4394_v3, 16 }
 0x1b0   : > { %v1365_v24 = vadd.f32 %v1311_v53, %v1004_v58  ;;  %v1682_v51 = vpop.f32.mrf.mxu0  ;;  %v1321_v57 = vpop.f32.mrf.mxu3 }
 0x1b2   : > { %v4375_v11 = vadd.f32 %v1680_v62, %v1365_v24  ;;  %v1762_v24 = vrot.slane %v3687_v43, 2  ;;  %v2125_v43 = vrot.slane %v4372_v59, 2 }
 0x1b5   : > { %v952_v37 = vpop.f32.mrf.mxu2 }
 0x1b6   : > { %v1005_v53 = vadd.f32 %v952_v37, %v753_v22  ;;  %v755_v9 = vpop.f32.mrf.mxu1 }
 0x1b7   : > { %v756_v26 = vadd.f32 %v755_v9, %v4059_v25  ;;  %v2413_v25 = vshrl.u32 %v4394_v3, 16 }
 0x1b8   : > { %v1366_v44 = vadd.f32 %v1313_v56, %v1005_v53  ;;  %v1685_v48 = vpop.f32.mrf.mxu0  ;;  %v1323_v62 = vpop.f32.mrf.mxu3  ;;  %v2411_v56 = vsel %vm2349_vm6, %v2401_v7, %v2410_v17  ;;  %v2728_v7 = vrot.slane %v4350_v61, 3  ;;  %v1763_v53 = vsel %vm1752_vm7, %v1760_v10, %v1762_v24  ;;  %v4891_v10 = vld [vmem:[#allocation8_spill] sm:$0xff] }
 0x1b9   : > { %3465 = vmatmul.msk.bf16.gmra.mxu1 %vm481_vm3, %v1761_v49  ;;  %v2415_v49 = vrot.slane %v2413_v25, 2 }
 0x1ba   : > { %3552 = vmatmul.msk.bf16.gmra.mxu2 %vm481_vm3, %v2122_v52  ;;  %v4388_v54 = vadd.f32 %v1682_v51, %v1366_v44  ;;  %v2123_v51 = vrot.slane %v4350_v61, 2  ;;  %v2418_v52 = vrot.slane %v2416_v16, 3  ;;  %v2729_v44 = vsel %vm2718_vm8, %v2726_v27, %v2728_v7 }
 0x1bb   : > { %3590 = vmatmul.msk.bf16.gmra.mxu0 %vm481_vm3, %v2727_v55 }
 0x1bc   : > { %3573 = vmatmul.msk.bf16.gmra.mxu3 %vm481_vm3, %v2411_v56  ;;  %v2124_v9 = vsel %vm1752_vm7, %v2121_v60, %v2123_v51  ;;  %v2419_v61 = vor.u32 %v2418_v52, %v2415_v49  ;;  %v2126_v49 = vsel %vm1752_vm7, %v2123_v51, %v2125_v43 }
 0x1bd   : > { %v955_v31 = vpop.f32.mrf.mxu2 }
 0x1be   : > { %v1006_v6 = vadd.f32 %v955_v31, %v756_v26  ;;  %v757_v1 = vpop.f32.mrf.mxu1 }
 0x1bf   : > { %v758_v47 = vadd.f32 %v757_v1, %v4070_v29 }
 0x1c0   : > { %v1367_v2 = vadd.f32 %v1316_v38, %v1006_v6  ;;  %v1687_v58 = vpop.f32.mrf.mxu0  ;;  %v1326_v22 = vpop.f32.mrf.mxu3  ;;  %v4416_v6 = vld [vmem:[%s3767_s27 + $0x50] sm:$0xff] }
 0x1c1   : > { %v2422_v25 = vshrl.u32 %v4416_v6, 16  ;;  %v2425_v16 = vshll.u32 %v4416_v6, 16 }
 0x1c2   : > { %v4397_v33 = vadd.f32 %v1685_v48, %v1367_v2  ;;  %v3688_v2 = vld [vmem:[%s3767_s27 + $0x38] sm:$0xff] }
 0x1c3   : > { %v2424_v52 = vrot.slane %v2422_v25, 2 }
 0x1c5   : > { %v957_v35 = vpop.f32.mrf.mxu2 }
 0x1c6   : > { %v1007_v38 = vadd.f32 %v957_v35, %v758_v47  ;;  %v760_v37 = vpop.f32.mrf.mxu1  ;;  %v4892_v47 = vld [vmem:[#allocation9_spill] sm:$0xff] }
 0x1c7   : > { %v761_v48 = vadd.f32 %v760_v37, %v4891_v10 }
 0x1c8   : > { %v1368_v8 = vadd.f32 %v1318_v18, %v1007_v38  ;;  %v1690_v45 = vpop.f32.mrf.mxu0  ;;  %v1328_v55 = vpop.f32.mrf.mxu3  ;;  %v2420_v18 = vsel %vm2349_vm6, %v2410_v17, %v2419_v61  ;;  %v2730_v17 = vrot.slane %v4372_v59, 3 }
 0x1c9   : > { %3466 = vmatmul.msk.bf16.gmra.mxu1 %vm481_vm3, %v1763_v53 }
 0x1ca   : > { %3553 = vmatmul.msk.bf16.gmra.mxu2 %vm481_vm3, %v2124_v9  ;;  %v4410_v29 = vadd.f32 %v1687_v58, %v1368_v8  ;;  %v1764_v58 = vrot.slane %v3688_v2, 2  ;;  %v2427_v8 = vrot.slane %v2425_v16, 3  ;;  %v2731_v10 = vsel %vm2718_vm8, %v2728_v7, %v2730_v17 }
 0x1cb   : > { %3591 = vmatmul.msk.bf16.gmra.mxu0 %vm481_vm3, %v2729_v44 }
 0x1cc   : > { %3574 = vmatmul.msk.bf16.gmra.mxu3 %vm481_vm3, %v2420_v18  ;;  %v1765_v9 = vsel %vm1752_vm7, %v1762_v24, %v1764_v58  ;;  %v4893_v24 = vld [vmem:[#allocation2_spill] sm:$0xff] }
 0x1cd   : > { %v960_v60 = vpop.f32.mrf.mxu2 }
 0x1ce   : > { %v1008_v26 = vadd.f32 %v960_v60, %v761_v48  ;;  %v762_v31 = vpop.f32.mrf.mxu1  ;;  %v2428_v48 = vor.u32 %v2427_v8, %v2424_v52 }
 0x1cf   : > { %v763_v35 = vadd.f32 %v762_v31, %v4892_v47  ;;  %v2127_v47 = vrot.slane %v4394_v3, 2 }
 0x1d0   : > { %v1369_v27 = vadd.f32 %v1321_v57, %v1008_v26  ;;  %v1692_v1 = vpop.f32.mrf.mxu0  ;;  %v1331_v37 = vpop.f32.mrf.mxu3 }
 0x1d2   : > { %v4419_v56 = vadd.f32 %v1690_v45, %v1369_v27  ;;  %v4438_v27 = vld [vmem:[%s3767_s27 + $0x58] sm:$0xff] }
 0x1d5   : > { %v962_v38 = vpop.f32.mrf.mxu2 }
 0x1d6   : > { %v1009_v57 = vadd.f32 %v962_v38, %v763_v35  ;;  %v765_v53 = vpop.f32.mrf.mxu1  ;;  %v2431_v35 = vshrl.u32 %v4438_v27, 16  ;;  %v2434_v38 = vshll.u32 %v4438_v27, 16 }
 0x1d7   : > { %v766_v60 = vadd.f32 %v765_v53, %v4893_v24 }
 0x1d8   : > { %v1370_v45 = vadd.f32 %v1323_v62, %v1009_v57  ;;  %v1695_v44 = vpop.f32.mrf.mxu0  ;;  %v1333_v26 = vpop.f32.mrf.mxu3  ;;  %v2429_v62 = vsel %vm2349_vm6, %v2419_v61, %v2428_v48  ;;  %v4894_v57 = vld [vmem:[#allocation3_spill] sm:$0xff]  ;;  %v2732_v61 = vrot.slane %v4394_v3, 3 }
 0x1d9   : > { %3467 = vmatmul.msk.bf16.gmra.mxu1 %vm481_vm3, %v1765_v9 }
 0x1da   : > { %3554 = vmatmul.msk.bf16.gmra.mxu2 %vm481_vm3, %v2126_v49  ;;  %v4432_v59 = vadd.f32 %v1692_v1, %v1370_v45  ;;  %v3689_v1 = vld [vmem:[%s3767_s27 + $0x40] sm:$0xff]  ;;  %v2128_v45 = vsel %vm1752_vm7, %v2125_v43, %v2127_v47 }
 0x1db   : > { %3592 = vmatmul.msk.bf16.gmra.mxu0 %vm481_vm3, %v2731_v10  ;;  %v1766_v16 = vrot.slane %v3689_v1, 2  ;;  %v2436_v10 = vrot.slane %v2434_v38, 3 }
 0x1dc   : > { %3575 = vmatmul.msk.bf16.gmra.mxu3 %vm481_vm3, %v2429_v62 }
 0x1dd   : > { %v965_v51 = vpop.f32.mrf.mxu2  ;;  %v1767_v8 = vsel %vm1752_vm7, %v1764_v58, %v1766_v16  ;;  %v4895_v58 = vld [vmem:[#allocation4_spill] sm:$0xff] }
 0x1de   : > { %v1010_v31 = vadd.f32 %v965_v51, %v766_v60  ;;  %v767_v18 = vpop.f32.mrf.mxu1  ;;  %v2733_v51 = vsel %vm2718_vm8, %v2730_v17, %v2732_v61 }
 0x1df   : > { %v768_v53 = vadd.f32 %v767_v18, %v4894_v57 }
 0x1e0   : > { %v1371_v7 = vadd.f32 %v1326_v22, %v1010_v31  ;;  %v1697_v2 = vpop.f32.mrf.mxu0  ;;  %v1336_v49 = vpop.f32.mrf.mxu3 }
 0x1e2   : > { %v4441_v25 = vadd.f32 %v1695_v44, %v1371_v7  ;;  %v2433_v44 = vrot.slane %v2431_v35, 2  ;;  %v4460_v35 = vld [vmem:[%s3767_s27 + $0x60] sm:$0xff] }
 0x1e4   : > { %v2437_v31 = vor.u32 %v2436_v10, %v2433_v44 }
 0x1e5   : > { %v967_v9 = vpop.f32.mrf.mxu2 }
 0x1e6   : > { %v1011_v22 = vadd.f32 %v967_v9, %v768_v53  ;;  %v770_v52 = vpop.f32.mrf.mxu1  ;;  %v2129_v9 = vrot.slane %v4416_v6, 2 }
 0x1e7   : > { %v771_v18 = vadd.f32 %v770_v52, %v4895_v58  ;;  %v2443_v52 = vshll.u32 %v4460_v35, 16 }
 0x1e8   : > { %v1372_v24 = vadd.f32 %v1328_v55, %v1011_v22  ;;  %v1700_v60 = vpop.f32.mrf.mxu0  ;;  %v1338_v62 = vpop.f32.mrf.mxu3  ;;  %v2438_v55 = vsel %vm2349_vm6, %v2428_v48, %v2437_v31  ;;  %v2440_v22 = vshrl.u32 %v4460_v35, 16  ;;  %v2734_v48 = vrot.slane %v4416_v6, 3 }
 0x1e9   : > { %3468 = vmatmul.msk.bf16.gmra.mxu1 %vm481_vm3, %v1767_v8  ;;  %v4896_v8 = vld [vmem:[#allocation5_spill] sm:$0xff] }
 0x1ea   : > { %3555 = vmatmul.msk.bf16.gmra.mxu2 %vm481_vm3, %v2128_v45  ;;  %v4454_v3 = vadd.f32 %v1697_v2, %v1372_v24  ;;  %v3690_v2 = vld [vmem:[%s3767_s27 + $0x48] sm:$0xff]  ;;  %v2442_v58 = vrot.slane %v2440_v22, 2 }
 0x1eb   : > { %3593 = vmatmul.msk.bf16.gmra.mxu0 %vm481_vm3, %v2733_v51  ;;  %v1768_v53 = vrot.slane %v3690_v2, 2 }
 0x1ec   : > { %3576 = vmatmul.msk.bf16.gmra.mxu3 %vm481_vm3, %v2438_v55  ;;  %v2735_v55 = vsel %vm2718_vm8, %v2732_v61, %v2734_v48  ;;  %v4484_v61 = vld [vmem:[%s3767_s27 + $0x68] sm:$0xff] }
 0x1ed   : > { %v970_v43 = vpop.f32.mrf.mxu2  ;;  %v1769_v51 = vsel %vm1752_vm7, %v1766_v16, %v1768_v53  ;;  %v4897_v16 = vld [vmem:[#allocation6_spill] sm:$0xff] }
 0x1ee   : > { %v1012_v7 = vadd.f32 %v970_v43, %v771_v18  ;;  %v772_v1 = vpop.f32.mrf.mxu1  ;;  %v2445_v18 = vrot.slane %v2443_v52, 3 }
 0x1ef   : > { %v773_v45 = vadd.f32 %v772_v1, %v4896_v8 }
 0x1f0   : > { %v1373_v17 = vadd.f32 %v1331_v37, %v1012_v7  ;;  %v1702_v38 = vpop.f32.mrf.mxu0  ;;  %v2586_v10 = vpop.f32.mrf.mxu3  ;;  %v2446_v1 = vor.u32 %v2445_v18, %v2442_v58  ;;  %v4898_v58 = vld [vmem:[#allocation7_spill] sm:$0xff] }
 0x1f2   : > { %v4463_v57 = vadd.f32 %v1700_v60, %v1373_v17  ;;  %v2130_v60 = vsel %vm1752_vm7, %v2127_v47, %v2129_v9  ;;  %v2447_v52 = vsel %vm2349_vm6, %v2437_v31, %v2446_v1  ;;  %v2736_v31 = vrot.slane %v4438_v27, 3 }
 0x1f5   : > { %v972_v44 = vpop.f32.mrf.mxu2 }
 0x1f6   : > { %v1013_v37 = vadd.f32 %v972_v44, %v773_v45  ;;  %v775_v24 = vpop.f32.mrf.mxu1  ;;  %v3691_v44 = vld [vmem:[%s3767_s27 + $0x50] sm:$0xff] }
 0x1f7   : > { %v776_v17 = vadd.f32 %v775_v24, %v4897_v16  ;;  %v2449_v24 = vshrl.u32 %v4484_v61, 16 }
 0x1f8   : > { %v1374_v43 = vadd.f32 %v1333_v26, %v1013_v37  ;;  %v1705_v7 = vpop.f32.mrf.mxu0  ;;  %v4480_v2 = vpop.f32.mrf.mxu3  ;;  %v1770_v37 = vrot.slane %v3691_v44, 2  ;;  %v2737_v44 = vsel %vm2718_vm8, %v2734_v48, %v2736_v31 }
 0x1f9   : > { %3469 = vmatmul.msk.bf16.gmra.mxu1 %vm481_vm3, %v1769_v51  ;;  %v2131_v51 = vrot.slane %v4438_v27, 2 }
 0x1fa   : > { %3556 = vmatmul.msk.bf16.gmra.mxu2 %vm481_vm3, %v2130_v60  ;;  %v4476_v6 = vadd.f32 %v1702_v38, %v1374_v43  ;;  %v2452_v60 = vshll.u32 %v4484_v61, 16 }
 0x1fb   : > { %3594 = vmatmul.msk.bf16.gmra.mxu0 %vm481_vm3, %v2735_v55 }
 0x1fc   : > { %3577 = vmatmul.msk.bf16.gmra.mxu3 %vm481_vm3, %v2447_v52 }
 0x1fd   : > { %v975_v47 = vpop.f32.mrf.mxu2 }
 0x1fe   : > { %v1014_v22 = vadd.f32 %v975_v47, %v776_v17  ;;  %v777_v26 = vpop.f32.mrf.mxu1  ;;  %v2132_v17 = vsel %vm1752_vm7, %v2129_v9, %v2131_v51  ;;  %v2451_v47 = vrot.slane %v2449_v24, 2 }
 0x1ff   : > { %v778_v18 = vadd.f32 %v777_v26, %v4898_v58  ;;  %v4510_v58 = vld [vmem:[%s3767_s27 + $0x70] sm:$0xff] }
 0x200   : > { %v1375_v8 = vadd.f32 %v1336_v49, %v1014_v22  ;;  %v1707_v45 = vpop.f32.mrf.mxu0  ;;  %v4495_v55 = vpop.f32.mrf.mxu3  ;;  %v2454_v22 = vrot.slane %v2452_v60, 3 }
 0x202   : > { %v4487_v38 = vadd.f32 %v1705_v7, %v1375_v8  ;;  %v1771_v7 = vsel %vm1752_vm7, %v1768_v53, %v1770_v37  ;;  %v2455_v26 = vor.u32 %v2454_v22, %v2451_v47  ;;  %v2738_v22 = vrot.slane %v4460_v35, 3 }
 0x204   : > { %v2456_v48 = vsel %vm2349_vm6, %v2446_v1, %v2455_v26  ;;  %v2458_v1 = vshrl.u32 %v4510_v58, 16 }
 0x205   : > { %v977_v43 = vpop.f32.mrf.mxu2 }
 0x206   : > { %v1015_v49 = vadd.f32 %v977_v43, %v778_v18  ;;  %v1856_v16 = vpop.f32.mrf.mxu1 }
 0x207   : > { %v1946_v53 = vadd.f32 %v1856_v16, %v4104_v39  ;;  %v4519_v39 = vld [vmem:[%s3767_s27 + $0x58] sm:$0xff] }
 0x208   : > { %v1376_v52 = vadd.f32 %v1338_v62, %v1015_v49  ;;  %v2822_v8 = vpop.f32.mrf.mxu0  ;;  %v4506_v24 = vpop.f32.mrf.mxu3  ;;  %v1772_v16 = vrot.slane %v4519_v39, 2 }
 0x209   : > { %3470 = vmatmul.msk.bf16.gmra.mxu1 %vm481_vm3, %v1771_v7  ;;  %v2133_v7 = vrot.slane %v4460_v35, 2 }
 0x20a   : > { %3557 = vmatmul.msk.bf16.gmra.mxu2 %vm481_vm3, %v2132_v17  ;;  %v4502_v27 = vadd.f32 %v1707_v45, %v1376_v52  ;;  %v4515_v45 = vld [vmem:[%s4874_s2] ss:$0 sm:$0xff]  ;;  %v2461_v17 = vshll.u32 %v4510_v58, 16 }
 0x20b   : > { %3595 = vmatmul.msk.bf16.gmra.mxu0 %vm481_vm3, %v2737_v44 }
 0x20c   : > { %3578 = vmatmul.msk.bf16.gmra.mxu3 %vm481_vm3, %v2456_v48  ;;  %v2134_v48 = vsel %vm1752_vm7, %v2131_v51, %v2133_v7 }
 0x20d   : > { %v2217_v9 = vpop.f32.mrf.mxu2 }
 0x20e   : > { %v2307_v62 = vadd.f32 %v2217_v9, %v1946_v53  ;;  %v1858_v60 = vpop.f32.mrf.mxu1 }
 0x20f   : > { %v1947_v47 = vadd.f32 %v1858_v60, %v4114_v32 }
 0x210   : > { %v2676_v18 = vadd.f32 %v2586_v10, %v2307_v62  ;;  %v2824_v43 = vpop.f32.mrf.mxu0  ;;  %v1773_v62 = vsel %vm1752_vm7, %v1770_v37, %v1772_v16  ;;  %v2739_v37 = vsel %vm2718_vm8, %v2736_v31, %v2738_v22 }
 0x212   : > { %v2912_v49 = vadd.f32 %v2822_v8, %v2676_v18  ;;  %v4529_v8 = vpop.f32.mrf.mxu3  ;;  %v2460_v18 = vrot.slane %v2458_v1, 2 }
 0x214   : > { %v2952_v10 = vadd.f32 %v4515_v45, %v2912_v49  ;;  %v2463_v49 = vrot.slane %v2461_v17, 3 }
 0x215   : > { %v2219_v52 = vpop.f32.mrf.mxu2 }
 0x216   : > { %vm2988_vm9 = vcmp.ge.f32.partialorder %v2952_v10, 0.0  ;;  %v3024_v44 = vmul.f32 0.2, %v2952_v10  ;;  %v2308_v53 = vadd.f32 %v2219_v52, %v1947_v47  ;;  %v1861_v9 = vpop.f32.mrf.mxu1  ;;  %v2464_v1 = vor.u32 %v2463_v49, %v2460_v18 }
 0x218   : > { %v3060_v32 = vsel %vm2988_vm9, %v2952_v10, %v3024_v44  ;;  %v2677_v60 = vadd.f32 %v4480_v2, %v2308_v53  ;;  %v2827_v47 = vpop.f32.mrf.mxu0  ;;  %v1948_v2 = vadd.f32 %v1861_v9, %v4120_v23  ;;  %v3693_v23 = vld [vmem:[%s3767_s27 + $0x60] sm:$0xff] }
 0x219   : > { %v3096_v52 = vpack.c.bf16 %v3060_v32, %v3060_v32  ;;  %3471 = vmatmul.msk.bf16.gmra.mxu1 %vm481_vm3, %v1773_v62  ;;  %v2465_v62 = vsel %vm2349_vm6, %v2455_v26, %v2464_v1  ;;  %v1774_v9 = vrot.slane %v3693_v23, 2 }
 0x21a   : > { %v2913_v51 = vadd.f32 %v2824_v43, %v2677_v60  ;;  %3558 = vmatmul.msk.bf16.gmra.mxu2 %vm481_vm3, %v2134_v48  ;;  %v4553_v31 = vpop.f32.mrf.mxu3  ;;  %v4557_v48 = vld [vmem:[%s3767_s27 + $0x78] sm:$0xff] }
 0x21b   : > { %3133 = vst.msk [vmem:[%s4540_s3] sm:$0xf] %vm3132_vm10, %v3096_v52  ;;  %3596 = vmatmul.msk.bf16.gmra.mxu0 %vm481_vm3, %v2739_v37  ;;  %v2135_v52 = vrot.slane %v4484_v61, 2  ;;  %v2470_v26 = vshll.u32 %v4557_v48, 16 }
 0x21c   : > { %v2953_v17 = vadd.f32 %v4515_v45, %v2913_v51  ;;  %3579 = vmatmul.msk.bf16.gmra.mxu3 %vm481_vm3, %v2465_v62  ;;  %v2467_v51 = vshrl.u32 %v4557_v48, 16 }
 0x21d   : > { %v2222_v10 = vpop.f32.mrf.mxu2 }
 0x21e   : > { %vm2989_vm11 = vcmp.ge.f32.partialorder %v2953_v17, 0.0  ;;  %v3025_v43 = vmul.f32 0.2, %v2953_v17  ;;  %v2309_v44 = vadd.f32 %v2222_v10, %v1948_v2  ;;  %v1863_v53 = vpop.f32.mrf.mxu1 }
 0x220   : > { %v3061_v32 = vsel %vm2989_vm11, %v2953_v17, %v3025_v43  ;;  %v2678_v18 = vadd.f32 %v4495_v55, %v2309_v44  ;;  %v2829_v49 = vpop.f32.mrf.mxu0  ;;  %v1949_v17 = vadd.f32 %v1863_v53, %v4130_v36  ;;  %v2740_v55 = vrot.slane %v4484_v61, 3 }
 0x221   : > { %v3097_v60 = vpack.c.bf16 %v3061_v32, %v3061_v32  ;;  %v1775_v32 = vsel %vm1752_vm7, %v1772_v16, %v1774_v9  ;;  %v2472_v36 = vrot.slane %v2470_v26, 3 }
 0x222   : > { %v2914_v37 = vadd.f32 %v2827_v47, %v2678_v18  ;;  %v4570_v47 = vpop.f32.mrf.mxu3  ;;  %v2136_v18 = vsel %vm1752_vm7, %v2133_v7, %v2135_v52  ;;  %v2741_v23 = vsel %vm2718_vm8, %v2738_v22, %v2740_v55 }
 0x223   : > { %3134 = vst.msk [vmem:[%s4540_s3 + $0x4] sm:$0xf] %vm3132_vm10, %v3097_v60  ;;  %v2469_v60 = vrot.slane %v2467_v51, 2 }
 0x224   : > { %v2954_v2 = vadd.f32 %v4515_v45, %v2914_v37 }
 0x225   : > { %v2224_v10 = vpop.f32.mrf.mxu2  ;;  %v2473_v39 = vor.u32 %v2472_v36, %v2469_v60  ;;  %v2137_v36 = vrot.slane %v4510_v58, 2 }
 0x226   : > { %vm2990_vm12 = vcmp.ge.f32.partialorder %v2954_v2, 0.0  ;;  %v3026_v43 = vmul.f32 0.2, %v2954_v2  ;;  %v2310_v44 = vadd.f32 %v2224_v10, %v1949_v17  ;;  %v1866_v62 = vpop.f32.mrf.mxu1 }
 0x227   : > { %v2474_v26 = vsel %vm2349_vm6, %v2464_v1, %v2473_v39 }
 0x228   : > { %v3062_v53 = vsel %vm2990_vm12, %v2954_v2, %v3026_v43  ;;  %v2679_v61 = vadd.f32 %v4506_v24, %v2310_v44  ;;  %v2832_v37 = vpop.f32.mrf.mxu0  ;;  %v1950_v24 = vadd.f32 %v1866_v62, %v4136_v63  ;;  %v4593_v2 = vld [vmem:[%s3767_s27 + $0x80] sm:$0xff]  ;;  %v3694_v63 = vld [vmem:[%s3767_s27 + $0x68] sm:$0xff] }
 0x229   : > { %v3098_v17 = vpack.c.bf16 %v3062_v53, %v3062_v53  ;;  %3472 = vmatmul.msk.bf16.gmra.mxu1 %vm481_vm3, %v1775_v32  ;;  %v1776_v62 = vrot.slane %v3694_v63, 2  ;;  %v2476_v53 = vshrl.u32 %v4593_v2, 16  ;;  %v2479_v1 = vshll.u32 %v4593_v2, 16 }
 0x22a   : > { %v2915_v10 = vadd.f32 %v2829_v49, %v2679_v61  ;;  %3559 = vmatmul.msk.bf16.gmra.mxu2 %vm481_vm3, %v2136_v18  ;;  %v4589_v7 = vpop.f32.mrf.mxu3 }
 0x22b   : > { %3135 = vst.msk [vmem:[%s4540_s3 + $0x8] sm:$0xf] %vm3132_vm10, %v3098_v17  ;;  %3597 = vmatmul.msk.bf16.gmra.mxu0 %vm481_vm3, %v2741_v23 }
 0x22c   : > { %v2955_v16 = vadd.f32 %v4515_v45, %v2915_v10  ;;  %3580 = vmatmul.msk.bf16.gmra.mxu3 %vm481_vm3, %v2474_v26  ;;  %v2481_v26 = vrot.slane %v2479_v1, 3 }
 0x22d   : > { %v2227_v35 = vpop.f32.mrf.mxu2 }
 0x22e   : > { %vm2991_vm13 = vcmp.ge.f32.partialorder %v2955_v16, 0.0  ;;  %v3027_v22 = vmul.f32 0.2, %v2955_v16  ;;  %v2311_v49 = vadd.f32 %v2227_v35, %v1950_v24  ;;  %v1868_v51 = vpop.f32.mrf.mxu1  ;;  %v1777_v35 = vsel %vm1752_vm7, %v1774_v9, %v1776_v62 }
 0x22f   : > { %v1951_v23 = vadd.f32 %v1868_v51, %v4146_v40 }
 0x230   : > { %v3063_v43 = vsel %vm2991_vm13, %v2955_v16, %v3027_v22  ;;  %v2680_v44 = vadd.f32 %v4529_v8, %v2311_v49  ;;  %v2834_v32 = vpop.f32.mrf.mxu0  ;;  %v2742_v8 = vrot.slane %v4510_v58, 3  ;;  %v2138_v22 = vsel %vm1752_vm7, %v2135_v52, %v2137_v36 }
 0x231   : > { %v3099_v18 = vpack.c.bf16 %v3063_v43, %v3063_v43  ;;  %v2478_v49 = vrot.slane %v2476_v53, 2 }
 0x232   : > { %v2916_v60 = vadd.f32 %v2832_v37, %v2680_v44  ;;  %v4606_v37 = vpop.f32.mrf.mxu3  ;;  %v2743_v58 = vsel %vm2718_vm8, %v2740_v55, %v2742_v8 }
 0x233   : > { %3136 = vst.msk [vmem:[%s4540_s3 + $0xc] sm:$0xf] %vm3132_vm10, %v3099_v18  ;;  %v2482_v9 = vor.u32 %v2481_v26, %v2478_v49 }
 0x234   : > { %v2956_v61 = vadd.f32 %v4515_v45, %v2916_v60 }
 0x235   : > { %v2229_v17 = vpop.f32.mrf.mxu2  ;;  %v2483_v1 = vsel %vm2349_vm6, %v2473_v39, %v2482_v9 }
 0x236   : > { %vm2992_vm14 = vcmp.ge.f32.partialorder %v2956_v61, 0.0  ;;  %v3028_v10 = vmul.f32 0.2, %v2956_v61  ;;  %v2312_v16 = vadd.f32 %v2229_v17, %v1951_v23  ;;  %v1871_v24 = vpop.f32.mrf.mxu1 }
 0x238   : > { %v3064_v43 = vsel %vm2992_vm14, %v2956_v61, %v3028_v10  ;;  %v2681_v44 = vadd.f32 %v4553_v31, %v2312_v16  ;;  %v2837_v40 = vpop.f32.mrf.mxu0  ;;  %v1952_v31 = vadd.f32 %v1871_v24, %v4152_v13  ;;  %v4623_v61 = vld [vmem:[%s3767_s27 + $0x88] sm:$0xff]  ;;  %v3695_v13 = vld [vmem:[%s3767_s27 + $0x70] sm:$0xff] }
 0x239   : > { %v3100_v51 = vpack.c.bf16 %v3064_v43, %v3064_v43  ;;  %3473 = vmatmul.msk.bf16.gmra.mxu1 %vm481_vm3, %v1777_v35  ;;  %v1778_v24 = vrot.slane %v3695_v13, 2  ;;  %v2485_v49 = vshrl.u32 %v4623_v61, 16  ;;  %v2488_v39 = vshll.u32 %v4623_v61, 16 }
 0x23a   : > { %v2917_v18 = vadd.f32 %v2834_v32, %v2681_v44  ;;  %3560 = vmatmul.msk.bf16.gmra.mxu2 %vm481_vm3, %v2138_v22  ;;  %v4619_v55 = vpop.f32.mrf.mxu3  ;;  %v2139_v22 = vrot.slane %v4557_v48, 2 }
 0x23b   : > { %3137 = vst.msk [vmem:[%s4540_s3 + $0x10] sm:$0xf] %vm3132_vm10, %v3100_v51  ;;  %3598 = vmatmul.msk.bf16.gmra.mxu0 %vm481_vm3, %v2743_v58 }
 0x23c   : > { %v2957_v52 = vadd.f32 %v4515_v45, %v2917_v18  ;;  %3581 = vmatmul.msk.bf16.gmra.mxu3 %vm481_vm3, %v2483_v1 }
 0x23d   : > { %v2232_v60 = vpop.f32.mrf.mxu2 }
 0x23e   : > { %vm2993_vm15 = vcmp.ge.f32.partialorder %v2957_v52, 0.0  ;;  %v3029_v32 = vmul.f32 0.2, %v2957_v52  ;;  %v2313_v63 = vadd.f32 %v2232_v60, %v1952_v31  ;;  %v1873_v53 = vpop.f32.mrf.mxu1  ;;  %v2140_v31 = vsel %vm1752_vm7, %v2137_v36, %v2139_v22 }
 0x23f   : > { %v1953_v43 = vadd.f32 %v1873_v53, %v4162_v5  ;;  %v2487_v60 = vrot.slane %v2485_v49, 2  ;;  %v4653_v49 = vld [vmem:[%s3767_s27 + $0x90] sm:$0xff] }
 0x240   : > { %v3065_v23 = vsel %vm2993_vm15, %v2957_v52, %v3029_v32  ;;  %v2682_v17 = vadd.f32 %v4570_v47, %v2313_v63  ;;  %v2839_v10 = vpop.f32.mrf.mxu0  ;;  %v2744_v47 = vrot.slane %v4557_v48, 3  ;;  %v1779_v52 = vsel %vm1752_vm7, %v1776_v62, %v1778_v24 }
 0x241   : > { %v3101_v16 = vpack.c.bf16 %v3065_v23, %v3065_v23  ;;  %v2490_v32 = vrot.slane %v2488_v39, 3 }
 0x242   : > { %v2918_v35 = vadd.f32 %v2837_v40, %v2682_v17  ;;  %v4636_v40 = vpop.f32.mrf.mxu3  ;;  %v2745_v48 = vsel %vm2718_vm8, %v2742_v8, %v2744_v47 }
 0x243   : > { %3138 = vst.msk [vmem:[%s4540_s3 + $0x14] sm:$0xf] %vm3132_vm10, %v3101_v16  ;;  %v2491_v62 = vor.u32 %v2490_v32, %v2487_v60 }
 0x244   : > { %v2958_v26 = vadd.f32 %v4515_v45, %v2918_v35 }
 0x245   : > { %v2234_v44 = vpop.f32.mrf.mxu2  ;;  %v2492_v13 = vsel %vm2349_vm6, %v2482_v9, %v2491_v62  ;;  %v2497_v9 = vshll.u32 %v4653_v49, 16 }
 0x246   : > { %vm2994_vm0 = vcmp.ge.f32.partialorder %v2958_v26, 0.0  ;;  %v3030_v58 = vmul.f32 0.2, %v2958_v26  ;;  %v2314_v51 = vadd.f32 %v2234_v44, %v1953_v43  ;;  %v1876_v18 = vpop.f32.mrf.mxu1 }
 0x248   : > { %v3066_v63 = vsel %vm2994_vm0, %v2958_v26, %v3030_v58  ;;  %v2683_v1 = vadd.f32 %v4589_v7, %v2314_v51  ;;  %v2842_v5 = vpop.f32.mrf.mxu0  ;;  %v1954_v7 = vadd.f32 %v1876_v18, %v4168_v14  ;;  %v3696_v14 = vld [vmem:[%s3767_s27 + $0x78] sm:$0xff]  ;;  %v2141_v18 = vrot.slane %v4593_v2, 2 }
 0x249   : > { %v3102_v53 = vpack.c.bf16 %v3066_v63, %v3066_v63  ;;  %3474 = vmatmul.msk.bf16.gmra.mxu1 %vm481_vm3, %v1779_v52  ;;  %v1780_v51 = vrot.slane %v3696_v14, 2  ;;  %v2494_v52 = vshrl.u32 %v4653_v49, 16 }
 0x24a   : > { %v2919_v23 = vadd.f32 %v2839_v10, %v2683_v1  ;;  %3561 = vmatmul.msk.bf16.gmra.mxu2 %vm481_vm3, %v2140_v31  ;;  %v4649_v8 = vpop.f32.mrf.mxu3 }
 0x24b   : > { %3139 = vst.msk [vmem:[%s4540_s3 + $0x18] sm:$0xf] %vm3132_vm10, %v3102_v53  ;;  %3599 = vmatmul.msk.bf16.gmra.mxu0 %vm481_vm3, %v2745_v48  ;;  %v1781_v53 = vsel %vm1752_vm7, %v1778_v24, %v1780_v51 }
 0x24c   : > { %v2959_v36 = vadd.f32 %v4515_v45, %v2919_v23  ;;  %3582 = vmatmul.msk.bf16.gmra.mxu3 %vm481_vm3, %v2492_v13  ;;  %v2142_v23 = vsel %vm1752_vm7, %v2139_v22, %v2141_v18 }
 0x24d   : > { %v2237_v17 = vpop.f32.mrf.mxu2 }
 0x24e   : > { %vm2995_vm1 = vcmp.ge.f32.partialorder %v2959_v36, 0.0  ;;  %v3031_v10 = vmul.f32 0.2, %v2959_v36  ;;  %v2315_v16 = vadd.f32 %v2237_v17, %v1954_v7  ;;  %v1878_v35 = vpop.f32.mrf.mxu1  ;;  %v2499_v7 = vrot.slane %v2497_v9, 3 }
 0x24f   : > { %v1955_v60 = vadd.f32 %v1878_v35, %v4178_v21 }
 0x250   : > { %v3067_v39 = vsel %vm2995_vm1, %v2959_v36, %v3031_v10  ;;  %v2684_v26 = vadd.f32 %v4606_v37, %v2315_v16  ;;  %v2844_v43 = vpop.f32.mrf.mxu0  ;;  %v2746_v37 = vrot.slane %v4593_v2, 3  ;;  %v2496_v36 = vrot.slane %v2494_v52, 2 }
 0x251   : > { %v3103_v44 = vpack.c.bf16 %v3067_v39, %v3067_v39 }
 0x252   : > { %v2920_v58 = vadd.f32 %v2842_v5, %v2684_v26  ;;  %v4666_v63 = vpop.f32.mrf.mxu3  ;;  %v2747_v2 = vsel %vm2718_vm8, %v2744_v47, %v2746_v37  ;;  %v2500_v24 = vor.u32 %v2499_v7, %v2496_v36 }
 0x253   : > { %3140 = vst.msk [vmem:[%s4540_s3 + $0x1c] sm:$0xf] %vm3132_vm10, %v3103_v44 }
 0x254   : > { %v2960_v31 = vadd.f32 %v4515_v45, %v2920_v58  ;;  %v2501_v44 = vsel %vm2349_vm6, %v2491_v62, %v2500_v24  ;;  %v4683_v58 = vld [vmem:[%s3767_s27 + $0x98] sm:$0xff] }
 0x255   : > { %v2239_v32 = vpop.f32.mrf.mxu2  ;;  %v2503_v62 = vshrl.u32 %v4683_v58, 16 }
 0x256   : > { %vm2996_vm2 = vcmp.ge.f32.partialorder %v2960_v31, 0.0  ;;  %v3032_v1 = vmul.f32 0.2, %v2960_v31  ;;  %v2316_v5 = vadd.f32 %v2239_v32, %v1955_v60  ;;  %v1881_v48 = vpop.f32.mrf.mxu1 }
 0x258   : > { %v3068_v17 = vsel %vm2996_vm2, %v2960_v31, %v3032_v1  ;;  %v2685_v10 = vadd.f32 %v4619_v55, %v2316_v5  ;;  %v2847_v21 = vpop.f32.mrf.mxu0  ;;  %v1956_v55 = vadd.f32 %v1881_v48, %v4184_v41  ;;  %v4690_v41 = vld [vmem:[%s3767_s27 + $0x80] sm:$0xff]  ;;  %v2143_v1 = vrot.slane %v4623_v61, 2 }
 0x259   : > { %v3104_v16 = vpack.c.bf16 %v3068_v17, %v3068_v17  ;;  %3475 = vmatmul.msk.bf16.gmra.mxu1 %vm481_vm3, %v1781_v53  ;;  %v1782_v32 = vrot.slane %v4690_v41, 2  ;;  %v2506_v5 = vshll.u32 %v4683_v58, 16  ;;  %v2748_v53 = vrot.slane %v4623_v61, 3 }
 0x25a   : > { %v2921_v35 = vadd.f32 %v2844_v43, %v2685_v10  ;;  %3562 = vmatmul.msk.bf16.gmra.mxu2 %vm481_vm3, %v2142_v23  ;;  %v4679_v47 = vpop.f32.mrf.mxu3 }
 0x25b   : > { %3141 = vst.msk [vmem:[%s4540_s3 + $0x20] sm:$0xf] %vm3132_vm10, %v3104_v16  ;;  %3600 = vmatmul.msk.bf16.gmra.mxu0 %vm481_vm3, %v2747_v2  ;;  %v2144_v2 = vsel %vm1752_vm7, %v2141_v18, %v2143_v1  ;;  %v2505_v16 = vrot.slane %v2503_v62, 2 }
 0x25c   : > { %v2961_v22 = vadd.f32 %v4515_v45, %v2921_v35  ;;  %3583 = vmatmul.msk.bf16.gmra.mxu3 %vm481_vm3, %v2501_v44  ;;  %v2508_v35 = vrot.slane %v2506_v5, 3 }
 0x25d   : > { %v2242_v13 = vpop.f32.mrf.mxu2 }
 0x25e   : > { %vm2997_vm4 = vcmp.ge.f32.partialorder %v2961_v22, 0.0  ;;  %v3033_v39 = vmul.f32 0.2, %v2961_v22  ;;  %v2317_v26 = vadd.f32 %v2242_v13, %v1956_v55  ;;  %v1883_v43 = vpop.f32.mrf.mxu1  ;;  %v2749_v13 = vsel %vm2718_vm8, %v2746_v37, %v2748_v53 }
 0x260   : > { %v3069_v14 = vsel %vm2997_vm4, %v2961_v22, %v3033_v39  ;;  %v2686_v52 = vadd.f32 %v4636_v40, %v2317_v26  ;;  %v2849_v9 = vpop.f32.mrf.mxu0  ;;  %v1957_v40 = vadd.f32 %v1883_v43, %v4194_v34  ;;  %v2343_v39 = vld [vmem:[%s3767_s27 + $0xa0] sm:$0x7] }
 0x261   : > { %v3105_v31 = vpack.c.bf16 %v3069_v14, %v3069_v14  ;;  %v2347_v18 = vunpack.c.l.b16 %v2343_v39 }
 0x262   : > { %v2922_v60 = vadd.f32 %v2847_v21, %v2686_v52  ;;  %v4699_v36 = vpop.f32.mrf.mxu3  ;;  %v1783_v21 = vsel %vm1752_vm7, %v1780_v51, %v1782_v32  ;;  %v2509_v51 = vor.u32 %v2508_v35, %v2505_v16 }
 0x263   : > { %3142 = vst.msk [vmem:[%s4540_s3 + $0x24] sm:$0xf] %vm3132_vm10, %v3105_v31  ;;  %v4718_v41 = vpack.c.b16 %v2347_v18, %v2347_v18 }
 0x264   : > { %v2962_v48 = vadd.f32 %v4515_v45, %v2922_v60  ;;  %v2510_v60 = vsel %vm2349_vm6, %v2500_v24, %v2509_v51 }
 0x265   : > { %v2244_v23 = vpop.f32.mrf.mxu2  ;;  %v2515_v24 = vshll.u32 %v4718_v41, 16 }
 0x266   : > { %vm2998_vm5 = vcmp.ge.f32.partialorder %v2962_v48, 0.0  ;;  %v3034_v7 = vmul.f32 0.2, %v2962_v48  ;;  %v2318_v17 = vadd.f32 %v2244_v23, %v1957_v40  ;;  %v1886_v10 = vpop.f32.mrf.mxu1 }
 0x267   : > { %v1958_v44 = vadd.f32 %v1886_v10, %v4203_v42  ;;  %v3698_v42 = vld [vmem:[%s3767_s27 + $0x88] sm:$0xff]  ;;  %v2512_v10 = vshrl.u32 %v4718_v41, 16  ;;  %v2517_v18 = vrot.slane %v2515_v24, 3 }
 0x268   : > { %v3070_v22 = vsel %vm2998_vm5, %v2962_v48, %v3034_v7  ;;  %v2687_v34 = vadd.f32 %v4649_v8, %v2318_v17  ;;  %v2852_v55 = vpop.f32.mrf.mxu0  ;;  %v1784_v7 = vrot.slane %v3698_v42, 2  ;;  %v2145_v17 = vrot.slane %v4653_v49, 2 }
 0x269   : > { %v3106_v26 = vpack.c.bf16 %v3070_v22, %v3070_v22  ;;  %3476 = vmatmul.msk.bf16.gmra.mxu1 %vm481_vm3, %v1783_v21 }
 0x26a   : > { %v2923_v43 = vadd.f32 %v2849_v9, %v2687_v34  ;;  %3563 = vmatmul.msk.bf16.gmra.mxu2 %vm481_vm3, %v2144_v2  ;;  %v4715_v14 = vpop.f32.mrf.mxu3  ;;  %v4899_v2 = vld [vmem:[#allocation10_spill] sm:$0xff]  ;;  %v1785_v39 = vsel %vm1752_vm7, %v1782_v32, %v1784_v7 }
 0x26b   : > { %3143 = vst.msk [vmem:[%s4540_s3 + $0x28] sm:$0xf] %vm3132_vm10, %v3106_v26  ;;  %3601 = vmatmul.msk.bf16.gmra.mxu0 %vm481_vm3, %v2749_v13  ;;  %v2146_v26 = vsel %vm1752_vm7, %v2143_v1, %v2145_v17 }
 0x26c   : > { %v2963_v8 = vadd.f32 %v4515_v45, %v2923_v43  ;;  %3584 = vmatmul.msk.bf16.gmra.mxu3 %vm481_vm3, %v2510_v60  ;;  %v2514_v43 = vrot.slane %v2512_v10, 2 }
 0x26d   : > { %v2247_v37 = vpop.f32.mrf.mxu2 }
 0x26e   : > { %vm2999_vm9 = vcmp.ge.f32.partialorder %v2963_v8, 0.0  ;;  %v3035_v52 = vmul.f32 0.2, %v2963_v8  ;;  %v2319_v9 = vadd.f32 %v2247_v37, %v1958_v44  ;;  %v1888_v31 = vpop.f32.mrf.mxu1  ;;  %v2518_v32 = vor.u32 %v2517_v18, %v2514_v43 }
 0x26f   : > { %v1959_v16 = vadd.f32 %v1888_v31, %v4899_v2 }
 0x270   : > { %v3071_v62 = vsel %vm2999_vm9, %v2963_v8, %v3035_v52  ;;  %v2688_v5 = vadd.f32 %v4666_v63, %v2319_v9  ;;  %v2854_v48 = vpop.f32.mrf.mxu0  ;;  %v2750_v63 = vrot.slane %v4653_v49, 3 }
 0x271   : > { %v3107_v40 = vpack.c.bf16 %v3071_v62, %v3071_v62 }
 0x272   : > { %v2924_v23 = vadd.f32 %v2852_v55, %v2688_v5  ;;  %v4731_v22 = vpop.f32.mrf.mxu3  ;;  %v2751_v49 = vsel %vm2718_vm8, %v2748_v53, %v2750_v63 }
 0x273   : > { %3144 = vst.msk [vmem:[%s4540_s3 + $0x2c] sm:$0xf] %vm3132_vm10, %v3107_v40 }
 0x274   : > { %v2964_v21 = vadd.f32 %v4515_v45, %v2924_v23 }
 0x275   : > { %v2249_v35 = vpop.f32.mrf.mxu2 }
 0x276   : > { %vm3000_vm11 = vcmp.ge.f32.partialorder %v2964_v21, 0.0  ;;  %v3036_v34 = vmul.f32 0.2, %v2964_v21  ;;  %v2320_v55 = vadd.f32 %v2249_v35, %v1959_v16  ;;  %v1891_v13 = vpop.f32.mrf.mxu1  ;;  %v2147_v16 = vrot.slane %v4683_v58, 2 }
 0x278   : > { %v3072_v8 = vsel %vm3000_vm11, %v2964_v21, %v3036_v34  ;;  %v2689_v44 = vadd.f32 %v4679_v47, %v2320_v55  ;;  %v2857_v37 = vpop.f32.mrf.mxu0  ;;  %v4900_v47 = vld [vmem:[#allocation11_spill] sm:$0xff]  ;;  %v3699_v21 = vld [vmem:[%s3767_s27 + $0x90] sm:$0xff]  ;;  %v2148_v18 = vsel %vm1752_vm7, %v2145_v17, %v2147_v16 }
 0x279   : > { %v3108_v52 = vpack.c.bf16 %v3072_v8, %v3072_v8  ;;  %3477 = vmatmul.msk.bf16.gmra.mxu1 %vm481_vm3, %v1785_v39  ;;  %v1960_v31 = vadd.f32 %v1891_v13, %v4900_v47  ;;  %v1786_v2 = vrot.slane %v3699_v21, 2 }
 0x27a   : > { %v2925_v9 = vadd.f32 %v2854_v48, %v2689_v44  ;;  %3564 = vmatmul.msk.bf16.gmra.mxu2 %vm481_vm3, %v2146_v26  ;;  %v4746_v60 = vpop.f32.mrf.mxu3  ;;  %v2519_v48 = vsel %vm2349_vm6, %v2509_v51, %v2518_v32  ;;  %v2752_v51 = vrot.slane %v4683_v58, 3 }
 0x27b   : > { %3145 = vst.msk [vmem:[%s4540_s3 + $0x30] sm:$0xf] %vm3132_vm10, %v3108_v52  ;;  %3602 = vmatmul.msk.bf16.gmra.mxu0 %vm481_vm3, %v2751_v49  ;;  %v1787_v43 = vsel %vm1752_vm7, %v1784_v7, %v1786_v2  ;;  %v2018_v49 = vld [vmem:[%s3767_s27 + $0xa0] sm:$0x3] }
 0x27c   : > { %v2965_v1 = vadd.f32 %v4515_v45, %v2925_v9  ;;  %3585 = vmatmul.msk.bf16.gmra.mxu3 %vm481_vm3, %v2519_v48  ;;  %v2094_v7 = vunpack.c.l.b16 %v2018_v49 }
 0x27d   : > { %v2252_v61 = vpop.f32.mrf.mxu2 }
 0x27e   : > { %vm3001_vm12 = vcmp.ge.f32.partialorder %v2965_v1, 0.0  ;;  %v3037_v53 = vmul.f32 0.2, %v2965_v1  ;;  %v2321_v62 = vadd.f32 %v2252_v61, %v1960_v31  ;;  %v1893_v5 = vpop.f32.mrf.mxu1  ;;  %v2113_v31 = vpack.c.b16 %v2094_v7, %v2094_v7 }
 0x27f   : > { %v1961_v34 = vadd.f32 %v1893_v5, %v4259_v4  ;;  %v2753_v4 = vsel %vm2718_vm8, %v2750_v63, %v2752_v51 }
 0x280   : > { %v3073_v40 = vsel %vm3001_vm12, %v2965_v1, %v3037_v53  ;;  %v2690_v23 = vadd.f32 %v4699_v36, %v2321_v62  ;;  %v2859_v42 = vpop.f32.mrf.mxu0 }
 0x281   : > { %v3109_v10 = vpack.c.bf16 %v3073_v40, %v3073_v40  ;;  %v1788_v40 = vrot.slane %v4254_v15, 2 }
 0x282   : > { %v2926_v24 = vadd.f32 %v2857_v37, %v2690_v23  ;;  %v4758_v36 = vpop.f32.mrf.mxu3  ;;  %v2149_v23 = vrot.slane %v2113_v31, 2 }
 0x283   : > { %3146 = vst.msk [vmem:[%s4540_s3 + $0x34] sm:$0xf] %vm3132_vm10, %v3109_v10  ;;  %v2754_v10 = vrot.slane %v4718_v41, 3 }
 0x284   : > { %v2966_v35 = vadd.f32 %v4515_v45, %v2926_v24 }
 0x285   : > { %v2254_v55 = vpop.f32.mrf.mxu2 }
 0x286   : > { %vm3002_vm6 = vcmp.ge.f32.partialorder %v2966_v35, 0.0  ;;  %v3038_v13 = vmul.f32 0.2, %v2966_v35  ;;  %v2322_v39 = vadd.f32 %v2254_v55, %v1961_v34  ;;  %v1896_v26 = vpop.f32.mrf.mxu1  ;;  %v1789_v55 = vsel %vm1752_vm7, %v1786_v2, %v1788_v40 }
 0x288   : > { %v3074_v8 = vsel %vm3002_vm6, %v2966_v35, %v3038_v13  ;;  %v2691_v44 = vadd.f32 %v4715_v14, %v2322_v39  ;;  %v2862_v37 = vpop.f32.mrf.mxu0  ;;  %v1962_v14 = vadd.f32 %v1896_v26, %v4273_v12  ;;  %v2150_v13 = vsel %vm1752_vm7, %v2147_v16, %v2149_v23 }
 0x289   : > { %v3110_v58 = vpack.c.bf16 %v3074_v8, %v3074_v8  ;;  %3478 = vmatmul.msk.bf16.gmra.mxu1 %vm481_vm3, %v1787_v43  ;;  %v2755_v43 = vsel %vm2718_vm8, %v2752_v51, %v2754_v10 }
 0x28a   : > { %v2927_v52 = vadd.f32 %v2859_v42, %v2691_v44  ;;  %3565 = vmatmul.msk.bf16.gmra.mxu2 %vm481_vm3, %v2148_v18  ;;  %v2633_v32 = vpop.f32.mrf.mxu3 }
 0x28b   : > { %3147 = vst.msk [vmem:[%s4540_s3 + $0x38] sm:$0xf] %vm3132_vm10, %v3110_v58  ;;  %3603 = vmatmul.msk.bf16.gmra.mxu0 %vm481_vm3, %v2753_v4 }
 0x28c   : > { %v2967_v17 = vadd.f32 %v4515_v45, %v2927_v52 }
 0x28d   : > { %v2257_v9 = vpop.f32.mrf.mxu2 }
 0x28e   : > { %vm3003_vm13 = vcmp.ge.f32.partialorder %v2967_v17, 0.0  ;;  %v3039_v63 = vmul.f32 0.2, %v2967_v17  ;;  %v2323_v1 = vadd.f32 %v2257_v9, %v1962_v14  ;;  %v1898_v47 = vpop.f32.mrf.mxu1 }
 0x28f   : > { %v1963_v42 = vadd.f32 %v1898_v47, %v4289_v50 }
 0x290   : > { %v3075_v61 = vsel %vm3003_vm13, %v2967_v17, %v3039_v63  ;;  %v2692_v53 = vadd.f32 %v4731_v22, %v2323_v1  ;;  %v2864_v62 = vpop.f32.mrf.mxu0 }
 0x291   : > { %v3111_v5 = vpack.c.bf16 %v3075_v61, %v3075_v61 }
 0x292   : > { %v2928_v48 = vadd.f32 %v2862_v37, %v2692_v53  ;;  %v2636_v21 = vpop.f32.mrf.mxu3 }
 0x293   : > { %3148 = vst.msk [vmem:[%s4540_s3 + $0x3c] sm:$0xf] %vm3132_vm10, %v3111_v5 }
 0x294   : > { %v2968_v12 = vadd.f32 %v4515_v45, %v2928_v48 }
 0x295   : > { %v2259_v24 = vpop.f32.mrf.mxu2 }
 0x296   : > { %vm3004_vm14 = vcmp.ge.f32.partialorder %v2968_v12, 0.0  ;;  %v3040_v35 = vmul.f32 0.2, %v2968_v12  ;;  %v2324_v22 = vadd.f32 %v2259_v24, %v1963_v42  ;;  %v1901_v34 = vpop.f32.mrf.mxu1 }
 0x297   : > { %v1964_v2 = vadd.f32 %v1901_v34, %v4306_v20 }
 0x298   : > { %v3076_v39 = vsel %vm3004_vm14, %v2968_v12, %v3040_v35  ;;  %v2693_v15 = vadd.f32 %v4746_v60, %v2324_v22  ;;  %v2867_v26 = vpop.f32.mrf.mxu0 }
 0x299   : > { %v3112_v50 = vpack.c.bf16 %v3076_v39, %v3076_v39  ;;  %3479 = vmatmul.msk.bf16.gmra.mxu1 %vm481_vm3, %v1789_v55 }
 0x29a   : > { %v2929_v18 = vadd.f32 %v2864_v62, %v2693_v15  ;;  %3566 = vmatmul.msk.bf16.gmra.mxu2 %vm481_vm3, %v2150_v13  ;;  %v2638_v60 = vpop.f32.mrf.mxu3 }
 0x29b   : > { %3149 = vst.msk [vmem:[%s4540_s3 + $0x40] sm:$0xf] %vm3132_vm10, %v3112_v50  ;;  %3604 = vmatmul.msk.bf16.gmra.mxu0 %vm481_vm3, %v2755_v43 }
 0x29c   : > { %v2969_v41 = vadd.f32 %v4515_v45, %v2929_v18 }
 0x29d   : > { %v2262_v16 = vpop.f32.mrf.mxu2 }
 0x29e   : > { %vm3005_vm7 = vcmp.ge.f32.partialorder %v2969_v41, 0.0  ;;  %v3041_v8 = vmul.f32 0.2, %v2969_v41  ;;  %v2325_v51 = vadd.f32 %v2262_v16, %v1964_v2  ;;  %v1903_v44 = vpop.f32.mrf.mxu1 }
 0x29f   : > { %v1965_v17 = vadd.f32 %v1903_v44, %v4320_v28 }
 0x2a0   : > { %v3077_v37 = vsel %vm3005_vm7, %v2969_v41, %v3041_v8  ;;  %v2694_v4 = vadd.f32 %v4758_v36, %v2325_v51  ;;  %v2869_v49 = vpop.f32.mrf.mxu0 }
 0x2a1   : > { %v3113_v58 = vpack.c.bf16 %v3077_v37, %v3077_v37 }
 0x2a2   : > { %v2930_v52 = vadd.f32 %v2867_v26, %v2694_v4  ;;  %v2641_v14 = vpop.f32.mrf.mxu3 }
 0x2a3   : > { %3150 = vst.msk [vmem:[%s4540_s3 + $0x44] sm:$0xf] %vm3132_vm10, %v3113_v58 }
 0x2a4   : > { %v2970_v7 = vadd.f32 %v4515_v45, %v2930_v52 }
 0x2a5   : > { %v2264_v20 = vpop.f32.mrf.mxu2 }
 0x2a6   : > { %vm3006_vm3 = vcmp.ge.f32.partialorder %v2970_v7, 0.0  ;;  %v3042_v9 = vmul.f32 0.2, %v2970_v7  ;;  %v2326_v63 = vadd.f32 %v2264_v20, %v1965_v17  ;;  %v1906_v1 = vpop.f32.mrf.mxu1 }
 0x2a7   : > { %v1966_v5 = vadd.f32 %v1906_v1, %v4330_v19 }
 0x2a8   : > { %v3078_v47 = vsel %vm3006_vm3, %v2970_v7, %v3042_v9  ;;  %v2695_v31 = vadd.f32 %v2633_v32, %v2326_v63  ;;  %v2872_v61 = vpop.f32.mrf.mxu0 }
 0x2a9   : > { %v3114_v36 = vpack.c.bf16 %v3078_v47, %v3078_v47 }
 0x2aa   : > { %v2931_v53 = vadd.f32 %v2869_v49, %v2695_v31  ;;  %v2643_v12 = vpop.f32.mrf.mxu3 }
 0x2ab   : > { %3151 = vst.msk [vmem:[%s4540_s3 + $0x48] sm:$0xf] %vm3132_vm10, %v3114_v36 }
 0x2ac   : > { %v2971_v62 = vadd.f32 %v4515_v45, %v2931_v53 }
 0x2ad   : > { %v2267_v48 = vpop.f32.mrf.mxu2 }
 0x2ae   : > { %vm3007_vm8 = vcmp.ge.f32.partialorder %v2971_v62, 0.0  ;;  %v3043_v28 = vmul.f32 0.2, %v2971_v62  ;;  %v2327_v40 = vadd.f32 %v2267_v48, %v1966_v5  ;;  %v1908_v23 = vpop.f32.mrf.mxu1 }
 0x2af   : > { %v1967_v34 = vadd.f32 %v1908_v23, %v4344_v0 }
 0x2b0   : > { %v3079_v42 = vsel %vm3007_vm8, %v2971_v62, %v3043_v28  ;;  %v2696_v10 = vadd.f32 %v2636_v21, %v2327_v40  ;;  %v2874_v24 = vpop.f32.mrf.mxu0 }
 0x2b1   : > { %v3115_v32 = vpack.c.bf16 %v3079_v42, %v3079_v42 }
 0x2b2   : > { %v2932_v35 = vadd.f32 %v2872_v61, %v2696_v10  ;;  %v2646_v21 = vpop.f32.mrf.mxu3 }
 0x2b3   : > { %3152 = vst.msk [vmem:[%s4540_s3 + $0x4c] sm:$0xf] %vm3132_vm10, %v3115_v32 }
 0x2b4   : > { %v2972_v22 = vadd.f32 %v4515_v45, %v2932_v35 }
 0x2b5   : > { %v2269_v55 = vpop.f32.mrf.mxu2 }
 0x2b6   : > { %vm3008_vm15 = vcmp.ge.f32.partialorder %v2972_v22, 0.0  ;;  %v3044_v19 = vmul.f32 0.2, %v2972_v22  ;;  %v2328_v13 = vadd.f32 %v2269_v55, %v1967_v34  ;;  %v1911_v39 = vpop.f32.mrf.mxu1 }
 0x2b7   : > { %v1968_v2 = vadd.f32 %v1911_v39, %v4353_v46 }
 0x2b8   : > { %v3080_v15 = vsel %vm3008_vm15, %v2972_v22, %v3044_v19  ;;  %v2697_v26 = vadd.f32 %v2638_v60, %v2328_v13  ;;  %v2877_v43 = vpop.f32.mrf.mxu0 }
 0x2b9   : > { %v3116_v50 = vpack.c.bf16 %v3080_v15, %v3080_v15 }
 0x2ba   : > { %v2933_v18 = vadd.f32 %v2874_v24, %v2697_v26  ;;  %v2648_v58 = vpop.f32.mrf.mxu3 }
 0x2bb   : > { %3153 = vst.msk [vmem:[%s4540_s3 + $0x50] sm:$0xf] %vm3132_vm10, %v3116_v50 }
 0x2bc   : > { %v2973_v41 = vadd.f32 %v4515_v45, %v2933_v18 }
 0x2bd   : > { %v2272_v16 = vpop.f32.mrf.mxu2 }
 0x2be   : > { %vm3009_vm0 = vcmp.ge.f32.partialorder %v2973_v41, 0.0  ;;  %v3045_v0 = vmul.f32 0.2, %v2973_v41  ;;  %v2329_v8 = vadd.f32 %v2272_v16, %v1968_v2  ;;  %v1913_v51 = vpop.f32.mrf.mxu1 }
 0x2bf   : > { %v1969_v7 = vadd.f32 %v1913_v51, %v4366_v30 }
 0x2c0   : > { %v3081_v44 = vsel %vm3009_vm0, %v2973_v41, %v3045_v0  ;;  %v2698_v37 = vadd.f32 %v2641_v14, %v2329_v8  ;;  %v2879_v4 = vpop.f32.mrf.mxu0 }
 0x2c1   : > { %v3117_v60 = vpack.c.bf16 %v3081_v44, %v3081_v44 }
 0x2c2   : > { %v2934_v49 = vadd.f32 %v2877_v43, %v2698_v37  ;;  %v2651_v62 = vpop.f32.mrf.mxu3 }
 0x2c3   : > { %3154 = vst.msk [vmem:[%s4540_s3 + $0x54] sm:$0xf] %vm3132_vm10, %v3117_v60 }
 0x2c4   : > { %v2974_v52 = vadd.f32 %v4515_v45, %v2934_v49 }
 0x2c5   : > { %v2274_v17 = vpop.f32.mrf.mxu2 }
 0x2c6   : > { %vm3010_vm1 = vcmp.ge.f32.partialorder %v2974_v52, 0.0  ;;  %v3046_v46 = vmul.f32 0.2, %v2974_v52  ;;  %v2330_v20 = vadd.f32 %v2274_v17, %v1969_v7  ;;  %v1916_v9 = vpop.f32.mrf.mxu1 }
 0x2c7   : > { %v1970_v36 = vadd.f32 %v1916_v9, %v4375_v11 }
 0x2c8   : > { %v3082_v63 = vsel %vm3010_vm1, %v2974_v52, %v3046_v46  ;;  %v2699_v1 = vadd.f32 %v2643_v12, %v2330_v20  ;;  %v2882_v47 = vpop.f32.mrf.mxu0 }
 0x2c9   : > { %v3118_v14 = vpack.c.bf16 %v3082_v63, %v3082_v63 }
 0x2ca   : > { %v2935_v31 = vadd.f32 %v2879_v4, %v2699_v1  ;;  %v2653_v34 = vpop.f32.mrf.mxu3 }
 0x2cb   : > { %3155 = vst.msk [vmem:[%s4540_s3 + $0x58] sm:$0xf] %vm3132_vm10, %v3118_v14 }
 0x2cc   : > { %v2975_v61 = vadd.f32 %v4515_v45, %v2935_v31 }
 0x2cd   : > { %v2277_v53 = vpop.f32.mrf.mxu2 }
 0x2ce   : > { %vm3011_vm2 = vcmp.ge.f32.partialorder %v2975_v61, 0.0  ;;  %v3047_v30 = vmul.f32 0.2, %v2975_v61  ;;  %v2331_v5 = vadd.f32 %v2277_v53, %v1970_v36  ;;  %v1918_v48 = vpop.f32.mrf.mxu1 }
 0x2cf   : > { %v1971_v24 = vadd.f32 %v1918_v48, %v4388_v54 }
 0x2d0   : > { %v3083_v28 = vsel %vm3011_vm2, %v2975_v61, %v3047_v30  ;;  %v2700_v40 = vadd.f32 %v2646_v21, %v2331_v5  ;;  %v2884_v23 = vpop.f32.mrf.mxu0 }
 0x2d1   : > { %v3119_v12 = vpack.c.bf16 %v3083_v28, %v3083_v28 }
 0x2d2   : > { %v2936_v42 = vadd.f32 %v2882_v47, %v2700_v40  ;;  %v2656_v8 = vpop.f32.mrf.mxu3 }
 0x2d3   : > { %3156 = vst.msk [vmem:[%s4540_s3 + $0x5c] sm:$0xf] %vm3132_vm10, %v3119_v12 }
 0x2d4   : > { %v2976_v10 = vadd.f32 %v4515_v45, %v2936_v42 }
 0x2d5   : > { %v2279_v32 = vpop.f32.mrf.mxu2 }
 0x2d6   : > { %vm3012_vm4 = vcmp.ge.f32.partialorder %v2976_v10, 0.0  ;;  %v3048_v11 = vmul.f32 0.2, %v2976_v10  ;;  %v2332_v35 = vadd.f32 %v2279_v32, %v1971_v24  ;;  %v1921_v22 = vpop.f32.mrf.mxu1 }
 0x2d7   : > { %v1972_v43 = vadd.f32 %v1921_v22, %v4397_v33 }
 0x2d8   : > { %v3084_v55 = vsel %vm3012_vm4, %v2976_v10, %v3048_v11  ;;  %v2701_v19 = vadd.f32 %v2648_v58, %v2332_v35  ;;  %v2887_v13 = vpop.f32.mrf.mxu0 }
 0x2d9   : > { %v3120_v39 = vpack.c.bf16 %v3084_v55, %v3084_v55 }
 0x2da   : > { %v2937_v15 = vadd.f32 %v2884_v23, %v2701_v19  ;;  %v2658_v20 = vpop.f32.mrf.mxu3 }
 0x2db   : > { %3157 = vst.msk [vmem:[%s4540_s3 + $0x60] sm:$0xf] %vm3132_vm10, %v3120_v39 }
 0x2dc   : > { %v2977_v26 = vadd.f32 %v4515_v45, %v2937_v15 }
 0x2dd   : > { %v2282_v50 = vpop.f32.mrf.mxu2 }
 0x2de   : > { %vm3013_vm5 = vcmp.ge.f32.partialorder %v2977_v26, 0.0  ;;  %v3049_v54 = vmul.f32 0.2, %v2977_v26  ;;  %v2333_v21 = vadd.f32 %v2282_v50, %v1972_v43  ;;  %v1923_v18 = vpop.f32.mrf.mxu1 }
 0x2df   : > { %v1973_v37 = vadd.f32 %v1923_v18, %v4410_v29 }
 0x2e0   : > { %v3085_v41 = vsel %vm3013_vm5, %v2977_v26, %v3049_v54  ;;  %v2702_v2 = vadd.f32 %v2651_v62, %v2333_v21  ;;  %v2889_v16 = vpop.f32.mrf.mxu0 }
 0x2e1   : > { %v3121_v0 = vpack.c.bf16 %v3085_v41, %v3085_v41 }
 0x2e2   : > { %v2938_v51 = vadd.f32 %v2887_v13, %v2702_v2  ;;  %v2661_v28 = vpop.f32.mrf.mxu3 }
 0x2e3   : > { %3158 = vst.msk [vmem:[%s4540_s3 + $0x64] sm:$0xf] %vm3132_vm10, %v3121_v0 }
 0x2e4   : > { %v2978_v44 = vadd.f32 %v4515_v45, %v2938_v51  ;;  %v4832_v45 = vld [vmem:[%s4874_s2] ss:$0 sm:$0xff] }
 0x2e5   : > { %v2284_v4 = vpop.f32.mrf.mxu2 }
 0x2e6   : > { %vm3014_vm9 = vcmp.ge.f32.partialorder %v2978_v44, 0.0  ;;  %v3050_v33 = vmul.f32 0.2, %v2978_v44  ;;  %v2334_v60 = vadd.f32 %v2284_v4, %v1973_v37  ;;  %v1926_v49 = vpop.f32.mrf.mxu1 }
 0x2e7   : > { %v1974_v9 = vadd.f32 %v1926_v49, %v4419_v56 }
 0x2e8   : > { %v3086_v58 = vsel %vm3014_vm9, %v2978_v44, %v3050_v33  ;;  %v2703_v52 = vadd.f32 %v2653_v34, %v2334_v60  ;;  %v2892_v7 = vpop.f32.mrf.mxu0 }
 0x2e9   : > { %v3122_v17 = vpack.c.bf16 %v3086_v58, %v3086_v58 }
 0x2ea   : > { %v2939_v46 = vadd.f32 %v2889_v16, %v2703_v52  ;;  %v2663_v19 = vpop.f32.mrf.mxu3 }
 0x2eb   : > { %3159 = vst.msk [vmem:[%s4540_s3 + $0x68] sm:$0xf] %vm3132_vm10, %v3122_v17 }
 0x2ec   : > { %v2979_v29 = vadd.f32 %v4832_v45, %v2939_v46 }
 0x2ed   : > { %v2287_v63 = vpop.f32.mrf.mxu2 }
 0x2ee   : > { %vm3015_vm11 = vcmp.ge.f32.partialorder %v2979_v29, 0.0  ;;  %v3051_v1 = vmul.f32 0.2, %v2979_v29  ;;  %v2335_v47 = vadd.f32 %v2287_v63, %v1974_v9  ;;  %v1928_v14 = vpop.f32.mrf.mxu1 }
 0x2ef   : > { %v1975_v5 = vadd.f32 %v1928_v14, %v4432_v59 }
 0x2f0   : > { %v3087_v31 = vsel %vm3015_vm11, %v2979_v29, %v3051_v1  ;;  %v2704_v61 = vadd.f32 %v2656_v8, %v2335_v47  ;;  %v2894_v36 = vpop.f32.mrf.mxu0 }
 0x2f1   : > { %v3123_v53 = vpack.c.bf16 %v3087_v31, %v3087_v31 }
 0x2f2   : > { %v2940_v62 = vadd.f32 %v2892_v7, %v2704_v61  ;;  %v2666_v8 = vpop.f32.mrf.mxu3 }
 0x2f3   : > { %3160 = vst.msk [vmem:[%s4540_s3 + $0x6c] sm:$0xf] %vm3132_vm10, %v3123_v53 }
 0x2f4   : > { %v2980_v30 = vadd.f32 %v4832_v45, %v2940_v62 }
 0x2f5   : > { %v2289_v48 = vpop.f32.mrf.mxu2 }
 0x2f6   : > { %vm3016_vm12 = vcmp.ge.f32.partialorder %v2980_v30, 0.0  ;;  %v3052_v56 = vmul.f32 0.2, %v2980_v30  ;;  %v2336_v40 = vadd.f32 %v2289_v48, %v1975_v5  ;;  %v1931_v23 = vpop.f32.mrf.mxu1 }
 0x2f7   : > { %v1976_v35 = vadd.f32 %v1931_v23, %v4441_v25 }
 0x2f8   : > { %v3088_v12 = vsel %vm3016_vm12, %v2980_v30, %v3052_v56  ;;  %v2705_v42 = vadd.f32 %v2658_v20, %v2336_v40  ;;  %v2897_v10 = vpop.f32.mrf.mxu0 }
 0x2f9   : > { %v3124_v24 = vpack.c.bf16 %v3088_v12, %v3088_v12 }
 0x2fa   : > { %v2941_v32 = vadd.f32 %v2894_v36, %v2705_v42  ;;  %v2668_v46 = vpop.f32.mrf.mxu3 }
 0x2fb   : > { %3161 = vst.msk [vmem:[%s4540_s3 + $0x70] sm:$0xf] %vm3132_vm10, %v3124_v24 }
 0x2fc   : > { %v2981_v11 = vadd.f32 %v4832_v45, %v2941_v32 }
 0x2fd   : > { %v2292_v22 = vpop.f32.mrf.mxu2 }
 0x2fe   : > { %vm3017_vm6 = vcmp.ge.f32.partialorder %v2981_v11, 0.0  ;;  %v3053_v59 = vmul.f32 0.2, %v2981_v11  ;;  %v2337_v34 = vadd.f32 %v2292_v22, %v1976_v35  ;;  %v1933_v55 = vpop.f32.mrf.mxu1 }
 0x2ff   : > { %v1977_v54 = vadd.f32 %v1933_v55, %v4454_v3 }
 0x300   : > { %v3089_v13 = vsel %vm3017_vm6, %v2981_v11, %v3053_v59  ;;  %v2706_v39 = vadd.f32 %v2661_v28, %v2337_v34  ;;  %v2899_v26 = vpop.f32.mrf.mxu0 }
 0x301   : > { %v3125_v15 = vpack.c.bf16 %v3089_v13, %v3089_v13 }
 0x302   : > { %v2942_v43 = vadd.f32 %v2897_v10, %v2706_v39  ;;  %v2671_v30 = vpop.f32.mrf.mxu3 }
 0x303   : > { %3162 = vst.msk [vmem:[%s4540_s3 + $0x74] sm:$0xf] %vm3132_vm10, %v3125_v15 }
 0x304   : > { %v2982_v50 = vadd.f32 %v4832_v45, %v2942_v43 }
 0x305   : > { %v2294_v21 = vpop.f32.mrf.mxu2 }
 0x306   : > { %vm3018_vm13 = vcmp.ge.f32.partialorder %v2982_v50, 0.0  ;;  %v3054_v25 = vmul.f32 0.2, %v2982_v50  ;;  %v2338_v18 = vadd.f32 %v2294_v21, %v1977_v54  ;;  %v1936_v41 = vpop.f32.mrf.mxu1 }
 0x307   : > { %v1978_v4 = vadd.f32 %v1936_v41, %v4463_v57 }
 0x308   : > { %v3090_v2 = vsel %vm3018_vm13, %v2982_v50, %v3054_v25  ;;  %v2707_v16 = vadd.f32 %v2663_v19, %v2338_v18  ;;  %v2902_v44 = vpop.f32.mrf.mxu0 }
 0x309   : > { %v3126_v0 = vpack.c.bf16 %v3090_v2, %v3090_v2 }
 0x30a   : > { %v2943_v51 = vadd.f32 %v2899_v26, %v2707_v16  ;;  %v2673_v35 = vpop.f32.mrf.mxu3 }
 0x30b   : > { %3163 = vst.msk [vmem:[%s4540_s3 + $0x78] sm:$0xf] %vm3132_vm10, %v3126_v0 }
 0x30c   : > { %v2983_v37 = vadd.f32 %v4832_v45, %v2943_v51 }
 0x30d   : > { %v2297_v33 = vpop.f32.mrf.mxu2 }
 0x30e   : > { %vm3019_vm14 = vcmp.ge.f32.partialorder %v2983_v37, 0.0  ;;  %v3055_v3 = vmul.f32 0.2, %v2983_v37  ;;  %v2339_v60 = vadd.f32 %v2297_v33, %v1978_v4  ;;  %v1938_v49 = vpop.f32.mrf.mxu1 }
 0x30f   : > { %v1979_v29 = vadd.f32 %v1938_v49, %v4476_v6 }
 0x310   : > { %v3091_v58 = vsel %vm3019_vm14, %v2983_v37, %v3055_v3  ;;  %v2708_v52 = vadd.f32 %v2666_v8, %v2339_v60  ;;  %v2904_v9 = vpop.f32.mrf.mxu0 }
 0x311   : > { %v3127_v7 = vpack.c.bf16 %v3091_v58, %v3091_v58 }
 0x312   : > { %v2944_v17 = vadd.f32 %v2902_v44, %v2708_v52 }
 0x313   : > { %3164 = vst.msk [vmem:[%s4540_s3 + $0x7c] sm:$0xf] %vm3132_vm10, %v3127_v7 }
 0x314   : > { %v2984_v20 = vadd.f32 %v4832_v45, %v2944_v17 }
 0x315   : > { %v2299_v63 = vpop.f32.mrf.mxu2 }
 0x316   : > { %vm3020_vm7 = vcmp.ge.f32.partialorder %v2984_v20, 0.0  ;;  %v3056_v57 = vmul.f32 0.2, %v2984_v20  ;;  %v2340_v1 = vadd.f32 %v2299_v63, %v1979_v29  ;;  %v1941_v47 = vpop.f32.mrf.mxu1 }
 0x317   : > { %v1980_v62 = vadd.f32 %v1941_v47, %v4487_v38 }
 0x318   : > { %v3092_v14 = vsel %vm3020_vm7, %v2984_v20, %v3056_v57  ;;  %v2709_v31 = vadd.f32 %v2668_v46, %v2340_v1  ;;  %v2907_v28 = vpop.f32.mrf.mxu0 }
 0x319   : > { %v3128_v61 = vpack.c.bf16 %v3092_v14, %v3092_v14 }
 0x31a   : > { %v2945_v36 = vadd.f32 %v2904_v9, %v2709_v31 }
 0x31b   : > { %3165 = vst.msk [vmem:[%s4540_s3 + $0x80] sm:$0xf] %vm3132_vm10, %v3128_v61 }
 0x31c   : > { %v2985_v53 = vadd.f32 %v4832_v45, %v2945_v36 }
 0x31d   : > { %v2302_v5 = vpop.f32.mrf.mxu2 }
 0x31e   : > { %vm3021_vm3 = vcmp.ge.f32.partialorder %v2985_v53, 0.0  ;;  %v3057_v6 = vmul.f32 0.2, %v2985_v53  ;;  %v2341_v48 = vadd.f32 %v2302_v5, %v1980_v62  ;;  %v1943_v12 = vpop.f32.mrf.mxu1 }
 0x31f   : > { %v1981_v24 = vadd.f32 %v1943_v12, %v4502_v27 }
 0x320   : > { %v3093_v56 = vsel %vm3021_vm3, %v2985_v53, %v3057_v6  ;;  %v2710_v40 = vadd.f32 %v2671_v30, %v2341_v48  ;;  %v2909_v55 = vpop.f32.mrf.mxu0 }
 0x321   : > { %v3129_v23 = vpack.c.bf16 %v3093_v56, %v3093_v56 }
 0x322   : > { %v2946_v42 = vadd.f32 %v2907_v28, %v2710_v40 }
 0x323   : > { %3166 = vst.msk [vmem:[%s4540_s3 + $0x84] sm:$0xf] %vm3132_vm10, %v3129_v23 }
 0x324   : > { %v2986_v10 = vadd.f32 %v4832_v45, %v2946_v42 }
 0x325   : > { %v2304_v32 = vpop.f32.mrf.mxu2 }
 0x326   : > { %vm3022_vm8 = vcmp.ge.f32.partialorder %v2986_v10, 0.0  ;;  %v3058_v38 = vmul.f32 0.2, %v2986_v10  ;;  %v2342_v11 = vadd.f32 %v2304_v32, %v1981_v24 }
 0x328   : > { %v3094_v22 = vsel %vm3022_vm8, %v2986_v10, %v3058_v38  ;;  %v2711_v59 = vadd.f32 %v2673_v35, %v2342_v11 }
 0x329   : > { %v3130_v34 = vpack.c.bf16 %v3094_v22, %v3094_v22 }
 0x32a   : > { %v2947_v19 = vadd.f32 %v2909_v55, %v2711_v59 }
 0x32b   : > { %3167 = vst.msk [vmem:[%s4540_s3 + $0x88] sm:$0xf] %vm3132_vm10, %v3130_v34 }
 0x32c   : > { %v2987_v13 = vadd.f32 %v4832_v45, %v2947_v19 }
 0x32e   : > { %vm3023_vm15 = vcmp.ge.f32.partialorder %v2987_v13, 0.0  ;;  %v3059_v39 = vmul.f32 0.2, %v2987_v13 }
 0x330   : > { %v3095_v15 = vsel %vm3023_vm15, %v2987_v13, %v3059_v39 }
 0x331   : > { %v3131_v26 = vpack.c.bf16 %v3095_v15, %v3095_v15 }
 0x333   : > { %3168 = vst.msk [vmem:[%s4540_s3 + $0x8c] sm:$0xf] %vm3132_vm10, %v3131_v26 }
 0x334 PF: > { %s14_s15 = sadd.s32 1, %s3707_s15  }
 0x335   : > { %p11_p4 = scmp.ge.s32.totalorder %s14_s15, 4  }
 0x337   :  { %13 = sbr.rel (!%p11_p4) target bundleno = 1 (0x1), region = 74 }

// kernel: discriminator_forward.8
= control target key start
LH: loop header
LB: loop body
LE: loop exit
PB: predicated region body
PF: predicated region fallthrough
CT: control target
= control target key end

     0   :  { %s607_s12 = smov 0   ;;  %s708_s0 = inlined_call_operand.vmem [shape: bf16[2,64,144], index: 0, kind: input, shape index: {}]   ;;  %s709_s1 = inlined_call_operand.vmem [shape: bf16[144,32], index: 1, kind: input, shape index: {}]   ;;  %s710_s2 = inlined_call_operand.vmem [shape: f32[1,32], index: 2, kind: input, shape index: {}]   ;;  %s711_s3 = inlined_call_operand.vmem [shape: bf16[2,64,32], index: 3, kind: output, shape index: {}]  }
   0x1 LB: > { %s459_s13 = sadd.s32 4294967295, %s585_s12   ;;  %p463_p0 = scmp.ge.s32.totalorder %s585_s12, 1  ;;  %s585_s12 = sphi %s607_s12, %s13_s12  }
   0x2   : > { %p137_p1 = scmp.lt.s32.totalorder %s585_s12, 3 }
   0x4   : > { %p138_p2 = pnand %p463_p0, %p137_p1 }
   0x5   : > { %p161_p3 = scmp.lt.s32.totalorder (!%p138_p2), %s459_s13, 1 }
   0x6   : > { %141 = sbr.rel (%p138_p2) target bundleno = 209 (0xd1), region = 32 }
   0xb   : > { %v559_v0 = vld [vmem:[%s709_s1 + $0x38] sm:$0xff]  ;;  %v560_v1 = vld [vmem:[%s709_s1 + $0x40] sm:$0xff]  ;;  %v558_v2 = vld [vmem:[%s709_s1 + $0x30] sm:$0xff]  ;;  %s713_s13 = smov (!%p161_p3, %s459_s13), 1  ;;  %vm292_vm0 = vcmask 130048   ;;  %vm395_vm2 = vcmask 257024  }
   0xc   : > { %305 = vmatpush.bf16.msra.mxu0 %v559_v0  ;;  %561 = vmatpush.bf16.msra.mxu2 %v559_v0  ;;  %s542_s20 = sshll.u32 %s713_s13, 6  ;;  %v557_v3 = vld [vmem:[%s709_s1 + $0x28] sm:$0xff]  ;;  %v556_v9 = vld [vmem:[%s709_s1 + $0x20] sm:$0xff]  ;;  %v555_v11 = vld [vmem:[%s709_s1 + $0x18] sm:$0xff]  ;;  %s543_s11 = sshll.u32 %s713_s13, 5 }
   0xd   : > { %569 = vmatpush.bf16.msra.mxu3 %v560_v1  ;;  %341 = vmatpush.bf16.msra.mxu1 %v560_v1  ;;  %s630_s23 = scalar_lea.vmem %s708_s0, %s542_s20  ;;  %v554_v12 = vld [vmem:[%s709_s1 + $0x10] sm:$0xff]  ;;  %v553_v16 = vld [vmem:[%s709_s1 + $0x8] sm:$0xff]  ;;  %v552_v17 = vld [vmem:[%s709_s1] sm:$0xff]  ;;  %s680_s16 = scalar_lea.vmem %s711_s3, %s543_s11 }
   0xe   : > { %v546_v4 = vld [vmem:[%s630_s23 + $0x14] sm:$0xf]  ;;  %v480_v5 = vld [vmem:[%s630_s23 + $0x18] sm:$0xf0]  ;;  %v544_v7 = vld [vmem:[%s630_s23 + $0x4] sm:$0xf] }
   0xf   : > { %v483_v6 = vor.u32 %v546_v4, %v480_v5  ;;  %v472_v8 = vld [vmem:[%s630_s23 + $0x8] sm:$0xf0]  ;;  %v548_v13 = vld [vmem:[%s630_s23 + $0x24] sm:$0xf]  ;;  %v470_v18 = vld [vmem:[%s630_s23] sm:$0xf] }
  0x10   : > { %306 = vmatpush.bf16.msra.mxu0 %v558_v2  ;;  %562 = vmatpush.bf16.msra.mxu2 %v558_v2  ;;  %v475_v10 = vor.u32 %v544_v7, %v472_v8  ;;  %v488_v14 = vld [vmem:[%s630_s23 + $0x28] sm:$0xf0]  ;;  %v545_v19 = vld [vmem:[%s630_s23 + $0x4] sm:$0xf0]  ;;  %v486_v20 = vld [vmem:[%s630_s23 + $0x20] sm:$0xf] }
  0x11   : > { %537 = vmatmul.msk.bf16.vlgmr.msra.gmra.mxu3 %vm292_vm0, %v483_v6  ;;  %v491_v15 = vor.u32 %v548_v13, %v488_v14  ;;  %v549_v21 = vld [vmem:[%s630_s23 + $0x24] sm:$0xf0]  ;;  %v471_v22 = vor.u32 %v545_v19, %v470_v18  ;;  %v550_v24 = vld [vmem:[%s630_s23 + $0x34] sm:$0xf]  ;;  %v496_v25 = vld [vmem:[%s630_s23 + $0x38] sm:$0xf0] }
  0x12   : > { %536 = vmatmul.msk.bf16.vlgmr.msra.gmra.mxu1 %vm292_vm0, %v475_v10  ;;  %v487_v23 = vor.u32 %v549_v21, %v486_v20  ;;  %v499_v26 = vor.u32 %v550_v24, %v496_v25  ;;  %v478_v27 = vld [vmem:[%s630_s23 + $0x10] sm:$0xf]  ;;  %v547_v28 = vld [vmem:[%s630_s23 + $0x14] sm:$0xf0]  ;;  %v673_v35 = vld [vmem:[%s710_s2] ss:$0 sm:$0xff] }
  0x13   : > { %v494_v29 = vld [vmem:[%s630_s23 + $0x30] sm:$0xf]  ;;  %v551_v30 = vld [vmem:[%s630_s23 + $0x34] sm:$0xf0]  ;;  %v479_v31 = vor.u32 %v547_v28, %v478_v27 }
  0x14   : > { %307 = vmatpush.bf16.msra.mxu0 %v557_v3  ;;  %563 = vmatpush.bf16.msra.mxu2 %v557_v3  ;;  %v495_v32 = vor.u32 %v551_v30, %v494_v29 }
  0x18   : > { %308 = vmatpush.bf16.msra.mxu0 %v556_v9  ;;  %564 = vmatpush.bf16.msra.mxu2 %v556_v9 }
  0x1c   : > { %309 = vmatpush.bf16.msra.mxu0 %v555_v11  ;;  %565 = vmatpush.bf16.msra.mxu2 %v555_v11 }
  0x20   : > { %310 = vmatpush.bf16.msra.mxu0 %v554_v12  ;;  %566 = vmatpush.bf16.msra.mxu2 %v554_v12 }
  0x21   : > { %538 = vmatmul.msk.bf16.gmra.mxu3 %vm292_vm0, %v491_v15 }
  0x24   : > { %311 = vmatpush.bf16.msra.mxu0 %v553_v16  ;;  %567 = vmatpush.bf16.msra.mxu2 %v553_v16 }
  0x28   : > { %312 = vmatpush.bf16.msra.mxu0 %v552_v17  ;;  %568 = vmatpush.bf16.msra.mxu2 %v552_v17 }
  0x2b   : > { %313 = vmatmul.bf16.vlgmr.msra.gmra.mxu0 %v471_v22  ;;  %323 = vmatmul.bf16.vlgmr.msra.gmra.mxu2 %v487_v23 }
  0x31   : > { %539 = vmatmul.msk.bf16.gmra.mxu3 %vm292_vm0, %v499_v26 }
  0x3b   : > { %318 = vmatmul.bf16.gmra.mxu0 %v479_v31  ;;  %328 = vmatmul.bf16.gmra.mxu2 %v495_v32 }
  0x8f   : > { %v343_v36 = vpop.f32.mrf.mxu1 }
  0x94   : > { %v348_v33 = vpop.f32.mrf.mxu3 }
  0x97   : > { %v345_v47 = vpop.f32.mrf.mxu1 }
  0x9c   : > { %v350_v34 = vpop.f32.mrf.mxu3 }
  0xa4   : > { %v353_v39 = vpop.f32.mrf.mxu3 }
  0xa8   : > { %v314_v37 = vpop.f32.mrf.mxu0 }
  0xa9   : > { %v315_v38 = vadd.f32 %v673_v35, %v314_v37 }
  0xab   : > { %v344_v40 = vadd.f32 %v343_v36, %v315_v38 }
  0xac   : > { %v355_v52 = vpop.f32.mrf.mxu3 }
  0xad   : > { %vm363_vm1 = vcmp.ge.f32.partialorder %v344_v40, 0.0  ;;  %v371_v41 = vmul.f32 0.2, %v344_v40 }
  0xae   : > { %v324_v42 = vpop.f32.mrf.mxu2 }
  0xaf   : > { %v379_v43 = vsel %vm363_vm1, %v344_v40, %v371_v41  ;;  %v325_v44 = vadd.f32 %v673_v35, %v324_v42 }
  0xb0   : > { %v387_v45 = vpack.c.bf16 %v379_v43, %v379_v43  ;;  %v316_v46 = vpop.f32.mrf.mxu0 }
  0xb1   : > { %v354_v48 = vadd.f32 %v353_v39, %v325_v44  ;;  %v317_v49 = vadd.f32 %v673_v35, %v316_v46 }
  0xb2   : > { %396 = vst.msk [vmem:[%s680_s16] sm:$0xf] %vm395_vm2, %v387_v45 }
  0xb3   : > { %vm367_vm3 = vcmp.ge.f32.partialorder %v354_v48, 0.0  ;;  %v375_v50 = vmul.f32 0.2, %v354_v48  ;;  %v346_v51 = vadd.f32 %v345_v47, %v317_v49 }
  0xb4   : > { %v358_v4 = vpop.f32.mrf.mxu3 }
  0xb5   : > { %v383_v53 = vsel %vm367_vm3, %v354_v48, %v375_v50  ;;  %vm364_vm4 = vcmp.ge.f32.partialorder %v346_v51, 0.0  ;;  %v372_v54 = vmul.f32 0.2, %v346_v51 }
  0xb6   : > { %v391_v55 = vpack.c.bf16 %v383_v53, %v383_v53  ;;  %v326_v56 = vpop.f32.mrf.mxu2 }
  0xb7   : > { %v380_v57 = vsel %vm364_vm4, %v346_v51, %v372_v54  ;;  %v327_v58 = vadd.f32 %v673_v35, %v326_v56 }
  0xb8   : > { %400 = vst.msk [vmem:[%s680_s16 + $0x10] sm:$0xf] %vm395_vm2, %v391_v55  ;;  %v388_v59 = vpack.c.bf16 %v380_v57, %v380_v57  ;;  %v319_v60 = vpop.f32.mrf.mxu0 }
  0xb9   : > { %v356_v61 = vadd.f32 %v355_v52, %v327_v58  ;;  %v320_v62 = vadd.f32 %v673_v35, %v319_v60 }
  0xba   : > { %397 = vst.msk [vmem:[%s680_s16 + $0x4] sm:$0xf] %vm395_vm2, %v388_v59 }
  0xbb   : > { %vm368_vm5 = vcmp.ge.f32.partialorder %v356_v61, 0.0  ;;  %v376_v63 = vmul.f32 0.2, %v356_v61  ;;  %v349_v0 = vadd.f32 %v348_v33, %v320_v62 }
  0xbc   : > { %v360_v21 = vpop.f32.mrf.mxu3 }
  0xbd   : > { %v384_v1 = vsel %vm368_vm5, %v356_v61, %v376_v63  ;;  %vm365_vm6 = vcmp.ge.f32.partialorder %v349_v0, 0.0  ;;  %v373_v2 = vmul.f32 0.2, %v349_v0 }
  0xbe   : > { %v392_v3 = vpack.c.bf16 %v384_v1, %v384_v1  ;;  %v329_v5 = vpop.f32.mrf.mxu2 }
  0xbf   : > { %v381_v6 = vsel %vm365_vm6, %v349_v0, %v373_v2  ;;  %v330_v7 = vadd.f32 %v673_v35, %v329_v5 }
  0xc0   : > { %401 = vst.msk [vmem:[%s680_s16 + $0x14] sm:$0xf] %vm395_vm2, %v392_v3  ;;  %v389_v8 = vpack.c.bf16 %v381_v6, %v381_v6  ;;  %v321_v9 = vpop.f32.mrf.mxu0 }
  0xc1   : > { %v359_v10 = vadd.f32 %v358_v4, %v330_v7  ;;  %v322_v11 = vadd.f32 %v673_v35, %v321_v9 }
  0xc2   : > { %398 = vst.msk [vmem:[%s680_s16 + $0x8] sm:$0xf] %vm395_vm2, %v389_v8 }
  0xc3   : > { %vm369_vm7 = vcmp.ge.f32.partialorder %v359_v10, 0.0  ;;  %v377_v12 = vmul.f32 0.2, %v359_v10  ;;  %v351_v13 = vadd.f32 %v350_v34, %v322_v11 }
  0xc5   : > { %v385_v14 = vsel %vm369_vm7, %v359_v10, %v377_v12  ;;  %vm366_vm8 = vcmp.ge.f32.partialorder %v351_v13, 0.0  ;;  %v374_v15 = vmul.f32 0.2, %v351_v13 }
  0xc6   : > { %v393_v16 = vpack.c.bf16 %v385_v14, %v385_v14  ;;  %v331_v17 = vpop.f32.mrf.mxu2 }
  0xc7   : > { %v382_v18 = vsel %vm366_vm8, %v351_v13, %v374_v15  ;;  %v332_v19 = vadd.f32 %v673_v35, %v331_v17 }
  0xc8   : > { %402 = vst.msk [vmem:[%s680_s16 + $0x18] sm:$0xf] %vm395_vm2, %v393_v16  ;;  %v390_v20 = vpack.c.bf16 %v382_v18, %v382_v18 }
  0xc9   : > { %v361_v22 = vadd.f32 %v360_v21, %v332_v19 }
  0xca   : > { %399 = vst.msk [vmem:[%s680_s16 + $0xc] sm:$0xf] %vm395_vm2, %v390_v20 }
  0xcb   : > { %vm370_vm9 = vcmp.ge.f32.partialorder %v361_v22, 0.0  ;;  %v378_v23 = vmul.f32 0.2, %v361_v22 }
  0xcd   : > { %v386_v24 = vsel %vm370_vm9, %v361_v22, %v378_v23 }
  0xce   : > { %v394_v25 = vpack.c.bf16 %v386_v24, %v386_v24 }
  0xd0   : > { %403 = vst.msk [vmem:[%s680_s16 + $0x1c] sm:$0xf] %vm395_vm2, %v394_v25 }
  0xd1 PF: > { %s13_s12 = sadd.s32 1, %s585_s12  }
  0xd2   : > { %p10_p4 = scmp.ge.s32.totalorder %s13_s12, 4  }
  0xd4   :  { %12 = sbr.rel (!%p10_p4) target bundleno = 1 (0x1), region = 62 }

// kernel: discriminator_forward.9
= control target key start
LH: loop header
LB: loop body
LE: loop exit
PB: predicated region body
PF: predicated region fallthrough
CT: control target
= control target key end

     0   :  { %s1800_s15 = smov 0   ;;  %s2328_s0 = inlined_call_operand.vmem [shape: bf16[2,110,32], index: 0, kind: input, shape index: {}]   ;;  %s2329_s1 = inlined_call_operand.vmem [shape: bf16[9,32,64], index: 1, kind: input, shape index: {}]   ;;  %s2330_s2 = inlined_call_operand.vmem [shape: f32[1,64], index: 2, kind: input, shape index: {}]   ;;  %s2331_s3 = inlined_call_operand.vmem [shape: f32[80,1], index: 3, kind: input, shape index: {}]   ;;  %s2332_s4 = inlined_call_operand.vmem [shape: bf16[2,80,64], index: 4, kind: output, shape index: {}]  }
   0x1 LB: > { %s1500_s16 = sadd.s32 4294967295, %s1772_s15   ;;  %p1504_p0 = scmp.ge.s32.totalorder %s1772_s15, 1  ;;  %s1772_s15 = sphi %s1800_s15, %s14_s15  }
   0x2   : > { %p162_p1 = scmp.lt.s32.totalorder %s1772_s15, 3 }
   0x4   : > { %p163_p2 = pnand %p1504_p0, %p162_p1 }
   0x5   : > { %p188_p3 = scmp.lt.s32.totalorder (!%p163_p2), %s1500_s16, 1 }
   0x6   : > { %166 = sbr.rel (%p163_p2) target bundleno = 446 (0x1be), region = 36 }
   0xb   : > { %v1713_v0 = vld [vmem:[%s2329_s1 + $0x18] sm:$0xff]  ;;  %v1712_v1 = vld [vmem:[%s2329_s1 + $0x10] sm:$0xff]  ;;  %s2334_s16 = smov (!%p188_p3, %s1500_s16), 1  ;;  %v1715_v2 = vld [vmem:[%s2329_s1 + $0x28] sm:$0xff]  ;;  %vm247_vm0 = vsmask.f32 7424 }
   0xc   : > { %1743 = vmatpush.bf16.msra.mxu1 %v1713_v0  ;;  %1744 = vmatpush.bf16.msra.mxu2 %v1713_v0  ;;  %s1749_s23 = smul.u32 56, %s2334_s16  ;;  %v1711_v3 = vld [vmem:[%s2329_s1 + $0x8] sm:$0xff]  ;;  %v1721_v4 = vld [vmem:[%s2329_s1 + $0x38] sm:$0xff]  ;;  %v1710_v6 = vld [vmem:[%s2329_s1] sm:$0xff]  ;;  %vm304_vm1 = vcmask 261120   ;;  %vm419_vm2 = vcmask 1046528  }
   0xd   : > { %1745 = vmatpush.bf16.msra.mxu3 %v1713_v0  ;;  %326 = vmatpush.bf16.msra.mxu0 %v1713_v0  ;;  %v1723_v5 = vld [vmem:[%s2329_s1 + $0x48] sm:$0xff]  ;;  %v1714_v7 = vld [vmem:[%s2329_s1 + $0x20] sm:$0xff]  ;;  %v1720_v13 = vld [vmem:[%s2329_s1 + $0x30] sm:$0xff]  ;;  %vm637_vm3 = vsmask.f32 6400  ;;  %vm771_vm4 = vcmask 1045504  }
   0xe   : > { %s1832_s6 = scalar_lea.vmem %s2328_s0, %s1749_s23  ;;  %v1722_v19 = vld [vmem:[%s2329_s1 + $0x40] sm:$0xff]  ;;  %v1731_v44 = vld [vmem:[%s2329_s1 + $0x68] sm:$0xff]  ;;  %v1733_v45 = vld [vmem:[%s2329_s1 + $0x78] sm:$0xff]  ;;  %vm989_vm5 = vsmask.f32 5376  ;;  %vm1123_vm6 = vcmask 1044480  }
   0xf   : > { %v1841_v8 = vld [vmem:[%s1832_s6 + $0x8] sm:$0xff]  ;;  %v1844_v9 = vld [vmem:[%s1832_s6 + $0x10] sm:$0xff]  ;;  %v1847_v10 = vld [vmem:[%s1832_s6 + $0x18] sm:$0xff]  ;;  %vm1290_vm7 = vcmask 523264   ;;  %vm1434_vm12 = vcmask 519168   ;;  %s1750_s5 = smul.u32 40, %s2334_s16 }
  0x10   : > { %1746 = vmatpush.bf16.msra.mxu1 %v1712_v1  ;;  %1747 = vmatpush.bf16.msra.mxu2 %v1712_v1  ;;  %v1850_v11 = vld [vmem:[%s1832_s6 + $0x20] sm:$0xff]  ;;  %v213_v12 = vld [vmem:[%s1832_s6 + $0x28] sm:$0x1]  ;;  %v256_v14 = vshll.u32 %v1841_v8, 16  ;;  %v260_v15 = vshrl.u32 %v1841_v8, 16  ;;  %v264_v16 = vshll.u32 %v1844_v9, 16 }
  0x11   : > { %1748 = vmatpush.bf16.msra.mxu3 %v1712_v1  ;;  %327 = vmatpush.bf16.msra.mxu0 %v1712_v1  ;;  %v268_v17 = vshrl.u32 %v1844_v9, 16  ;;  %v1861_v18 = vld [vmem:[%s1832_s6] sm:$0xff]   ;;  %v272_v20 = vshll.u32 %v1847_v10, 16  ;;  %v240_v21 = vunpack.c.l.b16 %v213_v12  ;;  %v280_v22 = vshll.u32 %v1850_v11, 16  ;;  %v1872_v28 = vld [vmem:[%s1832_s6 + $0x8] sm:$0xff]   ;;  %v1725_v46 = vld [vmem:[%s2329_s1 + $0x58] sm:$0xff]  ;;  %s2301_s8 = scalar_lea.vmem %s2332_s4, %s1750_s5 }
  0x12   : > { %v284_v23 = vshrl.u32 %v1850_v11, 16  ;;  %v502_v24 = vld [vmem:[%s1832_s6 + $0x4] sm:$0xe]  ;;  %v258_v25 = vrot.slane %v256_v14, 1  ;;  %v266_v26 = vrot.slane %v264_v16, 1  ;;  %v249_v27 = vshrl.u32 %v1861_v18, 16 }
  0x13   : > { %v274_v29 = vrot.slane %v272_v20, 1  ;;  %v1874_v30 = vpack.c.b16 %v240_v21, %v240_v21  ;;  %v282_v31 = vrot.slane %v280_v22, 1  ;;  %v251_v32 = vshll.u32 %v1861_v18, 16  ;;  %v1895_v49 = vld [vmem:[%s1832_s6 + $0xc] sm:$0xff] }
  0x14   : > { %464 = vmatpush.bf16.msrb.mxu2 %v1715_v2  ;;  %382 = vmatpush.bf16.msrb.mxu1 %v1711_v3  ;;  %v262_v33 = vor.u32 %v260_v15, %v258_v25  ;;  %v270_v34 = vor.u32 %v268_v17, %v266_v26  ;;  %v529_v35 = vunpack.c.l.b16 %v502_v24  ;;  %v530_v39 = vunpack.c.l.b16 %v1872_v28  ;;  %v1735_v51 = vld [vmem:[%s2329_s1 + $0x88] sm:$0xff]  ;;  %v1730_v24 = vld [vmem:[%s2329_s1 + $0x60] sm:$0xff] }
  0x15   : > { %590 = vmatpush.bf16.msrb.mxu3 %v1721_v4  ;;  %724 = vmatpush.bf16.msrb.mxu0 %v1723_v5  ;;  %v286_v36 = vor.u32 %v284_v23, %v282_v31  ;;  %v288_v37 = vshll.u32 %v1874_v30, 16  ;;  %v253_v38 = vrot.slane %v251_v32, 1  ;;  %v647_v54 = vshrl.u32 %v1895_v49, 16  ;;  %v1740_v5 = vld [vmem:[%s1832_s6] sm:$0xf0] }
  0x16   : > { %v267_v40 = vsel %vm247_vm0, %v262_v33, %v266_v26  ;;  %v275_v41 = vsel %vm247_vm0, %v270_v34, %v274_v29  ;;  %v540_v50 = vpack.c.b16 %v530_v39, %v529_v35  ;;  %v650_v55 = vshll.u32 %v1895_v49, 16  ;;  %v1724_v26 = vld [vmem:[%s2329_s1 + $0x50] sm:$0xff] }
  0x17   : > { %1536 = vmatmul.msk.bf16.vlgmr.msra.gmra.mxu1 %vm304_vm1, %v267_v40  ;;  %1537 = vmatmul.msk.bf16.vlgmr.msra.gmra.mxu2 %vm304_vm1, %v275_v41  ;;  %v290_v42 = vrot.slane %v288_v37, 1  ;;  %v254_v43 = vor.u32 %v253_v38, %v249_v27  ;;  %v276_v56 = vshrl.u32 %v1847_v10, 16  ;;  %v649_v59 = vrot.slane %v647_v54, 1  ;;  %v1734_v40 = vld [vmem:[%s2329_s1 + $0x80] sm:$0xff] }
  0x18   : > { %465 = vmatpush.bf16.msrb.mxu2 %v1714_v7  ;;  %383 = vmatpush.bf16.msrb.mxu1 %v1710_v6  ;;  %v639_v52 = vshrl.u32 %v540_v50, 16  ;;  %v642_v53 = vshll.u32 %v540_v50, 16  ;;  %v652_v60 = vrot.slane %v650_v55, 2  ;;  %v546_v62 = vrot.slane %v540_v50, 1  ;;  %v1741_v6 = vld [vmem:[%s1832_s6] sm:$0xe] }
  0x19   : > { %591 = vmatpush.bf16.msrb.mxu3 %v1720_v13  ;;  %725 = vmatpush.bf16.msrb.mxu0 %v1722_v19  ;;  %v291_v47 = vsel %vm247_vm0, %v286_v36, %v290_v42  ;;  %v259_v48 = vsel %vm247_vm0, %v254_v43, %v258_v25  ;;  %v278_v61 = vor.u32 %v276_v56, %v274_v29  ;;  %v547_v63 = vrot.slane %v1895_v49, 1  ;;  %v1917_v7 = vld [vmem:[%s1832_s6 + $0x14] sm:$0xff]  ;;  %v1935_v25 = vld [vmem:[%s1832_s6 + $0x1c] sm:$0xff]  ;;  %v1959_v41 = vld [vmem:[%s1832_s6 + $0x24] sm:$0xff] }
  0x1a   : > { %1539 = vmatmul.msk.bf16.vlgmr.msra.gmra.mxu3 %vm304_vm1, %v291_v47  ;;  %1535 = vmatmul.msk.bf16.vlgmr.msra.gmra.mxu0 %vm304_vm1, %v259_v48  ;;  %v641_v57 = vrot.slane %v639_v52, 1  ;;  %v644_v58 = vrot.slane %v642_v53, 2  ;;  %v653_v1 = vor.u32 %v652_v60, %v649_v59  ;;  %v656_v12 = vshrl.u32 %v1917_v7, 16  ;;  %v762_v48 = vld [vmem:[%s1832_s6 + $0x4] sm:$0xc] }
  0x1b   : > { %v283_v2 = vsel %vm247_vm0, %v278_v61, %v282_v31  ;;  %v548_v3 = vsel %vm419_vm2, %v546_v62, %v547_v63  ;;  %v659_v13 = vshll.u32 %v1917_v7, 16  ;;  %v1742_v14 = vor.u32 %v1741_v6, %v1740_v5  ;;  %v628_v52 = vld [vmem:[%s1832_s6 + $0x2c] sm:$0x3]  ;;  %v854_v5 = vld [vmem:[%s1832_s6 + $0x8] sm:$0xc] }
  0x1c   : > { %942 = vmatpush.bf16.msra.mxu2 %v1731_v44  ;;  %816 = vmatpush.bf16.msra.mxu1 %v1725_v46  ;;  %v645_v0 = vor.u32 %v644_v58, %v641_v57  ;;  %v658_v15 = vrot.slane %v656_v12, 1  ;;  %v549_v19 = vrot.slane %v1917_v7, 1  ;;  %v665_v27 = vshrl.u32 %v1935_v25, 16  ;;  %v512_v62 = vld [vmem:[%s1832_s6 + $0x2c] sm:$0x1] }
  0x1d   : > { %1076 = vmatpush.bf16.msra.mxu3 %v1733_v45  ;;  %1168 = vmatpush.bf16.msra.mxu0 %v1735_v51  ;;  %v661_v16 = vrot.slane %v659_v13, 2  ;;  %v420_v17 = vrot.slane %v1742_v14, 1  ;;  %v668_v29 = vshll.u32 %v1935_v25, 16  ;;  %v423_v33 = vrot.slane %v1844_v9, 1 }
  0x1e   : > { %v654_v4 = vsel %vm637_vm3, %v645_v0, %v653_v1  ;;  %v550_v22 = vsel %vm419_vm2, %v547_v63, %v549_v19  ;;  %v667_v31 = vrot.slane %v665_v27, 1  ;;  %v551_v34 = vrot.slane %v1935_v25, 1 }
  0x1f   : > { %v662_v20 = vor.u32 %v661_v16, %v658_v15  ;;  %v670_v32 = vrot.slane %v668_v29, 2  ;;  %v429_v42 = vrot.slane %v1874_v30, 1  ;;  %v674_v43 = vshrl.u32 %v1959_v41, 16  ;;  %v1999_v16 = vld [vmem:[%s1832_s6 + $0x10] sm:$0xff] }
  0x20   : > { %943 = vmatpush.bf16.msra.mxu2 %v1730_v24  ;;  %817 = vmatpush.bf16.msra.mxu1 %v1724_v26  ;;  %v552_v37 = vsel %vm419_vm2, %v549_v19, %v551_v34  ;;  %v677_v44 = vshll.u32 %v1959_v41, 16  ;;  %v425_v50 = vrot.slane %v1847_v10, 1  ;;  %v769_v51 = vunpack.c.l.b16 %v762_v48 }
  0x21   : > { %v663_v23 = vsel %vm637_vm3, %v653_v1, %v662_v20  ;;  %v671_v35 = vor.u32 %v670_v32, %v667_v31  ;;  %1169 = vmatpush.bf16.msra.mxu0 %v1734_v40  ;;  %v676_v46 = vrot.slane %v674_v43, 1  ;;  %v553_v30 = vrot.slane %v1959_v41, 1 }
  0x22   : > { %v679_v47 = vrot.slane %v677_v44, 2  ;;  %v770_v53 = vpack.c.b16 %v530_v39, %v769_v51  ;;  %v635_v55 = vunpack.c.l.b16 %v628_v52  ;;  %v426_v56 = vsel %vm419_vm2, %v423_v33, %v425_v50 }
  0x23   : > { %v672_v38 = vsel %vm637_vm3, %v662_v20, %v671_v35  ;;  %v773_v58 = vrot.slane %v1895_v49, 2  ;;  %v554_v39 = vsel %vm419_vm2, %v551_v34, %v553_v30  ;;  %v775_v49 = vrot.slane %v1917_v7, 2  ;;  %v1114_v20 = vld [vmem:[%s1832_s6 + $0x8] sm:$0x8]  ;;  %v1223_v7 = vld [vmem:[%s2331_s3 + $0x18] sm:$0xff] }
  0x24   : > { %v680_v54 = vor.u32 %v679_v47, %v676_v46  ;;  %v772_v57 = vrot.slane %v770_v53, 2  ;;  %v1984_v61 = vpack.c.b16 %v635_v55, %v635_v55  ;;  %v539_v63 = vunpack.c.l.b16 %v512_v62  ;;  %v2035_v53 = vld [vmem:[%s1832_s6 + $0x20] sm:$0xff] }
  0x25   : > { %v776_v1 = vsel %vm771_vm4, %v773_v58, %v775_v49  ;;  %v881_v13 = vunpack.c.l.b16 %v854_v5  ;;  %v882_v14 = vunpack.c.h.b16 %v1872_v28  ;;  %v999_v28 = vshrl.u32 %v1999_v16, 16 }
  0x26   : > { %v774_v59 = vsel %vm771_vm4, %v772_v57, %v773_v58  ;;  %v681_v60 = vsel %vm637_vm3, %v671_v35, %v680_v54  ;;  %v686_v0 = vshll.u32 %v1984_v61, 16  ;;  %v1121_v24 = vunpack.c.l.b16 %v1114_v20 }
  0x27   : > { %1538 = vmatmul.msk.bf16.gmra.mxu2 %vm304_vm1, %v283_v2  ;;  %1548 = vmatmul.msk.bf16.vlgmr.msrb.gmra.mxu1 %vm304_vm1, %v1861_v18  ;;  %v421_v18 = vrot.slane %v1841_v8, 1  ;;  %v545_v2 = vpack.c.b16 %v539_v63, %v539_v63  ;;  %v892_v19 = vpack.c.b16 %v882_v14, %v881_v13  ;;  %v1125_v34 = vrot.slane %v1999_v16, 3 }
  0x28   : > { %v1122_v29 = vpack.c.b16 %v882_v14, %v1121_v24  ;;  %v899_v46 = vrot.slane %v1999_v16, 2  ;;  %v1020_v55 = vshll.u32 %v2035_v53, 16  ;;  %v1129_v62 = vrot.slane %v2035_v53, 3 }
  0x29   : > { %v422_v21 = vsel %vm419_vm2, %v420_v17, %v421_v18  ;;  %v424_v36 = vsel %vm419_vm2, %v421_v18, %v423_v33  ;;  %v555_v6 = vrot.slane %v545_v2, 1 }
  0x2a   : > { %1598 = vmatmul.msk.bf16.vlgmr.msrb.gmra.mxu3 %vm304_vm1, %v548_v3  ;;  %1615 = vmatmul.msk.bf16.vlgmr.msrb.gmra.mxu0 %vm304_vm1, %v654_v4  ;;  %v688_v4 = vrot.slane %v686_v0, 2  ;;  %v1124_v33 = vrot.slane %v1122_v29, 3  ;;  %v1022_v58 = vrot.slane %v1020_v55, 3 }
  0x2b   : > { %v556_v17 = vsel %vm419_vm2, %v553_v30, %v555_v6  ;;  %v1221_v30 = vld [vmem:[%s2331_s3 + $0x8] sm:$0xff] }
  0x37   : > { %1549 = vmatmul.msk.bf16.gmra.mxu1 %vm304_vm1, %v1841_v8  ;;  %1565 = vmatmul.msk.bf16.vlgmr.msrb.gmra.mxu2 %vm304_vm1, %v422_v21  ;;  %v1732_v8 = vld [vmem:[%s2329_s1 + $0x70] sm:$0xff]  ;;  %v991_v21 = vshrl.u32 %v892_v19, 16 }
  0x38   : > { %1077 = vmatpush.bf16.msra.mxu3 %v1732_v8 }
  0x39   : > { %v993_v8 = vrot.slane %v991_v21, 2 }
  0x3a   : > { %1599 = vmatmul.msk.bf16.gmra.mxu3 %vm304_vm1, %v550_v22  ;;  %1616 = vmatmul.msk.bf16.gmra.mxu0 %vm304_vm1, %v663_v23  ;;  %v994_v22 = vshll.u32 %v892_v19, 16  ;;  %v1002_v23 = vshll.u32 %v1999_v16, 16  ;;  %v779_v16 = vrot.slane %v1959_v41, 2 }
  0x3c   : > { %v996_v26 = vrot.slane %v994_v22, 3  ;;  %v1004_v27 = vrot.slane %v1002_v23, 3 }
  0x3e   : > { %v997_v31 = vor.u32 %v996_v26, %v993_v8 }
  0x47   : > { %1550 = vmatmul.msk.bf16.gmra.mxu1 %vm304_vm1, %v1844_v9  ;;  %1566 = vmatmul.msk.bf16.gmra.mxu2 %vm304_vm1, %v424_v36  ;;  %v427_v9 = vrot.slane %v1850_v11, 1  ;;  %v1126_v36 = vsel %vm1123_vm6, %v1124_v33, %v1125_v34 }
  0x49   : > { %v1968_v45 = vsel %vm419_vm2, %v427_v9, %v429_v42  ;;  %v428_v15 = vsel %vm419_vm2, %v425_v50, %v427_v9  ;;  %v1220_v9 = vld [vmem:[%s2331_s3] sm:$0xff]  ;;  %v1774_v42 = vmov 0  }
  0x4a   : > { %1600 = vmatmul.msk.bf16.gmra.mxu3 %vm304_vm1, %v552_v37  ;;  %1617 = vmatmul.msk.bf16.gmra.mxu0 %vm304_vm1, %v672_v38  ;;  %v2018_v37 = vld [vmem:[%s1832_s6 + $0x18] sm:$0xff] }
  0x4b   : > { %v1008_v38 = vshrl.u32 %v2018_v37, 16  ;;  %v1011_v40 = vshll.u32 %v2018_v37, 16  ;;  %1760 = vset.pattern.permute.xlu0 %v1774_v42  ;;  %1761 = vset.pattern.permute.xlu1 %v1774_v42  ;;  %v1127_v48 = vrot.slane %v2018_v37, 3 }
  0x4c   : > { %1232 = vperm.xlu0 %1760, %v1220_v9   ;;  %1762 = vset.pattern.permute.xlu2 %v1774_v42 }
  0x4d   : > { %v1010_v43 = vrot.slane %v1008_v38, 2  ;;  %v1013_v44 = vrot.slane %v1011_v40, 3  ;;  %v1128_v52 = vsel %vm1123_vm6, %v1125_v34, %v1127_v48  ;;  %v1130_v2 = vsel %vm1123_vm6, %v1127_v48, %v1129_v62  ;;  %v1229_v38 = vld [vmem:[%s2331_s3 + $0x48] sm:$0xff]  ;;  %v1227_v48 = vld [vmem:[%s2331_s3 + $0x38] sm:$0xff] }
  0x4f   : > { %v1014_v47 = vor.u32 %v1013_v44, %v1010_v43  ;;  %v781_v43 = vrot.slane %v1984_v61, 2 }
  0x54   : > { %1237 = vperm.xlu0 %1760, %v1221_v30   ;;  %v864_v30 = vld [vmem:[%s1832_s6 + $0x30] sm:$0x3] }
  0x57   : > { %1551 = vmatmul.msk.bf16.gmra.mxu1 %vm304_vm1, %v1847_v10  ;;  %1567 = vmatmul.msk.bf16.gmra.mxu2 %vm304_vm1, %v426_v56  ;;  %v683_v10 = vshrl.u32 %v1984_v61, 16  ;;  %v1222_v56 = vld [vmem:[%s2331_s3 + $0x10] sm:$0xff] }
  0x58   : > { %1242 = vperm.xlu1 %1761, %v1222_v56  }
  0x59   : > { %v685_v3 = vrot.slane %v683_v10, 1 }
  0x5a   : > { %1601 = vmatmul.msk.bf16.gmra.mxu3 %vm304_vm1, %v554_v39  ;;  %1618 = vmatmul.msk.bf16.gmra.mxu0 %vm304_vm1, %v681_v60  ;;  %v901_v39 = vrot.slane %v2018_v37, 2 }
  0x5b   : > { %v689_v12 = vor.u32 %v688_v4, %v685_v3  ;;  %v2061_v3 = vld [vmem:[%s1832_s6 + $0x28] sm:$0xff] }
  0x5c   : > { %v902_v0 = vsel %vm771_vm4, %v899_v46, %v901_v39  ;;  %v1026_v4 = vshrl.u32 %v2061_v3, 16  ;;  %v1029_v5 = vshll.u32 %v2061_v3, 16  ;;  %v905_v44 = vrot.slane %v2061_v3, 2 }
  0x5d   : > { %v690_v18 = vsel %vm637_vm3, %v680_v54, %v689_v12  ;;  %v1017_v54 = vshrl.u32 %v2035_v53, 16 }
  0x5e   : > { %v1028_v14 = vrot.slane %v1026_v4, 2 }
  0x5f   : > { %v1019_v57 = vrot.slane %v1017_v54, 2  ;;  %v1224_v54 = vld [vmem:[%s2331_s3 + $0x20] sm:$0xff] }
  0x60   : > { %1247 = vperm.xlu1 %1761, %v1223_v7   ;;  %1252 = vperm.xlu2 %1762, %v1224_v54  }
  0x61   : > { %v1023_v60 = vor.u32 %v1022_v58, %v1019_v57  ;;  %v891_v58 = vunpack.c.l.b16 %v864_v30 }
  0x67   : > { %1552 = vmatmul.msk.bf16.gmra.mxu1 %vm304_vm1, %v1850_v11  ;;  %1568 = vmatmul.msk.bf16.gmra.mxu2 %vm304_vm1, %v428_v15  ;;  %v1001_v11 = vrot.slane %v999_v28, 2  ;;  %v1031_v15 = vrot.slane %v1029_v5, 3  ;;  %v1131_v28 = vrot.slane %v2061_v3, 3 }
  0x68   : > { %1267 = vperm.xlu1 %1761, %v1227_v48  }
  0x69   : > { %v1005_v32 = vor.u32 %v1004_v27, %v1001_v11  ;;  %v1032_v20 = vor.u32 %v1031_v15, %v1028_v14  ;;  %v1132_v27 = vsel %vm1123_vm6, %v1129_v62, %v1131_v28  ;;  %v897_v62 = vpack.c.b16 %v891_v58, %v891_v58 }
  0x6a   : > { %1602 = vmatmul.msk.bf16.gmra.mxu3 %vm304_vm1, %v556_v17  ;;  %1619 = vmatmul.msk.bf16.gmra.mxu0 %vm304_vm1, %v690_v18  ;;  %v903_v17 = vrot.slane %v2035_v53, 2  ;;  %v980_v18 = vld [vmem:[%s1832_s6 + $0x30] sm:$0x7] }
  0x6b   : > { %v1006_v35 = vsel %vm989_vm5, %v997_v31, %v1005_v32  ;;  %v1015_v51 = vsel %vm989_vm5, %v1005_v32, %v1014_v47  ;;  %v987_v21 = vunpack.c.l.b16 %v980_v18  ;;  %v1033_v41 = vsel %vm989_vm5, %v1023_v60, %v1032_v20  ;;  %v1226_v31 = vld [vmem:[%s2331_s3 + $0x30] sm:$0xff] }
  0x6c   : > { %v904_v24 = vsel %vm771_vm4, %v901_v39, %v903_v17  ;;  %1262 = vperm.xlu0 %1760, %v1226_v31   ;;  %v907_v3 = vrot.slane %v897_v62, 2 }
  0x6d   : > { %v988_v29 = vpack.c.b16 %v987_v21, %v987_v21 }
  0x6f   : > { %v1035_v33 = vshrl.u32 %v988_v29, 16  ;;  %v1038_v34 = vshll.u32 %v988_v29, 16 }
  0x71   : > { %v1037_v9 = vrot.slane %v1035_v33, 2  ;;  %v1040_v42 = vrot.slane %v1038_v34, 3 }
  0x74   : > { %1277 = vperm.xlu0 %1760, %v1229_v38  }
  0x77   : > { %1569 = vmatmul.msk.bf16.gmra.mxu2 %vm304_vm1, %v1968_v45  ;;  %1632 = vmatmul.msk.bf16.vlgmr.msra.gmra.mxu1 %vm304_vm1, %v774_v59  ;;  %v898_v45 = vrot.slane %v892_v19, 2  ;;  %v777_v59 = vrot.slane %v1935_v25, 2 }
  0x79   : > { %v900_v50 = vsel %vm771_vm4, %v898_v45, %v899_v46  ;;  %v778_v10 = vsel %vm771_vm4, %v775_v49, %v777_v59  ;;  %v780_v23 = vsel %vm771_vm4, %v777_v59, %v779_v16  ;;  %v1041_v46 = vor.u32 %v1040_v42, %v1037_v9 }
  0x7a   : > { %1682 = vmatmul.msk.bf16.vlgmr.msra.gmra.mxu3 %vm304_vm1, %v1006_v35  ;;  %1699 = vmatmul.msk.bf16.vlgmr.msra.gmra.mxu0 %vm304_vm1, %v1126_v36 }
  0x7b   : > { %v1042_v55 = vsel %vm989_vm5, %v1032_v20, %v1041_v46 }
  0x87   : > { %1633 = vmatmul.msk.bf16.gmra.mxu1 %vm304_vm1, %v776_v1  ;;  %1665 = vmatmul.msk.bf16.vlgmr.msra.gmra.mxu2 %vm304_vm1, %v900_v50  ;;  %v1024_v1 = vsel %vm989_vm5, %v1014_v47, %v1023_v60  ;;  %v1133_v47 = vrot.slane %v988_v29, 3 }
  0x89   : > { %v1134_v57 = vsel %vm1123_vm6, %v1131_v28, %v1133_v47 }
  0x8a   : > { %1683 = vmatmul.msk.bf16.gmra.mxu3 %vm304_vm1, %v1015_v51  ;;  %1700 = vmatmul.msk.bf16.gmra.mxu0 %vm304_vm1, %v1128_v52  ;;  %v782_v51 = vsel %vm771_vm4, %v779_v16, %v781_v43  ;;  %v906_v52 = vsel %vm771_vm4, %v903_v17, %v905_v44 }
  0x94   : > { %v2050_v63 = vpop.f32.mrf.mxu1 }
  0x97   : > { %1634 = vmatmul.msk.bf16.gmra.mxu1 %vm304_vm1, %v778_v10  ;;  %1666 = vmatmul.msk.bf16.gmra.mxu2 %vm304_vm1, %v902_v0  ;;  %v329_v25 = vpop.f32.mrf.mxu0 }
  0x9a   : > { %v2066_v49 = vpop.f32.mrf.mxu2  ;;  %1684 = vmatmul.msk.bf16.gmra.mxu3 %vm304_vm1, %v1024_v1  ;;  %1701 = vmatmul.msk.bf16.gmra.mxu0 %vm304_vm1, %v1130_v2  ;;  %v1225_v1 = vld [vmem:[%s2331_s3 + $0x28] sm:$0xff] }
  0x9b   : > { %1257 = vperm.xlu2 %1762, %v1225_v1  }
  0x9c   : > { %v2072_v6 = vpop.f32.mrf.mxu1 }
  0x9d   : > { %v2074_v12 = vpop.f32.mrf.mxu3 }
  0x9f   : > { %v331_v13 = vpop.f32.mrf.mxu0 }
  0xa2   : > { %v2079_v19 = vpop.f32.mrf.mxu2 }
  0xa4   : > { %v385_v22 = vpop.f32.mrf.mxu1 }
  0xa5   : > { %v386_v11 = vadd.f32 %v385_v22, %v329_v25  ;;  %v2084_v8 = vpop.f32.mrf.mxu3 }
  0xa7   : > { %1635 = vmatmul.msk.bf16.gmra.mxu1 %vm304_vm1, %v780_v23  ;;  %1667 = vmatmul.msk.bf16.gmra.mxu2 %vm304_vm1, %v904_v24  ;;  %v727_v26 = vpop.f32.mrf.mxu0  ;;  %v1228_v24 = vld [vmem:[%s2331_s3 + $0x40] sm:$0xff] }
  0xa8   : > { %1272 = vperm.xlu2 %1762, %v1228_v24  }
  0xaa   : > { %v2093_v32 = vpop.f32.mrf.mxu2  ;;  %1685 = vmatmul.msk.bf16.gmra.mxu3 %vm304_vm1, %v1033_v41  ;;  %1702 = vmatmul.msk.bf16.gmra.mxu0 %vm304_vm1, %v1132_v27 }
  0xac   : > { %v387_v35 = vpop.f32.mrf.mxu1 }
  0xad   : > { %v388_v36 = vadd.f32 %v387_v35, %v331_v13  ;;  %v593_v37 = vpop.f32.mrf.mxu3  ;;  %v908_v13 = vsel %vm771_vm4, %v905_v44, %v907_v3 }
  0xaf   : > { %v729_v40 = vpop.f32.mrf.mxu0 }
  0xb2   : > { %v2102_v45 = vpop.f32.mrf.mxu2 }
  0xb4   : > { %v390_v50 = vpop.f32.mrf.mxu1 }
  0xb5   : > { %v391_v53 = vadd.f32 %v390_v50, %v2050_v63  ;;  %v595_v61 = vpop.f32.mrf.mxu3 }
  0xb7   : > { %1636 = vmatmul.msk.bf16.gmra.mxu1 %vm304_vm1, %v782_v51  ;;  %1668 = vmatmul.msk.bf16.gmra.mxu2 %vm304_vm1, %v906_v52  ;;  %v732_v56 = vpop.f32.mrf.mxu0 }
  0xba   : > { %v467_v59 = vpop.f32.mrf.mxu2  ;;  %1686 = vmatmul.msk.bf16.gmra.mxu3 %vm304_vm1, %v1042_v55  ;;  %1703 = vmatmul.msk.bf16.gmra.mxu0 %vm304_vm1, %v1134_v57 }
  0xbb   : > { %v492_v39 = vadd.f32 %v467_v59, %v386_v11 }
  0xbc   : > { %v392_v60 = vpop.f32.mrf.mxu1 }
  0xbd   : > { %v618_v63 = vadd.f32 %v593_v37, %v492_v39  ;;  %v393_v10 = vadd.f32 %v392_v60, %v2072_v6  ;;  %v598_v0 = vpop.f32.mrf.mxu3 }
  0xbf   : > { %v734_v25 = vpop.f32.mrf.mxu0  ;;  %v2124_v2 = vadd.f32 %v727_v26, %v618_v63 }
  0xc2   : > { %v469_v7 = vpop.f32.mrf.mxu2 }
  0xc3   : > { %v493_v4 = vadd.f32 %v469_v7, %v388_v36 }
  0xc4   : > { %v395_v5 = vpop.f32.mrf.mxu1 }
  0xc5   : > { %v619_v14 = vadd.f32 %v595_v61, %v493_v4  ;;  %v396_v15 = vadd.f32 %v395_v5, %v2066_v49  ;;  %v600_v16 = vpop.f32.mrf.mxu3 }
  0xc7   : > { %1669 = vmatmul.msk.bf16.gmra.mxu2 %vm304_vm1, %v908_v13  ;;  %v737_v6 = vpop.f32.mrf.mxu0  ;;  %v2129_v17 = vadd.f32 %v729_v40, %v619_v14 }
  0xca   : > { %v472_v18 = vpop.f32.mrf.mxu2 }
  0xcb   : > { %v494_v20 = vadd.f32 %v472_v18, %v391_v53 }
  0xcc   : > { %v397_v28 = vpop.f32.mrf.mxu1 }
  0xcd   : > { %v620_v21 = vadd.f32 %v598_v0, %v494_v20  ;;  %v398_v22 = vadd.f32 %v397_v28, %v2079_v19  ;;  %v603_v23 = vpop.f32.mrf.mxu3 }
  0xcf   : > { %v739_v11 = vpop.f32.mrf.mxu0  ;;  %v2135_v49 = vadd.f32 %v732_v56, %v620_v21  ;;  %v2156_v21 = vpop.permute.xlu0 %1232 }
  0xd2   : > { %v474_v41 = vpop.f32.mrf.mxu2 }
  0xd3   : > { %v495_v26 = vadd.f32 %v474_v41, %v393_v10  ;;  %v2162_v41 = vld [vmem:[%s2330_s2] ss:$0 sm:$0xff] }
  0xd4   : > { %v400_v27 = vpop.f32.mrf.mxu1 }
  0xd5   : > { %v621_v29 = vadd.f32 %v600_v16, %v495_v26  ;;  %v401_v31 = vadd.f32 %v400_v27, %v2093_v32  ;;  %v605_v33 = vpop.f32.mrf.mxu3 }
  0xd7   : > { %v742_v34 = vpop.f32.mrf.mxu0  ;;  %v2138_v35 = vadd.f32 %v734_v25, %v621_v29 }
  0xda   : > { %v477_v19 = vpop.f32.mrf.mxu2 }
  0xdb   : > { %v496_v36 = vadd.f32 %v477_v19, %v396_v15 }
  0xdc   : > { %v402_v37 = vpop.f32.mrf.mxu1 }
  0xdd   : > { %v622_v38 = vadd.f32 %v603_v23, %v496_v36  ;;  %v403_v40 = vadd.f32 %v402_v37, %v2102_v45  ;;  %v608_v9 = vpop.f32.mrf.mxu3 }
  0xdf   : > { %v744_v42 = vpop.f32.mrf.mxu0  ;;  %v2141_v43 = vadd.f32 %v737_v6, %v622_v38 }
  0xe2   : > { %v479_v44 = vpop.f32.mrf.mxu2 }
  0xe3   : > { %v497_v46 = vadd.f32 %v479_v44, %v398_v22 }
  0xe4   : > { %v405_v47 = vpop.f32.mrf.mxu1 }
  0xe5   : > { %v623_v48 = vadd.f32 %v605_v33, %v497_v46  ;;  %v406_v32 = vadd.f32 %v405_v47, %v2074_v12  ;;  %v610_v50 = vpop.f32.mrf.mxu3 }
  0xe7   : > { %v2144_v51 = vadd.f32 %v739_v11, %v623_v48  ;;  %v747_v52 = vpop.f32.mrf.mxu0 }
  0xea   : > { %v482_v53 = vpop.f32.mrf.mxu2 }
  0xeb   : > { %v498_v61 = vadd.f32 %v482_v53, %v401_v31 }
  0xec   : > { %v407_v30 = vpop.f32.mrf.mxu1 }
  0xed   : > { %v624_v54 = vadd.f32 %v608_v9, %v498_v61  ;;  %v408_v45 = vadd.f32 %v407_v30, %v2084_v8  ;;  %v613_v55 = vpop.f32.mrf.mxu3 }
  0xef   : > { %v2147_v56 = vadd.f32 %v742_v34, %v624_v54  ;;  %v749_v58 = vpop.f32.mrf.mxu0  ;;  %v2167_v34 = vpop.permute.xlu0 %1237 }
  0xf2   : > { %v484_v57 = vpop.f32.mrf.mxu2 }
  0xf3   : > { %v499_v59 = vadd.f32 %v484_v57, %v403_v40 }
  0xf4   : > { %v819_v39 = vpop.f32.mrf.mxu1 }
  0xf5   : > { %v625_v60 = vadd.f32 %v610_v50, %v499_v59  ;;  %v615_v62 = vpop.f32.mrf.mxu3  ;;  %v844_v6 = vadd.f32 %v819_v39, %v2124_v2 }
  0xf7   : > { %v2149_v12 = vadd.f32 %v744_v42, %v625_v60  ;;  %v1171_v0 = vpop.f32.mrf.mxu0 }
  0xfa   : > { %v487_v63 = vpop.f32.mrf.mxu2 }
  0xfb   : > { %v500_v10 = vadd.f32 %v487_v63, %v406_v32  ;;  %v2179_v32 = vpop.permute.xlu1 %1242 }
  0xfc   : > { %v821_v3 = vpop.f32.mrf.mxu1 }
  0xfd   : > { %v626_v1 = vadd.f32 %v613_v55, %v500_v10  ;;  %v1079_v25 = vpop.f32.mrf.mxu3  ;;  %v845_v24 = vadd.f32 %v821_v3, %v2129_v17 }
  0xff   : > { %v2151_v7 = vadd.f32 %v747_v52, %v626_v1  ;;  %v1173_v14 = vpop.f32.mrf.mxu0 }
 0x102   : > { %v489_v8 = vpop.f32.mrf.mxu2 }
 0x103   : > { %v501_v4 = vadd.f32 %v489_v8, %v408_v45 }
 0x104   : > { %v824_v16 = vpop.f32.mrf.mxu1 }
 0x105   : > { %v627_v5 = vadd.f32 %v615_v62, %v501_v4  ;;  %v1081_v13 = vpop.f32.mrf.mxu3  ;;  %v846_v36 = vadd.f32 %v824_v16, %v2135_v49  ;;  %v2188_v62 = vpop.permute.xlu1 %1247 }
 0x107   : > { %v2153_v15 = vadd.f32 %v749_v58, %v627_v5  ;;  %v1176_v23 = vpop.f32.mrf.mxu0 }
 0x10a   : > { %v945_v18 = vpop.f32.mrf.mxu2 }
 0x10b   : > { %v970_v20 = vadd.f32 %v945_v18, %v844_v6 }
 0x10c   : > { %v826_v26 = vpop.f32.mrf.mxu1 }
 0x10d   : > { %v1104_v28 = vadd.f32 %v1079_v25, %v970_v20  ;;  %v1084_v22 = vpop.f32.mrf.mxu3  ;;  %v847_v52 = vadd.f32 %v826_v26, %v2138_v35 }
 0x10f   : > { %v1196_v11 = vadd.f32 %v1171_v0, %v1104_v28  ;;  %v1178_v40 = vpop.f32.mrf.mxu0 }
 0x111   : > { %v2165_v2 = vadd.f32 %v2162_v41, %v1196_v11 }
 0x112   : > { %v947_v27 = vpop.f32.mrf.mxu2 }
 0x113   : > { %v971_v29 = vadd.f32 %v947_v27, %v845_v24  ;;  %v1280_v17 = vmul.f32 %v2156_v21, %v2165_v2 }
 0x114   : > { %v829_v44 = vpop.f32.mrf.mxu1 }
 0x115   : > { %v1105_v31 = vadd.f32 %v1081_v13, %v971_v29  ;;  %v1086_v19 = vpop.f32.mrf.mxu3  ;;  %v1291_v46 = vsel %vm1290_vm7, %v1280_v17, 0.0  ;;  %v848_v35 = vadd.f32 %v829_v44, %v2141_v43  ;;  %v2197_v13 = vpop.permute.xlu2 %1252 }
 0x117   : > { %v1197_v33 = vadd.f32 %v1173_v14, %v1105_v31  ;;  %v1181_v55 = vpop.f32.mrf.mxu0 }
 0x119   : > { %v2173_v37 = vadd.f32 %v2162_v41, %v1197_v33 }
 0x11a   : > { %v950_v38 = vpop.f32.mrf.mxu2 }
 0x11b   : > { %v1281_v9 = vmul.f32 %v2167_v34, %v2173_v37  ;;  %v972_v42 = vadd.f32 %v950_v38, %v846_v36 }
 0x11c   : > { %v831_v59 = vpop.f32.mrf.mxu1 }
 0x11d   : > { %v1292_v47 = vsel %vm1290_vm7, %v1281_v9, 0.0  ;;  %v1106_v48 = vadd.f32 %v1084_v22, %v972_v42  ;;  %v1089_v30 = vpop.f32.mrf.mxu3  ;;  %v849_v43 = vadd.f32 %v831_v59, %v2144_v51  ;;  %v2206_v29 = vpop.permute.xlu2 %1257 }
 0x11e   : > { %v1293_v49 = vadd.f32 %v1292_v47, %v1291_v46  ;;  %v2216_v47 = vpop.permute.xlu0 %1262 }
 0x11f   : > { %v1198_v50 = vadd.f32 %v1176_v23, %v1106_v48  ;;  %v1183_v5 = vpop.f32.mrf.mxu0 }
 0x121   : > { %v2183_v53 = vadd.f32 %v2162_v41, %v1198_v50 }
 0x122   : > { %v952_v61 = vpop.f32.mrf.mxu2 }
 0x123   : > { %v1282_v54 = vmul.f32 %v2179_v32, %v2183_v53  ;;  %v973_v45 = vadd.f32 %v952_v61, %v847_v52 }
 0x124   : > { %v834_v16 = vpop.f32.mrf.mxu1 }
 0x125   : > { %v1294_v57 = vsel %vm1290_vm7, %v1282_v54, 0.0  ;;  %v1107_v58 = vadd.f32 %v1086_v19, %v973_v45  ;;  %v1091_v25 = vpop.f32.mrf.mxu3  ;;  %v850_v31 = vadd.f32 %v834_v16, %v2147_v56 }
 0x126   : > { %v1295_v39 = vadd.f32 %v1294_v57, %v1293_v49 }
 0x127   : > { %v1199_v60 = vadd.f32 %v1178_v40, %v1107_v58  ;;  %v1186_v27 = vpop.f32.mrf.mxu0  ;;  %v2222_v58 = vpop.permute.xlu1 %1267 }
 0x129   : > { %v2192_v63 = vadd.f32 %v2162_v41, %v1199_v60 }
 0x12a   : > { %v955_v10 = vpop.f32.mrf.mxu2 }
 0x12b   : > { %v1283_v0 = vmul.f32 %v2188_v62, %v2192_v63  ;;  %v974_v1 = vadd.f32 %v955_v10, %v848_v35 }
 0x12c   : > { %v836_v33 = vpop.f32.mrf.mxu1 }
 0x12d   : > { %v1296_v3 = vsel %vm1290_vm7, %v1283_v0, 0.0  ;;  %v1108_v8 = vadd.f32 %v1089_v30, %v974_v1  ;;  %v1094_v11 = vpop.f32.mrf.mxu3  ;;  %v851_v46 = vadd.f32 %v836_v33, %v2149_v12 }
 0x12e   : > { %v1297_v4 = vadd.f32 %v1296_v3, %v1295_v39 }
 0x12f   : > { %v1200_v14 = vadd.f32 %v1181_v55, %v1108_v8  ;;  %v1188_v48 = vpop.f32.mrf.mxu0 }
 0x131   : > { %v2201_v6 = vadd.f32 %v2162_v41, %v1200_v14 }
 0x132   : > { %v957_v18 = vpop.f32.mrf.mxu2 }
 0x133   : > { %v1284_v20 = vmul.f32 %v2197_v13, %v2201_v6  ;;  %v975_v28 = vadd.f32 %v957_v18, %v849_v43 }
 0x134   : > { %v839_v61 = vpop.f32.mrf.mxu1 }
 0x135   : > { %v1298_v22 = vsel %vm1290_vm7, %v1284_v20, 0.0  ;;  %v1109_v23 = vadd.f32 %v1091_v25, %v975_v28  ;;  %v1096_v44 = vpop.f32.mrf.mxu3  ;;  %v852_v57 = vadd.f32 %v839_v61, %v2151_v7 }
 0x136   : > { %v1299_v24 = vadd.f32 %v1298_v22, %v1297_v4 }
 0x137   : > { %v1201_v26 = vadd.f32 %v1183_v5, %v1109_v23  ;;  %v1191_v10 = vpop.f32.mrf.mxu0  ;;  %v1273_v5 = vpop.permute.xlu2 %1272 }
 0x139   : > { %v2210_v51 = vadd.f32 %v2162_v41, %v1201_v26  ;;  %v1278_v26 = vpop.permute.xlu0 %1277 }
 0x13a   : > { %v960_v19 = vpop.f32.mrf.mxu2 }
 0x13b   : > { %v1285_v36 = vmul.f32 %v2206_v29, %v2210_v51  ;;  %v976_v17 = vadd.f32 %v960_v19, %v850_v31 }
 0x13c   : > { %v841_v25 = vpop.f32.mrf.mxu1 }
 0x13d   : > { %v1300_v38 = vsel %vm1290_vm7, %v1285_v36, 0.0  ;;  %v1110_v40 = vadd.f32 %v1094_v11, %v976_v17  ;;  %v1099_v59 = vpop.f32.mrf.mxu3  ;;  %v853_v4 = vadd.f32 %v841_v25, %v2153_v15 }
 0x13e   : > { %v1301_v9 = vadd.f32 %v1300_v38, %v1299_v24 }
 0x13f   : > { %v1202_v42 = vadd.f32 %v1186_v27, %v1110_v40  ;;  %v1193_v23 = vpop.f32.mrf.mxu0 }
 0x141   : > { %v1216_v56 = vadd.f32 %v2162_v41, %v1202_v42 }
 0x142   : > { %v962_v49 = vpop.f32.mrf.mxu2 }
 0x143   : > { %v977_v50 = vadd.f32 %v962_v49, %v851_v46  ;;  %v1286_v52 = vmul.f32 %v2216_v47, %v1216_v56 }
 0x145   : > { %v1111_v30 = vadd.f32 %v1096_v44, %v977_v50  ;;  %v1302_v54 = vsel %vm1290_vm7, %v1286_v52, 0.0  ;;  %v1101_v18 = vpop.f32.mrf.mxu3 }
 0x146   : > { %v1303_v45 = vadd.f32 %v1302_v54, %v1301_v9 }
 0x147   : > { %v1203_v55 = vadd.f32 %v1188_v48, %v1111_v30 }
 0x149   : > { %v1217_v12 = vadd.f32 %v2162_v41, %v1203_v55 }
 0x14a   : > { %v965_v39 = vpop.f32.mrf.mxu2 }
 0x14b   : > { %v1287_v60 = vmul.f32 %v2222_v58, %v1217_v12  ;;  %v978_v35 = vadd.f32 %v965_v39, %v852_v57 }
 0x14d   : > { %v1304_v0 = vsel %vm1290_vm7, %v1287_v60, 0.0  ;;  %v1112_v1 = vadd.f32 %v1099_v59, %v978_v35 }
 0x14e   : > { %v1305_v3 = vadd.f32 %v1304_v0, %v1303_v45 }
 0x14f   : > { %v1204_v8 = vadd.f32 %v1191_v10, %v1112_v1 }
 0x151   : > { %v1218_v7 = vadd.f32 %v2162_v41, %v1204_v8 }
 0x152   : > { %v967_v14 = vpop.f32.mrf.mxu2 }
 0x153   : > { %v1288_v16 = vmul.f32 %v1273_v5, %v1218_v7  ;;  %v979_v43 = vadd.f32 %v967_v14, %v853_v4 }
 0x155   : > { %v1306_v20 = vsel %vm1290_vm7, %v1288_v16, 0.0  ;;  %v1113_v28 = vadd.f32 %v1101_v18, %v979_v43 }
 0x156   : > { %v1307_v22 = vadd.f32 %v1306_v20, %v1305_v3 }
 0x157   : > { %v1205_v24 = vadd.f32 %v1193_v23, %v1113_v28 }
 0x159   : > { %v1219_v11 = vadd.f32 %v2162_v41, %v1205_v24 }
 0x15b   : > { %v1289_v27 = vmul.f32 %v1278_v26, %v1219_v11 }
 0x15d   : > { %v1308_v31 = vsel %vm1290_vm7, %v1289_v27, 0.0 }
 0x15e   : > { %v1309_v15 = vadd.f32 %v1308_v31, %v1307_v22 }
 0x160   : > { %v1310_v33 = vrot.slane %v1309_v15, 4 }
 0x162   : > { %v1311_v19 = vadd.f32 %v1310_v33, %v1309_v15 }
 0x164   : > { %v1312_v36 = vrot.slane %v1311_v19, 2 }
 0x166   : > { %v1313_v17 = vadd.f32 %v1312_v36, %v1311_v19 }
 0x168   : > { %v1314_v38 = vrot.slane %v1313_v17, 1 }
 0x16a   : > { %v1315_v40 = vadd.f32 %v1314_v38, %v1313_v17 }
 0x16c   : > { %v1316_v9 = vmul.f32 0.015625, %v1315_v40 }
 0x16e   : > { %v2233_v42 = vsub.f32 %v2165_v2, %v1316_v9  ;;  %v2236_v44 = vsub.f32 %v2173_v37, %v1316_v9  ;;  %v2239_v41 = vsub.f32 %v2183_v53, %v1316_v9  ;;  %v2242_v46 = vsub.f32 %v2192_v63, %v1316_v9 }
 0x16f   : > { %v2245_v48 = vsub.f32 %v2201_v6, %v1316_v9  ;;  %v2248_v49 = vsub.f32 %v2210_v51, %v1316_v9  ;;  %v2250_v50 = vsub.f32 %v1216_v56, %v1316_v9  ;;  %v2252_v52 = vsub.f32 %v1217_v12, %v1316_v9 }
 0x170   : > { %v2254_v2 = vsub.f32 %v1218_v7, %v1316_v9  ;;  %v2256_v37 = vsub.f32 %v1219_v11, %v1316_v9  ;;  %v1327_v53 = vmul.f32 %v2233_v42, %v2156_v21  ;;  %v1328_v63 = vmul.f32 %v2236_v44, %v2167_v34 }
 0x171   : > { %v1329_v6 = vmul.f32 %v2239_v41, %v2179_v32  ;;  %v1330_v51 = vmul.f32 %v2242_v46, %v2188_v62  ;;  %v1331_v56 = vmul.f32 %v2245_v48, %v2197_v13  ;;  %v1332_v45 = vmul.f32 %v2248_v49, %v2206_v29 }
 0x172   : > { %v1337_v61 = vmul.f32 %v1327_v53, %v1327_v53  ;;  %v1338_v30 = vmul.f32 %v1328_v63, %v1328_v63  ;;  %v1333_v32 = vmul.f32 %v2250_v50, %v2216_v47  ;;  %v1334_v13 = vmul.f32 %v2252_v52, %v2222_v58 }
 0x173   : > { %v1339_v54 = vmul.f32 %v1329_v6, %v1329_v6  ;;  %v1340_v55 = vmul.f32 %v1330_v51, %v1330_v51  ;;  %v1341_v12 = vmul.f32 %v1331_v56, %v1331_v56  ;;  %v1342_v39 = vmul.f32 %v1332_v45, %v1332_v45 }
 0x174   : > { %v1347_v21 = vsel %vm1290_vm7, %v1337_v61, 0.0  ;;  %v1348_v34 = vsel %vm1290_vm7, %v1338_v30, 0.0  ;;  %v1335_v35 = vmul.f32 %v2254_v2, %v1273_v5  ;;  %v1343_v10 = vmul.f32 %v1333_v32, %v1333_v32 }
 0x175   : > { %v1349_v57 = vadd.f32 %v1348_v34, %v1347_v21  ;;  %v1350_v62 = vsel %vm1290_vm7, %v1339_v54, 0.0  ;;  %v1352_v60 = vsel %vm1290_vm7, %v1340_v55, 0.0  ;;  %v1354_v0 = vsel %vm1290_vm7, %v1341_v12, 0.0 }
 0x176   : > { %v1336_v25 = vmul.f32 %v2256_v37, %v1278_v26  ;;  %v1344_v47 = vmul.f32 %v1334_v13, %v1334_v13  ;;  %v1356_v3 = vsel %vm1290_vm7, %v1342_v39, 0.0  ;;  %v1345_v4 = vmul.f32 %v1335_v35, %v1335_v35 }
 0x177   : > { %v1351_v59 = vadd.f32 %v1350_v62, %v1349_v57  ;;  %v1358_v7 = vsel %vm1290_vm7, %v1343_v10, 0.0 }
 0x178   : > { %v1346_v14 = vmul.f32 %v1336_v25, %v1336_v25  ;;  %v1360_v16 = vsel %vm1290_vm7, %v1344_v47, 0.0  ;;  %v1362_v5 = vsel %vm1290_vm7, %v1345_v4, 0.0 }
 0x179   : > { %v1353_v29 = vadd.f32 %v1352_v60, %v1351_v59 }
 0x17a   : > { %v1364_v20 = vsel %vm1290_vm7, %v1346_v14, 0.0 }
 0x17b   : > { %v1355_v1 = vadd.f32 %v1354_v0, %v1353_v29 }
 0x17d   : > { %v1357_v8 = vadd.f32 %v1356_v3, %v1355_v1 }
 0x17f   : > { %v1359_v58 = vadd.f32 %v1358_v7, %v1357_v8 }
 0x181   : > { %v1361_v43 = vadd.f32 %v1360_v16, %v1359_v58 }
 0x183   : > { %v1363_v18 = vadd.f32 %v1362_v5, %v1361_v43 }
 0x185   : > { %v1365_v28 = vadd.f32 %v1364_v20, %v1363_v18 }
 0x187   : > { %v1366_v22 = vrot.slane %v1365_v28, 4 }
 0x189   : > { %v1367_v23 = vadd.f32 %v1366_v22, %v1365_v28 }
 0x18b   : > { %v1368_v24 = vrot.slane %v1367_v23, 2 }
 0x18d   : > { %v1369_v11 = vadd.f32 %v1368_v24, %v1367_v23 }
 0x18f   : > { %v1370_v26 = vrot.slane %v1369_v11, 1 }
 0x191   : > { %v1371_v27 = vadd.f32 %v1370_v26, %v1369_v11 }
 0x193   : > { %v1372_v31 = vmul.f32 0.015625, %v1371_v27 }
 0x195   : > { %v1373_v15 = vadd.f32 1e-05, %v1372_v31 }
 0x197   : > { %1764 = vrsqrt.f32 %v1373_v15  ;;  %vm1380_vm9 = vweird.f32 %v1373_v15 }
 0x19d   : > { %v1765_v33 = vpop.eup %1764 }
 0x19e   : > { %v1375_v19 = vmul.f32 %v1765_v33, %v1373_v15  ;;  %vm1381_vm8 = vweird.f32 %v1765_v33 }
 0x19f   : > { %vm1382_vm10 = vmor %vm1380_vm9, %vm1381_vm8 }
 0x1a0   : > { %v1376_v36 = vmul.f32 %v1765_v33, %v1375_v19 }
 0x1a2   : > { %v1377_v17 = vmul.f32 0.5, %v1376_v36 }
 0x1a4   : > { %v1378_v38 = vsub.f32 1.5, %v1377_v17 }
 0x1a6   : > { %v1379_v40 = vmul.f32 %v1765_v33, %v1378_v38 }
 0x1a8   : > { %v1383_v9 = vsel %vm1382_vm10, %v1765_v33, %v1379_v40 }
 0x1a9   : > { %v1384_v53 = vmul.f32 %v1383_v9, %v2233_v42  ;;  %v1385_v63 = vmul.f32 %v1383_v9, %v2236_v44  ;;  %v1386_v6 = vmul.f32 %v1383_v9, %v2239_v41  ;;  %v1387_v51 = vmul.f32 %v1383_v9, %v2242_v46 }
 0x1aa   : > { %v1388_v56 = vmul.f32 %v1383_v9, %v2245_v48  ;;  %v1389_v61 = vmul.f32 %v1383_v9, %v2248_v49  ;;  %v1390_v30 = vmul.f32 %v1383_v9, %v2250_v50  ;;  %v1391_v54 = vmul.f32 %v1383_v9, %v2252_v52 }
 0x1ab   : > { %v1392_v45 = vmul.f32 %v1383_v9, %v2254_v2  ;;  %v1393_v55 = vmul.f32 %v1383_v9, %v2256_v37  ;;  %vm1394_vm11 = vcmp.ge.f32.partialorder %v1384_v53, 0.0  ;;  %vm1395_vm13 = vcmp.ge.f32.partialorder %v1385_v63, 0.0 }
 0x1ac   : > { %vm1396_vm14 = vcmp.ge.f32.partialorder %v1386_v6, 0.0  ;;  %vm1397_vm15 = vcmp.ge.f32.partialorder %v1387_v51, 0.0  ;;  %vm1398_vm0 = vcmp.ge.f32.partialorder %v1388_v56, 0.0  ;;  %v1404_v42 = vmul.f32 0.2, %v1384_v53 }
 0x1ad   : > { %v1405_v44 = vmul.f32 0.2, %v1385_v63  ;;  %v1406_v41 = vmul.f32 0.2, %v1386_v6  ;;  %v1407_v46 = vmul.f32 0.2, %v1387_v51 }
 0x1ae   : > { %v1408_v48 = vmul.f32 0.2, %v1388_v56  ;;  %v1409_v49 = vmul.f32 0.2, %v1389_v61  ;;  %vm1399_vm1 = vcmp.ge.f32.partialorder %v1389_v61, 0.0  ;;  %vm1400_vm2 = vcmp.ge.f32.partialorder %v1390_v30, 0.0 }
 0x1af   : > { %v1410_v50 = vmul.f32 0.2, %v1390_v30  ;;  %v1414_v52 = vsel %vm1394_vm11, %v1384_v53, %v1404_v42  ;;  %v1411_v2 = vmul.f32 0.2, %v1391_v54  ;;  %v1415_v37 = vsel %vm1395_vm13, %v1385_v63, %v1405_v44 }
 0x1b0   : > { %v1416_v21 = vsel %vm1396_vm14, %v1386_v6, %v1406_v41  ;;  %v1417_v34 = vsel %vm1397_vm15, %v1387_v51, %v1407_v46  ;;  %vm1401_vm3 = vcmp.ge.f32.partialorder %v1391_v54, 0.0  ;;  %vm1402_vm4 = vcmp.ge.f32.partialorder %v1392_v45, 0.0 }
 0x1b1   : > { %v1412_v57 = vmul.f32 0.2, %v1392_v45  ;;  %v1418_v32 = vsel %vm1398_vm0, %v1388_v56, %v1408_v48  ;;  %v1413_v12 = vmul.f32 0.2, %v1393_v55  ;;  %v1419_v62 = vsel %vm1399_vm1, %v1389_v61, %v1409_v49 }
 0x1b2   : > { %v1424_v59 = vpack.c.bf16 %v1414_v52, %v1414_v52  ;;  %v1425_v13 = vpack.c.bf16 %v1415_v37, %v1415_v37  ;;  %vm1403_vm5 = vcmp.ge.f32.partialorder %v1393_v55, 0.0  ;;  %v1420_v39 = vsel %vm1400_vm2, %v1390_v30, %v1410_v50 }
 0x1b3   : > { %v1426_v60 = vpack.c.bf16 %v1416_v21, %v1416_v21  ;;  %v1427_v29 = vpack.c.bf16 %v1417_v34, %v1417_v34  ;;  %v1421_v35 = vsel %vm1401_vm3, %v1391_v54, %v1411_v2  ;;  %v1428_v10 = vpack.c.bf16 %v1418_v32, %v1418_v32 }
 0x1b4   : > { %1435 = vst.msk [vmem:[%s2301_s8] sm:$0xf] %vm1434_vm12, %v1424_v59  ;;  %v1422_v0 = vsel %vm1402_vm4, %v1392_v45, %v1412_v57  ;;  %v1429_v1 = vpack.c.bf16 %v1419_v62, %v1419_v62  ;;  %v1423_v25 = vsel %vm1403_vm5, %v1393_v55, %v1413_v12  ;;  %v1430_v47 = vpack.c.bf16 %v1420_v39, %v1420_v39 }
 0x1b5   : > { %1436 = vst.msk [vmem:[%s2301_s8 + $0x4] sm:$0xf] %vm1434_vm12, %v1425_v13  ;;  %v1431_v3 = vpack.c.bf16 %v1421_v35, %v1421_v35  ;;  %v1432_v8 = vpack.c.bf16 %v1422_v0, %v1422_v0  ;;  %v1433_v4 = vpack.c.bf16 %v1423_v25, %v1423_v25 }
 0x1b6   : > { %1437 = vst.msk [vmem:[%s2301_s8 + $0x8] sm:$0xf] %vm1434_vm12, %v1426_v60 }
 0x1b7   : > { %1438 = vst.msk [vmem:[%s2301_s8 + $0xc] sm:$0xf] %vm1434_vm12, %v1427_v29 }
 0x1b8   : > { %1439 = vst.msk [vmem:[%s2301_s8 + $0x10] sm:$0xf] %vm1434_vm12, %v1428_v10 }
 0x1b9   : > { %1440 = vst.msk [vmem:[%s2301_s8 + $0x14] sm:$0xf] %vm1434_vm12, %v1429_v1 }
 0x1ba   : > { %1441 = vst.msk [vmem:[%s2301_s8 + $0x18] sm:$0xf] %vm1434_vm12, %v1430_v47 }
 0x1bb   : > { %1442 = vst.msk [vmem:[%s2301_s8 + $0x1c] sm:$0xf] %vm1434_vm12, %v1431_v3 }
 0x1bc   : > { %1443 = vst.msk [vmem:[%s2301_s8 + $0x20] sm:$0xf] %vm1434_vm12, %v1432_v8 }
 0x1bd   : > { %1444 = vst.msk [vmem:[%s2301_s8 + $0x24] sm:$0xf] %vm1434_vm12, %v1433_v4 }
 0x1be PF: > { %s14_s15 = sadd.s32 1, %s1772_s15  }
 0x1bf   : > { %p11_p4 = scmp.ge.s32.totalorder %s14_s15, 4  }
 0x1c1   :  { %13 = sbr.rel (!%p11_p4) target bundleno = 1 (0x1), region = 74 }

// kernel: discriminator_forward.10
= control target key start
LH: loop header
LB: loop body
LE: loop exit
PB: predicated region body
PF: predicated region fallthrough
CT: control target
= control target key end

     0   :  { %s890_s12 = smov 0   ;;  %s1038_s0 = inlined_call_operand.vmem [shape: bf16[2,16,576], index: 0, kind: input, shape index: {}]   ;;  %s1039_s1 = inlined_call_operand.vmem [shape: bf16[576,64], index: 1, kind: input, shape index: {}]   ;;  %s1040_s2 = inlined_call_operand.vmem [shape: f32[1,64], index: 2, kind: input, shape index: {}]   ;;  %s1041_s3 = inlined_call_operand.vmem [shape: bf16[2,16,64], index: 3, kind: output, shape index: {}]  }
   0x1 LB: > { %s635_s13 = sadd.s32 4294967295, %s868_s12   ;;  %p639_p0 = scmp.ge.s32.totalorder %s868_s12, 1  ;;  %s868_s12 = sphi %s890_s12, %s13_s12  }
   0x2   : > { %p137_p1 = scmp.lt.s32.totalorder %s868_s12, 3 }
   0x4   : > { %p138_p2 = pnand %p639_p0, %p137_p1 }
   0x5   : > { %p161_p3 = scmp.lt.s32.totalorder (!%p138_p2), %s635_s13, 1 }
   0x6   : > { %141 = sbr.rel (%p138_p2) target bundleno = 201 (0xc9), region = 32 }
   0xb   : > { %v823_v0 = vld [vmem:[%s1039_s1 + $0x38] sm:$0xff]  ;;  %v822_v4 = vld [vmem:[%s1039_s1 + $0x30] sm:$0xff]  ;;  %v821_v8 = vld [vmem:[%s1039_s1 + $0x28] sm:$0xff]  ;;  %s1043_s13 = smov (!%p161_p3, %s635_s13), 1  ;;  %vm495_vm0 = vcmask 523264   ;;  %vm577_vm2 = vcmask 519168  }
   0xc   : > { %v839_v1 = vld [vmem:[%s1039_s1 + $0xb8] sm:$0xff]  ;;  %499 = vmatpush.bf16.msra.mxu0 %v823_v0  ;;  %v838_v5 = vld [vmem:[%s1039_s1 + $0xb0] sm:$0xff]  ;;  %v837_v9 = vld [vmem:[%s1039_s1 + $0xa8] sm:$0xff]  ;;  %s852_s6 = smul.u32 40, %s1043_s13  ;;  %s810_s17 = sshll.u32 %s1043_s13, 3 }
   0xd   : > { %v847_v2 = vld [vmem:[%s1039_s1 + $0xf8] sm:$0xff]  ;;  %527 = vmatpush.bf16.msra.mxu2 %v839_v1  ;;  %v846_v6 = vld [vmem:[%s1039_s1 + $0xf0] sm:$0xff]  ;;  %v845_v10 = vld [vmem:[%s1039_s1 + $0xe8] sm:$0xff]  ;;  %s170_s20 = scalar_lea.vmem %s1041_s3, %s810_s17 }
   0xe   : > { %v831_v3 = vld [vmem:[%s1039_s1 + $0x78] sm:$0xff]  ;;  %541 = vmatpush.bf16.msra.mxu3 %v847_v2  ;;  %v830_v7 = vld [vmem:[%s1039_s1 + $0x70] sm:$0xff]  ;;  %v829_v11 = vld [vmem:[%s1039_s1 + $0x68] sm:$0xff]  ;;  %s986_s19 = scalar_lea.vmem %s1038_s0, %s852_s6 }
   0xf   : > { %513 = vmatpush.bf16.msra.mxu1 %v831_v3  ;;  %v820_v12 = vld [vmem:[%s1039_s1 + $0x20] sm:$0xff]  ;;  %v819_v16 = vld [vmem:[%s1039_s1 + $0x18] sm:$0xff]  ;;  %v818_v20 = vld [vmem:[%s1039_s1 + $0x10] sm:$0xff] }
  0x10   : > { %500 = vmatpush.bf16.msra.mxu0 %v822_v4  ;;  %v836_v13 = vld [vmem:[%s1039_s1 + $0xa0] sm:$0xff]  ;;  %v835_v17 = vld [vmem:[%s1039_s1 + $0x98] sm:$0xff]  ;;  %v834_v21 = vld [vmem:[%s1039_s1 + $0x90] sm:$0xff] }
  0x11   : > { %528 = vmatpush.bf16.msra.mxu2 %v838_v5  ;;  %v844_v14 = vld [vmem:[%s1039_s1 + $0xe0] sm:$0xff]  ;;  %v843_v18 = vld [vmem:[%s1039_s1 + $0xd8] sm:$0xff]  ;;  %v842_v22 = vld [vmem:[%s1039_s1 + $0xd0] sm:$0xff] }
  0x12   : > { %542 = vmatpush.bf16.msra.mxu3 %v846_v6  ;;  %v828_v15 = vld [vmem:[%s1039_s1 + $0x60] sm:$0xff]  ;;  %v827_v19 = vld [vmem:[%s1039_s1 + $0x58] sm:$0xff]  ;;  %v826_v23 = vld [vmem:[%s1039_s1 + $0x50] sm:$0xff] }
  0x13   : > { %514 = vmatpush.bf16.msra.mxu1 %v830_v7  ;;  %v817_v24 = vld [vmem:[%s1039_s1 + $0x8] sm:$0xff]  ;;  %v816_v28 = vld [vmem:[%s1039_s1] sm:$0xff]  ;;  %v813_v33 = vld [vmem:[%s986_s19 + $0x10] sm:$0xf0] }
  0x14   : > { %501 = vmatpush.bf16.msra.mxu0 %v821_v8  ;;  %v833_v25 = vld [vmem:[%s1039_s1 + $0x88] sm:$0xff]  ;;  %v832_v29 = vld [vmem:[%s1039_s1 + $0x80] sm:$0xff]  ;;  %v814_v35 = vld [vmem:[%s986_s19 + $0x18] sm:$0xf0] }
  0x15   : > { %529 = vmatpush.bf16.msra.mxu2 %v837_v9  ;;  %v841_v26 = vld [vmem:[%s1039_s1 + $0xc8] sm:$0xff]  ;;  %v840_v30 = vld [vmem:[%s1039_s1 + $0xc0] sm:$0xff]  ;;  %v647_v39 = vld [vmem:[%s986_s19 + $0x14] sm:$0xf0] }
  0x16   : > { %543 = vmatpush.bf16.msra.mxu3 %v845_v10  ;;  %v825_v27 = vld [vmem:[%s1039_s1 + $0x48] sm:$0xff]  ;;  %v824_v31 = vld [vmem:[%s1039_s1 + $0x40] sm:$0xff]  ;;  %v851_v40 = vld [vmem:[%s1039_s1 + $0x118] sm:$0xff] }
  0x17   : > { %515 = vmatpush.bf16.msra.mxu1 %v829_v11  ;;  %v645_v32 = vld [vmem:[%s986_s19] sm:$0xf]  ;;  %v653_v34 = vld [vmem:[%s986_s19 + $0x8] sm:$0xf]  ;;  %v812_v36 = vld [vmem:[%s986_s19 + $0xc] sm:$0xf] }
  0x18   : > { %502 = vmatpush.bf16.msra.mxu0 %v820_v12  ;;  %v655_v37 = vld [vmem:[%s986_s19 + $0x1c] sm:$0xf0]  ;;  %v811_v38 = vld [vmem:[%s986_s19 + $0x4] sm:$0xf]  ;;  %v646_v41 = vor.u32 %v813_v33, %v645_v32  ;;  %v654_v42 = vor.u32 %v814_v35, %v653_v34  ;;  %v850_v45 = vld [vmem:[%s1039_s1 + $0x110] sm:$0xff] }
  0x19   : > { %530 = vmatpush.bf16.msra.mxu2 %v836_v13  ;;  %v658_v43 = vor.u32 %v812_v36, %v655_v37  ;;  %v650_v44 = vor.u32 %v811_v38, %v647_v39  ;;  %v849_v46 = vld [vmem:[%s1039_s1 + $0x108] sm:$0xff]  ;;  %v848_v47 = vld [vmem:[%s1039_s1 + $0x100] sm:$0xff]  ;;  %v661_v48 = vld [vmem:[%s986_s19 + $0x10] sm:$0xf] }
  0x1a   : > { %544 = vmatpush.bf16.msra.mxu3 %v844_v14  ;;  %v815_v49 = vld [vmem:[%s986_s19 + $0x20] sm:$0xf0]  ;;  %v861_v52 = vld [vmem:[%s1040_s2] ss:$0 sm:$0xff] }
  0x1b   : > { %516 = vmatpush.bf16.msra.mxu1 %v828_v15  ;;  %v662_v50 = vor.u32 %v815_v49, %v661_v48 }
  0x1c   : > { %503 = vmatpush.bf16.msra.mxu0 %v819_v16 }
  0x1d   : > { %531 = vmatpush.bf16.msra.mxu2 %v835_v17 }
  0x1e   : > { %545 = vmatpush.bf16.msra.mxu3 %v843_v18 }
  0x1f   : > { %517 = vmatpush.bf16.msra.mxu1 %v827_v19 }
  0x20   : > { %504 = vmatpush.bf16.msra.mxu0 %v818_v20 }
  0x21   : > { %532 = vmatpush.bf16.msra.mxu2 %v834_v21 }
  0x22   : > { %546 = vmatpush.bf16.msra.mxu3 %v842_v22 }
  0x23   : > { %518 = vmatpush.bf16.msra.mxu1 %v826_v23 }
  0x24   : > { %505 = vmatpush.bf16.msra.mxu0 %v817_v24 }
  0x25   : > { %533 = vmatpush.bf16.msra.mxu2 %v833_v25 }
  0x26   : > { %547 = vmatpush.bf16.msra.mxu3 %v841_v26 }
  0x27   : > { %519 = vmatpush.bf16.msra.mxu1 %v825_v27 }
  0x28   : > { %506 = vmatpush.bf16.msra.mxu0 %v816_v28 }
  0x29   : > { %534 = vmatpush.bf16.msra.mxu2 %v832_v29 }
  0x2a   : > { %548 = vmatpush.bf16.msra.mxu3 %v840_v30 }
  0x2b   : > { %520 = vmatpush.bf16.msra.mxu1 %v824_v31  ;;  %507 = vmatmul.bf16.vlgmr.msra.gmra.mxu0 %v646_v41 }
  0x2c   : > { %559 = vmatpush.bf16.msrb.mxu0 %v851_v40  ;;  %535 = vmatmul.bf16.vlgmr.msra.gmra.mxu2 %v654_v42 }
  0x2d   : > { %549 = vmatmul.bf16.vlgmr.msra.gmra.mxu3 %v658_v43 }
  0x2e   : > { %521 = vmatmul.bf16.vlgmr.msra.gmra.mxu1 %v650_v44 }
  0x30   : > { %560 = vmatpush.bf16.msrb.mxu0 %v850_v45 }
  0x34   : > { %561 = vmatpush.bf16.msrb.mxu0 %v849_v46 }
  0x38   : > { %562 = vmatpush.bf16.msrb.mxu0 %v848_v47 }
  0x3b   : > { %807 = vmatmul.msk.bf16.vlgmr.msrb.gmra.mxu0 %vm495_vm0, %v662_v50 }
  0xa8   : > { %v508_v51 = vpop.f32.mrf.mxu0 }
  0xa9   : > { %v509_v54 = vadd.f32 %v861_v52, %v508_v51 }
  0xab   : > { %v522_v53 = vpop.f32.mrf.mxu1 }
  0xac   : > { %v523_v57 = vadd.f32 %v522_v53, %v509_v54 }
  0xaf   : > { %v536_v55 = vpop.f32.mrf.mxu2 }
  0xb0   : > { %v510_v56 = vpop.f32.mrf.mxu0  ;;  %v537_v58 = vadd.f32 %v536_v55, %v523_v57  ;;  %v550_v59 = vpop.f32.mrf.mxu3 }
  0xb1   : > { %v511_v60 = vadd.f32 %v861_v52, %v510_v56 }
  0xb2   : > { %v551_v62 = vadd.f32 %v550_v59, %v537_v58 }
  0xb3   : > { %v524_v61 = vpop.f32.mrf.mxu1 }
  0xb4   : > { %v525_v1 = vadd.f32 %v524_v61, %v511_v60 }
  0xb7   : > { %v538_v63 = vpop.f32.mrf.mxu2 }
  0xb8   : > { %v564_v0 = vpop.f32.mrf.mxu0  ;;  %v539_v3 = vadd.f32 %v538_v63, %v525_v1  ;;  %v552_v6 = vpop.f32.mrf.mxu3 }
  0xb9   : > { %v565_v2 = vadd.f32 %v564_v0, %v551_v62 }
  0xba   : > { %v553_v8 = vadd.f32 %v552_v6, %v539_v3 }
  0xbb   : > { %vm569_vm1 = vcmp.ge.f32.partialorder %v565_v2, 0.0  ;;  %v571_v4 = vmul.f32 0.2, %v565_v2 }
  0xbd   : > { %v573_v5 = vsel %vm569_vm1, %v565_v2, %v571_v4 }
  0xbe   : > { %v575_v7 = vpack.c.bf16 %v573_v5, %v573_v5 }
  0xc0   : > { %578 = vst.msk [vmem:[%s170_s20] sm:$0xf] %vm577_vm2, %v575_v7  ;;  %v566_v9 = vpop.f32.mrf.mxu0 }
  0xc1   : > { %v567_v10 = vadd.f32 %v566_v9, %v553_v8 }
  0xc3   : > { %vm570_vm3 = vcmp.ge.f32.partialorder %v567_v10, 0.0  ;;  %v572_v11 = vmul.f32 0.2, %v567_v10 }
  0xc5   : > { %v574_v12 = vsel %vm570_vm3, %v567_v10, %v572_v11 }
  0xc6   : > { %v576_v13 = vpack.c.bf16 %v574_v12, %v574_v12 }
  0xc8   : > { %579 = vst.msk [vmem:[%s170_s20 + $0x4] sm:$0xf] %vm577_vm2, %v576_v13 }
  0xc9 PF: > { %s13_s12 = sadd.s32 1, %s868_s12  }
  0xca   : > { %p10_p4 = scmp.ge.s32.totalorder %s13_s12, 4  }
  0xcc   :  { %12 = sbr.rel (!%p10_p4) target bundleno = 1 (0x1), region = 62 }

// kernel: discriminator_forward.11
= control target key start
LH: loop header
LB: loop body
LE: loop exit
PB: predicated region body
PF: predicated region fallthrough
CT: control target
= control target key end

     0   :  { %s1332_s15 = smov 0   ;;  %s1554_s0 = inlined_call_operand.vmem [shape: bf16[2,42,64], index: 0, kind: input, shape index: {}]   ;;  %s1555_s1 = inlined_call_operand.vmem [shape: bf16[9,64,128], index: 1, kind: input, shape index: {}]   ;;  %s1556_s2 = inlined_call_operand.vmem [shape: f32[1,128], index: 2, kind: input, shape index: {}]   ;;  %s1557_s3 = inlined_call_operand.vmem [shape: f32[24,1], index: 3, kind: input, shape index: {}]   ;;  %s1558_s4 = inlined_call_operand.vmem [shape: bf16[2,24,128], index: 4, kind: output, shape index: {}]  }
   0x1 LB: > { %s993_s16 = sadd.s32 4294967295, %s1304_s15   ;;  %p997_p0 = scmp.ge.s32.totalorder %s1304_s15, 1  ;;  %s1304_s15 = sphi %s1332_s15, %s14_s15  }
   0x2   : > { %p162_p1 = scmp.lt.s32.totalorder %s1304_s15, 3 }
   0x4   : > { %p163_p2 = pnand %p997_p0, %p162_p1 }
   0x5   : > { %p188_p3 = scmp.lt.s32.totalorder (!%p163_p2), %s993_s16, 1 }
   0x6   : > { %166 = sbr.rel (%p163_p2) target bundleno = 300 (0x12c), region = 36 }
   0xb   : > { %v1235_v0 = vld [vmem:[%s1555_s1 + $0x38] sm:$0xff]  ;;  %v1234_v3 = vld [vmem:[%s1555_s1 + $0x30] sm:$0xff]  ;;  %s1560_s16 = smov (!%p188_p3, %s993_s16), 1  ;;  %v1233_v6 = vld [vmem:[%s1555_s1 + $0x28] sm:$0xff]  ;;  %vm356_vm0 = vcmask 1046528   ;;  %vm270_vm2 = vcmask 523264  }
   0xc   : > { %v1239_v1 = vld [vmem:[%s1555_s1 + $0x58] sm:$0xff]  ;;  %281 = vmatpush.bf16.msra.mxu0 %v1235_v0  ;;  %1278 = vmatpush.bf16.msra.mxu1 %v1235_v0  ;;  %v1238_v4 = vld [vmem:[%s1555_s1 + $0x50] sm:$0xff]  ;;  %s1282_s29 = smul.u32 24, %s1560_s16  ;;  %v1237_v7 = vld [vmem:[%s1555_s1 + $0x48] sm:$0xff]  ;;  %vm230_vm1 = vsmask.f32 7424 }
   0xd   : > { %v1243_v2 = vld [vmem:[%s1555_s1 + $0x78] sm:$0xff]  ;;  %394 = vmatpush.bf16.msra.mxu2 %v1239_v1  ;;  %v1242_v5 = vld [vmem:[%s1555_s1 + $0x70] sm:$0xff]  ;;  %v1241_v8 = vld [vmem:[%s1555_s1 + $0x68] sm:$0xff]  ;;  %vm428_vm3 = vcmask 1044480   ;;  %vm496_vm4 = vsmask.f32 4352 }
   0xe   : > { %466 = vmatpush.bf16.msra.mxu3 %v1243_v2  ;;  %s1373_s12 = scalar_lea.vmem %s1554_s0, %s1282_s29  ;;  %v1232_v22 = vld [vmem:[%s1555_s1 + $0x20] sm:$0xff]  ;;  %v1231_v27 = vld [vmem:[%s1555_s1 + $0x18] sm:$0xff]  ;;  %v1230_v42 = vld [vmem:[%s1555_s1 + $0x10] sm:$0xff]  ;;  %vm650_vm5 = vcmask 1045504   ;;  %vm718_vm6 = vsmask.f32 5376 }
   0xf   : > { %v1376_v9 = vld [vmem:[%s1373_s12] sm:$0xff]   ;;  %v1379_v10 = vld [vmem:[%s1373_s12 + $0x8] sm:$0xff]   ;;  %v1247_v34 = vld [vmem:[%s1555_s1 + $0x98] sm:$0xff]  ;;  %s1283_s30 = smul.u32 12, %s1560_s16 }
  0x10   : > { %282 = vmatpush.bf16.msra.mxu0 %v1234_v3  ;;  %1279 = vmatpush.bf16.msra.mxu1 %v1234_v3  ;;  %v210_v11 = vld [vmem:[%s1373_s12 + $0xc] sm:$0x1]  ;;  %v1383_v12 = vunpack.c.l.b16 %v1379_v10  ;;  %v232_v14 = vshrl.u32 %v1376_v9, 16  ;;  %v234_v15 = vshll.u32 %v1376_v9, 16  ;;  %v343_v16 = vld [vmem:[%s1373_s12] sm:$0xe]  ;;  %v1390_v18 = vunpack.c.h.b16 %v1376_v9 }
  0x11   : > { %395 = vmatpush.bf16.msra.mxu2 %v1238_v4  ;;  %v227_v13 = vunpack.c.l.b16 %v210_v11  ;;  %v411_v17 = vld [vmem:[%s1373_s12] sm:$0x8]  ;;  %v354_v19 = vunpack.c.l.b16 %v343_v16  ;;  %v412_v20 = vld [vmem:[%s1373_s12 + $0xc] sm:$0x7]  ;;  %v494_v26 = vunpack.c.h.b16 %v1379_v10  ;;  %v1255_v40 = vld [vmem:[%s1555_s1 + $0xd8] sm:$0xff]  ;;  %v506_v53 = vshrl.u32 %v1379_v10, 16  ;;  %s197_s7 = scalar_lea.vmem %s1558_s4, %s1283_s30 }
  0x12   : > { %467 = vmatpush.bf16.msra.mxu3 %v1242_v5  ;;  %v424_v21 = vunpack.c.l.b16 %v411_v17  ;;  %v236_v24 = vrot.slane %v234_v15, 1  ;;  %v425_v25 = vunpack.c.l.b16 %v412_v20  ;;  %v1236_v28 = vld [vmem:[%s1555_s1 + $0x40] sm:$0xff]  ;;  %v1246_v47 = vld [vmem:[%s1555_s1 + $0x90] sm:$0xff]  ;;  %v1259_v48 = vld [vmem:[%s1555_s1 + $0xf8] sm:$0xff]  ;;  %v509_v54 = vshll.u32 %v1379_v10, 16 }
  0x13   : > { %v1397_v23 = vpack.c.b16 %v227_v13, %v1383_v12  ;;  %v355_v29 = vpack.c.b16 %v1390_v18, %v354_v19  ;;  %v1240_v35 = vld [vmem:[%s1555_s1 + $0x60] sm:$0xff]  ;;  %v1254_v50 = vld [vmem:[%s1555_s1 + $0xd0] sm:$0xff]  ;;  %v1229_v55 = vld [vmem:[%s1555_s1 + $0x8] sm:$0xff]  ;;  %v508_v61 = vrot.slane %v506_v53, 3 }
  0x14   : > { %283 = vmatpush.bf16.msra.mxu0 %v1233_v6  ;;  %1280 = vmatpush.bf16.msra.mxu1 %v1233_v6  ;;  %v426_v30 = vpack.c.b16 %v1390_v18, %v424_v21  ;;  %v237_v31 = vor.u32 %v236_v24, %v232_v14  ;;  %v1418_v38 = vpack.c.b16 %v425_v25, %v1383_v12  ;;  %v1245_v56 = vld [vmem:[%s1555_s1 + $0x88] sm:$0xff]  ;;  %v1258_v57 = vld [vmem:[%s1555_s1 + $0xf0] sm:$0xff]  ;;  %v511_v62 = vrot.slane %v509_v54, 4  ;;  %v1228_v63 = vld [vmem:[%s1555_s1] sm:$0xff] }
  0x15   : > { %396 = vmatpush.bf16.msra.mxu2 %v1237_v7  ;;  %v239_v32 = vshll.u32 %v1397_v23, 16  ;;  %v243_v33 = vshrl.u32 %v1397_v23, 16  ;;  %v358_v36 = vrot.slane %v1397_v23, 1  ;;  %v357_v37 = vrot.slane %v355_v29, 1  ;;  %v1253_v58 = vld [vmem:[%s1555_s1 + $0xc8] sm:$0xff]  ;;  %v1244_v0 = vld [vmem:[%s1555_s1 + $0x80] sm:$0xff] }
  0x16   : > { %468 = vmatpush.bf16.msra.mxu3 %v1241_v8  ;;  %v429_v39 = vrot.slane %v426_v30, 3  ;;  %v430_v44 = vrot.slane %v1418_v38, 3  ;;  %v498_v51 = vshrl.u32 %v426_v30, 16  ;;  %v501_v52 = vshll.u32 %v426_v30, 16  ;;  %v1251_v1 = vld [vmem:[%s1555_s1 + $0xb8] sm:$0xff]  ;;  %v1257_v3 = vld [vmem:[%s1555_s1 + $0xe8] sm:$0xff] }
  0x17   : > { %v241_v41 = vrot.slane %v239_v32, 1  ;;  %v359_v43 = vsel %vm356_vm0, %v357_v37, %v358_v36  ;;  %v1263_v2 = vld [vmem:[%s1555_s1 + $0x118] sm:$0xff]  ;;  %v627_v4 = vld [vmem:[%s1373_s12 + $0x4] sm:$0xc]  ;;  %v1477_v5 = vld [vmem:[%s1373_s12 + $0x8] sm:$0xff]   ;;  %v512_v8 = vor.u32 %v511_v62, %v508_v61 }
  0x18   : > { %284 = vmatpush.bf16.msra.mxu0 %v1232_v22  ;;  %1281 = vmatpush.bf16.msra.mxu1 %v1232_v22  ;;  %v431_v49 = vsel %vm428_vm3, %v429_v39, %v430_v44  ;;  %v500_v59 = vrot.slane %v498_v51, 3  ;;  %v503_v60 = vrot.slane %v501_v52, 4  ;;  %v705_v6 = vld [vmem:[%s1373_s12 + $0x10] sm:$0x7]  ;;  %v1252_v11 = vld [vmem:[%s1555_s1 + $0xc0] sm:$0xff]  ;;  %v1270_v14 = vunpack.c.l.b16 %v1477_v5  ;;  %v1249_v22 = vld [vmem:[%s1555_s1 + $0xa8] sm:$0xff] }
  0x19   : > { %397 = vmatpush.bf16.msra.mxu2 %v1236_v28  ;;  %v242_v45 = vsel %vm230_vm1, %v237_v31, %v241_v41  ;;  %v245_v46 = vor.u32 %v243_v33, %v241_v41  ;;  %v1250_v13 = vld [vmem:[%s1555_s1 + $0xb0] sm:$0xff]  ;;  %v1271_v15 = vunpack.c.h.b16 %v1477_v5  ;;  %v644_v16 = vunpack.c.l.b16 %v627_v4  ;;  %v1256_v19 = vld [vmem:[%s1555_s1 + $0xe0] sm:$0xff]  ;;  %v1261_v29 = vld [vmem:[%s1555_s1 + $0x108] sm:$0xff] }
  0x1a   : > { %469 = vmatpush.bf16.msra.mxu3 %v1240_v35  ;;  %v504_v7 = vor.u32 %v503_v60, %v500_v59  ;;  %v716_v17 = vunpack.c.l.b16 %v705_v6  ;;  %v1262_v21 = vld [vmem:[%s1555_s1 + $0x110] sm:$0xff]  ;;  %v862_v52 = vld [vmem:[%s1557_s3 + $0x8] sm:$0xff] }
  0x1b   : > { %1024 = vmatmul.msk.bf16.vlgmr.msra.gmra.mxu0 %vm270_vm2, %v242_v45  ;;  %1025 = vmatmul.msk.bf16.vlgmr.msra.gmra.mxu1 %vm270_vm2, %v245_v46  ;;  %v630_v24 = vld [vmem:[%s1373_s12 + $0x10] sm:$0x3]  ;;  %v648_v25 = vpack.c.b16 %v1270_v14, %v644_v16  ;;  %v787_v45 = vld [vmem:[%s1373_s12 + $0x4] sm:$0x8] }
  0x1c   : > { %329 = vmatpush.bf16.msrb.mxu1 %v1231_v27  ;;  %548 = vmatpush.bf16.msrb.mxu0 %v1247_v34  ;;  %v513_v20 = vsel %vm496_vm4, %v504_v7, %v512_v8  ;;  %v717_v27 = vpack.c.b16 %v716_v17, %v1271_v15  ;;  %v647_v28 = vunpack.c.l.b16 %v630_v24  ;;  %v1260_v34 = vld [vmem:[%s1555_s1 + $0x100] sm:$0xff] }
  0x1d   : > { %688 = vmatpush.bf16.msrb.mxu2 %v1255_v40  ;;  %1094 = vmatmul.msk.bf16.vlgmr.msra.gmra.mxu3 %vm270_vm2, %v431_v49  ;;  %v720_v30 = vshrl.u32 %v648_v25, 16  ;;  %v723_v31 = vshll.u32 %v648_v25, 16  ;;  %v651_v39 = vrot.slane %v648_v25, 2  ;;  %v863_v49 = vld [vmem:[%s1557_s3 + $0x10] sm:$0xff] }
  0x1e   : > { %1068 = vmatmul.msk.bf16.vlgmr.msra.gmra.mxu2 %vm270_vm2, %v359_v43  ;;  %770 = vmatpush.bf16.msrb.mxu3 %v1259_v48  ;;  %v728_v32 = vshrl.u32 %v717_v27, 16  ;;  %v731_v33 = vshll.u32 %v717_v27, 16  ;;  %v649_v23 = vpack.c.b16 %v647_v28, %v1271_v15  ;;  %v295_v43 = vpack.c.b16 %v1383_v12, %v1383_v12  ;;  %v861_v48 = vld [vmem:[%s1557_s3] sm:$0xff] }
  0x1f   : > { %v722_v35 = vrot.slane %v720_v30, 2  ;;  %v801_v54 = vrot.slane %v717_v27, 3 }
  0x20   : > { %330 = vmatpush.bf16.msrb.mxu1 %v1230_v42  ;;  %549 = vmatpush.bf16.msrb.mxu0 %v1246_v47  ;;  %v730_v37 = vrot.slane %v728_v32, 2  ;;  %v733_v38 = vrot.slane %v731_v33, 3  ;;  %v652_v40 = vrot.slane %v649_v23, 2  ;;  %v798_v47 = vunpack.c.l.b16 %v787_v45 }
  0x21   : > { %689 = vmatpush.bf16.msrb.mxu2 %v1254_v50  ;;  %v1306_v50 = vmov 0  }
  0x22   : > { %771 = vmatpush.bf16.msrb.mxu3 %v1258_v57  ;;  %v734_v42 = vor.u32 %v733_v38, %v730_v37  ;;  %1293 = vset.pattern.permute.xlu0 %v1306_v50  ;;  %v799_v51 = vpack.c.b16 %v1270_v14, %v798_v47  ;;  %v575_v57 = vpack.c.b16 %v494_v26, %v494_v26 }
  0x23   : > { %866 = vperm.xlu0 %1293, %v861_v48   ;;  %1294 = vset.pattern.permute.xlu1 %v1306_v50 }
  0x24   : > { %331 = vmatpush.bf16.msrb.mxu1 %v1229_v55  ;;  %550 = vmatpush.bf16.msrb.mxu0 %v1245_v56  ;;  %v800_v53 = vrot.slane %v799_v51, 3  ;;  %v574_v55 = vpack.c.b16 %v1383_v12, %v1390_v18 }
  0x25   : > { %690 = vmatpush.bf16.msrb.mxu2 %v1253_v58  ;;  %876 = vperm.xlu1 %1294, %v863_v49   ;;  %v1295_v49 = vld [vmem:[%s1556_s2] ss:$0 sm:$0xff] }
  0x26   : > { %772 = vmatpush.bf16.msrb.mxu3 %v1257_v3  ;;  %v802_v56 = vsel %vm428_vm3, %v800_v53, %v801_v54 }
  0x28   : > { %332 = vmatpush.bf16.msrb.mxu1 %v1228_v63  ;;  %551 = vmatpush.bf16.msrb.mxu0 %v1244_v0 }
  0x29   : > { %691 = vmatpush.bf16.msrb.mxu2 %v1252_v11 }
  0x2a   : > { %773 = vmatpush.bf16.msrb.mxu3 %v1256_v19 }
  0x2b   : > { %1120 = vmatmul.msk.bf16.vlgmr.msrb.gmra.mxu0 %vm270_vm2, %v513_v20  ;;  %1042 = vmatmul.msk.bf16.vlgmr.msrb.gmra.mxu1 %vm270_vm2, %v1376_v9  ;;  %v1248_v9 = vld [vmem:[%s1555_s1 + $0xa0] sm:$0xff] }
  0x2c   : > { %610 = vmatpush.bf16.msra.mxu1 %v1251_v1  ;;  %837 = vmatpush.bf16.msra.mxu0 %v1263_v2 }
  0x2d   : > { %1095 = vmatmul.msk.bf16.gmra.mxu3 %vm270_vm2, %v430_v44  ;;  %v653_v44 = vsel %vm650_vm5, %v651_v39, %v652_v40  ;;  %871 = vperm.xlu0 %1293, %v862_v52  }
  0x2e   : > { %1069 = vmatmul.msk.bf16.gmra.mxu2 %vm270_vm2, %v358_v36  ;;  %v725_v36 = vrot.slane %v723_v31, 3 }
  0x30   : > { %611 = vmatpush.bf16.msra.mxu1 %v1250_v13  ;;  %838 = vmatpush.bf16.msra.mxu0 %v1262_v21  ;;  %v726_v41 = vor.u32 %v725_v36, %v722_v35 }
  0x32   : > { %v735_v46 = vsel %vm718_vm6, %v726_v41, %v734_v42 }
  0x34   : > { %612 = vmatpush.bf16.msra.mxu1 %v1249_v22  ;;  %839 = vmatpush.bf16.msra.mxu0 %v1261_v29 }
  0x38   : > { %613 = vmatpush.bf16.msra.mxu1 %v1248_v9  ;;  %840 = vmatpush.bf16.msra.mxu0 %v1260_v34 }
  0x3b   : > { %1121 = vmatmul.msk.bf16.gmra.mxu0 %vm270_vm2, %v512_v8  ;;  %1043 = vmatmul.msk.bf16.gmra.mxu1 %vm270_vm2, %v295_v43 }
  0x3d   : > { %1198 = vmatmul.msk.bf16.vlgmr.msrb.gmra.mxu3 %vm270_vm2, %v735_v46 }
  0x3e   : > { %1172 = vmatmul.msk.bf16.vlgmr.msrb.gmra.mxu2 %vm270_vm2, %v653_v44 }
  0x4b   : > { %1224 = vmatmul.msk.bf16.vlgmr.msra.gmra.mxu0 %vm270_vm2, %v802_v56  ;;  %1146 = vmatmul.msk.bf16.vlgmr.msra.gmra.mxu1 %vm270_vm2, %v574_v55 }
  0x4d   : > { %1199 = vmatmul.msk.bf16.gmra.mxu3 %vm270_vm2, %v734_v42 }
  0x4e   : > { %1173 = vmatmul.msk.bf16.gmra.mxu2 %vm270_vm2, %v652_v40 }
  0x5b   : > { %1225 = vmatmul.msk.bf16.gmra.mxu0 %vm270_vm2, %v801_v54  ;;  %1147 = vmatmul.msk.bf16.gmra.mxu1 %vm270_vm2, %v575_v57 }
  0x95   : > { %v867_v39 = vpop.permute.xlu0 %866 }
  0x98   : > { %v286_v58 = vpop.f32.mrf.mxu0  ;;  %v291_v12 = vpop.f32.mrf.mxu1 }
  0x9f   : > { %v872_v55 = vpop.permute.xlu0 %871 }
  0xa0   : > { %v288_v59 = vpop.f32.mrf.mxu0  ;;  %v471_v60 = vpop.f32.mrf.mxu3 }
  0xa1   : > { %v399_v18 = vpop.f32.mrf.mxu2  ;;  %v293_v61 = vpop.f32.mrf.mxu1 }
  0xa8   : > { %v553_v63 = vpop.f32.mrf.mxu0  ;;  %v473_v0 = vpop.f32.mrf.mxu3 }
  0xa9   : > { %v401_v62 = vpop.f32.mrf.mxu2  ;;  %v334_v1 = vpop.f32.mrf.mxu1 }
  0xaa   : > { %v335_v11 = vadd.f32 %v334_v1, %v286_v58 }
  0xac   : > { %v408_v16 = vadd.f32 %v399_v18, %v335_v11  ;;  %v877_v18 = vpop.permute.xlu1 %876 }
  0xae   : > { %v480_v20 = vadd.f32 %v471_v60, %v408_v16 }
  0xb0   : > { %v555_v3 = vpop.f32.mrf.mxu0  ;;  %v476_v4 = vpop.f32.mrf.mxu3  ;;  %v562_v27 = vadd.f32 %v553_v63, %v480_v20 }
  0xb1   : > { %v404_v2 = vpop.f32.mrf.mxu2  ;;  %v336_v10 = vpop.f32.mrf.mxu1 }
  0xb2   : > { %v337_v17 = vadd.f32 %v336_v10, %v288_v59 }
  0xb4   : > { %v409_v21 = vadd.f32 %v401_v62, %v337_v17 }
  0xb6   : > { %v481_v28 = vadd.f32 %v473_v0, %v409_v21 }
  0xb8   : > { %v558_v26 = vpop.f32.mrf.mxu0  ;;  %v478_v6 = vpop.f32.mrf.mxu3  ;;  %v563_v32 = vadd.f32 %v555_v3, %v481_v28 }
  0xb9   : > { %v406_v5 = vpop.f32.mrf.mxu2  ;;  %v339_v7 = vpop.f32.mrf.mxu1 }
  0xba   : > { %v340_v29 = vadd.f32 %v339_v7, %v291_v12 }
  0xbc   : > { %v410_v33 = vadd.f32 %v404_v2, %v340_v29 }
  0xbe   : > { %v482_v37 = vadd.f32 %v476_v4, %v410_v33 }
  0xc0   : > { %v560_v13 = vpop.f32.mrf.mxu0  ;;  %v775_v14 = vpop.f32.mrf.mxu3  ;;  %v564_v43 = vadd.f32 %v558_v26, %v482_v37 }
  0xc1   : > { %v693_v8 = vpop.f32.mrf.mxu2  ;;  %v341_v15 = vpop.f32.mrf.mxu1 }
  0xc8   : > { %v842_v22 = vpop.f32.mrf.mxu0  ;;  %v777_v24 = vpop.f32.mrf.mxu3 }
  0xc9   : > { %v695_v19 = vpop.f32.mrf.mxu2  ;;  %v615_v25 = vpop.f32.mrf.mxu1 }
  0xca   : > { %v624_v30 = vadd.f32 %v615_v25, %v562_v27 }
  0xcc   : > { %v702_v35 = vadd.f32 %v693_v8, %v624_v30 }
  0xce   : > { %v784_v40 = vadd.f32 %v775_v14, %v702_v35 }
  0xd0   : > { %v844_v9 = vpop.f32.mrf.mxu0  ;;  %v780_v23 = vpop.f32.mrf.mxu3  ;;  %v851_v48 = vadd.f32 %v842_v22, %v784_v40 }
  0xd1   : > { %v698_v31 = vpop.f32.mrf.mxu2  ;;  %v617_v34 = vpop.f32.mrf.mxu1 }
  0xd2   : > { %v625_v36 = vadd.f32 %v617_v34, %v563_v32  ;;  %v858_v53 = vadd.f32 %v1295_v49, %v851_v48 }
  0xd4   : > { %v703_v38 = vadd.f32 %v695_v19, %v625_v36  ;;  %v879_v59 = vmul.f32 %v867_v39, %v858_v53 }
  0xd6   : > { %v785_v41 = vadd.f32 %v777_v24, %v703_v38 }
  0xd8   : > { %v852_v44 = vadd.f32 %v844_v9, %v785_v41  ;;  %v847_v45 = vpop.f32.mrf.mxu0  ;;  %v782_v46 = vpop.f32.mrf.mxu3 }
  0xd9   : > { %v700_v42 = vpop.f32.mrf.mxu2  ;;  %v620_v47 = vpop.f32.mrf.mxu1 }
  0xda   : > { %v626_v50 = vadd.f32 %v620_v47, %v564_v43  ;;  %v859_v51 = vadd.f32 %v1295_v49, %v852_v44 }
  0xdc   : > { %v704_v52 = vadd.f32 %v698_v31, %v626_v50  ;;  %v880_v56 = vmul.f32 %v872_v55, %v859_v51 }
  0xde   : > { %v786_v54 = vadd.f32 %v780_v23, %v704_v52  ;;  %v882_v61 = vadd.f32 %v880_v56, %v879_v59 }
  0xe0   : > { %v853_v57 = vadd.f32 %v847_v45, %v786_v54  ;;  %v849_v58 = vpop.f32.mrf.mxu0 }
  0xe1   : > { %v622_v12 = vpop.f32.mrf.mxu1 }
  0xe2   : > { %v860_v60 = vadd.f32 %v1295_v49, %v853_v57 }
  0xe4   : > { %v881_v62 = vmul.f32 %v877_v18, %v860_v60 }
  0xe6   : > { %v883_v63 = vadd.f32 %v882_v61, %v881_v62 }
  0xe8   : > { %v884_v0 = vrot.slane %v883_v63, 4 }
  0xea   : > { %v885_v1 = vadd.f32 %v884_v0, %v883_v63 }
  0xec   : > { %v886_v2 = vrot.slane %v885_v1, 2 }
  0xee   : > { %v887_v3 = vadd.f32 %v886_v2, %v885_v1 }
  0xf0   : > { %v888_v4 = vrot.slane %v887_v3, 1 }
  0xf2   : > { %v889_v10 = vadd.f32 %v888_v4, %v887_v3 }
  0xf4   : > { %v890_v5 = vmul.f32 0.0625, %v889_v10 }
  0xf6   : > { %v891_v26 = vsub.f32 %v858_v53, %v890_v5  ;;  %v892_v6 = vsub.f32 %v859_v51, %v890_v5  ;;  %v893_v7 = vsub.f32 %v860_v60, %v890_v5 }
  0xf8   : > { %v894_v8 = vmul.f32 %v891_v26, %v867_v39  ;;  %v895_v11 = vmul.f32 %v892_v6, %v872_v55  ;;  %v896_v13 = vmul.f32 %v893_v7, %v877_v18 }
  0xfa   : > { %v897_v14 = vmul.f32 %v894_v8, %v894_v8  ;;  %v898_v15 = vmul.f32 %v895_v11, %v895_v11  ;;  %v899_v16 = vmul.f32 %v896_v13, %v896_v13 }
  0xfc   : > { %v900_v17 = vadd.f32 %v898_v15, %v897_v14 }
  0xfe   : > { %v901_v19 = vadd.f32 %v900_v17, %v899_v16 }
 0x100   : > { %v902_v20 = vrot.slane %v901_v19, 4 }
 0x102   : > { %v903_v21 = vadd.f32 %v902_v20, %v901_v19 }
 0x104   : > { %v904_v22 = vrot.slane %v903_v21, 2 }
 0x106   : > { %v905_v24 = vadd.f32 %v904_v22, %v903_v21 }
 0x108   : > { %v906_v25 = vrot.slane %v905_v24, 1 }
 0x10a   : > { %v907_v27 = vadd.f32 %v906_v25, %v905_v24 }
 0x10c   : > { %v908_v28 = vmul.f32 0.0625, %v907_v27 }
 0x10e   : > { %v909_v29 = vadd.f32 1e-05, %v908_v28 }
 0x110   : > { %1296 = vrsqrt.f32 %v909_v29  ;;  %vm916_vm8 = vweird.f32 %v909_v29 }
 0x116   : > { %v1297_v30 = vpop.eup %1296 }
 0x117   : > { %v911_v31 = vmul.f32 %v1297_v30, %v909_v29  ;;  %vm917_vm7 = vweird.f32 %v1297_v30 }
 0x118   : > { %vm918_vm9 = vmor %vm916_vm8, %vm917_vm7 }
 0x119   : > { %v912_v32 = vmul.f32 %v1297_v30, %v911_v31 }
 0x11b   : > { %v913_v33 = vmul.f32 0.5, %v912_v32 }
 0x11d   : > { %v914_v9 = vsub.f32 1.5, %v913_v33 }
 0x11f   : > { %v915_v23 = vmul.f32 %v1297_v30, %v914_v9 }
 0x121   : > { %v919_v34 = vsel %vm918_vm9, %v1297_v30, %v915_v23 }
 0x122   : > { %v920_v35 = vmul.f32 %v919_v34, %v891_v26  ;;  %v921_v36 = vmul.f32 %v919_v34, %v892_v6  ;;  %v922_v37 = vmul.f32 %v919_v34, %v893_v7 }
 0x124   : > { %vm923_vm10 = vcmp.ge.f32.partialorder %v920_v35, 0.0  ;;  %vm924_vm11 = vcmp.ge.f32.partialorder %v921_v36, 0.0  ;;  %vm925_vm12 = vcmp.ge.f32.partialorder %v922_v37, 0.0  ;;  %v926_v38 = vmul.f32 0.2, %v920_v35 }
 0x125   : > { %v927_v39 = vmul.f32 0.2, %v921_v36  ;;  %v928_v40 = vmul.f32 0.2, %v922_v37 }
 0x126   : > { %v929_v41 = vsel %vm923_vm10, %v920_v35, %v926_v38 }
 0x127   : > { %v930_v42 = vsel %vm924_vm11, %v921_v36, %v927_v39  ;;  %v931_v43 = vsel %vm925_vm12, %v922_v37, %v928_v40 }
 0x128   : > { %v934_v44 = vpack.c.bf16 %v931_v43, %v931_v43  ;;  %v1275_v45 = vpack.c.bf16 %v930_v42, %v929_v41 }
 0x12a   : > { %1276 = vst [vmem:[%s197_s7] sm:$0xff] %v1275_v45  }
 0x12b   : > { %937 = vst [vmem:[%s197_s7 + $0x8] sm:$0xf] %v934_v44 }
 0x12c PF: > { %s14_s15 = sadd.s32 1, %s1304_s15  }
 0x12d   : > { %p11_p4 = scmp.ge.s32.totalorder %s14_s15, 4  }
 0x12f   :  { %13 = sbr.rel (!%p11_p4) target bundleno = 1 (0x1), region = 74 }

// kernel: discriminator_forward.12
= control target key start
LH: loop header
LB: loop body
LE: loop exit
PB: predicated region body
PF: predicated region fallthrough
CT: control target
= control target key end

     0   :  { %s1813_s15 = smov 0   ;;  %s2152_s0 = inlined_call_operand.vmem [shape: bf16[2,42,128], index: 0, kind: input, shape index: {}]   ;;  %s2153_s1 = inlined_call_operand.vmem [shape: bf16[9,128,128], index: 1, kind: input, shape index: {}]   ;;  %s2154_s2 = inlined_call_operand.vmem [shape: f32[1,128], index: 2, kind: input, shape index: {}]   ;;  %s2155_s3 = inlined_call_operand.vmem [shape: f32[24,1], index: 3, kind: input, shape index: {}]   ;;  %s2156_s4 = inlined_call_operand.vmem [shape: bf16[2,24,128], index: 4, kind: output, shape index: {}]  }
   0x1 LB: > { %s1244_s16 = sadd.s32 4294967295, %s1785_s15   ;;  %p1248_p0 = scmp.ge.s32.totalorder %s1785_s15, 1  ;;  %s1785_s15 = sphi %s1813_s15, %s14_s15  }
   0x2   : > { %p162_p1 = scmp.lt.s32.totalorder %s1785_s15, 3 }
   0x4   : > { %p163_p2 = pnand %p1248_p0, %p162_p1 }
   0x5   : > { %p188_p3 = scmp.lt.s32.totalorder (!%p163_p2), %s1244_s16, 1 }
   0x6   : > { %166 = sbr.rel (%p163_p2) target bundleno = 319 (0x13f), region = 36 }
   0xb   : > { %v1684_v0 = vld [vmem:[%s2153_s1 + $0x78] sm:$0xff]  ;;  %v1683_v4 = vld [vmem:[%s2153_s1 + $0x70] sm:$0xff]  ;;  %s2158_s16 = smov (!%p188_p3, %s1244_s16), 1  ;;  %v1682_v8 = vld [vmem:[%s2153_s1 + $0x68] sm:$0xff]  ;;  %vm245_vm0 = vsmask.f32 7424 }
   0xc   : > { %v1676_v1 = vld [vmem:[%s2153_s1 + $0x38] sm:$0xff]  ;;  %311 = vmatpush.bf16.msra.mxu0 %v1684_v0  ;;  %v1675_v5 = vld [vmem:[%s2153_s1 + $0x30] sm:$0xff]  ;;  %s1763_s7 = smul.u32 24, %s2158_s16  ;;  %v1674_v9 = vld [vmem:[%s2153_s1 + $0x28] sm:$0xff]  ;;  %vm419_vm1 = vcmask 1046528   ;;  %vm519_vm2 = vcmask 1044480  }
   0xd   : > { %v1692_v2 = vld [vmem:[%s2153_s1 + $0xb8] sm:$0xff]  ;;  %380 = vmatpush.bf16.msra.mxu1 %v1676_v1  ;;  %v1691_v6 = vld [vmem:[%s2153_s1 + $0xb0] sm:$0xff]  ;;  %v1690_v10 = vld [vmem:[%s2153_s1 + $0xa8] sm:$0xff]  ;;  %vm615_vm3 = vsmask.f32 4352  ;;  %vm825_vm4 = vcmask 1045504  }
   0xe   : > { %v1700_v3 = vld [vmem:[%s2153_s1 + $0xf8] sm:$0xff]  ;;  %473 = vmatpush.bf16.msra.mxu2 %v1692_v2  ;;  %v1699_v7 = vld [vmem:[%s2153_s1 + $0xf0] sm:$0xff]  ;;  %v1698_v11 = vld [vmem:[%s2153_s1 + $0xe8] sm:$0xff]  ;;  %s1863_s20 = scalar_lea.vmem %s2152_s0, %s1763_s7  ;;  %vm921_vm5 = vsmask.f32 5376  ;;  %s1764_s7 = smul.u32 12, %s2158_s16 }
   0xf   : > { %573 = vmatpush.bf16.msra.mxu3 %v1700_v3  ;;  %v1681_v12 = vld [vmem:[%s2153_s1 + $0x60] sm:$0xff]  ;;  %v1878_v16 = vld [vmem:[%s1863_s20 + $0x8] sm:$0xff]   ;;  %v1680_v18 = vld [vmem:[%s2153_s1 + $0x58] sm:$0xff] }
  0x10   : > { %312 = vmatpush.bf16.msra.mxu0 %v1683_v4  ;;  %v1673_v13 = vld [vmem:[%s2153_s1 + $0x20] sm:$0xff]  ;;  %v217_v17 = vld [vmem:[%s1863_s20 + $0xc] sm:$0x1]  ;;  %v1672_v19 = vld [vmem:[%s2153_s1 + $0x18] sm:$0xff]  ;;  %v1888_v20 = vunpack.c.l.b16 %v1878_v16  ;;  %s197_s10 = scalar_lea.vmem %s2156_s4, %s1764_s7 }
  0x11   : > { %381 = vmatpush.bf16.msra.mxu1 %v1675_v5  ;;  %v1689_v14 = vld [vmem:[%s2153_s1 + $0xa0] sm:$0xff]  ;;  %v242_v21 = vunpack.c.l.b16 %v217_v17  ;;  %v1688_v22 = vld [vmem:[%s2153_s1 + $0x98] sm:$0xff]  ;;  %v495_v27 = vld [vmem:[%s1863_s20 + $0xc] sm:$0x7] }
  0x12   : > { %474 = vmatpush.bf16.msra.mxu2 %v1691_v6  ;;  %v1697_v15 = vld [vmem:[%s2153_s1 + $0xe0] sm:$0xff]  ;;  %v1696_v23 = vld [vmem:[%s2153_s1 + $0xd8] sm:$0xff]  ;;  %v1679_v28 = vld [vmem:[%s2153_s1 + $0x50] sm:$0xff]  ;;  %v516_v37 = vunpack.c.l.b16 %v495_v27  ;;  %v329_v27 = vpack.c.b16 %v1888_v20, %v1888_v20 }
  0x13   : > { %574 = vmatpush.bf16.msra.mxu3 %v1699_v7  ;;  %v1897_v24 = vld [vmem:[%s1863_s20] sm:$0xff]   ;;  %v1671_v29 = vld [vmem:[%s2153_s1 + $0x10] sm:$0xff]  ;;  %v1909_v30 = vpack.c.b16 %v242_v21, %v1888_v20  ;;  %v1678_v38 = vld [vmem:[%s2153_s1 + $0x48] sm:$0xff] }
  0x14   : > { %313 = vmatpush.bf16.msra.mxu0 %v1682_v8  ;;  %v398_v25 = vld [vmem:[%s1863_s20] sm:$0xe]  ;;  %v249_v31 = vshll.u32 %v1897_v24, 16  ;;  %v1687_v32 = vld [vmem:[%s2153_s1 + $0x90] sm:$0xff]  ;;  %v1919_v34 = vunpack.c.h.b16 %v1897_v24  ;;  %v1670_v39 = vld [vmem:[%s2153_s1 + $0x8] sm:$0xff]  ;;  %v247_v40 = vshrl.u32 %v1897_v24, 16  ;;  %v1940_v47 = vpack.c.b16 %v516_v37, %v1888_v20 }
  0x15   : > { %382 = vmatpush.bf16.msra.mxu1 %v1674_v9  ;;  %v494_v26 = vld [vmem:[%s1863_s20] sm:$0x8]  ;;  %v1695_v33 = vld [vmem:[%s2153_s1 + $0xd0] sm:$0xff]  ;;  %v417_v35 = vunpack.c.l.b16 %v398_v25  ;;  %v254_v42 = vshll.u32 %v1909_v30, 16  ;;  %v1686_v43 = vld [vmem:[%s2153_s1 + $0x88] sm:$0xff]  ;;  %v421_v55 = vrot.slane %v1909_v30, 1 }
  0x16   : > { %475 = vmatpush.bf16.msra.mxu2 %v1690_v10  ;;  %v515_v36 = vunpack.c.l.b16 %v494_v26  ;;  %v251_v41 = vrot.slane %v249_v31, 1  ;;  %v1694_v44 = vld [vmem:[%s2153_s1 + $0xc8] sm:$0xff]  ;;  %v1677_v48 = vld [vmem:[%s2153_s1 + $0x40] sm:$0xff]  ;;  %v521_v57 = vrot.slane %v1940_v47, 3  ;;  %v1708_v58 = vld [vmem:[%s2153_s1 + $0x138] sm:$0xff] }
  0x17   : > { %575 = vmatpush.bf16.msra.mxu3 %v1698_v11  ;;  %v418_v45 = vpack.c.b16 %v1919_v34, %v417_v35  ;;  %v1669_v49 = vld [vmem:[%s2153_s1] sm:$0xff]  ;;  %v1948_v51 = vrot.slane %v254_v42, 1  ;;  %v1716_v59 = vld [vmem:[%s2153_s1 + $0x178] sm:$0xff]  ;;  %v1707_v1 = vld [vmem:[%s2153_s1 + $0x130] sm:$0xff] }
  0x18   : > { %314 = vmatpush.bf16.msra.mxu0 %v1681_v12  ;;  %v1937_v46 = vpack.c.b16 %v1919_v34, %v515_v36  ;;  %v252_v50 = vor.u32 %v251_v41, %v247_v40  ;;  %v1685_v52 = vld [vmem:[%s2153_s1 + $0x80] sm:$0xff]  ;;  %v1724_v62 = vld [vmem:[%s2153_s1 + $0x1b8] sm:$0xff]  ;;  %v1715_v2 = vld [vmem:[%s2153_s1 + $0x170] sm:$0xff]  ;;  %v628_v40 = vshll.u32 %v1878_v16, 16 }
  0x19   : > { %383 = vmatpush.bf16.msra.mxu1 %v1673_v13  ;;  %v1693_v53 = vld [vmem:[%s2153_s1 + $0xc0] sm:$0xff]  ;;  %v420_v54 = vrot.slane %v418_v45, 1  ;;  %v1732_v0 = vld [vmem:[%s2153_s1 + $0x1f8] sm:$0xff]  ;;  %v1723_v3 = vld [vmem:[%s2153_s1 + $0x1b0] sm:$0xff] }
  0x1a   : > { %476 = vmatpush.bf16.msra.mxu2 %v1689_v14  ;;  %v520_v56 = vrot.slane %v1937_v46, 3  ;;  %v257_v60 = vsel %vm245_vm0, %v252_v50, %v1948_v51  ;;  %v1731_v4 = vld [vmem:[%s2153_s1 + $0x1f0] sm:$0xff]  ;;  %v1706_v5 = vld [vmem:[%s2153_s1 + $0x128] sm:$0xff]  ;;  %v1705_v9 = vld [vmem:[%s2153_s1 + $0x120] sm:$0xff]  ;;  %v258_v14 = vshrl.u32 %v1909_v30, 16  ;;  %v617_v37 = vshrl.u32 %v1937_v46, 16 }
  0x1b   : > { %576 = vmatpush.bf16.msra.mxu3 %v1697_v15  ;;  %v422_v61 = vsel %vm419_vm1, %v420_v54, %v421_v55  ;;  %v1714_v6 = vld [vmem:[%s2153_s1 + $0x168] sm:$0xff]  ;;  %v1713_v10 = vld [vmem:[%s2153_s1 + $0x160] sm:$0xff]  ;;  %v900_v13 = vld [vmem:[%s1863_s20 + $0x10] sm:$0x7]  ;;  %v613_v15 = vunpack.c.h.b16 %v1878_v16 }
  0x1c   : > { %315 = vmatpush.bf16.msra.mxu0 %v1680_v18  ;;  %v522_v63 = vsel %vm519_vm2, %v520_v56, %v521_v57  ;;  %v1722_v7 = vld [vmem:[%s2153_s1 + $0x1a8] sm:$0xff]  ;;  %v794_v11 = vld [vmem:[%s1863_s20 + $0x4] sm:$0xc]  ;;  %v1712_v25 = vld [vmem:[%s2153_s1 + $0x158] sm:$0xff]  ;;  %v260_v26 = vor.u32 %v258_v14, %v1948_v51  ;;  %v1787_v14 = vmov 0  }
  0x1d   : > { %384 = vmatpush.bf16.msra.mxu1 %v1672_v19  ;;  %v1730_v8 = vld [vmem:[%s2153_s1 + $0x1e8] sm:$0xff]  ;;  %v1721_v17 = vld [vmem:[%s2153_s1 + $0x1a0] sm:$0xff]  ;;  %v797_v31 = vld [vmem:[%s1863_s20 + $0x10] sm:$0x3]  ;;  %1774 = vset.pattern.permute.xlu0 %v1787_v14 }
  0x1e   : > { %477 = vmatpush.bf16.msra.mxu2 %v1688_v22  ;;  %v2011_v12 = vld [vmem:[%s1863_s20 + $0x8] sm:$0xff]   ;;  %v1729_v18 = vld [vmem:[%s2153_s1 + $0x1e0] sm:$0xff]  ;;  %v819_v22 = vunpack.c.l.b16 %v794_v11  ;;  %v1703_v35 = vld [vmem:[%s2153_s1 + $0x110] sm:$0xff]  ;;  %v822_v41 = vunpack.c.l.b16 %v797_v31  ;;  %1775 = vset.pattern.permute.xlu1 %v1787_v14 }
  0x1f   : > { %577 = vmatpush.bf16.msra.mxu3 %v1696_v23  ;;  %v1747_v19 = vunpack.c.l.b16 %v2011_v12  ;;  %v1748_v21 = vunpack.c.h.b16 %v2011_v12  ;;  %v919_v23 = vunpack.c.l.b16 %v900_v13  ;;  %v1711_v36 = vld [vmem:[%s2153_s1 + $0x150] sm:$0xff]  ;;  %v1702_v47 = vld [vmem:[%s2153_s1 + $0x108] sm:$0xff] }
  0x20   : > { %316 = vmatpush.bf16.msra.mxu0 %v1679_v28  ;;  %v1720_v28 = vld [vmem:[%s2153_s1 + $0x198] sm:$0xff]  ;;  %v1719_v42 = vld [vmem:[%s2153_s1 + $0x190] sm:$0xff]  ;;  %v1718_v54 = vld [vmem:[%s2153_s1 + $0x188] sm:$0xff] }
  0x21   : > { %385 = vmatpush.bf16.msra.mxu1 %v1671_v29  ;;  %v1728_v29 = vld [vmem:[%s2153_s1 + $0x1d8] sm:$0xff]  ;;  %v1727_v30 = vld [vmem:[%s2153_s1 + $0x1d0] sm:$0xff]  ;;  %v1738_v13 = vld [vmem:[%s2153_s1 + $0x228] sm:$0xff] }
  0x22   : > { %478 = vmatpush.bf16.msra.mxu2 %v1687_v32  ;;  %v2042_v32 = vpack.c.b16 %v1747_v19, %v819_v22  ;;  %v1739_v11 = vld [vmem:[%s2153_s1 + $0x230] sm:$0xff]  ;;  %v722_v22 = vpack.c.b16 %v613_v15, %v613_v15 }
  0x23   : > { %578 = vmatpush.bf16.msra.mxu3 %v1695_v33  ;;  %v2044_v33 = vpack.c.b16 %v919_v23, %v1748_v21  ;;  %v1735_v23 = vld [vmem:[%s2153_s1 + $0x210] sm:$0xff] }
  0x24   : > { %317 = vmatpush.bf16.msra.mxu0 %v1678_v38  ;;  %v620_v38 = vshll.u32 %v1937_v46, 16 }
  0x25   : > { %386 = vmatpush.bf16.msra.mxu1 %v1670_v39  ;;  %v625_v39 = vshrl.u32 %v1878_v16, 16  ;;  %v931_v45 = vshrl.u32 %v2044_v33, 16  ;;  %v934_v46 = vshll.u32 %v2044_v33, 16  ;;  %v1734_v16 = vld [vmem:[%s2153_s1 + $0x208] sm:$0xff] }
  0x26   : > { %479 = vmatpush.bf16.msra.mxu2 %v1686_v43  ;;  %v923_v43 = vshrl.u32 %v2042_v32, 16  ;;  %v622_v50 = vrot.slane %v620_v38, 4 }
  0x27   : > { %579 = vmatpush.bf16.msra.mxu3 %v1694_v44  ;;  %v926_v44 = vshll.u32 %v2042_v32, 16  ;;  %v627_v51 = vrot.slane %v625_v39, 3 }
  0x28   : > { %318 = vmatpush.bf16.msra.mxu0 %v1677_v48  ;;  %v1710_v48 = vld [vmem:[%s2153_s1 + $0x148] sm:$0xff]  ;;  %v925_v56 = vrot.slane %v923_v43, 2 }
  0x29   : > { %387 = vmatpush.bf16.msra.mxu1 %v1669_v49  ;;  %v619_v49 = vrot.slane %v617_v37, 3 }
  0x2a   : > { %480 = vmatpush.bf16.msra.mxu2 %v1685_v52  ;;  %v630_v52 = vrot.slane %v628_v40, 4 }
  0x2b   : > { %580 = vmatpush.bf16.msra.mxu3 %v1693_v53  ;;  %319 = vmatmul.bf16.vlgmr.msra.gmra.mxu0 %v257_v60  ;;  %v2076_v53 = vpack.c.b16 %v822_v41, %v1748_v21  ;;  %v1701_v60 = vld [vmem:[%s2153_s1 + $0x100] sm:$0xff]  ;;  %v1736_v21 = vld [vmem:[%s2153_s1 + $0x218] sm:$0xff] }
  0x2c   : > { %683 = vmatpush.bf16.msrb.mxu0 %v1708_v58  ;;  %388 = vmatmul.bf16.vlgmr.msra.gmra.mxu1 %v1897_v24  ;;  %v1704_v24 = vld [vmem:[%s2153_s1 + $0x118] sm:$0xff]  ;;  %v933_v58 = vrot.slane %v931_v45, 2 }
  0x2d   : > { %773 = vmatpush.bf16.msrb.mxu1 %v1716_v59  ;;  %481 = vmatmul.bf16.vlgmr.msra.gmra.mxu2 %v422_v61  ;;  %v936_v59 = vrot.slane %v934_v46, 3  ;;  %v1709_v61 = vld [vmem:[%s2153_s1 + $0x140] sm:$0xff] }
  0x2e   : > { %581 = vmatmul.bf16.vlgmr.msra.gmra.mxu3 %v522_v63  ;;  %879 = vmatpush.bf16.msrb.mxu2 %v1724_v62  ;;  %v1740_v62 = vld [vmem:[%s2153_s1 + $0x238] sm:$0xff]  ;;  %v623_v63 = vor.u32 %v622_v50, %v619_v49 }
  0x2f   : > { %989 = vmatpush.bf16.msrb.mxu3 %v1732_v0  ;;  %v631_v0 = vor.u32 %v630_v52, %v627_v51 }
  0x30   : > { %684 = vmatpush.bf16.msrb.mxu0 %v1707_v1  ;;  %v1717_v1 = vld [vmem:[%s2153_s1 + $0x180] sm:$0xff] }
  0x31   : > { %774 = vmatpush.bf16.msrb.mxu1 %v1715_v2  ;;  %v1725_v2 = vld [vmem:[%s2153_s1 + $0x1c0] sm:$0xff] }
  0x32   : > { %880 = vmatpush.bf16.msrb.mxu2 %v1723_v3  ;;  %v826_v3 = vrot.slane %v2042_v32, 2 }
  0x33   : > { %990 = vmatpush.bf16.msrb.mxu3 %v1731_v4  ;;  %v827_v4 = vrot.slane %v2076_v53, 2 }
  0x34   : > { %685 = vmatpush.bf16.msrb.mxu0 %v1706_v5 }
  0x35   : > { %775 = vmatpush.bf16.msrb.mxu1 %v1714_v6  ;;  %v937_v6 = vor.u32 %v936_v59, %v933_v58 }
  0x36   : > { %881 = vmatpush.bf16.msrb.mxu2 %v1722_v7  ;;  %v721_v7 = vpack.c.b16 %v1888_v20, %v1919_v34  ;;  %v1112_v20 = vld [vmem:[%s2155_s3] sm:$0xff]  ;;  %v1114_v34 = vld [vmem:[%s2155_s3 + $0x10] sm:$0xff] }
  0x37   : > { %991 = vmatpush.bf16.msrb.mxu3 %v1730_v8  ;;  %v632_v8 = vsel %vm615_vm3, %v623_v63, %v631_v0  ;;  %1117 = vperm.xlu0 %1774, %v1112_v20  }
  0x38   : > { %686 = vmatpush.bf16.msrb.mxu0 %v1705_v9  ;;  %v828_v9 = vsel %vm825_vm4, %v826_v3, %v827_v4  ;;  %1127 = vperm.xlu1 %1775, %v1114_v34  }
  0x39   : > { %776 = vmatpush.bf16.msrb.mxu1 %v1713_v10 }
  0x3a   : > { %882 = vmatpush.bf16.msrb.mxu2 %v1721_v17  ;;  %v1737_v17 = vld [vmem:[%s2153_s1 + $0x220] sm:$0xff] }
  0x3b   : > { %992 = vmatpush.bf16.msrb.mxu3 %v1729_v18  ;;  %324 = vmatmul.bf16.gmra.mxu0 %v260_v26  ;;  %v1113_v18 = vld [vmem:[%s2155_s3 + $0x8] sm:$0xff]  ;;  %v1733_v26 = vld [vmem:[%s2153_s1 + $0x200] sm:$0xff] }
  0x3c   : > { %687 = vmatpush.bf16.msrb.mxu0 %v1704_v24  ;;  %393 = vmatmul.bf16.gmra.mxu1 %v329_v27  ;;  %v1010_v24 = vld [vmem:[%s1863_s20 + $0x4] sm:$0x8] }
  0x3d   : > { %777 = vmatpush.bf16.msrb.mxu1 %v1712_v25  ;;  %486 = vmatmul.bf16.gmra.mxu2 %v421_v55  ;;  %v1726_v55 = vld [vmem:[%s2153_s1 + $0x1c8] sm:$0xff]  ;;  %v1029_v25 = vunpack.c.l.b16 %v1010_v24  ;;  %v1776_v24 = vld [vmem:[%s2154_s2] ss:$0 sm:$0xff] }
  0x3e   : > { %586 = vmatmul.bf16.gmra.mxu3 %v521_v57  ;;  %883 = vmatpush.bf16.msrb.mxu2 %v1720_v28  ;;  %v928_v57 = vrot.slane %v926_v44, 3  ;;  %v1032_v28 = vrot.slane %v2044_v33, 3 }
  0x3f   : > { %993 = vmatpush.bf16.msrb.mxu3 %v1728_v29  ;;  %1122 = vperm.xlu0 %1774, %v1113_v18   ;;  %v1030_v15 = vpack.c.b16 %v1747_v19, %v1029_v25 }
  0x40   : > { %688 = vmatpush.bf16.msrb.mxu0 %v1703_v35  ;;  %v929_v5 = vor.u32 %v928_v57, %v925_v56 }
  0x41   : > { %778 = vmatpush.bf16.msrb.mxu1 %v1711_v36  ;;  %v1031_v27 = vrot.slane %v1030_v15, 3 }
  0x42   : > { %884 = vmatpush.bf16.msrb.mxu2 %v1719_v42  ;;  %v938_v10 = vsel %vm921_vm5, %v929_v5, %v937_v6 }
  0x43   : > { %994 = vmatpush.bf16.msrb.mxu3 %v1727_v30  ;;  %v1033_v29 = vsel %vm519_vm2, %v1031_v27, %v1032_v28 }
  0x44   : > { %689 = vmatpush.bf16.msrb.mxu0 %v1702_v47 }
  0x45   : > { %779 = vmatpush.bf16.msrb.mxu1 %v1710_v48 }
  0x46   : > { %885 = vmatpush.bf16.msrb.mxu2 %v1718_v54 }
  0x47   : > { %995 = vmatpush.bf16.msrb.mxu3 %v1726_v55 }
  0x48   : > { %690 = vmatpush.bf16.msrb.mxu0 %v1701_v60 }
  0x49   : > { %780 = vmatpush.bf16.msrb.mxu1 %v1709_v61 }
  0x4a   : > { %886 = vmatpush.bf16.msrb.mxu2 %v1717_v1 }
  0x4b   : > { %996 = vmatpush.bf16.msrb.mxu3 %v1725_v2  ;;  %691 = vmatmul.bf16.vlgmr.msrb.gmra.mxu0 %v632_v8 }
  0x4c   : > { %1084 = vmatpush.bf16.msra.mxu0 %v1740_v62  ;;  %781 = vmatmul.bf16.vlgmr.msrb.gmra.mxu1 %v721_v7 }
  0x4d   : > { %1755 = vmatpush.bf16.msra.mxu1 %v1740_v62  ;;  %887 = vmatmul.bf16.vlgmr.msrb.gmra.mxu2 %v828_v9 }
  0x4e   : > { %997 = vmatmul.bf16.vlgmr.msrb.gmra.mxu3 %v938_v10 }
  0x50   : > { %1085 = vmatpush.bf16.msra.mxu0 %v1739_v11 }
  0x51   : > { %1756 = vmatpush.bf16.msra.mxu1 %v1739_v11 }
  0x54   : > { %1086 = vmatpush.bf16.msra.mxu0 %v1738_v13 }
  0x55   : > { %1757 = vmatpush.bf16.msra.mxu1 %v1738_v13 }
  0x58   : > { %1087 = vmatpush.bf16.msra.mxu0 %v1737_v17 }
  0x59   : > { %1758 = vmatpush.bf16.msra.mxu1 %v1737_v17 }
  0x5b   : > { %696 = vmatmul.bf16.gmra.mxu0 %v631_v0 }
  0x5c   : > { %1088 = vmatpush.bf16.msra.mxu0 %v1736_v21  ;;  %786 = vmatmul.bf16.gmra.mxu1 %v722_v22 }
  0x5d   : > { %1759 = vmatpush.bf16.msra.mxu1 %v1736_v21  ;;  %892 = vmatmul.bf16.gmra.mxu2 %v827_v4 }
  0x5e   : > { %1002 = vmatmul.bf16.gmra.mxu3 %v937_v6 }
  0x60   : > { %1089 = vmatpush.bf16.msra.mxu0 %v1735_v23 }
  0x61   : > { %1760 = vmatpush.bf16.msra.mxu1 %v1735_v23 }
  0x64   : > { %1090 = vmatpush.bf16.msra.mxu0 %v1734_v16 }
  0x65   : > { %1761 = vmatpush.bf16.msra.mxu1 %v1734_v16 }
  0x68   : > { %1091 = vmatpush.bf16.msra.mxu0 %v1733_v26 }
  0x69   : > { %1762 = vmatpush.bf16.msra.mxu1 %v1733_v26 }
  0x6b   : > { %1092 = vmatmul.bf16.vlgmr.msra.gmra.mxu0 %v1033_v29 }
  0x6c   : > { %1097 = vmatmul.bf16.vlgmr.msra.gmra.mxu1 %v1032_v28 }
  0xa8   : > { %v320_v31 = vpop.f32.mrf.mxu0 }
  0xa9   : > { %v389_v32 = vpop.f32.mrf.mxu1  ;;  %v1118_v17 = vpop.permute.xlu0 %1117 }
  0xaa   : > { %v390_v55 = vadd.f32 %v389_v32, %v320_v31  ;;  %v1128_v32 = vpop.permute.xlu1 %1127 }
  0xb0   : > { %v482_v35 = vpop.f32.mrf.mxu2  ;;  %v322_v19 = vpop.f32.mrf.mxu0 }
  0xb1   : > { %v582_v12 = vpop.f32.mrf.mxu3  ;;  %v391_v36 = vpop.f32.mrf.mxu1  ;;  %v491_v56 = vadd.f32 %v482_v35, %v390_v55 }
  0xb2   : > { %v392_v58 = vadd.f32 %v391_v36, %v322_v19  ;;  %v1123_v35 = vpop.permute.xlu0 %1122 }
  0xb3   : > { %v591_v60 = vadd.f32 %v582_v12, %v491_v56 }
  0xb8   : > { %v484_v37 = vpop.f32.mrf.mxu2  ;;  %v325_v39 = vpop.f32.mrf.mxu0 }
  0xb9   : > { %v584_v38 = vpop.f32.mrf.mxu3  ;;  %v394_v40 = vpop.f32.mrf.mxu1  ;;  %v492_v61 = vadd.f32 %v484_v37, %v392_v58 }
  0xba   : > { %v395_v57 = vadd.f32 %v394_v40, %v325_v39 }
  0xbb   : > { %v592_v4 = vadd.f32 %v584_v38, %v492_v61 }
  0xc0   : > { %v487_v41 = vpop.f32.mrf.mxu2  ;;  %v327_v30 = vpop.f32.mrf.mxu0 }
  0xc1   : > { %v587_v42 = vpop.f32.mrf.mxu3  ;;  %v396_v33 = vpop.f32.mrf.mxu1  ;;  %v493_v59 = vadd.f32 %v487_v41, %v395_v57 }
  0xc3   : > { %v593_v2 = vadd.f32 %v587_v42, %v493_v59 }
  0xc8   : > { %v489_v43 = vpop.f32.mrf.mxu2  ;;  %v692_v45 = vpop.f32.mrf.mxu0 }
  0xc9   : > { %v589_v44 = vpop.f32.mrf.mxu3  ;;  %v782_v46 = vpop.f32.mrf.mxu1  ;;  %v701_v3 = vadd.f32 %v692_v45, %v591_v60 }
  0xcb   : > { %v791_v6 = vadd.f32 %v782_v46, %v701_v3 }
  0xd0   : > { %v888_v47 = vpop.f32.mrf.mxu2  ;;  %v694_v49 = vpop.f32.mrf.mxu0 }
  0xd1   : > { %v998_v48 = vpop.f32.mrf.mxu3  ;;  %v784_v50 = vpop.f32.mrf.mxu1  ;;  %v702_v7 = vadd.f32 %v694_v49, %v592_v4  ;;  %v897_v8 = vadd.f32 %v888_v47, %v791_v6 }
  0xd3   : > { %v792_v13 = vadd.f32 %v784_v50, %v702_v7  ;;  %v1007_v18 = vadd.f32 %v998_v48, %v897_v8 }
  0xd8   : > { %v890_v51 = vpop.f32.mrf.mxu2  ;;  %v697_v53 = vpop.f32.mrf.mxu0 }
  0xd9   : > { %v1000_v52 = vpop.f32.mrf.mxu3  ;;  %v787_v54 = vpop.f32.mrf.mxu1  ;;  %v703_v5 = vadd.f32 %v697_v53, %v593_v2  ;;  %v898_v21 = vadd.f32 %v890_v51, %v792_v13 }
  0xdb   : > { %v793_v9 = vadd.f32 %v787_v54, %v703_v5  ;;  %v1008_v25 = vadd.f32 %v1000_v52, %v898_v21 }
  0xe0   : > { %v893_v62 = vpop.f32.mrf.mxu2  ;;  %v699_v0 = vpop.f32.mrf.mxu0 }
  0xe1   : > { %v1003_v63 = vpop.f32.mrf.mxu3  ;;  %v789_v1 = vpop.f32.mrf.mxu1  ;;  %v899_v14 = vadd.f32 %v893_v62, %v793_v9 }
  0xe3   : > { %v1009_v22 = vadd.f32 %v1003_v63, %v899_v14 }
  0xe8   : > { %v895_v10 = vpop.f32.mrf.mxu2  ;;  %v1093_v20 = vpop.f32.mrf.mxu0 }
  0xe9   : > { %v1005_v11 = vpop.f32.mrf.mxu3  ;;  %v1098_v34 = vpop.f32.mrf.mxu1  ;;  %v1102_v23 = vadd.f32 %v1093_v20, %v1007_v18 }
  0xea   : > { %v1104_v16 = vadd.f32 %v1098_v34, %v1009_v22 }
  0xeb   : > { %v1109_v27 = vadd.f32 %v1776_v24, %v1102_v23 }
  0xec   : > { %v1111_v29 = vadd.f32 %v1776_v24, %v1104_v16 }
  0xed   : > { %v1130_v12 = vmul.f32 %v1118_v17, %v1109_v27 }
  0xee   : > { %v1132_v36 = vmul.f32 %v1128_v32, %v1111_v29 }
  0xf0   : > { %v1095_v15 = vpop.f32.mrf.mxu0 }
  0xf1   : > { %v1100_v26 = vpop.f32.mrf.mxu1  ;;  %v1103_v28 = vadd.f32 %v1095_v15, %v1008_v25 }
  0xf3   : > { %v1110_v31 = vadd.f32 %v1776_v24, %v1103_v28 }
  0xf5   : > { %v1131_v19 = vmul.f32 %v1123_v35, %v1110_v31 }
  0xf7   : > { %v1133_v37 = vadd.f32 %v1131_v19, %v1130_v12 }
  0xf9   : > { %v1134_v38 = vadd.f32 %v1133_v37, %v1132_v36 }
  0xfb   : > { %v1135_v39 = vrot.slane %v1134_v38, 4 }
  0xfd   : > { %v1136_v40 = vadd.f32 %v1135_v39, %v1134_v38 }
  0xff   : > { %v1137_v41 = vrot.slane %v1136_v40, 2 }
 0x101   : > { %v1138_v42 = vadd.f32 %v1137_v41, %v1136_v40 }
 0x103   : > { %v1139_v30 = vrot.slane %v1138_v42, 1 }
 0x105   : > { %v1140_v33 = vadd.f32 %v1139_v30, %v1138_v42 }
 0x107   : > { %v1141_v43 = vmul.f32 0.0625, %v1140_v33 }
 0x109   : > { %v1142_v44 = vsub.f32 %v1109_v27, %v1141_v43  ;;  %v1143_v45 = vsub.f32 %v1110_v31, %v1141_v43  ;;  %v1144_v46 = vsub.f32 %v1111_v29, %v1141_v43 }
 0x10b   : > { %v1145_v47 = vmul.f32 %v1142_v44, %v1118_v17  ;;  %v1146_v48 = vmul.f32 %v1143_v45, %v1123_v35  ;;  %v1147_v49 = vmul.f32 %v1144_v46, %v1128_v32 }
 0x10d   : > { %v1148_v50 = vmul.f32 %v1145_v47, %v1145_v47  ;;  %v1149_v51 = vmul.f32 %v1146_v48, %v1146_v48  ;;  %v1150_v52 = vmul.f32 %v1147_v49, %v1147_v49 }
 0x10f   : > { %v1151_v53 = vadd.f32 %v1149_v51, %v1148_v50 }
 0x111   : > { %v1152_v54 = vadd.f32 %v1151_v53, %v1150_v52 }
 0x113   : > { %v1153_v55 = vrot.slane %v1152_v54, 4 }
 0x115   : > { %v1154_v56 = vadd.f32 %v1153_v55, %v1152_v54 }
 0x117   : > { %v1155_v57 = vrot.slane %v1154_v56, 2 }
 0x119   : > { %v1156_v58 = vadd.f32 %v1155_v57, %v1154_v56 }
 0x11b   : > { %v1157_v59 = vrot.slane %v1156_v58, 1 }
 0x11d   : > { %v1158_v60 = vadd.f32 %v1157_v59, %v1156_v58 }
 0x11f   : > { %v1159_v61 = vmul.f32 0.0625, %v1158_v60 }
 0x121   : > { %v1160_v62 = vadd.f32 1e-05, %v1159_v61 }
 0x123   : > { %1777 = vrsqrt.f32 %v1160_v62  ;;  %vm1167_vm7 = vweird.f32 %v1160_v62 }
 0x129   : > { %v1778_v63 = vpop.eup %1777 }
 0x12a   : > { %v1162_v0 = vmul.f32 %v1778_v63, %v1160_v62  ;;  %vm1168_vm6 = vweird.f32 %v1778_v63 }
 0x12b   : > { %vm1169_vm8 = vmor %vm1167_vm7, %vm1168_vm6 }
 0x12c   : > { %v1163_v1 = vmul.f32 %v1778_v63, %v1162_v0 }
 0x12e   : > { %v1164_v2 = vmul.f32 0.5, %v1163_v1 }
 0x130   : > { %v1165_v3 = vsub.f32 1.5, %v1164_v2 }
 0x132   : > { %v1166_v4 = vmul.f32 %v1778_v63, %v1165_v3 }
 0x134   : > { %v1170_v5 = vsel %vm1169_vm8, %v1778_v63, %v1166_v4 }
 0x135   : > { %v1171_v6 = vmul.f32 %v1170_v5, %v1142_v44  ;;  %v1172_v7 = vmul.f32 %v1170_v5, %v1143_v45  ;;  %v1173_v8 = vmul.f32 %v1170_v5, %v1144_v46 }
 0x137   : > { %vm1174_vm9 = vcmp.ge.f32.partialorder %v1171_v6, 0.0  ;;  %vm1175_vm10 = vcmp.ge.f32.partialorder %v1172_v7, 0.0  ;;  %vm1176_vm11 = vcmp.ge.f32.partialorder %v1173_v8, 0.0  ;;  %v1177_v9 = vmul.f32 0.2, %v1171_v6 }
 0x138   : > { %v1178_v10 = vmul.f32 0.2, %v1172_v7  ;;  %v1179_v11 = vmul.f32 0.2, %v1173_v8 }
 0x139   : > { %v1180_v20 = vsel %vm1174_vm9, %v1171_v6, %v1177_v9 }
 0x13a   : > { %v1181_v34 = vsel %vm1175_vm10, %v1172_v7, %v1178_v10  ;;  %v1182_v13 = vsel %vm1176_vm11, %v1173_v8, %v1179_v11 }
 0x13b   : > { %v1185_v14 = vpack.c.bf16 %v1182_v13, %v1182_v13  ;;  %v1752_v17 = vpack.c.bf16 %v1181_v34, %v1180_v20 }
 0x13d   : > { %1753 = vst [vmem:[%s197_s10] sm:$0xff] %v1752_v17  }
 0x13e   : > { %1188 = vst [vmem:[%s197_s10 + $0x8] sm:$0xf] %v1185_v14 }
 0x13f PF: > { %s14_s15 = sadd.s32 1, %s1785_s15  }
 0x140   : > { %p11_p4 = scmp.ge.s32.totalorder %s14_s15, 4  }
 0x142   :  { %13 = sbr.rel (!%p11_p4) target bundleno = 1 (0x1), region = 74 }

// kernel: discriminator_forward.13
= control target key start
LH: loop header
LB: loop body
LE: loop exit
PB: predicated region body
PF: predicated region fallthrough
CT: control target
= control target key end

     0   :  { %s1754_s15 = smov 0   ;;  %s2084_s0 = inlined_call_operand.vmem [shape: bf16[2,42,128], index: 0, kind: input, shape index: {}]   ;;  %s2085_s1 = inlined_call_operand.vmem [shape: bf16[9,128,128], index: 1, kind: input, shape index: {}]   ;;  %s2086_s2 = inlined_call_operand.vmem [shape: f32[1,128], index: 2, kind: input, shape index: {}]   ;;  %s2087_s3 = inlined_call_operand.vmem [shape: f32[24,1], index: 3, kind: input, shape index: {}]   ;;  %s2088_s4 = inlined_call_operand.vmem [shape: f32[2,24,128], index: 4, kind: output, shape index: {}]  }
   0x1 LB: > { %s1185_s16 = sadd.s32 4294967295, %s1727_s15   ;;  %p1189_p0 = scmp.ge.s32.totalorder %s1727_s15, 1  ;;  %s1727_s15 = sphi %s1754_s15, %s14_s15  }
   0x2   : > { %p162_p1 = scmp.lt.s32.totalorder %s1727_s15, 3 }
   0x4   : > { %p163_p2 = pnand %p1189_p0, %p162_p1 }
   0x5   : > { %p188_p3 = scmp.lt.s32.totalorder (!%p163_p2), %s1185_s16, 1 }
   0x6   : > { %166 = sbr.rel (%p163_p2) target bundleno = 266 (0x10a), region = 36 }
   0xb   : > { %v1625_v0 = vld [vmem:[%s2085_s1 + $0x78] sm:$0xff]  ;;  %v1624_v4 = vld [vmem:[%s2085_s1 + $0x70] sm:$0xff]  ;;  %s2090_s16 = smov (!%p188_p3, %s1185_s16), 1  ;;  %v1623_v8 = vld [vmem:[%s2085_s1 + $0x68] sm:$0xff]  ;;  %vm245_vm0 = vsmask.f32 7424 }
   0xc   : > { %v1617_v1 = vld [vmem:[%s2085_s1 + $0x38] sm:$0xff]  ;;  %311 = vmatpush.bf16.msra.mxu0 %v1625_v0  ;;  %v1616_v5 = vld [vmem:[%s2085_s1 + $0x30] sm:$0xff]  ;;  %s1699_s6 = smul.u32 24, %s2090_s16  ;;  %v1615_v9 = vld [vmem:[%s2085_s1 + $0x28] sm:$0xff]  ;;  %vm419_vm1 = vcmask 1046528   ;;  %vm519_vm2 = vcmask 1044480  }
   0xd   : > { %v1633_v2 = vld [vmem:[%s2085_s1 + $0xb8] sm:$0xff]  ;;  %380 = vmatpush.bf16.msra.mxu1 %v1617_v1  ;;  %v1632_v6 = vld [vmem:[%s2085_s1 + $0xb0] sm:$0xff]  ;;  %v1631_v10 = vld [vmem:[%s2085_s1 + $0xa8] sm:$0xff]  ;;  %vm615_vm3 = vsmask.f32 4352  ;;  %vm825_vm4 = vcmask 1045504  }
   0xe   : > { %v1641_v3 = vld [vmem:[%s2085_s1 + $0xf8] sm:$0xff]  ;;  %473 = vmatpush.bf16.msra.mxu2 %v1633_v2  ;;  %v1640_v7 = vld [vmem:[%s2085_s1 + $0xf0] sm:$0xff]  ;;  %v1639_v11 = vld [vmem:[%s2085_s1 + $0xe8] sm:$0xff]  ;;  %s1806_s18 = scalar_lea.vmem %s2084_s0, %s1699_s6  ;;  %vm921_vm5 = vsmask.f32 5376  ;;  %s197_s27 = scalar_lea.vmem %s2088_s4, %s1699_s6 }
   0xf   : > { %573 = vmatpush.bf16.msra.mxu3 %v1641_v3  ;;  %v1622_v12 = vld [vmem:[%s2085_s1 + $0x60] sm:$0xff]  ;;  %v1821_v16 = vld [vmem:[%s1806_s18 + $0x8] sm:$0xff]   ;;  %v1621_v18 = vld [vmem:[%s2085_s1 + $0x58] sm:$0xff] }
  0x10   : > { %312 = vmatpush.bf16.msra.mxu0 %v1624_v4  ;;  %v1614_v13 = vld [vmem:[%s2085_s1 + $0x20] sm:$0xff]  ;;  %v217_v17 = vld [vmem:[%s1806_s18 + $0xc] sm:$0x1]  ;;  %v1613_v19 = vld [vmem:[%s2085_s1 + $0x18] sm:$0xff]  ;;  %v1831_v20 = vunpack.c.l.b16 %v1821_v16 }
  0x11   : > { %381 = vmatpush.bf16.msra.mxu1 %v1616_v5  ;;  %v1630_v14 = vld [vmem:[%s2085_s1 + $0xa0] sm:$0xff]  ;;  %v242_v21 = vunpack.c.l.b16 %v217_v17  ;;  %v1629_v22 = vld [vmem:[%s2085_s1 + $0x98] sm:$0xff]  ;;  %v495_v27 = vld [vmem:[%s1806_s18 + $0xc] sm:$0x7] }
  0x12   : > { %474 = vmatpush.bf16.msra.mxu2 %v1632_v6  ;;  %v1638_v15 = vld [vmem:[%s2085_s1 + $0xe0] sm:$0xff]  ;;  %v1637_v23 = vld [vmem:[%s2085_s1 + $0xd8] sm:$0xff]  ;;  %v1620_v28 = vld [vmem:[%s2085_s1 + $0x50] sm:$0xff]  ;;  %v516_v37 = vunpack.c.l.b16 %v495_v27  ;;  %v329_v27 = vpack.c.b16 %v1831_v20, %v1831_v20 }
  0x13   : > { %574 = vmatpush.bf16.msra.mxu3 %v1640_v7  ;;  %v1840_v24 = vld [vmem:[%s1806_s18] sm:$0xff]   ;;  %v1612_v29 = vld [vmem:[%s2085_s1 + $0x10] sm:$0xff]  ;;  %v1852_v30 = vpack.c.b16 %v242_v21, %v1831_v20  ;;  %v1619_v38 = vld [vmem:[%s2085_s1 + $0x48] sm:$0xff] }
  0x14   : > { %313 = vmatpush.bf16.msra.mxu0 %v1623_v8  ;;  %v398_v25 = vld [vmem:[%s1806_s18] sm:$0xe]  ;;  %v249_v31 = vshll.u32 %v1840_v24, 16  ;;  %v1628_v32 = vld [vmem:[%s2085_s1 + $0x90] sm:$0xff]  ;;  %v1862_v34 = vunpack.c.h.b16 %v1840_v24  ;;  %v1611_v39 = vld [vmem:[%s2085_s1 + $0x8] sm:$0xff]  ;;  %v247_v40 = vshrl.u32 %v1840_v24, 16  ;;  %v1883_v47 = vpack.c.b16 %v516_v37, %v1831_v20 }
  0x15   : > { %382 = vmatpush.bf16.msra.mxu1 %v1615_v9  ;;  %v494_v26 = vld [vmem:[%s1806_s18] sm:$0x8]  ;;  %v1636_v33 = vld [vmem:[%s2085_s1 + $0xd0] sm:$0xff]  ;;  %v417_v35 = vunpack.c.l.b16 %v398_v25  ;;  %v254_v42 = vshll.u32 %v1852_v30, 16  ;;  %v1627_v43 = vld [vmem:[%s2085_s1 + $0x88] sm:$0xff]  ;;  %v421_v55 = vrot.slane %v1852_v30, 1 }
  0x16   : > { %475 = vmatpush.bf16.msra.mxu2 %v1631_v10  ;;  %v515_v36 = vunpack.c.l.b16 %v494_v26  ;;  %v251_v41 = vrot.slane %v249_v31, 1  ;;  %v1635_v44 = vld [vmem:[%s2085_s1 + $0xc8] sm:$0xff]  ;;  %v1618_v48 = vld [vmem:[%s2085_s1 + $0x40] sm:$0xff]  ;;  %v521_v57 = vrot.slane %v1883_v47, 3  ;;  %v1649_v58 = vld [vmem:[%s2085_s1 + $0x138] sm:$0xff] }
  0x17   : > { %575 = vmatpush.bf16.msra.mxu3 %v1639_v11  ;;  %v418_v45 = vpack.c.b16 %v1862_v34, %v417_v35  ;;  %v1610_v49 = vld [vmem:[%s2085_s1] sm:$0xff]  ;;  %v1891_v51 = vrot.slane %v254_v42, 1  ;;  %v1657_v59 = vld [vmem:[%s2085_s1 + $0x178] sm:$0xff]  ;;  %v1648_v1 = vld [vmem:[%s2085_s1 + $0x130] sm:$0xff] }
  0x18   : > { %314 = vmatpush.bf16.msra.mxu0 %v1622_v12  ;;  %v1880_v46 = vpack.c.b16 %v1862_v34, %v515_v36  ;;  %v252_v50 = vor.u32 %v251_v41, %v247_v40  ;;  %v1626_v52 = vld [vmem:[%s2085_s1 + $0x80] sm:$0xff]  ;;  %v1665_v62 = vld [vmem:[%s2085_s1 + $0x1b8] sm:$0xff]  ;;  %v1656_v2 = vld [vmem:[%s2085_s1 + $0x170] sm:$0xff]  ;;  %v628_v40 = vshll.u32 %v1821_v16, 16 }
  0x19   : > { %383 = vmatpush.bf16.msra.mxu1 %v1614_v13  ;;  %v1634_v53 = vld [vmem:[%s2085_s1 + $0xc0] sm:$0xff]  ;;  %v420_v54 = vrot.slane %v418_v45, 1  ;;  %v1673_v0 = vld [vmem:[%s2085_s1 + $0x1f8] sm:$0xff]  ;;  %v1664_v3 = vld [vmem:[%s2085_s1 + $0x1b0] sm:$0xff] }
  0x1a   : > { %476 = vmatpush.bf16.msra.mxu2 %v1630_v14  ;;  %v520_v56 = vrot.slane %v1880_v46, 3  ;;  %v257_v60 = vsel %vm245_vm0, %v252_v50, %v1891_v51  ;;  %v1672_v4 = vld [vmem:[%s2085_s1 + $0x1f0] sm:$0xff]  ;;  %v1647_v5 = vld [vmem:[%s2085_s1 + $0x128] sm:$0xff]  ;;  %v1646_v9 = vld [vmem:[%s2085_s1 + $0x120] sm:$0xff]  ;;  %v258_v14 = vshrl.u32 %v1852_v30, 16  ;;  %v617_v37 = vshrl.u32 %v1880_v46, 16 }
  0x1b   : > { %576 = vmatpush.bf16.msra.mxu3 %v1638_v15  ;;  %v422_v61 = vsel %vm419_vm1, %v420_v54, %v421_v55  ;;  %v1655_v6 = vld [vmem:[%s2085_s1 + $0x168] sm:$0xff]  ;;  %v1654_v10 = vld [vmem:[%s2085_s1 + $0x160] sm:$0xff]  ;;  %v900_v13 = vld [vmem:[%s1806_s18 + $0x10] sm:$0x7]  ;;  %v613_v15 = vunpack.c.h.b16 %v1821_v16 }
  0x1c   : > { %315 = vmatpush.bf16.msra.mxu0 %v1621_v18  ;;  %v522_v63 = vsel %vm519_vm2, %v520_v56, %v521_v57  ;;  %v1663_v7 = vld [vmem:[%s2085_s1 + $0x1a8] sm:$0xff]  ;;  %v794_v11 = vld [vmem:[%s1806_s18 + $0x4] sm:$0xc]  ;;  %v1653_v25 = vld [vmem:[%s2085_s1 + $0x158] sm:$0xff]  ;;  %v260_v26 = vor.u32 %v258_v14, %v1891_v51 }
  0x1d   : > { %384 = vmatpush.bf16.msra.mxu1 %v1613_v19  ;;  %v1671_v8 = vld [vmem:[%s2085_s1 + $0x1e8] sm:$0xff]  ;;  %v1662_v17 = vld [vmem:[%s2085_s1 + $0x1a0] sm:$0xff]  ;;  %v797_v31 = vld [vmem:[%s1806_s18 + $0x10] sm:$0x3]  ;;  %v722_v14 = vpack.c.b16 %v613_v15, %v613_v15 }
  0x1e   : > { %477 = vmatpush.bf16.msra.mxu2 %v1629_v22  ;;  %v1954_v12 = vld [vmem:[%s1806_s18 + $0x8] sm:$0xff]   ;;  %v1670_v18 = vld [vmem:[%s2085_s1 + $0x1e0] sm:$0xff]  ;;  %v819_v22 = vunpack.c.l.b16 %v794_v11  ;;  %v1644_v35 = vld [vmem:[%s2085_s1 + $0x110] sm:$0xff]  ;;  %v822_v41 = vunpack.c.l.b16 %v797_v31 }
  0x1f   : > { %577 = vmatpush.bf16.msra.mxu3 %v1637_v23  ;;  %v1688_v19 = vunpack.c.l.b16 %v1954_v12  ;;  %v1689_v21 = vunpack.c.h.b16 %v1954_v12  ;;  %v919_v23 = vunpack.c.l.b16 %v900_v13  ;;  %v1652_v36 = vld [vmem:[%s2085_s1 + $0x150] sm:$0xff]  ;;  %v1643_v47 = vld [vmem:[%s2085_s1 + $0x108] sm:$0xff]  ;;  %v1677_v13 = vld [vmem:[%s2085_s1 + $0x218] sm:$0xff] }
  0x20   : > { %316 = vmatpush.bf16.msra.mxu0 %v1620_v28  ;;  %v1661_v28 = vld [vmem:[%s2085_s1 + $0x198] sm:$0xff]  ;;  %v1660_v42 = vld [vmem:[%s2085_s1 + $0x190] sm:$0xff]  ;;  %v1659_v54 = vld [vmem:[%s2085_s1 + $0x188] sm:$0xff] }
  0x21   : > { %385 = vmatpush.bf16.msra.mxu1 %v1612_v29  ;;  %v1669_v29 = vld [vmem:[%s2085_s1 + $0x1d8] sm:$0xff]  ;;  %v1668_v30 = vld [vmem:[%s2085_s1 + $0x1d0] sm:$0xff] }
  0x22   : > { %478 = vmatpush.bf16.msra.mxu2 %v1628_v32  ;;  %v1985_v32 = vpack.c.b16 %v1688_v19, %v819_v22  ;;  %v1680_v11 = vld [vmem:[%s2085_s1 + $0x230] sm:$0xff]  ;;  %v1674_v22 = vld [vmem:[%s2085_s1 + $0x200] sm:$0xff] }
  0x23   : > { %578 = vmatpush.bf16.msra.mxu3 %v1636_v33  ;;  %v1987_v33 = vpack.c.b16 %v919_v23, %v1689_v21 }
  0x24   : > { %317 = vmatpush.bf16.msra.mxu0 %v1619_v38  ;;  %v620_v38 = vshll.u32 %v1880_v46, 16 }
  0x25   : > { %386 = vmatpush.bf16.msra.mxu1 %v1611_v39  ;;  %v625_v39 = vshrl.u32 %v1821_v16, 16  ;;  %v931_v45 = vshrl.u32 %v1987_v33, 16  ;;  %v934_v46 = vshll.u32 %v1987_v33, 16  ;;  %v1675_v16 = vld [vmem:[%s2085_s1 + $0x208] sm:$0xff] }
  0x26   : > { %479 = vmatpush.bf16.msra.mxu2 %v1627_v43  ;;  %v923_v43 = vshrl.u32 %v1985_v32, 16  ;;  %v622_v50 = vrot.slane %v620_v38, 4 }
  0x27   : > { %579 = vmatpush.bf16.msra.mxu3 %v1635_v44  ;;  %v926_v44 = vshll.u32 %v1985_v32, 16  ;;  %v627_v51 = vrot.slane %v625_v39, 3 }
  0x28   : > { %318 = vmatpush.bf16.msra.mxu0 %v1618_v48  ;;  %v1651_v48 = vld [vmem:[%s2085_s1 + $0x148] sm:$0xff]  ;;  %v925_v56 = vrot.slane %v923_v43, 2 }
  0x29   : > { %387 = vmatpush.bf16.msra.mxu1 %v1610_v49  ;;  %v619_v49 = vrot.slane %v617_v37, 3 }
  0x2a   : > { %480 = vmatpush.bf16.msra.mxu2 %v1626_v52  ;;  %v630_v52 = vrot.slane %v628_v40, 4 }
  0x2b   : > { %580 = vmatpush.bf16.msra.mxu3 %v1634_v53  ;;  %319 = vmatmul.bf16.vlgmr.msra.gmra.mxu0 %v257_v60  ;;  %v824_v53 = vpack.c.b16 %v822_v41, %v1689_v21  ;;  %v1642_v60 = vld [vmem:[%s2085_s1 + $0x100] sm:$0xff] }
  0x2c   : > { %683 = vmatpush.bf16.msrb.mxu0 %v1649_v58  ;;  %388 = vmatmul.bf16.vlgmr.msra.gmra.mxu1 %v1840_v24  ;;  %v1645_v24 = vld [vmem:[%s2085_s1 + $0x118] sm:$0xff]  ;;  %v933_v58 = vrot.slane %v931_v45, 2 }
  0x2d   : > { %773 = vmatpush.bf16.msrb.mxu1 %v1657_v59  ;;  %481 = vmatmul.bf16.vlgmr.msra.gmra.mxu2 %v422_v61  ;;  %v936_v59 = vrot.slane %v934_v46, 3  ;;  %v1650_v61 = vld [vmem:[%s2085_s1 + $0x140] sm:$0xff] }
  0x2e   : > { %581 = vmatmul.bf16.vlgmr.msra.gmra.mxu3 %v522_v63  ;;  %879 = vmatpush.bf16.msrb.mxu2 %v1665_v62  ;;  %v1681_v62 = vld [vmem:[%s2085_s1 + $0x238] sm:$0xff]  ;;  %v623_v63 = vor.u32 %v622_v50, %v619_v49 }
  0x2f   : > { %989 = vmatpush.bf16.msrb.mxu3 %v1673_v0  ;;  %v631_v0 = vor.u32 %v630_v52, %v627_v51 }
  0x30   : > { %684 = vmatpush.bf16.msrb.mxu0 %v1648_v1  ;;  %v1658_v1 = vld [vmem:[%s2085_s1 + $0x180] sm:$0xff] }
  0x31   : > { %774 = vmatpush.bf16.msrb.mxu1 %v1656_v2  ;;  %v1666_v2 = vld [vmem:[%s2085_s1 + $0x1c0] sm:$0xff] }
  0x32   : > { %880 = vmatpush.bf16.msrb.mxu2 %v1664_v3  ;;  %v826_v3 = vrot.slane %v1985_v32, 2 }
  0x33   : > { %990 = vmatpush.bf16.msrb.mxu3 %v1672_v4  ;;  %v827_v4 = vrot.slane %v824_v53, 2 }
  0x34   : > { %685 = vmatpush.bf16.msrb.mxu0 %v1647_v5 }
  0x35   : > { %775 = vmatpush.bf16.msrb.mxu1 %v1655_v6  ;;  %v937_v6 = vor.u32 %v936_v59, %v933_v58 }
  0x36   : > { %881 = vmatpush.bf16.msrb.mxu2 %v1663_v7  ;;  %v721_v7 = vpack.c.b16 %v1831_v20, %v1862_v34  ;;  %v1679_v20 = vld [vmem:[%s2085_s1 + $0x228] sm:$0xff]  ;;  %v1678_v34 = vld [vmem:[%s2085_s1 + $0x220] sm:$0xff] }
  0x37   : > { %991 = vmatpush.bf16.msrb.mxu3 %v1671_v8  ;;  %v632_v8 = vsel %vm615_vm3, %v623_v63, %v631_v0 }
  0x38   : > { %686 = vmatpush.bf16.msrb.mxu0 %v1646_v9  ;;  %v828_v9 = vsel %vm825_vm4, %v826_v3, %v827_v4 }
  0x39   : > { %776 = vmatpush.bf16.msrb.mxu1 %v1654_v10 }
  0x3a   : > { %882 = vmatpush.bf16.msrb.mxu2 %v1662_v17  ;;  %v1676_v17 = vld [vmem:[%s2085_s1 + $0x210] sm:$0xff] }
  0x3b   : > { %992 = vmatpush.bf16.msrb.mxu3 %v1670_v18  ;;  %324 = vmatmul.bf16.gmra.mxu0 %v260_v26  ;;  %v1010_v18 = vld [vmem:[%s1806_s18 + $0x4] sm:$0x8] }
  0x3c   : > { %687 = vmatpush.bf16.msrb.mxu0 %v1645_v24  ;;  %393 = vmatmul.bf16.gmra.mxu1 %v329_v27  ;;  %v1029_v21 = vunpack.c.l.b16 %v1010_v18  ;;  %v1032_v24 = vrot.slane %v1987_v33, 3 }
  0x3d   : > { %777 = vmatpush.bf16.msrb.mxu1 %v1653_v25  ;;  %486 = vmatmul.bf16.gmra.mxu2 %v421_v55  ;;  %v1667_v55 = vld [vmem:[%s2085_s1 + $0x1c8] sm:$0xff] }
  0x3e   : > { %586 = vmatmul.bf16.gmra.mxu3 %v521_v57  ;;  %883 = vmatpush.bf16.msrb.mxu2 %v1661_v28  ;;  %v928_v57 = vrot.slane %v926_v44, 3  ;;  %v1030_v15 = vpack.c.b16 %v1688_v19, %v1029_v21 }
  0x3f   : > { %993 = vmatpush.bf16.msrb.mxu3 %v1669_v29 }
  0x40   : > { %688 = vmatpush.bf16.msrb.mxu0 %v1644_v35  ;;  %v929_v5 = vor.u32 %v928_v57, %v925_v56  ;;  %v1031_v23 = vrot.slane %v1030_v15, 3 }
  0x41   : > { %778 = vmatpush.bf16.msrb.mxu1 %v1652_v36 }
  0x42   : > { %884 = vmatpush.bf16.msrb.mxu2 %v1660_v42  ;;  %v938_v10 = vsel %vm921_vm5, %v929_v5, %v937_v6  ;;  %v1033_v25 = vsel %vm519_vm2, %v1031_v23, %v1032_v24 }
  0x43   : > { %994 = vmatpush.bf16.msrb.mxu3 %v1668_v30 }
  0x44   : > { %689 = vmatpush.bf16.msrb.mxu0 %v1643_v47 }
  0x45   : > { %779 = vmatpush.bf16.msrb.mxu1 %v1651_v48 }
  0x46   : > { %885 = vmatpush.bf16.msrb.mxu2 %v1659_v54 }
  0x47   : > { %995 = vmatpush.bf16.msrb.mxu3 %v1667_v55 }
  0x48   : > { %690 = vmatpush.bf16.msrb.mxu0 %v1642_v60 }
  0x49   : > { %780 = vmatpush.bf16.msrb.mxu1 %v1650_v61 }
  0x4a   : > { %886 = vmatpush.bf16.msrb.mxu2 %v1658_v1 }
  0x4b   : > { %996 = vmatpush.bf16.msrb.mxu3 %v1666_v2  ;;  %691 = vmatmul.bf16.vlgmr.msrb.gmra.mxu0 %v632_v8 }
  0x4c   : > { %1084 = vmatpush.bf16.msra.mxu0 %v1681_v62  ;;  %781 = vmatmul.bf16.vlgmr.msrb.gmra.mxu1 %v721_v7 }
  0x4d   : > { %1691 = vmatpush.bf16.msra.mxu1 %v1681_v62  ;;  %887 = vmatmul.bf16.vlgmr.msrb.gmra.mxu2 %v828_v9  ;;  %v1708_v9 = vld [vmem:[%s2086_s2] ss:$0 sm:$0xff] }
  0x4e   : > { %997 = vmatmul.bf16.vlgmr.msrb.gmra.mxu3 %v938_v10 }
  0x50   : > { %1085 = vmatpush.bf16.msra.mxu0 %v1680_v11 }
  0x51   : > { %1692 = vmatpush.bf16.msra.mxu1 %v1680_v11 }
  0x54   : > { %1086 = vmatpush.bf16.msra.mxu0 %v1679_v20 }
  0x55   : > { %1693 = vmatpush.bf16.msra.mxu1 %v1679_v20 }
  0x58   : > { %1087 = vmatpush.bf16.msra.mxu0 %v1678_v34 }
  0x59   : > { %1694 = vmatpush.bf16.msra.mxu1 %v1678_v34 }
  0x5b   : > { %696 = vmatmul.bf16.gmra.mxu0 %v631_v0 }
  0x5c   : > { %1088 = vmatpush.bf16.msra.mxu0 %v1677_v13  ;;  %786 = vmatmul.bf16.gmra.mxu1 %v722_v14 }
  0x5d   : > { %1695 = vmatpush.bf16.msra.mxu1 %v1677_v13  ;;  %892 = vmatmul.bf16.gmra.mxu2 %v827_v4 }
  0x5e   : > { %1002 = vmatmul.bf16.gmra.mxu3 %v937_v6 }
  0x60   : > { %1089 = vmatpush.bf16.msra.mxu0 %v1676_v17 }
  0x61   : > { %1696 = vmatpush.bf16.msra.mxu1 %v1676_v17 }
  0x64   : > { %1090 = vmatpush.bf16.msra.mxu0 %v1675_v16 }
  0x65   : > { %1697 = vmatpush.bf16.msra.mxu1 %v1675_v16 }
  0x68   : > { %1091 = vmatpush.bf16.msra.mxu0 %v1674_v22 }
  0x69   : > { %1698 = vmatpush.bf16.msra.mxu1 %v1674_v22 }
  0x6b   : > { %1092 = vmatmul.bf16.vlgmr.msra.gmra.mxu0 %v1033_v25 }
  0x6c   : > { %1097 = vmatmul.bf16.vlgmr.msra.gmra.mxu1 %v1032_v24 }
  0xa8   : > { %v320_v26 = vpop.f32.mrf.mxu0 }
  0xa9   : > { %v389_v27 = vpop.f32.mrf.mxu1 }
  0xaa   : > { %v390_v47 = vadd.f32 %v389_v27, %v320_v26 }
  0xb0   : > { %v482_v28 = vpop.f32.mrf.mxu2  ;;  %v322_v19 = vpop.f32.mrf.mxu0 }
  0xb1   : > { %v582_v12 = vpop.f32.mrf.mxu3  ;;  %v391_v29 = vpop.f32.mrf.mxu1  ;;  %v491_v49 = vadd.f32 %v482_v28, %v390_v47 }
  0xb2   : > { %v392_v57 = vadd.f32 %v391_v29, %v322_v19 }
  0xb3   : > { %v591_v55 = vadd.f32 %v582_v12, %v491_v49 }
  0xb8   : > { %v484_v31 = vpop.f32.mrf.mxu2  ;;  %v325_v35 = vpop.f32.mrf.mxu0 }
  0xb9   : > { %v584_v32 = vpop.f32.mrf.mxu3  ;;  %v394_v36 = vpop.f32.mrf.mxu1  ;;  %v492_v60 = vadd.f32 %v484_v31, %v392_v57 }
  0xba   : > { %v395_v48 = vadd.f32 %v394_v36, %v325_v35 }
  0xbb   : > { %v592_v3 = vadd.f32 %v584_v32, %v492_v60 }
  0xc0   : > { %v487_v37 = vpop.f32.mrf.mxu2  ;;  %v327_v39 = vpop.f32.mrf.mxu0 }
  0xc1   : > { %v587_v38 = vpop.f32.mrf.mxu3  ;;  %v396_v33 = vpop.f32.mrf.mxu1  ;;  %v493_v50 = vadd.f32 %v487_v37, %v395_v48 }
  0xc3   : > { %v593_v56 = vadd.f32 %v587_v38, %v493_v50 }
  0xc8   : > { %v489_v40 = vpop.f32.mrf.mxu2  ;;  %v692_v42 = vpop.f32.mrf.mxu0 }
  0xc9   : > { %v589_v41 = vpop.f32.mrf.mxu3  ;;  %v782_v30 = vpop.f32.mrf.mxu1  ;;  %v701_v58 = vadd.f32 %v692_v42, %v591_v55 }
  0xcb   : > { %v791_v1 = vadd.f32 %v782_v30, %v701_v58 }
  0xd0   : > { %v888_v43 = vpop.f32.mrf.mxu2  ;;  %v694_v45 = vpop.f32.mrf.mxu0 }
  0xd1   : > { %v998_v44 = vpop.f32.mrf.mxu3  ;;  %v784_v46 = vpop.f32.mrf.mxu1  ;;  %v897_v4 = vadd.f32 %v888_v43, %v791_v1  ;;  %v702_v6 = vadd.f32 %v694_v45, %v592_v3 }
  0xd3   : > { %v1007_v7 = vadd.f32 %v998_v44, %v897_v4  ;;  %v792_v13 = vadd.f32 %v784_v46, %v702_v6 }
  0xd8   : > { %v890_v51 = vpop.f32.mrf.mxu2  ;;  %v697_v53 = vpop.f32.mrf.mxu0 }
  0xd9   : > { %v1000_v52 = vpop.f32.mrf.mxu3  ;;  %v787_v54 = vpop.f32.mrf.mxu1  ;;  %v703_v59 = vadd.f32 %v697_v53, %v593_v56  ;;  %v898_v18 = vadd.f32 %v890_v51, %v792_v13 }
  0xdb   : > { %v793_v2 = vadd.f32 %v787_v54, %v703_v59  ;;  %v1008_v23 = vadd.f32 %v1000_v52, %v898_v18 }
  0xe0   : > { %v893_v61 = vpop.f32.mrf.mxu2  ;;  %v699_v63 = vpop.f32.mrf.mxu0 }
  0xe1   : > { %v1003_v62 = vpop.f32.mrf.mxu3  ;;  %v789_v0 = vpop.f32.mrf.mxu1  ;;  %v899_v5 = vadd.f32 %v893_v61, %v793_v2 }
  0xe3   : > { %v1009_v8 = vadd.f32 %v1003_v62, %v899_v5 }
  0xe8   : > { %v895_v10 = vpop.f32.mrf.mxu2  ;;  %v1093_v20 = vpop.f32.mrf.mxu0 }
  0xe9   : > { %v1005_v11 = vpop.f32.mrf.mxu3  ;;  %v1098_v34 = vpop.f32.mrf.mxu1  ;;  %v1102_v14 = vadd.f32 %v1093_v20, %v1007_v7 }
  0xea   : > { %v1104_v17 = vadd.f32 %v1098_v34, %v1009_v8 }
  0xeb   : > { %v1109_v21 = vadd.f32 %v1708_v9, %v1102_v14 }
  0xec   : > { %v1111_v16 = vadd.f32 %v1708_v9, %v1104_v17 }
  0xed   : > { %v1112_v15 = vsub.f32 0.0, %v1109_v21 }
  0xee   : > { %v1114_v22 = vsub.f32 0.0, %v1111_v16 }
  0xef   : > { %v1115_v24 = vmul.f32 1.442695, %v1112_v15 }
  0xf0   : > { %v1119_v25 = vmul.f32 1.442695, %v1114_v22  ;;  %v1095_v26 = vpop.f32.mrf.mxu0 }
  0xf1   : > { %v1100_v27 = vpop.f32.mrf.mxu1  ;;  %1709 = vpow2.f32 %v1115_v24  ;;  %v1103_v28 = vadd.f32 %v1095_v26, %v1008_v23 }
  0xf2   : > { %1711 = vpow2.f32 %v1119_v25 }
  0xf3   : > { %v1110_v12 = vadd.f32 %v1708_v9, %v1103_v28 }
  0xf5   : > { %v1113_v19 = vsub.f32 0.0, %v1110_v12 }
  0xf7   : > { %v1710_v29 = vpop.eup %1709  ;;  %v1117_v31 = vmul.f32 1.442695, %v1113_v19 }
  0xf8   : > { %v1712_v32 = vpop.eup %1711  ;;  %v1121_v35 = vadd.f32 1.0, %v1710_v29 }
  0xf9   : > { %v1123_v36 = vadd.f32 1.0, %v1712_v32  ;;  %1713 = vpow2.f32 %v1117_v31 }
  0xfa   : > { %1715 = vrcp.f32 %v1121_v35 }
  0xfb   : > { %1717 = vrcp.f32 %v1123_v36 }
  0xff   : > { %v1714_v37 = vpop.eup %1713 }
 0x100   : > { %v1716_v38 = vpop.eup %1715  ;;  %v1122_v39 = vadd.f32 1.0, %v1714_v37 }
 0x101   : > { %v1718_v33 = vpop.eup %1717  ;;  %1127 = vst [vmem:[%s197_s27] sm:$0xff] %v1716_v38 }
 0x102   : > { %1129 = vst [vmem:[%s197_s27 + $0x10] sm:$0xff] %v1718_v33  ;;  %1719 = vrcp.f32 %v1122_v39 }
 0x108   : > { %v1720_v40 = vpop.eup %1719 }
 0x109   : > { %1128 = vst [vmem:[%s197_s27 + $0x8] sm:$0xff] %v1720_v40 }
 0x10a PF: > { %s14_s15 = sadd.s32 1, %s1727_s15  }
 0x10b   : > { %p11_p4 = scmp.ge.s32.totalorder %s14_s15, 4  }
 0x10d   :  { %13 = sbr.rel (!%p11_p4) target bundleno = 1 (0x1), region = 74 }

</bundles_post_ra>
